<compile_context>
chip_gen: v5e
topology: v5e:2x2
jax: 0.10.0
libtpu: 0.0.40
codegen_flags: <defaults>
</compile_context>

<pallas_src>
import jax
import jax.numpy as jnp
from jax import lax
from jax.experimental import pallas as pl
from jax.experimental.pallas import tpu as pltpu

# ---- small config consistent with SegmentLSTM (scaled down) -----------------
INPUT_DIM = 8
HIDDEN_DIM = 32
NUM_LAYERS = 2
EMBED_DIM = 2 * HIDDEN_DIM          # bidirectional LSTM -> attention embed dim
NUM_HEADS = 4
HEAD_DIM = EMBED_DIM // NUM_HEADS
EMBEDDING_DIM = 64
BATCH = 16                          # segments batched per call (review item 1)
SEQ = 8
B_TILE = 8                          # sublane-full per-grid-step batch tile
QKV_STRIDE = max(128, ((EMBED_DIM + 127) // 128) * 128)  # 128-lane aligned Q/K/V


# =============================================================================
# Single fused kernel: 2 x bi-LSTM layer + MHA + mean-pool + output projection
# =============================================================================
def _segment_lstm_kernel(x_ref,
                         wih1_ref, whh1_ref, b1_ref,
                         wih2_ref, whh2_ref, b2_ref,
                         wqkv_ref, bqkv_ref, wop_ref, bop_ref,
                         out_ref,
                         gin_ref, hraw_ref, y1_ref, y2_ref, ctx_ref):
    """x_ref: time-major (T, B_TILE, Din).
    Fused LSTM weights per layer (gate lane layout per gate k: [fwd H | bwd H]):
      wih: (Din, 8H), whh: (2H, 8H) block-diagonal, b: (1, 8H) = b_ih + b_hh.
    wqkv: (E, 3*QKV_STRIDE) with Q/K/V groups 128-lane aligned, bqkv matching.
    wop = Wo @ Wp (E, EMBEDDING_DIM), bop = bo @ Wp + bp (1, EMBEDDING_DIM).
    out_ref: (B_TILE, EMBEDDING_DIM)."""
    T, Bt, Din = x_ref.shape
    H = HIDDEN_DIM
    E = 2 * H            # bidirectional feature width
    G = 8 * H            # fused gate width (4 gates x [fwd|bwd])

    # Hoisted, loop-invariant lane masks / per-lane scale vectors.
    lane_g = lax.broadcasted_iota(jnp.int32, (Bt, G), 1)
    fwd_mask = (lane_g % (2 * H)) < H                       # forward-direction lanes
    g_mask = (lane_g >= 4 * H) & (lane_g < 6 * H)           # cell-candidate (tanh) lanes
    g_scale = jnp.where(g_mask, 2.0, 1.0).astype(jnp.float32)
    g_shift = jnp.where(g_mask, -1.0, 0.0).astype(jnp.float32)
    lane_e = lax.broadcasted_iota(jnp.int32, (Bt, E), 1)
    dir_mask = lane_e < H                                   # fwd half of [h_fwd|h_bwd]

    def run_layer(whh):
        """Serial bi-directional recurrence. gin_ref[t] already holds the input
        projection with backward-direction lanes pre-time-reversed, so the loop
        body is: load, one recurrent matmul, one fused EUP pass (tanh(x) ==
        2*sigmoid(2x)-1 on the g lanes), cell update, one contiguous store."""
        # TODO(synk): keep `whh` resident in the MXU across the T steps via
        # pltpu.matmul_push_rhs / matmul_acc_lhs / matmul_pop (verify the
        # 256-wide output spanning two passes on v5e's 128-wide MXUs first).
        h0 = jnp.zeros((Bt, E), jnp.float32)
        c0 = jnp.zeros((Bt, E), jnp.float32)

        def step(t, carry):
            h_cat, c_cat = carry
            gates = gin_ref[t] + jnp.dot(h_cat, whh,
                                         preferred_element_type=jnp.float32)
            s = jax.nn.sigmoid(gates * g_scale)       # single EUP pass, 256 lanes
            act = s * g_scale + g_shift               # tanh on g lanes, sigmoid else
            i_g = act[:, 0:2 * H]
            f_g = act[:, 2 * H:4 * H]
            g_g = act[:, 4 * H:6 * H]
            o_g = act[:, 6 * H:8 * H]
            c_new = f_g * c_cat + i_g * g_g
            h_new = o_g * jnp.tanh(c_new)
            hraw_ref[t] = h_new                       # raw order: [h_f(t) | h_b(T-1-t)]
            return h_new, c_new

        lax.fori_loop(0, T, step, (h0, c0), unroll=True)

    # ---------------- LSTM layer 1: hoisted flat input projection --------------
    x_flat = x_ref[...].reshape(T * Bt, Din)
    gin1 = (jnp.dot(x_flat, wih1_ref[...], preferred_element_type=jnp.float32)
            + b1_ref[...]).reshape(T, Bt, G)
    # Pre-reverse the backward-direction lanes once (off the critical path).
    for t in range(T):
        gin_ref[t] = jnp.where(fwd_mask, gin1[t], gin1[T - 1 - t])
    run_layer(whh1_ref[...])

    # Post-loop relayout: y1[t] = [h_f(t) | h_b(t)] (time-reverse the bwd half).
    for t in range(T):
        y1_ref[t] = jnp.where(dir_mask, hraw_ref[t], hraw_ref[T - 1 - t])

    # ---------------- LSTM layer 2 ----------------------------------------------
    y1_flat = y1_ref[...].reshape(T * Bt, E)
    gin2 = (jnp.dot(y1_flat, wih2_ref[...], preferred_element_type=jnp.float32)
            + b2_ref[...]).reshape(T, Bt, G)
    for t in range(T):
        gin_ref[t] = jnp.where(fwd_mask, gin2[t], gin2[T - 1 - t])
    run_layer(whh2_ref[...])

    # Post-loop relayout straight to batch-major (Bt, T, E) for attention.
    for t in range(T):
        y2_t = jnp.where(dir_mask, hraw_ref[t], hraw_ref[T - 1 - t])
        y2_ref[:, pl.ds(t, 1), :] = y2_t[:, None, :]

    # ------- multi-head self-attention: fused lane-aligned QKV + pool-before-PV --
    # TODO(synk): on v6e/v7x the hoisted matmul operands could be cast to bf16
    # (f32 accumulate); kept f32 here to stay within the 1e-3 reference check.
    qkv = (jnp.dot(y2_ref[...].reshape(Bt * T, E), wqkv_ref[...],
                   preferred_element_type=jnp.float32)
           + bqkv_ref[...]).reshape(Bt, T, 3 * QKV_STRIDE)
    q = qkv[..., 0:E]
    k = qkv[..., QKV_STRIDE:QKV_STRIDE + E]
    v = qkv[..., 2 * QKV_STRIDE:2 * QKV_STRIDE + E]

    scale = 1.0 / (HEAD_DIM ** 0.5)
    for hd in range(NUM_HEADS):
        sl = slice(hd * HEAD_DIM, (hd + 1) * HEAD_DIM)
        # Transposed scores (keys on sublanes, queries on lanes) so the softmax
        # reductions and the P@V contraction need no extra transposes.
        s_h = jnp.einsum('bkd,bqd->bkq', k[..., sl], q[..., sl],
                         preferred_element_type=jnp.float32) * scale   # (Bt,Tk,Tq)
        s_h = s_h - jnp.max(s_h, axis=1, keepdims=True)                # over keys
        e_h = jnp.exp(s_h)
        p_h = e_h * pl.reciprocal(jnp.sum(e_h, axis=1, keepdims=True),
                                  approx=True)                         # softmax(keys)
        # Mean over queries first (linear), then contract with V (VPU+XLU only).
        p_mean = jnp.mean(p_h, axis=2, keepdims=True)                  # (Bt, Tk, 1)
        ctx_h = jnp.sum(p_mean * v[..., sl], axis=1)                   # (Bt, HEAD_DIM)
        ctx_ref[:, sl] = ctx_h

    # Fused (attention out-proj @ final Linear) on the mean-pooled context.
    out_ref[...] = (jnp.dot(ctx_ref[...], wop_ref[...],
                            preferred_element_type=jnp.float32)
                    + bop_ref[...]).astype(out_ref.dtype)


# =============================================================================
# Wrapper: build fused weight layouts and launch over a parallel batch grid
# =============================================================================
def _fuse_bilstm_layer(layer):
    """Fuse fwd/bwd direction weights into the [per-gate: fwd|bwd] lane layout."""
    H = HIDDEN_DIM
    wih_f, whh_f, b_f = layer['f']['w_ih_T'], layer['f']['w_hh_T'], layer['f']['b']
    wih_b, whh_b, b_b = layer['b']['w_ih_T'], layer['b']['w_hh_T'], layer['b']['b']
    din = wih_f.shape[0]
    wih = jnp.zeros((din, 8 * H), jnp.float32)
    whh = jnp.zeros((2 * H, 8 * H), jnp.float32)        # block-diagonal recurrent weight
    bias = jnp.zeros((1, 8 * H), jnp.float32)
    for gk in range(4):                                  # gate order i, f, g, o
        src = slice(gk * H, (gk + 1) * H)
        dst_f = slice(gk * 2 * H, gk * 2 * H + H)
        dst_b = slice(gk * 2 * H + H, (gk + 1) * 2 * H)
        wih = wih.at[:, dst_f].set(wih_f[:, src])
        wih = wih.at[:, dst_b].set(wih_b[:, src])
        whh = whh.at[0:H, dst_f].set(whh_f[:, src])
        whh = whh.at[H:2 * H, dst_b].set(whh_b[:, src])
        bias = bias.at[:, dst_f].set(b_f[:, src])
        bias = bias.at[:, dst_b].set(b_b[:, src])
    return wih, whh, bias


def _full_spec(arr):
    zeros = (0,) * arr.ndim
    return pl.BlockSpec(arr.shape, lambda b: zeros)      # resident across the grid


def segment_lstm_forward(pose_sequence, params):
    B, T, _ = pose_sequence.shape
    assert B % B_TILE == 0, "batch must be a multiple of B_TILE"
    E = EMBED_DIM
    wih1, whh1, b1 = _fuse_bilstm_layer(params['lstm'][0])
    wih2, whh2, b2 = _fuse_bilstm_layer(params['lstm'][1])
    mha, proj = params['mha'], params['proj']

    # Fused QKV with each group starting on a 128-lane boundary (no lane shifts).
    wqkv = jnp.zeros((E, 3 * QKV_STRIDE), jnp.float32)
    bqkv = jnp.zeros((1, 3 * QKV_STRIDE), jnp.float32)
    for i, (wn, bn) in enumerate((('wq_T', 'bq'), ('wk_T', 'bk'), ('wv_T', 'bv'))):
        wqkv = wqkv.at[:, i * QKV_STRIDE:i * QKV_STRIDE + E].set(mha[wn])
        bqkv = bqkv.at[:, i * QKV_STRIDE:i * QKV_STRIDE + E].set(mha[bn])

    # Attention out-projection and the final Linear act on the mean-pooled
    # context back-to-back (eval mode) -> fold into a single affine map.
    wop = mha['wo_T'] @ proj['w_T']
    bop = mha['bo'] @ proj['w_T'] + proj['b']

    x_tm = jnp.transpose(pose_sequence, (1, 0, 2))       # time-major (T, B, Din)
    weights = (wih1, whh1, b1, wih2, whh2, b2, wqkv, bqkv, wop, bop)

    # VMEM budget per core: ~170 KiB scratch + <1 MiB weights -> comfortably
    # under the v7x 64 MiB physical / 32 MiB scoped-default limit.
    return pl.pallas_call(
        _segment_lstm_kernel,
        out_shape=jax.ShapeDtypeStruct((B, EMBEDDING_DIM), jnp.float32),
        grid_spec=pltpu.PrefetchScalarGridSpec(
            num_scalar_prefetch=0,
            grid=(B // B_TILE,),
            in_specs=[pl.BlockSpec((T, B_TILE, INPUT_DIM), lambda b: (0, b, 0))]
                     + [_full_spec(w) for w in weights],
            out_specs=pl.BlockSpec((B_TILE, EMBEDDING_DIM), lambda b: (b, 0)),
            scratch_shapes=[
                pltpu.VMEM((T, B_TILE, 8 * HIDDEN_DIM), jnp.float32),  # pre-reversed gates
                pltpu.VMEM((T, B_TILE, E), jnp.float32),  # raw per-step hiddens
                pltpu.VMEM((T, B_TILE, E), jnp.float32),  # layer-1 output, time-major
                pltpu.VMEM((B_TILE, T, E), jnp.float32),  # layer-2 output, batch-major
                pltpu.VMEM((B_TILE, E), jnp.float32),     # pooled per-head context
            ]),
        compiler_params=pltpu.CompilerParams(
            dimension_semantics=("parallel",)),           # v7x: both TCs participate
    )(x_tm, *weights)


# =============================================================================
# Deterministic parameter init (same shapes as the PyTorch module, scaled down)
# =============================================================================
def init_params(key):
    def uni(k, shape, scale):
        return jax.random.uniform(k, shape, jnp.float32, -scale, scale)

    kscale = 1.0 / (HIDDEN_DIM ** 0.5)
    lstm_layers = []
    din = INPUT_DIM
    for _ in range(NUM_LAYERS):
        key, *ks = jax.random.split(key, 9)
        layer = {}
        for name, kk in (('f', ks[0:4]), ('b', ks[4:8])):
            w_ih = uni(kk[0], (4 * HIDDEN_DIM, din), kscale)
            w_hh = uni(kk[1], (4 * HIDDEN_DIM, HIDDEN_DIM), kscale)
            b_ih = uni(kk[2], (4 * HIDDEN_DIM,), kscale)
            b_hh = uni(kk[3], (4 * HIDDEN_DIM,), kscale)
            layer[name] = dict(w_ih_T=w_ih.T, w_hh_T=w_hh.T,
                               b=(b_ih + b_hh)[None, :])
        lstm_layers.append(layer)
        din = 2 * HIDDEN_DIM

    key, *ks = jax.random.split(key, 9)
    escale = 1.0 / (EMBED_DIM ** 0.5)
    mha = dict(
        wq_T=uni(ks[0], (EMBED_DIM, EMBED_DIM), escale).T,
        wk_T=uni(ks[1], (EMBED_DIM, EMBED_DIM), escale).T,
        wv_T=uni(ks[2], (EMBED_DIM, EMBED_DIM), escale).T,
        bq=uni(ks[3], (EMBED_DIM,), escale)[None, :],
        bk=uni(ks[4], (EMBED_DIM,), escale)[None, :],
        bv=uni(ks[5], (EMBED_DIM,), escale)[None, :],
        wo_T=uni(ks[6], (EMBED_DIM, EMBED_DIM), escale).T,
        bo=uni(ks[7], (EMBED_DIM,), escale)[None, :],
    )

    key, k1, k2 = jax.random.split(key, 3)
    proj = dict(
        w_T=uni(k1, (EMBEDDING_DIM, EMBED_DIM), escale).T,
        b=uni(k2, (EMBEDDING_DIM,), escale)[None, :],
    )
    return dict(lstm=lstm_layers, mha=mha, proj=proj)


# =============================================================================
# Pure-JAX reference (PyTorch semantics) for a numerical sanity check
# =============================================================================
def _bilstm_layer_ref(x, layer):
    B, T, _ = x.shape
    H = HIDDEN_DIM

    def run(direction, rev):
        wi, wh, b = direction['w_ih_T'], direction['w_hh_T'], direction['b']
        h = jnp.zeros((B, H), jnp.float32)
        c = jnp.zeros((B, H), jnp.float32)
        outs = [None] * T
        ts = range(T - 1, -1, -1) if rev else range(T)
        for t in ts:
            gates = x[:, t, :] @ wi + h @ wh + b
            i = jax.nn.sigmoid(gates[:, 0 * H:1 * H])
            f = jax.nn.sigmoid(gates[:, 1 * H:2 * H])
            g = jnp.tanh(gates[:, 2 * H:3 * H])
            o = jax.nn.sigmoid(gates[:, 3 * H:4 * H])
            c = f * c + i * g
            h = o * jnp.tanh(c)
            outs[t] = h
        return jnp.stack(outs, axis=1)

    return jnp.concatenate([run(layer['f'], False), run(layer['b'], True)],
                           axis=-1)


def segment_lstm_ref(pose, params):
    h = pose
    for layer in params['lstm']:
        h = _bilstm_layer_ref(h, layer)
    mha, proj = params['mha'], params['proj']
    q = h @ mha['wq_T'] + mha['bq']
    k = h @ mha['wk_T'] + mha['bk']
    v = h @ mha['wv_T'] + mha['bv']
    scale = 1.0 / (HEAD_DIM ** 0.5)
    ctx = []
    for hd in range(NUM_HEADS):
        sl = slice(hd * HEAD_DIM, (hd + 1) * HEAD_DIM)
        s = jnp.einsum('bqd,bkd->bqk', q[:, :, sl], k[:, :, sl]) * scale
        p = jax.nn.softmax(s, axis=-1)
        ctx.append(jnp.einsum('bqk,bkd->bqd', p, v[:, :, sl]))
    ctx = jnp.concatenate(ctx, axis=-1)
    attended = ctx @ mha['wo_T'] + mha['bo']
    pooled = attended.mean(axis=1)
    return pooled @ proj['w_T'] + proj['b']


if __name__ == "__main__":
    key = jax.random.PRNGKey(0)
    kp, kx = jax.random.split(key)
    params = init_params(kp)
    pose = jax.random.normal(kx, (BATCH, SEQ, INPUT_DIM), jnp.float32)

    forward = jax.jit(segment_lstm_forward)
    emb = jax.block_until_ready(forward(pose, params))

    assert emb.shape == (BATCH, EMBEDDING_DIM)
    assert bool(jnp.all(jnp.isfinite(emb)))

    ref = segment_lstm_ref(pose, params)
    max_err = float(jnp.max(jnp.abs(emb - ref)))
    assert max_err < 1e-3, f"mismatch vs reference: {max_err}"

    print("KERNEL_OK")
</pallas_src>

<mosaic_0001>
module attributes {stable_mosaic.version = 11 : i64} {
  func.func @_segment_lstm_kernel(%arg0: i32, %arg1: memref<8x8x8xf32, #tpu.memory_space<vmem>>, %arg2: memref<8x256xf32, #tpu.memory_space<vmem>>, %arg3: memref<64x256xf32, #tpu.memory_space<vmem>>, %arg4: memref<1x256xf32, #tpu.memory_space<vmem>>, %arg5: memref<64x256xf32, #tpu.memory_space<vmem>>, %arg6: memref<64x256xf32, #tpu.memory_space<vmem>>, %arg7: memref<1x256xf32, #tpu.memory_space<vmem>>, %arg8: memref<64x384xf32, #tpu.memory_space<vmem>>, %arg9: memref<1x384xf32, #tpu.memory_space<vmem>>, %arg10: memref<64x64xf32, #tpu.memory_space<vmem>>, %arg11: memref<1x64xf32, #tpu.memory_space<vmem>>, %arg12: memref<8x64xf32, #tpu.memory_space<vmem>>, %arg13: memref<8x8x256xf32, #tpu.memory_space<vmem>>, %arg14: memref<8x8x64xf32, #tpu.memory_space<vmem>>, %arg15: memref<8x8x64xf32, #tpu.memory_space<vmem>>, %arg16: memref<8x8x64xf32, #tpu.memory_space<vmem>>, %arg17: memref<8x64xf32, #tpu.memory_space<vmem>>) attributes {dimension_semantics = [#tpu.dimension_semantics<parallel>], iteration_bounds = array<i64: 2>, scalar_prefetch = 0 : i64, scratch_operands = 5 : i64, tpu.core_type = #tpu.core_type<tc>, window_params = [{transform_indices = @transform_0, window_bounds = array<i64: 8, 8, 8>}, {pipeline_mode = #tpu.pipeline_mode<synchronous>, transform_indices = @transform_1, window_bounds = array<i64: 8, 256>}, {pipeline_mode = #tpu.pipeline_mode<synchronous>, transform_indices = @transform_2, window_bounds = array<i64: 64, 256>}, {pipeline_mode = #tpu.pipeline_mode<synchronous>, transform_indices = @transform_3, window_bounds = array<i64: 1, 256>}, {pipeline_mode = #tpu.pipeline_mode<synchronous>, transform_indices = @transform_4, window_bounds = array<i64: 64, 256>}, {pipeline_mode = #tpu.pipeline_mode<synchronous>, transform_indices = @transform_5, window_bounds = array<i64: 64, 256>}, {pipeline_mode = #tpu.pipeline_mode<synchronous>, transform_indices = @transform_6, window_bounds = array<i64: 1, 256>}, {pipeline_mode = #tpu.pipeline_mode<synchronous>, transform_indices = @transform_7, window_bounds = array<i64: 64, 384>}, {pipeline_mode = #tpu.pipeline_mode<synchronous>, transform_indices = @transform_8, window_bounds = array<i64: 1, 384>}, {pipeline_mode = #tpu.pipeline_mode<synchronous>, transform_indices = @transform_9, window_bounds = array<i64: 64, 64>}, {pipeline_mode = #tpu.pipeline_mode<synchronous>, transform_indices = @transform_10, window_bounds = array<i64: 1, 64>}, {transform_indices = @transform_11, window_bounds = array<i64: 8, 64>}]} {
    %0 = tpu.iota {dimensions = array<i32: 1>} : vector<8x256xi32>
    %c64_i32 = arith.constant 64 : i32
    %c0_i32 = arith.constant 0 : i32
    %1 = arith.cmpi eq, %c64_i32, %c0_i32 : i32
    %c1_i32 = arith.constant 1 : i32
    %2 = arith.select %1, %c1_i32, %c64_i32 : i32
    %3 = vector.broadcast %2 : i32 to vector<8x256xi32>
    %4 = arith.remsi %0, %3 : vector<8x256xi32>
    %c0_i32_0 = arith.constant 0 : i32
    %5 = vector.broadcast %c0_i32_0 : i32 to vector<8x256xi32>
    %6 = arith.cmpi ne, %4, %5 : vector<8x256xi32>
    %c0_i32_1 = arith.constant 0 : i32
    %7 = vector.broadcast %c0_i32_1 : i32 to vector<8x256xi32>
    %8 = arith.cmpi slt, %4, %7 : vector<8x256xi32>
    %c0_i32_2 = arith.constant 0 : i32
    %9 = arith.cmpi slt, %2, %c0_i32_2 : i32
    %10 = vector.broadcast %9 : i1 to vector<8x256xi1>
    %11 = vector.broadcast %10 : vector<8x256xi1> to vector<8x256xi1>
    %12 = arith.xori %8, %11 : vector<8x256xi1>
    %13 = arith.andi %12, %6 : vector<8x256xi1>
    %14 = vector.broadcast %2 : i32 to vector<8x256xi32>
    %15 = arith.addi %4, %14 : vector<8x256xi32>
    %16 = arith.select %13, %15, %4 : vector<8x256xi1>, vector<8x256xi32>
    %c32_i32 = arith.constant 32 : i32
    %17 = vector.broadcast %c32_i32 : i32 to vector<8x256xi32>
    %18 = arith.cmpi slt, %16, %17 : vector<8x256xi32>
    %c128_i32 = arith.constant 128 : i32
    %19 = vector.broadcast %c128_i32 : i32 to vector<8x256xi32>
    %20 = arith.cmpi sge, %0, %19 : vector<8x256xi32>
    %c192_i32 = arith.constant 192 : i32
    %21 = vector.broadcast %c192_i32 : i32 to vector<8x256xi32>
    %22 = arith.cmpi slt, %0, %21 : vector<8x256xi32>
    %23 = arith.andi %20, %22 : vector<8x256xi1>
    %cst = arith.constant 2.000000e+00 : f32
    %cst_3 = arith.constant 1.000000e+00 : f32
    %24 = vector.broadcast %cst : f32 to vector<8x256xf32>
    %25 = vector.broadcast %cst_3 : f32 to vector<8x256xf32>
    %26 = arith.select %23, %24, %25 : vector<8x256xi1>, vector<8x256xf32>
    %cst_4 = arith.constant -1.000000e+00 : f32
    %cst_5 = arith.constant 0.000000e+00 : f32
    %27 = vector.broadcast %cst_4 : f32 to vector<8x256xf32>
    %28 = vector.broadcast %cst_5 : f32 to vector<8x256xf32>
    %29 = arith.select %23, %27, %28 : vector<8x256xi1>, vector<8x256xf32>
    %30 = tpu.iota {dimensions = array<i32: 1>} : vector<8x64xi32>
    %c32_i32_6 = arith.constant 32 : i32
    %31 = vector.broadcast %c32_i32_6 : i32 to vector<8x64xi32>
    %32 = arith.cmpi slt, %30, %31 : vector<8x64xi32>
    %c0 = arith.constant 0 : index
    %c0_7 = arith.constant 0 : index
    %c0_8 = arith.constant 0 : index
    %33 = vector.load %arg1[%c0, %c0_7, %c0_8] : memref<8x8x8xf32, #tpu.memory_space<vmem>>, vector<8x8x8xf32>
    %34 = vector.shape_cast %33 : vector<8x8x8xf32> to vector<64x8xf32>
    %c0_9 = arith.constant 0 : index
    %c0_10 = arith.constant 0 : index
    %35 = vector.load %arg2[%c0_9, %c0_10] : memref<8x256xf32, #tpu.memory_space<vmem>>, vector<8x256xf32>
    %cst_11 = arith.constant dense<0.000000e+00> : vector<64x256xf32>
    %36 = tpu.matmul %34, %35, %cst_11 {dimension_numbers = #tpu.dot_dimension_numbers<[1], [0], [0], [1], [0, 0, 1, 1], [], []>} : vector<64x8xf32>, vector<8x256xf32>, vector<64x256xf32> -> vector<64x256xf32>
    %c0_12 = arith.constant 0 : index
    %c0_13 = arith.constant 0 : index
    %37 = vector.load %arg4[%c0_12, %c0_13] : memref<1x256xf32, #tpu.memory_space<vmem>>, vector<1x256xf32>
    %38 = vector.broadcast %37 : vector<1x256xf32> to vector<64x256xf32>
    %39 = arith.addf %36, %38 : vector<64x256xf32>
    %40 = vector.shape_cast %39 : vector<64x256xf32> to vector<8x8x256xf32>
    %41 = vector.extract_strided_slice %40 {offsets = [0, 0, 0], sizes = [1, 8, 256], strides = [1, 1, 1]} : vector<8x8x256xf32> to vector<1x8x256xf32>
    %42 = vector.shape_cast %41 : vector<1x8x256xf32> to vector<8x256xf32>
    %43 = vector.extract_strided_slice %40 {offsets = [7, 0, 0], sizes = [1, 8, 256], strides = [1, 1, 1]} : vector<8x8x256xf32> to vector<1x8x256xf32>
    %44 = vector.shape_cast %43 : vector<1x8x256xf32> to vector<8x256xf32>
    %45 = arith.select %18, %42, %44 : vector<8x256xi1>, vector<8x256xf32>
    %c0_14 = arith.constant 0 : index
    %c0_15 = arith.constant 0 : index
    %c0_16 = arith.constant 0 : index
    %46 = vector.load %arg13[%c0_14, %c0_15, %c0_16] : memref<8x8x256xf32, #tpu.memory_space<vmem>>, vector<1x8x256xf32>
    %47 = vector.shape_cast %46 : vector<1x8x256xf32> to vector<8x256xf32>
    %48 = vector.shape_cast %45 : vector<8x256xf32> to vector<1x8x256xf32>
    tpu.vector_store %arg13[%c0_14, %c0_15, %c0_16], %48 {strides = array<i32>} : memref<8x8x256xf32, #tpu.memory_space<vmem>>, vector<1x8x256xf32>,
    %49 = vector.extract_strided_slice %40 {offsets = [1, 0, 0], sizes = [1, 8, 256], strides = [1, 1, 1]} : vector<8x8x256xf32> to vector<1x8x256xf32>
    %50 = vector.shape_cast %49 : vector<1x8x256xf32> to vector<8x256xf32>
    %51 = vector.extract_strided_slice %40 {offsets = [6, 0, 0], sizes = [1, 8, 256], strides = [1, 1, 1]} : vector<8x8x256xf32> to vector<1x8x256xf32>
    %52 = vector.shape_cast %51 : vector<1x8x256xf32> to vector<8x256xf32>
    %53 = arith.select %18, %50, %52 : vector<8x256xi1>, vector<8x256xf32>
    %c1 = arith.constant 1 : index
    %c0_17 = arith.constant 0 : index
    %c0_18 = arith.constant 0 : index
    %54 = vector.load %arg13[%c1, %c0_17, %c0_18] : memref<8x8x256xf32, #tpu.memory_space<vmem>>, vector<1x8x256xf32>
    %55 = vector.shape_cast %54 : vector<1x8x256xf32> to vector<8x256xf32>
    %56 = vector.shape_cast %53 : vector<8x256xf32> to vector<1x8x256xf32>
    tpu.vector_store %arg13[%c1, %c0_17, %c0_18], %56 {strides = array<i32>} : memref<8x8x256xf32, #tpu.memory_space<vmem>>, vector<1x8x256xf32>,
    %57 = vector.extract_strided_slice %40 {offsets = [2, 0, 0], sizes = [1, 8, 256], strides = [1, 1, 1]} : vector<8x8x256xf32> to vector<1x8x256xf32>
    %58 = vector.shape_cast %57 : vector<1x8x256xf32> to vector<8x256xf32>
    %59 = vector.extract_strided_slice %40 {offsets = [5, 0, 0], sizes = [1, 8, 256], strides = [1, 1, 1]} : vector<8x8x256xf32> to vector<1x8x256xf32>
    %60 = vector.shape_cast %59 : vector<1x8x256xf32> to vector<8x256xf32>
    %61 = arith.select %18, %58, %60 : vector<8x256xi1>, vector<8x256xf32>
    %c2 = arith.constant 2 : index
    %c0_19 = arith.constant 0 : index
    %c0_20 = arith.constant 0 : index
    %62 = vector.load %arg13[%c2, %c0_19, %c0_20] : memref<8x8x256xf32, #tpu.memory_space<vmem>>, vector<1x8x256xf32>
    %63 = vector.shape_cast %62 : vector<1x8x256xf32> to vector<8x256xf32>
    %64 = vector.shape_cast %61 : vector<8x256xf32> to vector<1x8x256xf32>
    tpu.vector_store %arg13[%c2, %c0_19, %c0_20], %64 {strides = array<i32>} : memref<8x8x256xf32, #tpu.memory_space<vmem>>, vector<1x8x256xf32>,
    %65 = vector.extract_strided_slice %40 {offsets = [3, 0, 0], sizes = [1, 8, 256], strides = [1, 1, 1]} : vector<8x8x256xf32> to vector<1x8x256xf32>
    %66 = vector.shape_cast %65 : vector<1x8x256xf32> to vector<8x256xf32>
    %67 = vector.extract_strided_slice %40 {offsets = [4, 0, 0], sizes = [1, 8, 256], strides = [1, 1, 1]} : vector<8x8x256xf32> to vector<1x8x256xf32>
    %68 = vector.shape_cast %67 : vector<1x8x256xf32> to vector<8x256xf32>
    %69 = arith.select %18, %66, %68 : vector<8x256xi1>, vector<8x256xf32>
    %c3 = arith.constant 3 : index
    %c0_21 = arith.constant 0 : index
    %c0_22 = arith.constant 0 : index
    %70 = vector.load %arg13[%c3, %c0_21, %c0_22] : memref<8x8x256xf32, #tpu.memory_space<vmem>>, vector<1x8x256xf32>
    %71 = vector.shape_cast %70 : vector<1x8x256xf32> to vector<8x256xf32>
    %72 = vector.shape_cast %69 : vector<8x256xf32> to vector<1x8x256xf32>
    tpu.vector_store %arg13[%c3, %c0_21, %c0_22], %72 {strides = array<i32>} : memref<8x8x256xf32, #tpu.memory_space<vmem>>, vector<1x8x256xf32>,
    %73 = vector.extract_strided_slice %40 {offsets = [4, 0, 0], sizes = [1, 8, 256], strides = [1, 1, 1]} : vector<8x8x256xf32> to vector<1x8x256xf32>
    %74 = vector.shape_cast %73 : vector<1x8x256xf32> to vector<8x256xf32>
    %75 = vector.extract_strided_slice %40 {offsets = [3, 0, 0], sizes = [1, 8, 256], strides = [1, 1, 1]} : vector<8x8x256xf32> to vector<1x8x256xf32>
    %76 = vector.shape_cast %75 : vector<1x8x256xf32> to vector<8x256xf32>
    %77 = arith.select %18, %74, %76 : vector<8x256xi1>, vector<8x256xf32>
    %c4 = arith.constant 4 : index
    %c0_23 = arith.constant 0 : index
    %c0_24 = arith.constant 0 : index
    %78 = vector.load %arg13[%c4, %c0_23, %c0_24] : memref<8x8x256xf32, #tpu.memory_space<vmem>>, vector<1x8x256xf32>
    %79 = vector.shape_cast %78 : vector<1x8x256xf32> to vector<8x256xf32>
    %80 = vector.shape_cast %77 : vector<8x256xf32> to vector<1x8x256xf32>
    tpu.vector_store %arg13[%c4, %c0_23, %c0_24], %80 {strides = array<i32>} : memref<8x8x256xf32, #tpu.memory_space<vmem>>, vector<1x8x256xf32>,
    %81 = vector.extract_strided_slice %40 {offsets = [5, 0, 0], sizes = [1, 8, 256], strides = [1, 1, 1]} : vector<8x8x256xf32> to vector<1x8x256xf32>
    %82 = vector.shape_cast %81 : vector<1x8x256xf32> to vector<8x256xf32>
    %83 = vector.extract_strided_slice %40 {offsets = [2, 0, 0], sizes = [1, 8, 256], strides = [1, 1, 1]} : vector<8x8x256xf32> to vector<1x8x256xf32>
    %84 = vector.shape_cast %83 : vector<1x8x256xf32> to vector<8x256xf32>
    %85 = arith.select %18, %82, %84 : vector<8x256xi1>, vector<8x256xf32>
    %c5 = arith.constant 5 : index
    %c0_25 = arith.constant 0 : index
    %c0_26 = arith.constant 0 : index
    %86 = vector.load %arg13[%c5, %c0_25, %c0_26] : memref<8x8x256xf32, #tpu.memory_space<vmem>>, vector<1x8x256xf32>
    %87 = vector.shape_cast %86 : vector<1x8x256xf32> to vector<8x256xf32>
    %88 = vector.shape_cast %85 : vector<8x256xf32> to vector<1x8x256xf32>
    tpu.vector_store %arg13[%c5, %c0_25, %c0_26], %88 {strides = array<i32>} : memref<8x8x256xf32, #tpu.memory_space<vmem>>, vector<1x8x256xf32>,
    %89 = vector.extract_strided_slice %40 {offsets = [6, 0, 0], sizes = [1, 8, 256], strides = [1, 1, 1]} : vector<8x8x256xf32> to vector<1x8x256xf32>
    %90 = vector.shape_cast %89 : vector<1x8x256xf32> to vector<8x256xf32>
    %91 = vector.extract_strided_slice %40 {offsets = [1, 0, 0], sizes = [1, 8, 256], strides = [1, 1, 1]} : vector<8x8x256xf32> to vector<1x8x256xf32>
    %92 = vector.shape_cast %91 : vector<1x8x256xf32> to vector<8x256xf32>
    %93 = arith.select %18, %90, %92 : vector<8x256xi1>, vector<8x256xf32>
    %c6 = arith.constant 6 : index
    %c0_27 = arith.constant 0 : index
    %c0_28 = arith.constant 0 : index
    %94 = vector.load %arg13[%c6, %c0_27, %c0_28] : memref<8x8x256xf32, #tpu.memory_space<vmem>>, vector<1x8x256xf32>
    %95 = vector.shape_cast %94 : vector<1x8x256xf32> to vector<8x256xf32>
    %96 = vector.shape_cast %93 : vector<8x256xf32> to vector<1x8x256xf32>
    tpu.vector_store %arg13[%c6, %c0_27, %c0_28], %96 {strides = array<i32>} : memref<8x8x256xf32, #tpu.memory_space<vmem>>, vector<1x8x256xf32>,
    %97 = vector.extract_strided_slice %40 {offsets = [7, 0, 0], sizes = [1, 8, 256], strides = [1, 1, 1]} : vector<8x8x256xf32> to vector<1x8x256xf32>
    %98 = vector.shape_cast %97 : vector<1x8x256xf32> to vector<8x256xf32>
    %99 = vector.extract_strided_slice %40 {offsets = [0, 0, 0], sizes = [1, 8, 256], strides = [1, 1, 1]} : vector<8x8x256xf32> to vector<1x8x256xf32>
    %100 = vector.shape_cast %99 : vector<1x8x256xf32> to vector<8x256xf32>
    %101 = arith.select %18, %98, %100 : vector<8x256xi1>, vector<8x256xf32>
    %c7 = arith.constant 7 : index
    %c0_29 = arith.constant 0 : index
    %c0_30 = arith.constant 0 : index
    %102 = vector.load %arg13[%c7, %c0_29, %c0_30] : memref<8x8x256xf32, #tpu.memory_space<vmem>>, vector<1x8x256xf32>
    %103 = vector.shape_cast %102 : vector<1x8x256xf32> to vector<8x256xf32>
    %104 = vector.shape_cast %101 : vector<8x256xf32> to vector<1x8x256xf32>
    tpu.vector_store %arg13[%c7, %c0_29, %c0_30], %104 {strides = array<i32>} : memref<8x8x256xf32, #tpu.memory_space<vmem>>, vector<1x8x256xf32>,
    %c0_31 = arith.constant 0 : index
    %c0_32 = arith.constant 0 : index
    %105 = vector.load %arg3[%c0_31, %c0_32] : memref<64x256xf32, #tpu.memory_space<vmem>>, vector<64x256xf32>
    %cst_33 = arith.constant 0.000000e+00 : f32
    %106 = vector.broadcast %cst_33 : f32 to vector<8x64xf32>
    %cst_34 = arith.constant 0.000000e+00 : f32
    %107 = vector.broadcast %cst_34 : f32 to vector<8x64xf32>
    %c0_i32_35 = arith.constant 0 : i32
    %108 = arith.index_cast %c0_i32_35 : i32 to index
    %c0_36 = arith.constant 0 : index
    %c0_37 = arith.constant 0 : index
    %109 = vector.load %arg13[%108, %c0_36, %c0_37] : memref<8x8x256xf32, #tpu.memory_space<vmem>>, vector<1x8x256xf32>
    %110 = vector.shape_cast %109 : vector<1x8x256xf32> to vector<8x256xf32>
    %cst_38 = arith.constant dense<0.000000e+00> : vector<8x256xf32>
    %111 = tpu.matmul %106, %105, %cst_38 {dimension_numbers = #tpu.dot_dimension_numbers<[1], [0], [0], [1], [0, 0, 1, 1], [], []>} : vector<8x64xf32>, vector<64x256xf32>, vector<8x256xf32> -> vector<8x256xf32>
    %112 = arith.addf %110, %111 : vector<8x256xf32>
    %113 = arith.mulf %112, %26 : vector<8x256xf32>
    %114 = arith.negf %113 : vector<8x256xf32>
    %115 = math.exp %114 : vector<8x256xf32>
    %cst_39 = arith.constant 1.000000e+00 : f32
    %116 = vector.broadcast %cst_39 : f32 to vector<8x256xf32>
    %117 = arith.addf %116, %115 : vector<8x256xf32>
    %118 = arith.divf %116, %117 : vector<8x256xf32>
    %119 = arith.mulf %118, %26 : vector<8x256xf32>
    %120 = arith.addf %119, %29 : vector<8x256xf32>
    %121 = vector.extract_strided_slice %120 {offsets = [0, 0], sizes = [8, 64], strides = [1, 1]} : vector<8x256xf32> to vector<8x64xf32>
    %122 = vector.extract_strided_slice %120 {offsets = [0, 64], sizes = [8, 64], strides = [1, 1]} : vector<8x256xf32> to vector<8x64xf32>
    %123 = vector.extract_strided_slice %120 {offsets = [0, 128], sizes = [8, 64], strides = [1, 1]} : vector<8x256xf32> to vector<8x64xf32>
    %124 = vector.extract_strided_slice %120 {offsets = [0, 192], sizes = [8, 64], strides = [1, 1]} : vector<8x256xf32> to vector<8x64xf32>
    %125 = arith.mulf %122, %107 : vector<8x64xf32>
    %126 = arith.mulf %121, %123 : vector<8x64xf32>
    %127 = arith.addf %125, %126 : vector<8x64xf32>
    %128 = math.tanh %127 : vector<8x64xf32>
    %129 = arith.mulf %124, %128 : vector<8x64xf32>
    %130 = arith.index_cast %c0_i32_35 : i32 to index
    %c0_40 = arith.constant 0 : index
    %c0_41 = arith.constant 0 : index
    %131 = vector.load %arg14[%130, %c0_40, %c0_41] : memref<8x8x64xf32, #tpu.memory_space<vmem>>, vector<1x8x64xf32>
    %132 = vector.shape_cast %131 : vector<1x8x64xf32> to vector<8x64xf32>
    %133 = vector.shape_cast %129 : vector<8x64xf32> to vector<1x8x64xf32>
    tpu.vector_store %arg14[%130, %c0_40, %c0_41], %133 {strides = array<i32>} : memref<8x8x64xf32, #tpu.memory_space<vmem>>, vector<1x8x64xf32>,
    %c1_i32_42 = arith.constant 1 : i32
    %134 = arith.index_cast %c1_i32_42 : i32 to index
    %c0_43 = arith.constant 0 : index
    %c0_44 = arith.constant 0 : index
    %135 = vector.load %arg13[%134, %c0_43, %c0_44] : memref<8x8x256xf32, #tpu.memory_space<vmem>>, vector<1x8x256xf32>
    %136 = vector.shape_cast %135 : vector<1x8x256xf32> to vector<8x256xf32>
    %cst_45 = arith.constant dense<0.000000e+00> : vector<8x256xf32>
    %137 = tpu.matmul %129, %105, %cst_45 {dimension_numbers = #tpu.dot_dimension_numbers<[1], [0], [0], [1], [0, 0, 1, 1], [], []>} : vector<8x64xf32>, vector<64x256xf32>, vector<8x256xf32> -> vector<8x256xf32>
    %138 = arith.addf %136, %137 : vector<8x256xf32>
    %139 = arith.mulf %138, %26 : vector<8x256xf32>
    %140 = arith.negf %139 : vector<8x256xf32>
    %141 = math.exp %140 : vector<8x256xf32>
    %cst_46 = arith.constant 1.000000e+00 : f32
    %142 = vector.broadcast %cst_46 : f32 to vector<8x256xf32>
    %143 = arith.addf %142, %141 : vector<8x256xf32>
    %144 = arith.divf %142, %143 : vector<8x256xf32>
    %145 = arith.mulf %144, %26 : vector<8x256xf32>
    %146 = arith.addf %145, %29 : vector<8x256xf32>
    %147 = vector.extract_strided_slice %146 {offsets = [0, 0], sizes = [8, 64], strides = [1, 1]} : vector<8x256xf32> to vector<8x64xf32>
    %148 = vector.extract_strided_slice %146 {offsets = [0, 64], sizes = [8, 64], strides = [1, 1]} : vector<8x256xf32> to vector<8x64xf32>
    %149 = vector.extract_strided_slice %146 {offsets = [0, 128], sizes = [8, 64], strides = [1, 1]} : vector<8x256xf32> to vector<8x64xf32>
    %150 = vector.extract_strided_slice %146 {offsets = [0, 192], sizes = [8, 64], strides = [1, 1]} : vector<8x256xf32> to vector<8x64xf32>
    %151 = arith.mulf %148, %127 : vector<8x64xf32>
    %152 = arith.mulf %147, %149 : vector<8x64xf32>
    %153 = arith.addf %151, %152 : vector<8x64xf32>
    %154 = math.tanh %153 : vector<8x64xf32>
    %155 = arith.mulf %150, %154 : vector<8x64xf32>
    %156 = arith.index_cast %c1_i32_42 : i32 to index
    %c0_47 = arith.constant 0 : index
    %c0_48 = arith.constant 0 : index
    %157 = vector.load %arg14[%156, %c0_47, %c0_48] : memref<8x8x64xf32, #tpu.memory_space<vmem>>, vector<1x8x64xf32>
    %158 = vector.shape_cast %157 : vector<1x8x64xf32> to vector<8x64xf32>
    %159 = vector.shape_cast %155 : vector<8x64xf32> to vector<1x8x64xf32>
    tpu.vector_store %arg14[%156, %c0_47, %c0_48], %159 {strides = array<i32>} : memref<8x8x64xf32, #tpu.memory_space<vmem>>, vector<1x8x64xf32>,
    %c2_i32 = arith.constant 2 : i32
    %160 = arith.index_cast %c2_i32 : i32 to index
    %c0_49 = arith.constant 0 : index
    %c0_50 = arith.constant 0 : index
    %161 = vector.load %arg13[%160, %c0_49, %c0_50] : memref<8x8x256xf32, #tpu.memory_space<vmem>>, vector<1x8x256xf32>
    %162 = vector.shape_cast %161 : vector<1x8x256xf32> to vector<8x256xf32>
    %cst_51 = arith.constant dense<0.000000e+00> : vector<8x256xf32>
    %163 = tpu.matmul %155, %105, %cst_51 {dimension_numbers = #tpu.dot_dimension_numbers<[1], [0], [0], [1], [0, 0, 1, 1], [], []>} : vector<8x64xf32>, vector<64x256xf32>, vector<8x256xf32> -> vector<8x256xf32>
    %164 = arith.addf %162, %163 : vector<8x256xf32>
    %165 = arith.mulf %164, %26 : vector<8x256xf32>
    %166 = arith.negf %165 : vector<8x256xf32>
    %167 = math.exp %166 : vector<8x256xf32>
    %cst_52 = arith.constant 1.000000e+00 : f32
    %168 = vector.broadcast %cst_52 : f32 to vector<8x256xf32>
    %169 = arith.addf %168, %167 : vector<8x256xf32>
    %170 = arith.divf %168, %169 : vector<8x256xf32>
    %171 = arith.mulf %170, %26 : vector<8x256xf32>
    %172 = arith.addf %171, %29 : vector<8x256xf32>
    %173 = vector.extract_strided_slice %172 {offsets = [0, 0], sizes = [8, 64], strides = [1, 1]} : vector<8x256xf32> to vector<8x64xf32>
    %174 = vector.extract_strided_slice %172 {offsets = [0, 64], sizes = [8, 64], strides = [1, 1]} : vector<8x256xf32> to vector<8x64xf32>
    %175 = vector.extract_strided_slice %172 {offsets = [0, 128], sizes = [8, 64], strides = [1, 1]} : vector<8x256xf32> to vector<8x64xf32>
    %176 = vector.extract_strided_slice %172 {offsets = [0, 192], sizes = [8, 64], strides = [1, 1]} : vector<8x256xf32> to vector<8x64xf32>
    %177 = arith.mulf %174, %153 : vector<8x64xf32>
    %178 = arith.mulf %173, %175 : vector<8x64xf32>
    %179 = arith.addf %177, %178 : vector<8x64xf32>
    %180 = math.tanh %179 : vector<8x64xf32>
    %181 = arith.mulf %176, %180 : vector<8x64xf32>
    %182 = arith.index_cast %c2_i32 : i32 to index
    %c0_53 = arith.constant 0 : index
    %c0_54 = arith.constant 0 : index
    %183 = vector.load %arg14[%182, %c0_53, %c0_54] : memref<8x8x64xf32, #tpu.memory_space<vmem>>, vector<1x8x64xf32>
    %184 = vector.shape_cast %183 : vector<1x8x64xf32> to vector<8x64xf32>
    %185 = vector.shape_cast %181 : vector<8x64xf32> to vector<1x8x64xf32>
    tpu.vector_store %arg14[%182, %c0_53, %c0_54], %185 {strides = array<i32>} : memref<8x8x64xf32, #tpu.memory_space<vmem>>, vector<1x8x64xf32>,
    %c3_i32 = arith.constant 3 : i32
    %186 = arith.index_cast %c3_i32 : i32 to index
    %c0_55 = arith.constant 0 : index
    %c0_56 = arith.constant 0 : index
    %187 = vector.load %arg13[%186, %c0_55, %c0_56] : memref<8x8x256xf32, #tpu.memory_space<vmem>>, vector<1x8x256xf32>
    %188 = vector.shape_cast %187 : vector<1x8x256xf32> to vector<8x256xf32>
    %cst_57 = arith.constant dense<0.000000e+00> : vector<8x256xf32>
    %189 = tpu.matmul %181, %105, %cst_57 {dimension_numbers = #tpu.dot_dimension_numbers<[1], [0], [0], [1], [0, 0, 1, 1], [], []>} : vector<8x64xf32>, vector<64x256xf32>, vector<8x256xf32> -> vector<8x256xf32>
    %190 = arith.addf %188, %189 : vector<8x256xf32>
    %191 = arith.mulf %190, %26 : vector<8x256xf32>
    %192 = arith.negf %191 : vector<8x256xf32>
    %193 = math.exp %192 : vector<8x256xf32>
    %cst_58 = arith.constant 1.000000e+00 : f32
    %194 = vector.broadcast %cst_58 : f32 to vector<8x256xf32>
    %195 = arith.addf %194, %193 : vector<8x256xf32>
    %196 = arith.divf %194, %195 : vector<8x256xf32>
    %197 = arith.mulf %196, %26 : vector<8x256xf32>
    %198 = arith.addf %197, %29 : vector<8x256xf32>
    %199 = vector.extract_strided_slice %198 {offsets = [0, 0], sizes = [8, 64], strides = [1, 1]} : vector<8x256xf32> to vector<8x64xf32>
    %200 = vector.extract_strided_slice %198 {offsets = [0, 64], sizes = [8, 64], strides = [1, 1]} : vector<8x256xf32> to vector<8x64xf32>
    %201 = vector.extract_strided_slice %198 {offsets = [0, 128], sizes = [8, 64], strides = [1, 1]} : vector<8x256xf32> to vector<8x64xf32>
    %202 = vector.extract_strided_slice %198 {offsets = [0, 192], sizes = [8, 64], strides = [1, 1]} : vector<8x256xf32> to vector<8x64xf32>
    %203 = arith.mulf %200, %179 : vector<8x64xf32>
    %204 = arith.mulf %199, %201 : vector<8x64xf32>
    %205 = arith.addf %203, %204 : vector<8x64xf32>
    %206 = math.tanh %205 : vector<8x64xf32>
    %207 = arith.mulf %202, %206 : vector<8x64xf32>
    %208 = arith.index_cast %c3_i32 : i32 to index
    %c0_59 = arith.constant 0 : index
    %c0_60 = arith.constant 0 : index
    %209 = vector.load %arg14[%208, %c0_59, %c0_60] : memref<8x8x64xf32, #tpu.memory_space<vmem>>, vector<1x8x64xf32>
    %210 = vector.shape_cast %209 : vector<1x8x64xf32> to vector<8x64xf32>
    %211 = vector.shape_cast %207 : vector<8x64xf32> to vector<1x8x64xf32>
    tpu.vector_store %arg14[%208, %c0_59, %c0_60], %211 {strides = array<i32>} : memref<8x8x64xf32, #tpu.memory_space<vmem>>, vector<1x8x64xf32>,
    %c4_i32 = arith.constant 4 : i32
    %212 = arith.index_cast %c4_i32 : i32 to index
    %c0_61 = arith.constant 0 : index
    %c0_62 = arith.constant 0 : index
    %213 = vector.load %arg13[%212, %c0_61, %c0_62] : memref<8x8x256xf32, #tpu.memory_space<vmem>>, vector<1x8x256xf32>
    %214 = vector.shape_cast %213 : vector<1x8x256xf32> to vector<8x256xf32>
    %cst_63 = arith.constant dense<0.000000e+00> : vector<8x256xf32>
    %215 = tpu.matmul %207, %105, %cst_63 {dimension_numbers = #tpu.dot_dimension_numbers<[1], [0], [0], [1], [0, 0, 1, 1], [], []>} : vector<8x64xf32>, vector<64x256xf32>, vector<8x256xf32> -> vector<8x256xf32>
    %216 = arith.addf %214, %215 : vector<8x256xf32>
    %217 = arith.mulf %216, %26 : vector<8x256xf32>
    %218 = arith.negf %217 : vector<8x256xf32>
    %219 = math.exp %218 : vector<8x256xf32>
    %cst_64 = arith.constant 1.000000e+00 : f32
    %220 = vector.broadcast %cst_64 : f32 to vector<8x256xf32>
    %221 = arith.addf %220, %219 : vector<8x256xf32>
    %222 = arith.divf %220, %221 : vector<8x256xf32>
    %223 = arith.mulf %222, %26 : vector<8x256xf32>
    %224 = arith.addf %223, %29 : vector<8x256xf32>
    %225 = vector.extract_strided_slice %224 {offsets = [0, 0], sizes = [8, 64], strides = [1, 1]} : vector<8x256xf32> to vector<8x64xf32>
    %226 = vector.extract_strided_slice %224 {offsets = [0, 64], sizes = [8, 64], strides = [1, 1]} : vector<8x256xf32> to vector<8x64xf32>
    %227 = vector.extract_strided_slice %224 {offsets = [0, 128], sizes = [8, 64], strides = [1, 1]} : vector<8x256xf32> to vector<8x64xf32>
    %228 = vector.extract_strided_slice %224 {offsets = [0, 192], sizes = [8, 64], strides = [1, 1]} : vector<8x256xf32> to vector<8x64xf32>
    %229 = arith.mulf %226, %205 : vector<8x64xf32>
    %230 = arith.mulf %225, %227 : vector<8x64xf32>
    %231 = arith.addf %229, %230 : vector<8x64xf32>
    %232 = math.tanh %231 : vector<8x64xf32>
    %233 = arith.mulf %228, %232 : vector<8x64xf32>
    %234 = arith.index_cast %c4_i32 : i32 to index
    %c0_65 = arith.constant 0 : index
    %c0_66 = arith.constant 0 : index
    %235 = vector.load %arg14[%234, %c0_65, %c0_66] : memref<8x8x64xf32, #tpu.memory_space<vmem>>, vector<1x8x64xf32>
    %236 = vector.shape_cast %235 : vector<1x8x64xf32> to vector<8x64xf32>
    %237 = vector.shape_cast %233 : vector<8x64xf32> to vector<1x8x64xf32>
    tpu.vector_store %arg14[%234, %c0_65, %c0_66], %237 {strides = array<i32>} : memref<8x8x64xf32, #tpu.memory_space<vmem>>, vector<1x8x64xf32>,
    %c5_i32 = arith.constant 5 : i32
    %238 = arith.index_cast %c5_i32 : i32 to index
    %c0_67 = arith.constant 0 : index
    %c0_68 = arith.constant 0 : index
    %239 = vector.load %arg13[%238, %c0_67, %c0_68] : memref<8x8x256xf32, #tpu.memory_space<vmem>>, vector<1x8x256xf32>
    %240 = vector.shape_cast %239 : vector<1x8x256xf32> to vector<8x256xf32>
    %cst_69 = arith.constant dense<0.000000e+00> : vector<8x256xf32>
    %241 = tpu.matmul %233, %105, %cst_69 {dimension_numbers = #tpu.dot_dimension_numbers<[1], [0], [0], [1], [0, 0, 1, 1], [], []>} : vector<8x64xf32>, vector<64x256xf32>, vector<8x256xf32> -> vector<8x256xf32>
    %242 = arith.addf %240, %241 : vector<8x256xf32>
    %243 = arith.mulf %242, %26 : vector<8x256xf32>
    %244 = arith.negf %243 : vector<8x256xf32>
    %245 = math.exp %244 : vector<8x256xf32>
    %cst_70 = arith.constant 1.000000e+00 : f32
    %246 = vector.broadcast %cst_70 : f32 to vector<8x256xf32>
    %247 = arith.addf %246, %245 : vector<8x256xf32>
    %248 = arith.divf %246, %247 : vector<8x256xf32>
    %249 = arith.mulf %248, %26 : vector<8x256xf32>
    %250 = arith.addf %249, %29 : vector<8x256xf32>
    %251 = vector.extract_strided_slice %250 {offsets = [0, 0], sizes = [8, 64], strides = [1, 1]} : vector<8x256xf32> to vector<8x64xf32>
    %252 = vector.extract_strided_slice %250 {offsets = [0, 64], sizes = [8, 64], strides = [1, 1]} : vector<8x256xf32> to vector<8x64xf32>
    %253 = vector.extract_strided_slice %250 {offsets = [0, 128], sizes = [8, 64], strides = [1, 1]} : vector<8x256xf32> to vector<8x64xf32>
    %254 = vector.extract_strided_slice %250 {offsets = [0, 192], sizes = [8, 64], strides = [1, 1]} : vector<8x256xf32> to vector<8x64xf32>
    %255 = arith.mulf %252, %231 : vector<8x64xf32>
    %256 = arith.mulf %251, %253 : vector<8x64xf32>
    %257 = arith.addf %255, %256 : vector<8x64xf32>
    %258 = math.tanh %257 : vector<8x64xf32>
    %259 = arith.mulf %254, %258 : vector<8x64xf32>
    %260 = arith.index_cast %c5_i32 : i32 to index
    %c0_71 = arith.constant 0 : index
    %c0_72 = arith.constant 0 : index
    %261 = vector.load %arg14[%260, %c0_71, %c0_72] : memref<8x8x64xf32, #tpu.memory_space<vmem>>, vector<1x8x64xf32>
    %262 = vector.shape_cast %261 : vector<1x8x64xf32> to vector<8x64xf32>
    %263 = vector.shape_cast %259 : vector<8x64xf32> to vector<1x8x64xf32>
    tpu.vector_store %arg14[%260, %c0_71, %c0_72], %263 {strides = array<i32>} : memref<8x8x64xf32, #tpu.memory_space<vmem>>, vector<1x8x64xf32>,
    %c6_i32 = arith.constant 6 : i32
    %264 = arith.index_cast %c6_i32 : i32 to index
    %c0_73 = arith.constant 0 : index
    %c0_74 = arith.constant 0 : index
    %265 = vector.load %arg13[%264, %c0_73, %c0_74] : memref<8x8x256xf32, #tpu.memory_space<vmem>>, vector<1x8x256xf32>
    %266 = vector.shape_cast %265 : vector<1x8x256xf32> to vector<8x256xf32>
    %cst_75 = arith.constant dense<0.000000e+00> : vector<8x256xf32>
    %267 = tpu.matmul %259, %105, %cst_75 {dimension_numbers = #tpu.dot_dimension_numbers<[1], [0], [0], [1], [0, 0, 1, 1], [], []>} : vector<8x64xf32>, vector<64x256xf32>, vector<8x256xf32> -> vector<8x256xf32>
    %268 = arith.addf %266, %267 : vector<8x256xf32>
    %269 = arith.mulf %268, %26 : vector<8x256xf32>
    %270 = arith.negf %269 : vector<8x256xf32>
    %271 = math.exp %270 : vector<8x256xf32>
    %cst_76 = arith.constant 1.000000e+00 : f32
    %272 = vector.broadcast %cst_76 : f32 to vector<8x256xf32>
    %273 = arith.addf %272, %271 : vector<8x256xf32>
    %274 = arith.divf %272, %273 : vector<8x256xf32>
    %275 = arith.mulf %274, %26 : vector<8x256xf32>
    %276 = arith.addf %275, %29 : vector<8x256xf32>
    %277 = vector.extract_strided_slice %276 {offsets = [0, 0], sizes = [8, 64], strides = [1, 1]} : vector<8x256xf32> to vector<8x64xf32>
    %278 = vector.extract_strided_slice %276 {offsets = [0, 64], sizes = [8, 64], strides = [1, 1]} : vector<8x256xf32> to vector<8x64xf32>
    %279 = vector.extract_strided_slice %276 {offsets = [0, 128], sizes = [8, 64], strides = [1, 1]} : vector<8x256xf32> to vector<8x64xf32>
    %280 = vector.extract_strided_slice %276 {offsets = [0, 192], sizes = [8, 64], strides = [1, 1]} : vector<8x256xf32> to vector<8x64xf32>
    %281 = arith.mulf %278, %257 : vector<8x64xf32>
    %282 = arith.mulf %277, %279 : vector<8x64xf32>
    %283 = arith.addf %281, %282 : vector<8x64xf32>
    %284 = math.tanh %283 : vector<8x64xf32>
    %285 = arith.mulf %280, %284 : vector<8x64xf32>
    %286 = arith.index_cast %c6_i32 : i32 to index
    %c0_77 = arith.constant 0 : index
    %c0_78 = arith.constant 0 : index
    %287 = vector.load %arg14[%286, %c0_77, %c0_78] : memref<8x8x64xf32, #tpu.memory_space<vmem>>, vector<1x8x64xf32>
    %288 = vector.shape_cast %287 : vector<1x8x64xf32> to vector<8x64xf32>
    %289 = vector.shape_cast %285 : vector<8x64xf32> to vector<1x8x64xf32>
    tpu.vector_store %arg14[%286, %c0_77, %c0_78], %289 {strides = array<i32>} : memref<8x8x64xf32, #tpu.memory_space<vmem>>, vector<1x8x64xf32>,
    %c7_i32 = arith.constant 7 : i32
    %290 = arith.index_cast %c7_i32 : i32 to index
    %c0_79 = arith.constant 0 : index
    %c0_80 = arith.constant 0 : index
    %291 = vector.load %arg13[%290, %c0_79, %c0_80] : memref<8x8x256xf32, #tpu.memory_space<vmem>>, vector<1x8x256xf32>
    %292 = vector.shape_cast %291 : vector<1x8x256xf32> to vector<8x256xf32>
    %cst_81 = arith.constant dense<0.000000e+00> : vector<8x256xf32>
    %293 = tpu.matmul %285, %105, %cst_81 {dimension_numbers = #tpu.dot_dimension_numbers<[1], [0], [0], [1], [0, 0, 1, 1], [], []>} : vector<8x64xf32>, vector<64x256xf32>, vector<8x256xf32> -> vector<8x256xf32>
    %294 = arith.addf %292, %293 : vector<8x256xf32>
    %295 = arith.mulf %294, %26 : vector<8x256xf32>
    %296 = arith.negf %295 : vector<8x256xf32>
    %297 = math.exp %296 : vector<8x256xf32>
    %cst_82 = arith.constant 1.000000e+00 : f32
    %298 = vector.broadcast %cst_82 : f32 to vector<8x256xf32>
    %299 = arith.addf %298, %297 : vector<8x256xf32>
    %300 = arith.divf %298, %299 : vector<8x256xf32>
    %301 = arith.mulf %300, %26 : vector<8x256xf32>
    %302 = arith.addf %301, %29 : vector<8x256xf32>
    %303 = vector.extract_strided_slice %302 {offsets = [0, 0], sizes = [8, 64], strides = [1, 1]} : vector<8x256xf32> to vector<8x64xf32>
    %304 = vector.extract_strided_slice %302 {offsets = [0, 64], sizes = [8, 64], strides = [1, 1]} : vector<8x256xf32> to vector<8x64xf32>
    %305 = vector.extract_strided_slice %302 {offsets = [0, 128], sizes = [8, 64], strides = [1, 1]} : vector<8x256xf32> to vector<8x64xf32>
    %306 = vector.extract_strided_slice %302 {offsets = [0, 192], sizes = [8, 64], strides = [1, 1]} : vector<8x256xf32> to vector<8x64xf32>
    %307 = arith.mulf %304, %283 : vector<8x64xf32>
    %308 = arith.mulf %303, %305 : vector<8x64xf32>
    %309 = arith.addf %307, %308 : vector<8x64xf32>
    %310 = math.tanh %309 : vector<8x64xf32>
    %311 = arith.mulf %306, %310 : vector<8x64xf32>
    %312 = arith.index_cast %c7_i32 : i32 to index
    %c0_83 = arith.constant 0 : index
    %c0_84 = arith.constant 0 : index
    %313 = vector.load %arg14[%312, %c0_83, %c0_84] : memref<8x8x64xf32, #tpu.memory_space<vmem>>, vector<1x8x64xf32>
    %314 = vector.shape_cast %313 : vector<1x8x64xf32> to vector<8x64xf32>
    %315 = vector.shape_cast %311 : vector<8x64xf32> to vector<1x8x64xf32>
    tpu.vector_store %arg14[%312, %c0_83, %c0_84], %315 {strides = array<i32>} : memref<8x8x64xf32, #tpu.memory_space<vmem>>, vector<1x8x64xf32>,
    %c8_i32 = arith.constant 8 : i32
    %c0_85 = arith.constant 0 : index
    %c0_86 = arith.constant 0 : index
    %c0_87 = arith.constant 0 : index
    %316 = vector.load %arg14[%c0_85, %c0_86, %c0_87] : memref<8x8x64xf32, #tpu.memory_space<vmem>>, vector<1x8x64xf32>
    %317 = vector.shape_cast %316 : vector<1x8x64xf32> to vector<8x64xf32>
    %c7_88 = arith.constant 7 : index
    %c0_89 = arith.constant 0 : index
    %c0_90 = arith.constant 0 : index
    %318 = vector.load %arg14[%c7_88, %c0_89, %c0_90] : memref<8x8x64xf32, #tpu.memory_space<vmem>>, vector<1x8x64xf32>
    %319 = vector.shape_cast %318 : vector<1x8x64xf32> to vector<8x64xf32>
    %320 = arith.select %32, %317, %319 : vector<8x64xi1>, vector<8x64xf32>
    %c0_91 = arith.constant 0 : index
    %c0_92 = arith.constant 0 : index
    %c0_93 = arith.constant 0 : index
    %321 = vector.load %arg15[%c0_91, %c0_92, %c0_93] : memref<8x8x64xf32, #tpu.memory_space<vmem>>, vector<1x8x64xf32>
    %322 = vector.shape_cast %321 : vector<1x8x64xf32> to vector<8x64xf32>
    %323 = vector.shape_cast %320 : vector<8x64xf32> to vector<1x8x64xf32>
    tpu.vector_store %arg15[%c0_91, %c0_92, %c0_93], %323 {strides = array<i32>} : memref<8x8x64xf32, #tpu.memory_space<vmem>>, vector<1x8x64xf32>,
    %c1_94 = arith.constant 1 : index
    %c0_95 = arith.constant 0 : index
    %c0_96 = arith.constant 0 : index
    %324 = vector.load %arg14[%c1_94, %c0_95, %c0_96] : memref<8x8x64xf32, #tpu.memory_space<vmem>>, vector<1x8x64xf32>
    %325 = vector.shape_cast %324 : vector<1x8x64xf32> to vector<8x64xf32>
    %c6_97 = arith.constant 6 : index
    %c0_98 = arith.constant 0 : index
    %c0_99 = arith.constant 0 : index
    %326 = vector.load %arg14[%c6_97, %c0_98, %c0_99] : memref<8x8x64xf32, #tpu.memory_space<vmem>>, vector<1x8x64xf32>
    %327 = vector.shape_cast %326 : vector<1x8x64xf32> to vector<8x64xf32>
    %328 = arith.select %32, %325, %327 : vector<8x64xi1>, vector<8x64xf32>
    %c1_100 = arith.constant 1 : index
    %c0_101 = arith.constant 0 : index
    %c0_102 = arith.constant 0 : index
    %329 = vector.load %arg15[%c1_100, %c0_101, %c0_102] : memref<8x8x64xf32, #tpu.memory_space<vmem>>, vector<1x8x64xf32>
    %330 = vector.shape_cast %329 : vector<1x8x64xf32> to vector<8x64xf32>
    %331 = vector.shape_cast %328 : vector<8x64xf32> to vector<1x8x64xf32>
    tpu.vector_store %arg15[%c1_100, %c0_101, %c0_102], %331 {strides = array<i32>} : memref<8x8x64xf32, #tpu.memory_space<vmem>>, vector<1x8x64xf32>,
    %c2_103 = arith.constant 2 : index
    %c0_104 = arith.constant 0 : index
    %c0_105 = arith.constant 0 : index
    %332 = vector.load %arg14[%c2_103, %c0_104, %c0_105] : memref<8x8x64xf32, #tpu.memory_space<vmem>>, vector<1x8x64xf32>
    %333 = vector.shape_cast %332 : vector<1x8x64xf32> to vector<8x64xf32>
    %c5_106 = arith.constant 5 : index
    %c0_107 = arith.constant 0 : index
    %c0_108 = arith.constant 0 : index
    %334 = vector.load %arg14[%c5_106, %c0_107, %c0_108] : memref<8x8x64xf32, #tpu.memory_space<vmem>>, vector<1x8x64xf32>
    %335 = vector.shape_cast %334 : vector<1x8x64xf32> to vector<8x64xf32>
    %336 = arith.select %32, %333, %335 : vector<8x64xi1>, vector<8x64xf32>
    %c2_109 = arith.constant 2 : index
    %c0_110 = arith.constant 0 : index
    %c0_111 = arith.constant 0 : index
    %337 = vector.load %arg15[%c2_109, %c0_110, %c0_111] : memref<8x8x64xf32, #tpu.memory_space<vmem>>, vector<1x8x64xf32>
    %338 = vector.shape_cast %337 : vector<1x8x64xf32> to vector<8x64xf32>
    %339 = vector.shape_cast %336 : vector<8x64xf32> to vector<1x8x64xf32>
    tpu.vector_store %arg15[%c2_109, %c0_110, %c0_111], %339 {strides = array<i32>} : memref<8x8x64xf32, #tpu.memory_space<vmem>>, vector<1x8x64xf32>,
    %c3_112 = arith.constant 3 : index
    %c0_113 = arith.constant 0 : index
    %c0_114 = arith.constant 0 : index
    %340 = vector.load %arg14[%c3_112, %c0_113, %c0_114] : memref<8x8x64xf32, #tpu.memory_space<vmem>>, vector<1x8x64xf32>
    %341 = vector.shape_cast %340 : vector<1x8x64xf32> to vector<8x64xf32>
    %c4_115 = arith.constant 4 : index
    %c0_116 = arith.constant 0 : index
    %c0_117 = arith.constant 0 : index
    %342 = vector.load %arg14[%c4_115, %c0_116, %c0_117] : memref<8x8x64xf32, #tpu.memory_space<vmem>>, vector<1x8x64xf32>
    %343 = vector.shape_cast %342 : vector<1x8x64xf32> to vector<8x64xf32>
    %344 = arith.select %32, %341, %343 : vector<8x64xi1>, vector<8x64xf32>
    %c3_118 = arith.constant 3 : index
    %c0_119 = arith.constant 0 : index
    %c0_120 = arith.constant 0 : index
    %345 = vector.load %arg15[%c3_118, %c0_119, %c0_120] : memref<8x8x64xf32, #tpu.memory_space<vmem>>, vector<1x8x64xf32>
    %346 = vector.shape_cast %345 : vector<1x8x64xf32> to vector<8x64xf32>
    %347 = vector.shape_cast %344 : vector<8x64xf32> to vector<1x8x64xf32>
    tpu.vector_store %arg15[%c3_118, %c0_119, %c0_120], %347 {strides = array<i32>} : memref<8x8x64xf32, #tpu.memory_space<vmem>>, vector<1x8x64xf32>,
    %c4_121 = arith.constant 4 : index
    %c0_122 = arith.constant 0 : index
    %c0_123 = arith.constant 0 : index
    %348 = vector.load %arg14[%c4_121, %c0_122, %c0_123] : memref<8x8x64xf32, #tpu.memory_space<vmem>>, vector<1x8x64xf32>
    %349 = vector.shape_cast %348 : vector<1x8x64xf32> to vector<8x64xf32>
    %c3_124 = arith.constant 3 : index
    %c0_125 = arith.constant 0 : index
    %c0_126 = arith.constant 0 : index
    %350 = vector.load %arg14[%c3_124, %c0_125, %c0_126] : memref<8x8x64xf32, #tpu.memory_space<vmem>>, vector<1x8x64xf32>
    %351 = vector.shape_cast %350 : vector<1x8x64xf32> to vector<8x64xf32>
    %352 = arith.select %32, %349, %351 : vector<8x64xi1>, vector<8x64xf32>
    %c4_127 = arith.constant 4 : index
    %c0_128 = arith.constant 0 : index
    %c0_129 = arith.constant 0 : index
    %353 = vector.load %arg15[%c4_127, %c0_128, %c0_129] : memref<8x8x64xf32, #tpu.memory_space<vmem>>, vector<1x8x64xf32>
    %354 = vector.shape_cast %353 : vector<1x8x64xf32> to vector<8x64xf32>
    %355 = vector.shape_cast %352 : vector<8x64xf32> to vector<1x8x64xf32>
    tpu.vector_store %arg15[%c4_127, %c0_128, %c0_129], %355 {strides = array<i32>} : memref<8x8x64xf32, #tpu.memory_space<vmem>>, vector<1x8x64xf32>,
    %c5_130 = arith.constant 5 : index
    %c0_131 = arith.constant 0 : index
    %c0_132 = arith.constant 0 : index
    %356 = vector.load %arg14[%c5_130, %c0_131, %c0_132] : memref<8x8x64xf32, #tpu.memory_space<vmem>>, vector<1x8x64xf32>
    %357 = vector.shape_cast %356 : vector<1x8x64xf32> to vector<8x64xf32>
    %c2_133 = arith.constant 2 : index
    %c0_134 = arith.constant 0 : index
    %c0_135 = arith.constant 0 : index
    %358 = vector.load %arg14[%c2_133, %c0_134, %c0_135] : memref<8x8x64xf32, #tpu.memory_space<vmem>>, vector<1x8x64xf32>
    %359 = vector.shape_cast %358 : vector<1x8x64xf32> to vector<8x64xf32>
    %360 = arith.select %32, %357, %359 : vector<8x64xi1>, vector<8x64xf32>
    %c5_136 = arith.constant 5 : index
    %c0_137 = arith.constant 0 : index
    %c0_138 = arith.constant 0 : index
    %361 = vector.load %arg15[%c5_136, %c0_137, %c0_138] : memref<8x8x64xf32, #tpu.memory_space<vmem>>, vector<1x8x64xf32>
    %362 = vector.shape_cast %361 : vector<1x8x64xf32> to vector<8x64xf32>
    %363 = vector.shape_cast %360 : vector<8x64xf32> to vector<1x8x64xf32>
    tpu.vector_store %arg15[%c5_136, %c0_137, %c0_138], %363 {strides = array<i32>} : memref<8x8x64xf32, #tpu.memory_space<vmem>>, vector<1x8x64xf32>,
    %c6_139 = arith.constant 6 : index
    %c0_140 = arith.constant 0 : index
    %c0_141 = arith.constant 0 : index
    %364 = vector.load %arg14[%c6_139, %c0_140, %c0_141] : memref<8x8x64xf32, #tpu.memory_space<vmem>>, vector<1x8x64xf32>
    %365 = vector.shape_cast %364 : vector<1x8x64xf32> to vector<8x64xf32>
    %c1_142 = arith.constant 1 : index
    %c0_143 = arith.constant 0 : index
    %c0_144 = arith.constant 0 : index
    %366 = vector.load %arg14[%c1_142, %c0_143, %c0_144] : memref<8x8x64xf32, #tpu.memory_space<vmem>>, vector<1x8x64xf32>
    %367 = vector.shape_cast %366 : vector<1x8x64xf32> to vector<8x64xf32>
    %368 = arith.select %32, %365, %367 : vector<8x64xi1>, vector<8x64xf32>
    %c6_145 = arith.constant 6 : index
    %c0_146 = arith.constant 0 : index
    %c0_147 = arith.constant 0 : index
    %369 = vector.load %arg15[%c6_145, %c0_146, %c0_147] : memref<8x8x64xf32, #tpu.memory_space<vmem>>, vector<1x8x64xf32>
    %370 = vector.shape_cast %369 : vector<1x8x64xf32> to vector<8x64xf32>
    %371 = vector.shape_cast %368 : vector<8x64xf32> to vector<1x8x64xf32>
    tpu.vector_store %arg15[%c6_145, %c0_146, %c0_147], %371 {strides = array<i32>} : memref<8x8x64xf32, #tpu.memory_space<vmem>>, vector<1x8x64xf32>,
    %c7_148 = arith.constant 7 : index
    %c0_149 = arith.constant 0 : index
    %c0_150 = arith.constant 0 : index
    %372 = vector.load %arg14[%c7_148, %c0_149, %c0_150] : memref<8x8x64xf32, #tpu.memory_space<vmem>>, vector<1x8x64xf32>
    %373 = vector.shape_cast %372 : vector<1x8x64xf32> to vector<8x64xf32>
    %c0_151 = arith.constant 0 : index
    %c0_152 = arith.constant 0 : index
    %c0_153 = arith.constant 0 : index
    %374 = vector.load %arg14[%c0_151, %c0_152, %c0_153] : memref<8x8x64xf32, #tpu.memory_space<vmem>>, vector<1x8x64xf32>
    %375 = vector.shape_cast %374 : vector<1x8x64xf32> to vector<8x64xf32>
    %376 = arith.select %32, %373, %375 : vector<8x64xi1>, vector<8x64xf32>
    %c7_154 = arith.constant 7 : index
    %c0_155 = arith.constant 0 : index
    %c0_156 = arith.constant 0 : index
    %377 = vector.load %arg15[%c7_154, %c0_155, %c0_156] : memref<8x8x64xf32, #tpu.memory_space<vmem>>, vector<1x8x64xf32>
    %378 = vector.shape_cast %377 : vector<1x8x64xf32> to vector<8x64xf32>
    %379 = vector.shape_cast %376 : vector<8x64xf32> to vector<1x8x64xf32>
    tpu.vector_store %arg15[%c7_154, %c0_155, %c0_156], %379 {strides = array<i32>} : memref<8x8x64xf32, #tpu.memory_space<vmem>>, vector<1x8x64xf32>,
    %c0_157 = arith.constant 0 : index
    %c0_158 = arith.constant 0 : index
    %c0_159 = arith.constant 0 : index
    %380 = vector.load %arg15[%c0_157, %c0_158, %c0_159] : memref<8x8x64xf32, #tpu.memory_space<vmem>>, vector<8x8x64xf32>
    %381 = vector.shape_cast %380 : vector<8x8x64xf32> to vector<64x64xf32>
    %c0_160 = arith.constant 0 : index
    %c0_161 = arith.constant 0 : index
    %382 = vector.load %arg5[%c0_160, %c0_161] : memref<64x256xf32, #tpu.memory_space<vmem>>, vector<64x256xf32>
    %cst_162 = arith.constant dense<0.000000e+00> : vector<64x256xf32>
    %383 = tpu.matmul %381, %382, %cst_162 {dimension_numbers = #tpu.dot_dimension_numbers<[1], [0], [0], [1], [0, 0, 1, 1], [], []>} : vector<64x64xf32>, vector<64x256xf32>, vector<64x256xf32> -> vector<64x256xf32>
    %c0_163 = arith.constant 0 : index
    %c0_164 = arith.constant 0 : index
    %384 = vector.load %arg7[%c0_163, %c0_164] : memref<1x256xf32, #tpu.memory_space<vmem>>, vector<1x256xf32>
    %385 = vector.broadcast %384 : vector<1x256xf32> to vector<64x256xf32>
    %386 = arith.addf %383, %385 : vector<64x256xf32>
    %387 = vector.shape_cast %386 : vector<64x256xf32> to vector<8x8x256xf32>
    %388 = vector.extract_strided_slice %387 {offsets = [0, 0, 0], sizes = [1, 8, 256], strides = [1, 1, 1]} : vector<8x8x256xf32> to vector<1x8x256xf32>
    %389 = vector.shape_cast %388 : vector<1x8x256xf32> to vector<8x256xf32>
    %390 = vector.extract_strided_slice %387 {offsets = [7, 0, 0], sizes = [1, 8, 256], strides = [1, 1, 1]} : vector<8x8x256xf32> to vector<1x8x256xf32>
    %391 = vector.shape_cast %390 : vector<1x8x256xf32> to vector<8x256xf32>
    %392 = arith.select %18, %389, %391 : vector<8x256xi1>, vector<8x256xf32>
    %c0_165 = arith.constant 0 : index
    %c0_166 = arith.constant 0 : index
    %c0_167 = arith.constant 0 : index
    %393 = vector.load %arg13[%c0_165, %c0_166, %c0_167] : memref<8x8x256xf32, #tpu.memory_space<vmem>>, vector<1x8x256xf32>
    %394 = vector.shape_cast %393 : vector<1x8x256xf32> to vector<8x256xf32>
    %395 = vector.shape_cast %392 : vector<8x256xf32> to vector<1x8x256xf32>
    tpu.vector_store %arg13[%c0_165, %c0_166, %c0_167], %395 {strides = array<i32>} : memref<8x8x256xf32, #tpu.memory_space<vmem>>, vector<1x8x256xf32>,
    %396 = vector.extract_strided_slice %387 {offsets = [1, 0, 0], sizes = [1, 8, 256], strides = [1, 1, 1]} : vector<8x8x256xf32> to vector<1x8x256xf32>
    %397 = vector.shape_cast %396 : vector<1x8x256xf32> to vector<8x256xf32>
    %398 = vector.extract_strided_slice %387 {offsets = [6, 0, 0], sizes = [1, 8, 256], strides = [1, 1, 1]} : vector<8x8x256xf32> to vector<1x8x256xf32>
    %399 = vector.shape_cast %398 : vector<1x8x256xf32> to vector<8x256xf32>
    %400 = arith.select %18, %397, %399 : vector<8x256xi1>, vector<8x256xf32>
    %c1_168 = arith.constant 1 : index
    %c0_169 = arith.constant 0 : index
    %c0_170 = arith.constant 0 : index
    %401 = vector.load %arg13[%c1_168, %c0_169, %c0_170] : memref<8x8x256xf32, #tpu.memory_space<vmem>>, vector<1x8x256xf32>
    %402 = vector.shape_cast %401 : vector<1x8x256xf32> to vector<8x256xf32>
    %403 = vector.shape_cast %400 : vector<8x256xf32> to vector<1x8x256xf32>
    tpu.vector_store %arg13[%c1_168, %c0_169, %c0_170], %403 {strides = array<i32>} : memref<8x8x256xf32, #tpu.memory_space<vmem>>, vector<1x8x256xf32>,
    %404 = vector.extract_strided_slice %387 {offsets = [2, 0, 0], sizes = [1, 8, 256], strides = [1, 1, 1]} : vector<8x8x256xf32> to vector<1x8x256xf32>
    %405 = vector.shape_cast %404 : vector<1x8x256xf32> to vector<8x256xf32>
    %406 = vector.extract_strided_slice %387 {offsets = [5, 0, 0], sizes = [1, 8, 256], strides = [1, 1, 1]} : vector<8x8x256xf32> to vector<1x8x256xf32>
    %407 = vector.shape_cast %406 : vector<1x8x256xf32> to vector<8x256xf32>
    %408 = arith.select %18, %405, %407 : vector<8x256xi1>, vector<8x256xf32>
    %c2_171 = arith.constant 2 : index
    %c0_172 = arith.constant 0 : index
    %c0_173 = arith.constant 0 : index
    %409 = vector.load %arg13[%c2_171, %c0_172, %c0_173] : memref<8x8x256xf32, #tpu.memory_space<vmem>>, vector<1x8x256xf32>
    %410 = vector.shape_cast %409 : vector<1x8x256xf32> to vector<8x256xf32>
    %411 = vector.shape_cast %408 : vector<8x256xf32> to vector<1x8x256xf32>
    tpu.vector_store %arg13[%c2_171, %c0_172, %c0_173], %411 {strides = array<i32>} : memref<8x8x256xf32, #tpu.memory_space<vmem>>, vector<1x8x256xf32>,
    %412 = vector.extract_strided_slice %387 {offsets = [3, 0, 0], sizes = [1, 8, 256], strides = [1, 1, 1]} : vector<8x8x256xf32> to vector<1x8x256xf32>
    %413 = vector.shape_cast %412 : vector<1x8x256xf32> to vector<8x256xf32>
    %414 = vector.extract_strided_slice %387 {offsets = [4, 0, 0], sizes = [1, 8, 256], strides = [1, 1, 1]} : vector<8x8x256xf32> to vector<1x8x256xf32>
    %415 = vector.shape_cast %414 : vector<1x8x256xf32> to vector<8x256xf32>
    %416 = arith.select %18, %413, %415 : vector<8x256xi1>, vector<8x256xf32>
    %c3_174 = arith.constant 3 : index
    %c0_175 = arith.constant 0 : index
    %c0_176 = arith.constant 0 : index
    %417 = vector.load %arg13[%c3_174, %c0_175, %c0_176] : memref<8x8x256xf32, #tpu.memory_space<vmem>>, vector<1x8x256xf32>
    %418 = vector.shape_cast %417 : vector<1x8x256xf32> to vector<8x256xf32>
    %419 = vector.shape_cast %416 : vector<8x256xf32> to vector<1x8x256xf32>
    tpu.vector_store %arg13[%c3_174, %c0_175, %c0_176], %419 {strides = array<i32>} : memref<8x8x256xf32, #tpu.memory_space<vmem>>, vector<1x8x256xf32>,
    %420 = vector.extract_strided_slice %387 {offsets = [4, 0, 0], sizes = [1, 8, 256], strides = [1, 1, 1]} : vector<8x8x256xf32> to vector<1x8x256xf32>
    %421 = vector.shape_cast %420 : vector<1x8x256xf32> to vector<8x256xf32>
    %422 = vector.extract_strided_slice %387 {offsets = [3, 0, 0], sizes = [1, 8, 256], strides = [1, 1, 1]} : vector<8x8x256xf32> to vector<1x8x256xf32>
    %423 = vector.shape_cast %422 : vector<1x8x256xf32> to vector<8x256xf32>
    %424 = arith.select %18, %421, %423 : vector<8x256xi1>, vector<8x256xf32>
    %c4_177 = arith.constant 4 : index
    %c0_178 = arith.constant 0 : index
    %c0_179 = arith.constant 0 : index
    %425 = vector.load %arg13[%c4_177, %c0_178, %c0_179] : memref<8x8x256xf32, #tpu.memory_space<vmem>>, vector<1x8x256xf32>
    %426 = vector.shape_cast %425 : vector<1x8x256xf32> to vector<8x256xf32>
    %427 = vector.shape_cast %424 : vector<8x256xf32> to vector<1x8x256xf32>
    tpu.vector_store %arg13[%c4_177, %c0_178, %c0_179], %427 {strides = array<i32>} : memref<8x8x256xf32, #tpu.memory_space<vmem>>, vector<1x8x256xf32>,
    %428 = vector.extract_strided_slice %387 {offsets = [5, 0, 0], sizes = [1, 8, 256], strides = [1, 1, 1]} : vector<8x8x256xf32> to vector<1x8x256xf32>
    %429 = vector.shape_cast %428 : vector<1x8x256xf32> to vector<8x256xf32>
    %430 = vector.extract_strided_slice %387 {offsets = [2, 0, 0], sizes = [1, 8, 256], strides = [1, 1, 1]} : vector<8x8x256xf32> to vector<1x8x256xf32>
    %431 = vector.shape_cast %430 : vector<1x8x256xf32> to vector<8x256xf32>
    %432 = arith.select %18, %429, %431 : vector<8x256xi1>, vector<8x256xf32>
    %c5_180 = arith.constant 5 : index
    %c0_181 = arith.constant 0 : index
    %c0_182 = arith.constant 0 : index
    %433 = vector.load %arg13[%c5_180, %c0_181, %c0_182] : memref<8x8x256xf32, #tpu.memory_space<vmem>>, vector<1x8x256xf32>
    %434 = vector.shape_cast %433 : vector<1x8x256xf32> to vector<8x256xf32>
    %435 = vector.shape_cast %432 : vector<8x256xf32> to vector<1x8x256xf32>
    tpu.vector_store %arg13[%c5_180, %c0_181, %c0_182], %435 {strides = array<i32>} : memref<8x8x256xf32, #tpu.memory_space<vmem>>, vector<1x8x256xf32>,
    %436 = vector.extract_strided_slice %387 {offsets = [6, 0, 0], sizes = [1, 8, 256], strides = [1, 1, 1]} : vector<8x8x256xf32> to vector<1x8x256xf32>
    %437 = vector.shape_cast %436 : vector<1x8x256xf32> to vector<8x256xf32>
    %438 = vector.extract_strided_slice %387 {offsets = [1, 0, 0], sizes = [1, 8, 256], strides = [1, 1, 1]} : vector<8x8x256xf32> to vector<1x8x256xf32>
    %439 = vector.shape_cast %438 : vector<1x8x256xf32> to vector<8x256xf32>
    %440 = arith.select %18, %437, %439 : vector<8x256xi1>, vector<8x256xf32>
    %c6_183 = arith.constant 6 : index
    %c0_184 = arith.constant 0 : index
    %c0_185 = arith.constant 0 : index
    %441 = vector.load %arg13[%c6_183, %c0_184, %c0_185] : memref<8x8x256xf32, #tpu.memory_space<vmem>>, vector<1x8x256xf32>
    %442 = vector.shape_cast %441 : vector<1x8x256xf32> to vector<8x256xf32>
    %443 = vector.shape_cast %440 : vector<8x256xf32> to vector<1x8x256xf32>
    tpu.vector_store %arg13[%c6_183, %c0_184, %c0_185], %443 {strides = array<i32>} : memref<8x8x256xf32, #tpu.memory_space<vmem>>, vector<1x8x256xf32>,
    %444 = vector.extract_strided_slice %387 {offsets = [7, 0, 0], sizes = [1, 8, 256], strides = [1, 1, 1]} : vector<8x8x256xf32> to vector<1x8x256xf32>
    %445 = vector.shape_cast %444 : vector<1x8x256xf32> to vector<8x256xf32>
    %446 = vector.extract_strided_slice %387 {offsets = [0, 0, 0], sizes = [1, 8, 256], strides = [1, 1, 1]} : vector<8x8x256xf32> to vector<1x8x256xf32>
    %447 = vector.shape_cast %446 : vector<1x8x256xf32> to vector<8x256xf32>
    %448 = arith.select %18, %445, %447 : vector<8x256xi1>, vector<8x256xf32>
    %c7_186 = arith.constant 7 : index
    %c0_187 = arith.constant 0 : index
    %c0_188 = arith.constant 0 : index
    %449 = vector.load %arg13[%c7_186, %c0_187, %c0_188] : memref<8x8x256xf32, #tpu.memory_space<vmem>>, vector<1x8x256xf32>
    %450 = vector.shape_cast %449 : vector<1x8x256xf32> to vector<8x256xf32>
    %451 = vector.shape_cast %448 : vector<8x256xf32> to vector<1x8x256xf32>
    tpu.vector_store %arg13[%c7_186, %c0_187, %c0_188], %451 {strides = array<i32>} : memref<8x8x256xf32, #tpu.memory_space<vmem>>, vector<1x8x256xf32>,
    %c0_189 = arith.constant 0 : index
    %c0_190 = arith.constant 0 : index
    %452 = vector.load %arg6[%c0_189, %c0_190] : memref<64x256xf32, #tpu.memory_space<vmem>>, vector<64x256xf32>
    %cst_191 = arith.constant 0.000000e+00 : f32
    %453 = vector.broadcast %cst_191 : f32 to vector<8x64xf32>
    %cst_192 = arith.constant 0.000000e+00 : f32
    %454 = vector.broadcast %cst_192 : f32 to vector<8x64xf32>
    %c0_i32_193 = arith.constant 0 : i32
    %455 = arith.index_cast %c0_i32_193 : i32 to index
    %c0_194 = arith.constant 0 : index
    %c0_195 = arith.constant 0 : index
    %456 = vector.load %arg13[%455, %c0_194, %c0_195] : memref<8x8x256xf32, #tpu.memory_space<vmem>>, vector<1x8x256xf32>
    %457 = vector.shape_cast %456 : vector<1x8x256xf32> to vector<8x256xf32>
    %cst_196 = arith.constant dense<0.000000e+00> : vector<8x256xf32>
    %458 = tpu.matmul %453, %452, %cst_196 {dimension_numbers = #tpu.dot_dimension_numbers<[1], [0], [0], [1], [0, 0, 1, 1], [], []>} : vector<8x64xf32>, vector<64x256xf32>, vector<8x256xf32> -> vector<8x256xf32>
    %459 = arith.addf %457, %458 : vector<8x256xf32>
    %460 = arith.mulf %459, %26 : vector<8x256xf32>
    %461 = arith.negf %460 : vector<8x256xf32>
    %462 = math.exp %461 : vector<8x256xf32>
    %cst_197 = arith.constant 1.000000e+00 : f32
    %463 = vector.broadcast %cst_197 : f32 to vector<8x256xf32>
    %464 = arith.addf %463, %462 : vector<8x256xf32>
    %465 = arith.divf %463, %464 : vector<8x256xf32>
    %466 = arith.mulf %465, %26 : vector<8x256xf32>
    %467 = arith.addf %466, %29 : vector<8x256xf32>
    %468 = vector.extract_strided_slice %467 {offsets = [0, 0], sizes = [8, 64], strides = [1, 1]} : vector<8x256xf32> to vector<8x64xf32>
    %469 = vector.extract_strided_slice %467 {offsets = [0, 64], sizes = [8, 64], strides = [1, 1]} : vector<8x256xf32> to vector<8x64xf32>
    %470 = vector.extract_strided_slice %467 {offsets = [0, 128], sizes = [8, 64], strides = [1, 1]} : vector<8x256xf32> to vector<8x64xf32>
    %471 = vector.extract_strided_slice %467 {offsets = [0, 192], sizes = [8, 64], strides = [1, 1]} : vector<8x256xf32> to vector<8x64xf32>
    %472 = arith.mulf %469, %454 : vector<8x64xf32>
    %473 = arith.mulf %468, %470 : vector<8x64xf32>
    %474 = arith.addf %472, %473 : vector<8x64xf32>
    %475 = math.tanh %474 : vector<8x64xf32>
    %476 = arith.mulf %471, %475 : vector<8x64xf32>
    %477 = arith.index_cast %c0_i32_193 : i32 to index
    %c0_198 = arith.constant 0 : index
    %c0_199 = arith.constant 0 : index
    %478 = vector.load %arg14[%477, %c0_198, %c0_199] : memref<8x8x64xf32, #tpu.memory_space<vmem>>, vector<1x8x64xf32>
    %479 = vector.shape_cast %478 : vector<1x8x64xf32> to vector<8x64xf32>
    %480 = vector.shape_cast %476 : vector<8x64xf32> to vector<1x8x64xf32>
    tpu.vector_store %arg14[%477, %c0_198, %c0_199], %480 {strides = array<i32>} : memref<8x8x64xf32, #tpu.memory_space<vmem>>, vector<1x8x64xf32>,
    %c1_i32_200 = arith.constant 1 : i32
    %481 = arith.index_cast %c1_i32_200 : i32 to index
    %c0_201 = arith.constant 0 : index
    %c0_202 = arith.constant 0 : index
    %482 = vector.load %arg13[%481, %c0_201, %c0_202] : memref<8x8x256xf32, #tpu.memory_space<vmem>>, vector<1x8x256xf32>
    %483 = vector.shape_cast %482 : vector<1x8x256xf32> to vector<8x256xf32>
    %cst_203 = arith.constant dense<0.000000e+00> : vector<8x256xf32>
    %484 = tpu.matmul %476, %452, %cst_203 {dimension_numbers = #tpu.dot_dimension_numbers<[1], [0], [0], [1], [0, 0, 1, 1], [], []>} : vector<8x64xf32>, vector<64x256xf32>, vector<8x256xf32> -> vector<8x256xf32>
    %485 = arith.addf %483, %484 : vector<8x256xf32>
    %486 = arith.mulf %485, %26 : vector<8x256xf32>
    %487 = arith.negf %486 : vector<8x256xf32>
    %488 = math.exp %487 : vector<8x256xf32>
    %cst_204 = arith.constant 1.000000e+00 : f32
    %489 = vector.broadcast %cst_204 : f32 to vector<8x256xf32>
    %490 = arith.addf %489, %488 : vector<8x256xf32>
    %491 = arith.divf %489, %490 : vector<8x256xf32>
    %492 = arith.mulf %491, %26 : vector<8x256xf32>
    %493 = arith.addf %492, %29 : vector<8x256xf32>
    %494 = vector.extract_strided_slice %493 {offsets = [0, 0], sizes = [8, 64], strides = [1, 1]} : vector<8x256xf32> to vector<8x64xf32>
    %495 = vector.extract_strided_slice %493 {offsets = [0, 64], sizes = [8, 64], strides = [1, 1]} : vector<8x256xf32> to vector<8x64xf32>
    %496 = vector.extract_strided_slice %493 {offsets = [0, 128], sizes = [8, 64], strides = [1, 1]} : vector<8x256xf32> to vector<8x64xf32>
    %497 = vector.extract_strided_slice %493 {offsets = [0, 192], sizes = [8, 64], strides = [1, 1]} : vector<8x256xf32> to vector<8x64xf32>
    %498 = arith.mulf %495, %474 : vector<8x64xf32>
    %499 = arith.mulf %494, %496 : vector<8x64xf32>
    %500 = arith.addf %498, %499 : vector<8x64xf32>
    %501 = math.tanh %500 : vector<8x64xf32>
    %502 = arith.mulf %497, %501 : vector<8x64xf32>
    %503 = arith.index_cast %c1_i32_200 : i32 to index
    %c0_205 = arith.constant 0 : index
    %c0_206 = arith.constant 0 : index
    %504 = vector.load %arg14[%503, %c0_205, %c0_206] : memref<8x8x64xf32, #tpu.memory_space<vmem>>, vector<1x8x64xf32>
    %505 = vector.shape_cast %504 : vector<1x8x64xf32> to vector<8x64xf32>
    %506 = vector.shape_cast %502 : vector<8x64xf32> to vector<1x8x64xf32>
    tpu.vector_store %arg14[%503, %c0_205, %c0_206], %506 {strides = array<i32>} : memref<8x8x64xf32, #tpu.memory_space<vmem>>, vector<1x8x64xf32>,
    %c2_i32_207 = arith.constant 2 : i32
    %507 = arith.index_cast %c2_i32_207 : i32 to index
    %c0_208 = arith.constant 0 : index
    %c0_209 = arith.constant 0 : index
    %508 = vector.load %arg13[%507, %c0_208, %c0_209] : memref<8x8x256xf32, #tpu.memory_space<vmem>>, vector<1x8x256xf32>
    %509 = vector.shape_cast %508 : vector<1x8x256xf32> to vector<8x256xf32>
    %cst_210 = arith.constant dense<0.000000e+00> : vector<8x256xf32>
    %510 = tpu.matmul %502, %452, %cst_210 {dimension_numbers = #tpu.dot_dimension_numbers<[1], [0], [0], [1], [0, 0, 1, 1], [], []>} : vector<8x64xf32>, vector<64x256xf32>, vector<8x256xf32> -> vector<8x256xf32>
    %511 = arith.addf %509, %510 : vector<8x256xf32>
    %512 = arith.mulf %511, %26 : vector<8x256xf32>
    %513 = arith.negf %512 : vector<8x256xf32>
    %514 = math.exp %513 : vector<8x256xf32>
    %cst_211 = arith.constant 1.000000e+00 : f32
    %515 = vector.broadcast %cst_211 : f32 to vector<8x256xf32>
    %516 = arith.addf %515, %514 : vector<8x256xf32>
    %517 = arith.divf %515, %516 : vector<8x256xf32>
    %518 = arith.mulf %517, %26 : vector<8x256xf32>
    %519 = arith.addf %518, %29 : vector<8x256xf32>
    %520 = vector.extract_strided_slice %519 {offsets = [0, 0], sizes = [8, 64], strides = [1, 1]} : vector<8x256xf32> to vector<8x64xf32>
    %521 = vector.extract_strided_slice %519 {offsets = [0, 64], sizes = [8, 64], strides = [1, 1]} : vector<8x256xf32> to vector<8x64xf32>
    %522 = vector.extract_strided_slice %519 {offsets = [0, 128], sizes = [8, 64], strides = [1, 1]} : vector<8x256xf32> to vector<8x64xf32>
    %523 = vector.extract_strided_slice %519 {offsets = [0, 192], sizes = [8, 64], strides = [1, 1]} : vector<8x256xf32> to vector<8x64xf32>
    %524 = arith.mulf %521, %500 : vector<8x64xf32>
    %525 = arith.mulf %520, %522 : vector<8x64xf32>
    %526 = arith.addf %524, %525 : vector<8x64xf32>
    %527 = math.tanh %526 : vector<8x64xf32>
    %528 = arith.mulf %523, %527 : vector<8x64xf32>
    %529 = arith.index_cast %c2_i32_207 : i32 to index
    %c0_212 = arith.constant 0 : index
    %c0_213 = arith.constant 0 : index
    %530 = vector.load %arg14[%529, %c0_212, %c0_213] : memref<8x8x64xf32, #tpu.memory_space<vmem>>, vector<1x8x64xf32>
    %531 = vector.shape_cast %530 : vector<1x8x64xf32> to vector<8x64xf32>
    %532 = vector.shape_cast %528 : vector<8x64xf32> to vector<1x8x64xf32>
    tpu.vector_store %arg14[%529, %c0_212, %c0_213], %532 {strides = array<i32>} : memref<8x8x64xf32, #tpu.memory_space<vmem>>, vector<1x8x64xf32>,
    %c3_i32_214 = arith.constant 3 : i32
    %533 = arith.index_cast %c3_i32_214 : i32 to index
    %c0_215 = arith.constant 0 : index
    %c0_216 = arith.constant 0 : index
    %534 = vector.load %arg13[%533, %c0_215, %c0_216] : memref<8x8x256xf32, #tpu.memory_space<vmem>>, vector<1x8x256xf32>
    %535 = vector.shape_cast %534 : vector<1x8x256xf32> to vector<8x256xf32>
    %cst_217 = arith.constant dense<0.000000e+00> : vector<8x256xf32>
    %536 = tpu.matmul %528, %452, %cst_217 {dimension_numbers = #tpu.dot_dimension_numbers<[1], [0], [0], [1], [0, 0, 1, 1], [], []>} : vector<8x64xf32>, vector<64x256xf32>, vector<8x256xf32> -> vector<8x256xf32>
    %537 = arith.addf %535, %536 : vector<8x256xf32>
    %538 = arith.mulf %537, %26 : vector<8x256xf32>
    %539 = arith.negf %538 : vector<8x256xf32>
    %540 = math.exp %539 : vector<8x256xf32>
    %cst_218 = arith.constant 1.000000e+00 : f32
    %541 = vector.broadcast %cst_218 : f32 to vector<8x256xf32>
    %542 = arith.addf %541, %540 : vector<8x256xf32>
    %543 = arith.divf %541, %542 : vector<8x256xf32>
    %544 = arith.mulf %543, %26 : vector<8x256xf32>
    %545 = arith.addf %544, %29 : vector<8x256xf32>
    %546 = vector.extract_strided_slice %545 {offsets = [0, 0], sizes = [8, 64], strides = [1, 1]} : vector<8x256xf32> to vector<8x64xf32>
    %547 = vector.extract_strided_slice %545 {offsets = [0, 64], sizes = [8, 64], strides = [1, 1]} : vector<8x256xf32> to vector<8x64xf32>
    %548 = vector.extract_strided_slice %545 {offsets = [0, 128], sizes = [8, 64], strides = [1, 1]} : vector<8x256xf32> to vector<8x64xf32>
    %549 = vector.extract_strided_slice %545 {offsets = [0, 192], sizes = [8, 64], strides = [1, 1]} : vector<8x256xf32> to vector<8x64xf32>
    %550 = arith.mulf %547, %526 : vector<8x64xf32>
    %551 = arith.mulf %546, %548 : vector<8x64xf32>
    %552 = arith.addf %550, %551 : vector<8x64xf32>
    %553 = math.tanh %552 : vector<8x64xf32>
    %554 = arith.mulf %549, %553 : vector<8x64xf32>
    %555 = arith.index_cast %c3_i32_214 : i32 to index
    %c0_219 = arith.constant 0 : index
    %c0_220 = arith.constant 0 : index
    %556 = vector.load %arg14[%555, %c0_219, %c0_220] : memref<8x8x64xf32, #tpu.memory_space<vmem>>, vector<1x8x64xf32>
    %557 = vector.shape_cast %556 : vector<1x8x64xf32> to vector<8x64xf32>
    %558 = vector.shape_cast %554 : vector<8x64xf32> to vector<1x8x64xf32>
    tpu.vector_store %arg14[%555, %c0_219, %c0_220], %558 {strides = array<i32>} : memref<8x8x64xf32, #tpu.memory_space<vmem>>, vector<1x8x64xf32>,
    %c4_i32_221 = arith.constant 4 : i32
    %559 = arith.index_cast %c4_i32_221 : i32 to index
    %c0_222 = arith.constant 0 : index
    %c0_223 = arith.constant 0 : index
    %560 = vector.load %arg13[%559, %c0_222, %c0_223] : memref<8x8x256xf32, #tpu.memory_space<vmem>>, vector<1x8x256xf32>
    %561 = vector.shape_cast %560 : vector<1x8x256xf32> to vector<8x256xf32>
    %cst_224 = arith.constant dense<0.000000e+00> : vector<8x256xf32>
    %562 = tpu.matmul %554, %452, %cst_224 {dimension_numbers = #tpu.dot_dimension_numbers<[1], [0], [0], [1], [0, 0, 1, 1], [], []>} : vector<8x64xf32>, vector<64x256xf32>, vector<8x256xf32> -> vector<8x256xf32>
    %563 = arith.addf %561, %562 : vector<8x256xf32>
    %564 = arith.mulf %563, %26 : vector<8x256xf32>
    %565 = arith.negf %564 : vector<8x256xf32>
    %566 = math.exp %565 : vector<8x256xf32>
    %cst_225 = arith.constant 1.000000e+00 : f32
    %567 = vector.broadcast %cst_225 : f32 to vector<8x256xf32>
    %568 = arith.addf %567, %566 : vector<8x256xf32>
    %569 = arith.divf %567, %568 : vector<8x256xf32>
    %570 = arith.mulf %569, %26 : vector<8x256xf32>
    %571 = arith.addf %570, %29 : vector<8x256xf32>
    %572 = vector.extract_strided_slice %571 {offsets = [0, 0], sizes = [8, 64], strides = [1, 1]} : vector<8x256xf32> to vector<8x64xf32>
    %573 = vector.extract_strided_slice %571 {offsets = [0, 64], sizes = [8, 64], strides = [1, 1]} : vector<8x256xf32> to vector<8x64xf32>
    %574 = vector.extract_strided_slice %571 {offsets = [0, 128], sizes = [8, 64], strides = [1, 1]} : vector<8x256xf32> to vector<8x64xf32>
    %575 = vector.extract_strided_slice %571 {offsets = [0, 192], sizes = [8, 64], strides = [1, 1]} : vector<8x256xf32> to vector<8x64xf32>
    %576 = arith.mulf %573, %552 : vector<8x64xf32>
    %577 = arith.mulf %572, %574 : vector<8x64xf32>
    %578 = arith.addf %576, %577 : vector<8x64xf32>
    %579 = math.tanh %578 : vector<8x64xf32>
    %580 = arith.mulf %575, %579 : vector<8x64xf32>
    %581 = arith.index_cast %c4_i32_221 : i32 to index
    %c0_226 = arith.constant 0 : index
    %c0_227 = arith.constant 0 : index
    %582 = vector.load %arg14[%581, %c0_226, %c0_227] : memref<8x8x64xf32, #tpu.memory_space<vmem>>, vector<1x8x64xf32>
    %583 = vector.shape_cast %582 : vector<1x8x64xf32> to vector<8x64xf32>
    %584 = vector.shape_cast %580 : vector<8x64xf32> to vector<1x8x64xf32>
    tpu.vector_store %arg14[%581, %c0_226, %c0_227], %584 {strides = array<i32>} : memref<8x8x64xf32, #tpu.memory_space<vmem>>, vector<1x8x64xf32>,
    %c5_i32_228 = arith.constant 5 : i32
    %585 = arith.index_cast %c5_i32_228 : i32 to index
    %c0_229 = arith.constant 0 : index
    %c0_230 = arith.constant 0 : index
    %586 = vector.load %arg13[%585, %c0_229, %c0_230] : memref<8x8x256xf32, #tpu.memory_space<vmem>>, vector<1x8x256xf32>
    %587 = vector.shape_cast %586 : vector<1x8x256xf32> to vector<8x256xf32>
    %cst_231 = arith.constant dense<0.000000e+00> : vector<8x256xf32>
    %588 = tpu.matmul %580, %452, %cst_231 {dimension_numbers = #tpu.dot_dimension_numbers<[1], [0], [0], [1], [0, 0, 1, 1], [], []>} : vector<8x64xf32>, vector<64x256xf32>, vector<8x256xf32> -> vector<8x256xf32>
    %589 = arith.addf %587, %588 : vector<8x256xf32>
    %590 = arith.mulf %589, %26 : vector<8x256xf32>
    %591 = arith.negf %590 : vector<8x256xf32>
    %592 = math.exp %591 : vector<8x256xf32>
    %cst_232 = arith.constant 1.000000e+00 : f32
    %593 = vector.broadcast %cst_232 : f32 to vector<8x256xf32>
    %594 = arith.addf %593, %592 : vector<8x256xf32>
    %595 = arith.divf %593, %594 : vector<8x256xf32>
    %596 = arith.mulf %595, %26 : vector<8x256xf32>
    %597 = arith.addf %596, %29 : vector<8x256xf32>
    %598 = vector.extract_strided_slice %597 {offsets = [0, 0], sizes = [8, 64], strides = [1, 1]} : vector<8x256xf32> to vector<8x64xf32>
    %599 = vector.extract_strided_slice %597 {offsets = [0, 64], sizes = [8, 64], strides = [1, 1]} : vector<8x256xf32> to vector<8x64xf32>
    %600 = vector.extract_strided_slice %597 {offsets = [0, 128], sizes = [8, 64], strides = [1, 1]} : vector<8x256xf32> to vector<8x64xf32>
    %601 = vector.extract_strided_slice %597 {offsets = [0, 192], sizes = [8, 64], strides = [1, 1]} : vector<8x256xf32> to vector<8x64xf32>
    %602 = arith.mulf %599, %578 : vector<8x64xf32>
    %603 = arith.mulf %598, %600 : vector<8x64xf32>
    %604 = arith.addf %602, %603 : vector<8x64xf32>
    %605 = math.tanh %604 : vector<8x64xf32>
    %606 = arith.mulf %601, %605 : vector<8x64xf32>
    %607 = arith.index_cast %c5_i32_228 : i32 to index
    %c0_233 = arith.constant 0 : index
    %c0_234 = arith.constant 0 : index
    %608 = vector.load %arg14[%607, %c0_233, %c0_234] : memref<8x8x64xf32, #tpu.memory_space<vmem>>, vector<1x8x64xf32>
    %609 = vector.shape_cast %608 : vector<1x8x64xf32> to vector<8x64xf32>
    %610 = vector.shape_cast %606 : vector<8x64xf32> to vector<1x8x64xf32>
    tpu.vector_store %arg14[%607, %c0_233, %c0_234], %610 {strides = array<i32>} : memref<8x8x64xf32, #tpu.memory_space<vmem>>, vector<1x8x64xf32>,
    %c6_i32_235 = arith.constant 6 : i32
    %611 = arith.index_cast %c6_i32_235 : i32 to index
    %c0_236 = arith.constant 0 : index
    %c0_237 = arith.constant 0 : index
    %612 = vector.load %arg13[%611, %c0_236, %c0_237] : memref<8x8x256xf32, #tpu.memory_space<vmem>>, vector<1x8x256xf32>
    %613 = vector.shape_cast %612 : vector<1x8x256xf32> to vector<8x256xf32>
    %cst_238 = arith.constant dense<0.000000e+00> : vector<8x256xf32>
    %614 = tpu.matmul %606, %452, %cst_238 {dimension_numbers = #tpu.dot_dimension_numbers<[1], [0], [0], [1], [0, 0, 1, 1], [], []>} : vector<8x64xf32>, vector<64x256xf32>, vector<8x256xf32> -> vector<8x256xf32>
    %615 = arith.addf %613, %614 : vector<8x256xf32>
    %616 = arith.mulf %615, %26 : vector<8x256xf32>
    %617 = arith.negf %616 : vector<8x256xf32>
    %618 = math.exp %617 : vector<8x256xf32>
    %cst_239 = arith.constant 1.000000e+00 : f32
    %619 = vector.broadcast %cst_239 : f32 to vector<8x256xf32>
    %620 = arith.addf %619, %618 : vector<8x256xf32>
    %621 = arith.divf %619, %620 : vector<8x256xf32>
    %622 = arith.mulf %621, %26 : vector<8x256xf32>
    %623 = arith.addf %622, %29 : vector<8x256xf32>
    %624 = vector.extract_strided_slice %623 {offsets = [0, 0], sizes = [8, 64], strides = [1, 1]} : vector<8x256xf32> to vector<8x64xf32>
    %625 = vector.extract_strided_slice %623 {offsets = [0, 64], sizes = [8, 64], strides = [1, 1]} : vector<8x256xf32> to vector<8x64xf32>
    %626 = vector.extract_strided_slice %623 {offsets = [0, 128], sizes = [8, 64], strides = [1, 1]} : vector<8x256xf32> to vector<8x64xf32>
    %627 = vector.extract_strided_slice %623 {offsets = [0, 192], sizes = [8, 64], strides = [1, 1]} : vector<8x256xf32> to vector<8x64xf32>
    %628 = arith.mulf %625, %604 : vector<8x64xf32>
    %629 = arith.mulf %624, %626 : vector<8x64xf32>
    %630 = arith.addf %628, %629 : vector<8x64xf32>
    %631 = math.tanh %630 : vector<8x64xf32>
    %632 = arith.mulf %627, %631 : vector<8x64xf32>
    %633 = arith.index_cast %c6_i32_235 : i32 to index
    %c0_240 = arith.constant 0 : index
    %c0_241 = arith.constant 0 : index
    %634 = vector.load %arg14[%633, %c0_240, %c0_241] : memref<8x8x64xf32, #tpu.memory_space<vmem>>, vector<1x8x64xf32>
    %635 = vector.shape_cast %634 : vector<1x8x64xf32> to vector<8x64xf32>
    %636 = vector.shape_cast %632 : vector<8x64xf32> to vector<1x8x64xf32>
    tpu.vector_store %arg14[%633, %c0_240, %c0_241], %636 {strides = array<i32>} : memref<8x8x64xf32, #tpu.memory_space<vmem>>, vector<1x8x64xf32>,
    %c7_i32_242 = arith.constant 7 : i32
    %637 = arith.index_cast %c7_i32_242 : i32 to index
    %c0_243 = arith.constant 0 : index
    %c0_244 = arith.constant 0 : index
    %638 = vector.load %arg13[%637, %c0_243, %c0_244] : memref<8x8x256xf32, #tpu.memory_space<vmem>>, vector<1x8x256xf32>
    %639 = vector.shape_cast %638 : vector<1x8x256xf32> to vector<8x256xf32>
    %cst_245 = arith.constant dense<0.000000e+00> : vector<8x256xf32>
    %640 = tpu.matmul %632, %452, %cst_245 {dimension_numbers = #tpu.dot_dimension_numbers<[1], [0], [0], [1], [0, 0, 1, 1], [], []>} : vector<8x64xf32>, vector<64x256xf32>, vector<8x256xf32> -> vector<8x256xf32>
    %641 = arith.addf %639, %640 : vector<8x256xf32>
    %642 = arith.mulf %641, %26 : vector<8x256xf32>
    %643 = arith.negf %642 : vector<8x256xf32>
    %644 = math.exp %643 : vector<8x256xf32>
    %cst_246 = arith.constant 1.000000e+00 : f32
    %645 = vector.broadcast %cst_246 : f32 to vector<8x256xf32>
    %646 = arith.addf %645, %644 : vector<8x256xf32>
    %647 = arith.divf %645, %646 : vector<8x256xf32>
    %648 = arith.mulf %647, %26 : vector<8x256xf32>
    %649 = arith.addf %648, %29 : vector<8x256xf32>
    %650 = vector.extract_strided_slice %649 {offsets = [0, 0], sizes = [8, 64], strides = [1, 1]} : vector<8x256xf32> to vector<8x64xf32>
    %651 = vector.extract_strided_slice %649 {offsets = [0, 64], sizes = [8, 64], strides = [1, 1]} : vector<8x256xf32> to vector<8x64xf32>
    %652 = vector.extract_strided_slice %649 {offsets = [0, 128], sizes = [8, 64], strides = [1, 1]} : vector<8x256xf32> to vector<8x64xf32>
    %653 = vector.extract_strided_slice %649 {offsets = [0, 192], sizes = [8, 64], strides = [1, 1]} : vector<8x256xf32> to vector<8x64xf32>
    %654 = arith.mulf %651, %630 : vector<8x64xf32>
    %655 = arith.mulf %650, %652 : vector<8x64xf32>
    %656 = arith.addf %654, %655 : vector<8x64xf32>
    %657 = math.tanh %656 : vector<8x64xf32>
    %658 = arith.mulf %653, %657 : vector<8x64xf32>
    %659 = arith.index_cast %c7_i32_242 : i32 to index
    %c0_247 = arith.constant 0 : index
    %c0_248 = arith.constant 0 : index
    %660 = vector.load %arg14[%659, %c0_247, %c0_248] : memref<8x8x64xf32, #tpu.memory_space<vmem>>, vector<1x8x64xf32>
    %661 = vector.shape_cast %660 : vector<1x8x64xf32> to vector<8x64xf32>
    %662 = vector.shape_cast %658 : vector<8x64xf32> to vector<1x8x64xf32>
    tpu.vector_store %arg14[%659, %c0_247, %c0_248], %662 {strides = array<i32>} : memref<8x8x64xf32, #tpu.memory_space<vmem>>, vector<1x8x64xf32>,
    %c8_i32_249 = arith.constant 8 : i32
    %c0_250 = arith.constant 0 : index
    %c0_251 = arith.constant 0 : index
    %c0_252 = arith.constant 0 : index
    %663 = vector.load %arg14[%c0_250, %c0_251, %c0_252] : memref<8x8x64xf32, #tpu.memory_space<vmem>>, vector<1x8x64xf32>
    %664 = vector.shape_cast %663 : vector<1x8x64xf32> to vector<8x64xf32>
    %c7_253 = arith.constant 7 : index
    %c0_254 = arith.constant 0 : index
    %c0_255 = arith.constant 0 : index
    %665 = vector.load %arg14[%c7_253, %c0_254, %c0_255] : memref<8x8x64xf32, #tpu.memory_space<vmem>>, vector<1x8x64xf32>
    %666 = vector.shape_cast %665 : vector<1x8x64xf32> to vector<8x64xf32>
    %667 = arith.select %32, %664, %666 : vector<8x64xi1>, vector<8x64xf32>
    %668 = vector.shape_cast %667 : vector<8x64xf32> to vector<8x1x64xf32>
    %c0_256 = arith.constant 0 : index
    %c0_257 = arith.constant 0 : index
    %c0_258 = arith.constant 0 : index
    %669 = vector.load %arg16[%c0_256, %c0_257, %c0_258] : memref<8x8x64xf32, #tpu.memory_space<vmem>>, vector<8x1x64xf32>
    tpu.vector_store %arg16[%c0_256, %c0_257, %c0_258], %668 {strides = array<i32>} : memref<8x8x64xf32, #tpu.memory_space<vmem>>, vector<8x1x64xf32>,
    %c1_259 = arith.constant 1 : index
    %c0_260 = arith.constant 0 : index
    %c0_261 = arith.constant 0 : index
    %670 = vector.load %arg14[%c1_259, %c0_260, %c0_261] : memref<8x8x64xf32, #tpu.memory_space<vmem>>, vector<1x8x64xf32>
    %671 = vector.shape_cast %670 : vector<1x8x64xf32> to vector<8x64xf32>
    %c6_262 = arith.constant 6 : index
    %c0_263 = arith.constant 0 : index
    %c0_264 = arith.constant 0 : index
    %672 = vector.load %arg14[%c6_262, %c0_263, %c0_264] : memref<8x8x64xf32, #tpu.memory_space<vmem>>, vector<1x8x64xf32>
    %673 = vector.shape_cast %672 : vector<1x8x64xf32> to vector<8x64xf32>
    %674 = arith.select %32, %671, %673 : vector<8x64xi1>, vector<8x64xf32>
    %675 = vector.shape_cast %674 : vector<8x64xf32> to vector<8x1x64xf32>
    %c0_265 = arith.constant 0 : index
    %c1_266 = arith.constant 1 : index
    %c0_267 = arith.constant 0 : index
    %676 = vector.load %arg16[%c0_265, %c1_266, %c0_267] : memref<8x8x64xf32, #tpu.memory_space<vmem>>, vector<8x1x64xf32>
    tpu.vector_store %arg16[%c0_265, %c1_266, %c0_267], %675 {strides = array<i32>} : memref<8x8x64xf32, #tpu.memory_space<vmem>>, vector<8x1x64xf32>,
    %c2_268 = arith.constant 2 : index
    %c0_269 = arith.constant 0 : index
    %c0_270 = arith.constant 0 : index
    %677 = vector.load %arg14[%c2_268, %c0_269, %c0_270] : memref<8x8x64xf32, #tpu.memory_space<vmem>>, vector<1x8x64xf32>
    %678 = vector.shape_cast %677 : vector<1x8x64xf32> to vector<8x64xf32>
    %c5_271 = arith.constant 5 : index
    %c0_272 = arith.constant 0 : index
    %c0_273 = arith.constant 0 : index
    %679 = vector.load %arg14[%c5_271, %c0_272, %c0_273] : memref<8x8x64xf32, #tpu.memory_space<vmem>>, vector<1x8x64xf32>
    %680 = vector.shape_cast %679 : vector<1x8x64xf32> to vector<8x64xf32>
    %681 = arith.select %32, %678, %680 : vector<8x64xi1>, vector<8x64xf32>
    %682 = vector.shape_cast %681 : vector<8x64xf32> to vector<8x1x64xf32>
    %c0_274 = arith.constant 0 : index
    %c2_275 = arith.constant 2 : index
    %c0_276 = arith.constant 0 : index
    %683 = vector.load %arg16[%c0_274, %c2_275, %c0_276] : memref<8x8x64xf32, #tpu.memory_space<vmem>>, vector<8x1x64xf32>
    tpu.vector_store %arg16[%c0_274, %c2_275, %c0_276], %682 {strides = array<i32>} : memref<8x8x64xf32, #tpu.memory_space<vmem>>, vector<8x1x64xf32>,
    %c3_277 = arith.constant 3 : index
    %c0_278 = arith.constant 0 : index
    %c0_279 = arith.constant 0 : index
    %684 = vector.load %arg14[%c3_277, %c0_278, %c0_279] : memref<8x8x64xf32, #tpu.memory_space<vmem>>, vector<1x8x64xf32>
    %685 = vector.shape_cast %684 : vector<1x8x64xf32> to vector<8x64xf32>
    %c4_280 = arith.constant 4 : index
    %c0_281 = arith.constant 0 : index
    %c0_282 = arith.constant 0 : index
    %686 = vector.load %arg14[%c4_280, %c0_281, %c0_282] : memref<8x8x64xf32, #tpu.memory_space<vmem>>, vector<1x8x64xf32>
    %687 = vector.shape_cast %686 : vector<1x8x64xf32> to vector<8x64xf32>
    %688 = arith.select %32, %685, %687 : vector<8x64xi1>, vector<8x64xf32>
    %689 = vector.shape_cast %688 : vector<8x64xf32> to vector<8x1x64xf32>
    %c0_283 = arith.constant 0 : index
    %c3_284 = arith.constant 3 : index
    %c0_285 = arith.constant 0 : index
    %690 = vector.load %arg16[%c0_283, %c3_284, %c0_285] : memref<8x8x64xf32, #tpu.memory_space<vmem>>, vector<8x1x64xf32>
    tpu.vector_store %arg16[%c0_283, %c3_284, %c0_285], %689 {strides = array<i32>} : memref<8x8x64xf32, #tpu.memory_space<vmem>>, vector<8x1x64xf32>,
    %c4_286 = arith.constant 4 : index
    %c0_287 = arith.constant 0 : index
    %c0_288 = arith.constant 0 : index
    %691 = vector.load %arg14[%c4_286, %c0_287, %c0_288] : memref<8x8x64xf32, #tpu.memory_space<vmem>>, vector<1x8x64xf32>
    %692 = vector.shape_cast %691 : vector<1x8x64xf32> to vector<8x64xf32>
    %c3_289 = arith.constant 3 : index
    %c0_290 = arith.constant 0 : index
    %c0_291 = arith.constant 0 : index
    %693 = vector.load %arg14[%c3_289, %c0_290, %c0_291] : memref<8x8x64xf32, #tpu.memory_space<vmem>>, vector<1x8x64xf32>
    %694 = vector.shape_cast %693 : vector<1x8x64xf32> to vector<8x64xf32>
    %695 = arith.select %32, %692, %694 : vector<8x64xi1>, vector<8x64xf32>
    %696 = vector.shape_cast %695 : vector<8x64xf32> to vector<8x1x64xf32>
    %c0_292 = arith.constant 0 : index
    %c4_293 = arith.constant 4 : index
    %c0_294 = arith.constant 0 : index
    %697 = vector.load %arg16[%c0_292, %c4_293, %c0_294] : memref<8x8x64xf32, #tpu.memory_space<vmem>>, vector<8x1x64xf32>
    tpu.vector_store %arg16[%c0_292, %c4_293, %c0_294], %696 {strides = array<i32>} : memref<8x8x64xf32, #tpu.memory_space<vmem>>, vector<8x1x64xf32>,
    %c5_295 = arith.constant 5 : index
    %c0_296 = arith.constant 0 : index
    %c0_297 = arith.constant 0 : index
    %698 = vector.load %arg14[%c5_295, %c0_296, %c0_297] : memref<8x8x64xf32, #tpu.memory_space<vmem>>, vector<1x8x64xf32>
    %699 = vector.shape_cast %698 : vector<1x8x64xf32> to vector<8x64xf32>
    %c2_298 = arith.constant 2 : index
    %c0_299 = arith.constant 0 : index
    %c0_300 = arith.constant 0 : index
    %700 = vector.load %arg14[%c2_298, %c0_299, %c0_300] : memref<8x8x64xf32, #tpu.memory_space<vmem>>, vector<1x8x64xf32>
    %701 = vector.shape_cast %700 : vector<1x8x64xf32> to vector<8x64xf32>
    %702 = arith.select %32, %699, %701 : vector<8x64xi1>, vector<8x64xf32>
    %703 = vector.shape_cast %702 : vector<8x64xf32> to vector<8x1x64xf32>
    %c0_301 = arith.constant 0 : index
    %c5_302 = arith.constant 5 : index
    %c0_303 = arith.constant 0 : index
    %704 = vector.load %arg16[%c0_301, %c5_302, %c0_303] : memref<8x8x64xf32, #tpu.memory_space<vmem>>, vector<8x1x64xf32>
    tpu.vector_store %arg16[%c0_301, %c5_302, %c0_303], %703 {strides = array<i32>} : memref<8x8x64xf32, #tpu.memory_space<vmem>>, vector<8x1x64xf32>,
    %c6_304 = arith.constant 6 : index
    %c0_305 = arith.constant 0 : index
    %c0_306 = arith.constant 0 : index
    %705 = vector.load %arg14[%c6_304, %c0_305, %c0_306] : memref<8x8x64xf32, #tpu.memory_space<vmem>>, vector<1x8x64xf32>
    %706 = vector.shape_cast %705 : vector<1x8x64xf32> to vector<8x64xf32>
    %c1_307 = arith.constant 1 : index
    %c0_308 = arith.constant 0 : index
    %c0_309 = arith.constant 0 : index
    %707 = vector.load %arg14[%c1_307, %c0_308, %c0_309] : memref<8x8x64xf32, #tpu.memory_space<vmem>>, vector<1x8x64xf32>
    %708 = vector.shape_cast %707 : vector<1x8x64xf32> to vector<8x64xf32>
    %709 = arith.select %32, %706, %708 : vector<8x64xi1>, vector<8x64xf32>
    %710 = vector.shape_cast %709 : vector<8x64xf32> to vector<8x1x64xf32>
    %c0_310 = arith.constant 0 : index
    %c6_311 = arith.constant 6 : index
    %c0_312 = arith.constant 0 : index
    %711 = vector.load %arg16[%c0_310, %c6_311, %c0_312] : memref<8x8x64xf32, #tpu.memory_space<vmem>>, vector<8x1x64xf32>
    tpu.vector_store %arg16[%c0_310, %c6_311, %c0_312], %710 {strides = array<i32>} : memref<8x8x64xf32, #tpu.memory_space<vmem>>, vector<8x1x64xf32>,
    %c7_313 = arith.constant 7 : index
    %c0_314 = arith.constant 0 : index
    %c0_315 = arith.constant 0 : index
    %712 = vector.load %arg14[%c7_313, %c0_314, %c0_315] : memref<8x8x64xf32, #tpu.memory_space<vmem>>, vector<1x8x64xf32>
    %713 = vector.shape_cast %712 : vector<1x8x64xf32> to vector<8x64xf32>
    %c0_316 = arith.constant 0 : index
    %c0_317 = arith.constant 0 : index
    %c0_318 = arith.constant 0 : index
    %714 = vector.load %arg14[%c0_316, %c0_317, %c0_318] : memref<8x8x64xf32, #tpu.memory_space<vmem>>, vector<1x8x64xf32>
    %715 = vector.shape_cast %714 : vector<1x8x64xf32> to vector<8x64xf32>
    %716 = arith.select %32, %713, %715 : vector<8x64xi1>, vector<8x64xf32>
    %717 = vector.shape_cast %716 : vector<8x64xf32> to vector<8x1x64xf32>
    %c0_319 = arith.constant 0 : index
    %c7_320 = arith.constant 7 : index
    %c0_321 = arith.constant 0 : index
    %718 = vector.load %arg16[%c0_319, %c7_320, %c0_321] : memref<8x8x64xf32, #tpu.memory_space<vmem>>, vector<8x1x64xf32>
    tpu.vector_store %arg16[%c0_319, %c7_320, %c0_321], %717 {strides = array<i32>} : memref<8x8x64xf32, #tpu.memory_space<vmem>>, vector<8x1x64xf32>,
    %c0_322 = arith.constant 0 : index
    %c0_323 = arith.constant 0 : index
    %c0_324 = arith.constant 0 : index
    %719 = vector.load %arg16[%c0_322, %c0_323, %c0_324] : memref<8x8x64xf32, #tpu.memory_space<vmem>>, vector<8x8x64xf32>
    %720 = vector.shape_cast %719 : vector<8x8x64xf32> to vector<64x64xf32>
    %c0_325 = arith.constant 0 : index
    %c0_326 = arith.constant 0 : index
    %721 = vector.load %arg8[%c0_325, %c0_326] : memref<64x384xf32, #tpu.memory_space<vmem>>, vector<64x384xf32>
    %cst_327 = arith.constant dense<0.000000e+00> : vector<64x384xf32>
    %722 = tpu.matmul %720, %721, %cst_327 {dimension_numbers = #tpu.dot_dimension_numbers<[1], [0], [0], [1], [0, 0, 1, 1], [], []>} : vector<64x64xf32>, vector<64x384xf32>, vector<64x384xf32> -> vector<64x384xf32>
    %c0_328 = arith.constant 0 : index
    %c0_329 = arith.constant 0 : index
    %723 = vector.load %arg9[%c0_328, %c0_329] : memref<1x384xf32, #tpu.memory_space<vmem>>, vector<1x384xf32>
    %724 = vector.broadcast %723 : vector<1x384xf32> to vector<64x384xf32>
    %725 = arith.addf %722, %724 : vector<64x384xf32>
    %726 = vector.shape_cast %725 : vector<64x384xf32> to vector<8x8x384xf32>
    %727 = vector.extract_strided_slice %726 {offsets = [0, 0, 0], sizes = [8, 8, 64], strides = [1, 1, 1]} : vector<8x8x384xf32> to vector<8x8x64xf32>
    %728 = vector.extract_strided_slice %726 {offsets = [0, 0, 128], sizes = [8, 8, 64], strides = [1, 1, 1]} : vector<8x8x384xf32> to vector<8x8x64xf32>
    %729 = vector.extract_strided_slice %726 {offsets = [0, 0, 256], sizes = [8, 8, 64], strides = [1, 1, 1]} : vector<8x8x384xf32> to vector<8x8x64xf32>
    %730 = vector.extract_strided_slice %728 {offsets = [0, 0, 0], sizes = [8, 8, 16], strides = [1, 1, 1]} : vector<8x8x64xf32> to vector<8x8x16xf32>
    %731 = vector.extract_strided_slice %727 {offsets = [0, 0, 0], sizes = [8, 8, 16], strides = [1, 1, 1]} : vector<8x8x64xf32> to vector<8x8x16xf32>
    "tpu.trace_start"() <{level = 10 : i32, message = "bkd,bqd->bkq"}> : () -> ()
    %cst_330 = arith.constant dense<0.000000e+00> : vector<8x8x8xf32>
    %732 = tpu.matmul %730, %731, %cst_330 {dimension_numbers = #tpu.dot_dimension_numbers<[2], [2], [1], [1], [0, 0, 0, 1, 1, 1], [0], [0]>} : vector<8x8x16xf32>, vector<8x8x16xf32>, vector<8x8x8xf32> -> vector<8x8x8xf32>
    "tpu.trace_stop"() : () -> ()
    %cst_331 = arith.constant 2.500000e-01 : f32
    %733 = vector.broadcast %cst_331 : f32 to vector<8x8x8xf32>
    %734 = arith.mulf %732, %733 : vector<8x8x8xf32>
    %cst_332 = arith.constant dense<0xFF800000> : vector<8x8xf32>
    %735 = vector.multi_reduction <maximumf>, %734, %cst_332 [1] : vector<8x8x8xf32> to vector<8x8xf32>
    %736 = vector.shape_cast %735 : vector<8x8xf32> to vector<8x1x8xf32>
    %737 = vector.broadcast %736 : vector<8x1x8xf32> to vector<8x8x8xf32>
    %738 = arith.subf %734, %737 : vector<8x8x8xf32>
    %739 = math.exp %738 : vector<8x8x8xf32>
    %cst_333 = arith.constant dense<0.000000e+00> : vector<8x8xf32>
    %740 = vector.multi_reduction <add>, %739, %cst_333 [1] : vector<8x8x8xf32> to vector<8x8xf32>
    %741 = vector.shape_cast %740 : vector<8x8xf32> to vector<8x1x8xf32>
    %742 = tpu.reciprocal %741 {approx = true} : vector<8x1x8xf32> -> vector<8x1x8xf32>
    %743 = vector.broadcast %742 : vector<8x1x8xf32> to vector<8x8x8xf32>
    %744 = arith.mulf %739, %743 : vector<8x8x8xf32>
    %cst_334 = arith.constant dense<0.000000e+00> : vector<8x8xf32>
    %745 = vector.multi_reduction <add>, %744, %cst_334 [2] : vector<8x8x8xf32> to vector<8x8xf32>
    %746 = vector.shape_cast %745 : vector<8x8xf32> to vector<8x8x1xf32>
    %cst_335 = arith.constant 8.000000e+00 : f32
    %747 = vector.broadcast %cst_335 : f32 to vector<8x8x1xf32>
    %748 = arith.divf %746, %747 : vector<8x8x1xf32>
    %749 = vector.extract_strided_slice %729 {offsets = [0, 0, 0], sizes = [8, 8, 16], strides = [1, 1, 1]} : vector<8x8x64xf32> to vector<8x8x16xf32>
    %750 = vector.broadcast %748 : vector<8x8x1xf32> to vector<8x8x16xf32>
    %751 = arith.mulf %750, %749 : vector<8x8x16xf32>
    %cst_336 = arith.constant dense<0.000000e+00> : vector<8x16xf32>
    %752 = vector.multi_reduction <add>, %751, %cst_336 [1] : vector<8x8x16xf32> to vector<8x16xf32>
    %c0_337 = arith.constant 0 : index
    %c0_338 = arith.constant 0 : index
    %753 = vector.load %arg17[%c0_337, %c0_338] : memref<8x64xf32, #tpu.memory_space<vmem>>, vector<8x16xf32>
    tpu.vector_store %arg17[%c0_337, %c0_338], %752 {strides = array<i32>} : memref<8x64xf32, #tpu.memory_space<vmem>>, vector<8x16xf32>,
    %754 = vector.extract_strided_slice %728 {offsets = [0, 0, 16], sizes = [8, 8, 16], strides = [1, 1, 1]} : vector<8x8x64xf32> to vector<8x8x16xf32>
    %755 = vector.extract_strided_slice %727 {offsets = [0, 0, 16], sizes = [8, 8, 16], strides = [1, 1, 1]} : vector<8x8x64xf32> to vector<8x8x16xf32>
    "tpu.trace_start"() <{level = 10 : i32, message = "bkd,bqd->bkq"}> : () -> ()
    %cst_339 = arith.constant dense<0.000000e+00> : vector<8x8x8xf32>
    %756 = tpu.matmul %754, %755, %cst_339 {dimension_numbers = #tpu.dot_dimension_numbers<[2], [2], [1], [1], [0, 0, 0, 1, 1, 1], [0], [0]>} : vector<8x8x16xf32>, vector<8x8x16xf32>, vector<8x8x8xf32> -> vector<8x8x8xf32>
    "tpu.trace_stop"() : () -> ()
    %cst_340 = arith.constant 2.500000e-01 : f32
    %757 = vector.broadcast %cst_340 : f32 to vector<8x8x8xf32>
    %758 = arith.mulf %756, %757 : vector<8x8x8xf32>
    %cst_341 = arith.constant dense<0xFF800000> : vector<8x8xf32>
    %759 = vector.multi_reduction <maximumf>, %758, %cst_341 [1] : vector<8x8x8xf32> to vector<8x8xf32>
    %760 = vector.shape_cast %759 : vector<8x8xf32> to vector<8x1x8xf32>
    %761 = vector.broadcast %760 : vector<8x1x8xf32> to vector<8x8x8xf32>
    %762 = arith.subf %758, %761 : vector<8x8x8xf32>
    %763 = math.exp %762 : vector<8x8x8xf32>
    %cst_342 = arith.constant dense<0.000000e+00> : vector<8x8xf32>
    %764 = vector.multi_reduction <add>, %763, %cst_342 [1] : vector<8x8x8xf32> to vector<8x8xf32>
    %765 = vector.shape_cast %764 : vector<8x8xf32> to vector<8x1x8xf32>
    %766 = tpu.reciprocal %765 {approx = true} : vector<8x1x8xf32> -> vector<8x1x8xf32>
    %767 = vector.broadcast %766 : vector<8x1x8xf32> to vector<8x8x8xf32>
    %768 = arith.mulf %763, %767 : vector<8x8x8xf32>
    %cst_343 = arith.constant dense<0.000000e+00> : vector<8x8xf32>
    %769 = vector.multi_reduction <add>, %768, %cst_343 [2] : vector<8x8x8xf32> to vector<8x8xf32>
    %770 = vector.shape_cast %769 : vector<8x8xf32> to vector<8x8x1xf32>
    %cst_344 = arith.constant 8.000000e+00 : f32
    %771 = vector.broadcast %cst_344 : f32 to vector<8x8x1xf32>
    %772 = arith.divf %770, %771 : vector<8x8x1xf32>
    %773 = vector.extract_strided_slice %729 {offsets = [0, 0, 16], sizes = [8, 8, 16], strides = [1, 1, 1]} : vector<8x8x64xf32> to vector<8x8x16xf32>
    %774 = vector.broadcast %772 : vector<8x8x1xf32> to vector<8x8x16xf32>
    %775 = arith.mulf %774, %773 : vector<8x8x16xf32>
    %cst_345 = arith.constant dense<0.000000e+00> : vector<8x16xf32>
    %776 = vector.multi_reduction <add>, %775, %cst_345 [1] : vector<8x8x16xf32> to vector<8x16xf32>
    %c0_346 = arith.constant 0 : index
    %c16 = arith.constant 16 : index
    %777 = vector.load %arg17[%c0_346, %c16] : memref<8x64xf32, #tpu.memory_space<vmem>>, vector<8x16xf32>
    tpu.vector_store %arg17[%c0_346, %c16], %776 {strides = array<i32>} : memref<8x64xf32, #tpu.memory_space<vmem>>, vector<8x16xf32>,
    %778 = vector.extract_strided_slice %728 {offsets = [0, 0, 32], sizes = [8, 8, 16], strides = [1, 1, 1]} : vector<8x8x64xf32> to vector<8x8x16xf32>
    %779 = vector.extract_strided_slice %727 {offsets = [0, 0, 32], sizes = [8, 8, 16], strides = [1, 1, 1]} : vector<8x8x64xf32> to vector<8x8x16xf32>
    "tpu.trace_start"() <{level = 10 : i32, message = "bkd,bqd->bkq"}> : () -> ()
    %cst_347 = arith.constant dense<0.000000e+00> : vector<8x8x8xf32>
    %780 = tpu.matmul %778, %779, %cst_347 {dimension_numbers = #tpu.dot_dimension_numbers<[2], [2], [1], [1], [0, 0, 0, 1, 1, 1], [0], [0]>} : vector<8x8x16xf32>, vector<8x8x16xf32>, vector<8x8x8xf32> -> vector<8x8x8xf32>
    "tpu.trace_stop"() : () -> ()
    %cst_348 = arith.constant 2.500000e-01 : f32
    %781 = vector.broadcast %cst_348 : f32 to vector<8x8x8xf32>
    %782 = arith.mulf %780, %781 : vector<8x8x8xf32>
    %cst_349 = arith.constant dense<0xFF800000> : vector<8x8xf32>
    %783 = vector.multi_reduction <maximumf>, %782, %cst_349 [1] : vector<8x8x8xf32> to vector<8x8xf32>
    %784 = vector.shape_cast %783 : vector<8x8xf32> to vector<8x1x8xf32>
    %785 = vector.broadcast %784 : vector<8x1x8xf32> to vector<8x8x8xf32>
    %786 = arith.subf %782, %785 : vector<8x8x8xf32>
    %787 = math.exp %786 : vector<8x8x8xf32>
    %cst_350 = arith.constant dense<0.000000e+00> : vector<8x8xf32>
    %788 = vector.multi_reduction <add>, %787, %cst_350 [1] : vector<8x8x8xf32> to vector<8x8xf32>
    %789 = vector.shape_cast %788 : vector<8x8xf32> to vector<8x1x8xf32>
    %790 = tpu.reciprocal %789 {approx = true} : vector<8x1x8xf32> -> vector<8x1x8xf32>
    %791 = vector.broadcast %790 : vector<8x1x8xf32> to vector<8x8x8xf32>
    %792 = arith.mulf %787, %791 : vector<8x8x8xf32>
    %cst_351 = arith.constant dense<0.000000e+00> : vector<8x8xf32>
    %793 = vector.multi_reduction <add>, %792, %cst_351 [2] : vector<8x8x8xf32> to vector<8x8xf32>
    %794 = vector.shape_cast %793 : vector<8x8xf32> to vector<8x8x1xf32>
    %cst_352 = arith.constant 8.000000e+00 : f32
    %795 = vector.broadcast %cst_352 : f32 to vector<8x8x1xf32>
    %796 = arith.divf %794, %795 : vector<8x8x1xf32>
    %797 = vector.extract_strided_slice %729 {offsets = [0, 0, 32], sizes = [8, 8, 16], strides = [1, 1, 1]} : vector<8x8x64xf32> to vector<8x8x16xf32>
    %798 = vector.broadcast %796 : vector<8x8x1xf32> to vector<8x8x16xf32>
    %799 = arith.mulf %798, %797 : vector<8x8x16xf32>
    %cst_353 = arith.constant dense<0.000000e+00> : vector<8x16xf32>
    %800 = vector.multi_reduction <add>, %799, %cst_353 [1] : vector<8x8x16xf32> to vector<8x16xf32>
    %c0_354 = arith.constant 0 : index
    %c32 = arith.constant 32 : index
    %801 = vector.load %arg17[%c0_354, %c32] : memref<8x64xf32, #tpu.memory_space<vmem>>, vector<8x16xf32>
    tpu.vector_store %arg17[%c0_354, %c32], %800 {strides = array<i32>} : memref<8x64xf32, #tpu.memory_space<vmem>>, vector<8x16xf32>,
    %802 = vector.extract_strided_slice %728 {offsets = [0, 0, 48], sizes = [8, 8, 16], strides = [1, 1, 1]} : vector<8x8x64xf32> to vector<8x8x16xf32>
    %803 = vector.extract_strided_slice %727 {offsets = [0, 0, 48], sizes = [8, 8, 16], strides = [1, 1, 1]} : vector<8x8x64xf32> to vector<8x8x16xf32>
    "tpu.trace_start"() <{level = 10 : i32, message = "bkd,bqd->bkq"}> : () -> ()
    %cst_355 = arith.constant dense<0.000000e+00> : vector<8x8x8xf32>
    %804 = tpu.matmul %802, %803, %cst_355 {dimension_numbers = #tpu.dot_dimension_numbers<[2], [2], [1], [1], [0, 0, 0, 1, 1, 1], [0], [0]>} : vector<8x8x16xf32>, vector<8x8x16xf32>, vector<8x8x8xf32> -> vector<8x8x8xf32>
    "tpu.trace_stop"() : () -> ()
    %cst_356 = arith.constant 2.500000e-01 : f32
    %805 = vector.broadcast %cst_356 : f32 to vector<8x8x8xf32>
    %806 = arith.mulf %804, %805 : vector<8x8x8xf32>
    %cst_357 = arith.constant dense<0xFF800000> : vector<8x8xf32>
    %807 = vector.multi_reduction <maximumf>, %806, %cst_357 [1] : vector<8x8x8xf32> to vector<8x8xf32>
    %808 = vector.shape_cast %807 : vector<8x8xf32> to vector<8x1x8xf32>
    %809 = vector.broadcast %808 : vector<8x1x8xf32> to vector<8x8x8xf32>
    %810 = arith.subf %806, %809 : vector<8x8x8xf32>
    %811 = math.exp %810 : vector<8x8x8xf32>
    %cst_358 = arith.constant dense<0.000000e+00> : vector<8x8xf32>
    %812 = vector.multi_reduction <add>, %811, %cst_358 [1] : vector<8x8x8xf32> to vector<8x8xf32>
    %813 = vector.shape_cast %812 : vector<8x8xf32> to vector<8x1x8xf32>
    %814 = tpu.reciprocal %813 {approx = true} : vector<8x1x8xf32> -> vector<8x1x8xf32>
    %815 = vector.broadcast %814 : vector<8x1x8xf32> to vector<8x8x8xf32>
    %816 = arith.mulf %811, %815 : vector<8x8x8xf32>
    %cst_359 = arith.constant dense<0.000000e+00> : vector<8x8xf32>
    %817 = vector.multi_reduction <add>, %816, %cst_359 [2] : vector<8x8x8xf32> to vector<8x8xf32>
    %818 = vector.shape_cast %817 : vector<8x8xf32> to vector<8x8x1xf32>
    %cst_360 = arith.constant 8.000000e+00 : f32
    %819 = vector.broadcast %cst_360 : f32 to vector<8x8x1xf32>
    %820 = arith.divf %818, %819 : vector<8x8x1xf32>
    %821 = vector.extract_strided_slice %729 {offsets = [0, 0, 48], sizes = [8, 8, 16], strides = [1, 1, 1]} : vector<8x8x64xf32> to vector<8x8x16xf32>
    %822 = vector.broadcast %820 : vector<8x8x1xf32> to vector<8x8x16xf32>
    %823 = arith.mulf %822, %821 : vector<8x8x16xf32>
    %cst_361 = arith.constant dense<0.000000e+00> : vector<8x16xf32>
    %824 = vector.multi_reduction <add>, %823, %cst_361 [1] : vector<8x8x16xf32> to vector<8x16xf32>
    %c0_362 = arith.constant 0 : index
    %c48 = arith.constant 48 : index
    %825 = vector.load %arg17[%c0_362, %c48] : memref<8x64xf32, #tpu.memory_space<vmem>>, vector<8x16xf32>
    tpu.vector_store %arg17[%c0_362, %c48], %824 {strides = array<i32>} : memref<8x64xf32, #tpu.memory_space<vmem>>, vector<8x16xf32>,
    %c0_363 = arith.constant 0 : index
    %c0_364 = arith.constant 0 : index
    %826 = vector.load %arg17[%c0_363, %c0_364] : memref<8x64xf32, #tpu.memory_space<vmem>>, vector<8x64xf32>
    %c0_365 = arith.constant 0 : index
    %c0_366 = arith.constant 0 : index
    %827 = vector.load %arg10[%c0_365, %c0_366] : memref<64x64xf32, #tpu.memory_space<vmem>>, vector<64x64xf32>
    %cst_367 = arith.constant dense<0.000000e+00> : vector<8x64xf32>
    %828 = tpu.matmul %826, %827, %cst_367 {dimension_numbers = #tpu.dot_dimension_numbers<[1], [0], [0], [1], [0, 0, 1, 1], [], []>} : vector<8x64xf32>, vector<64x64xf32>, vector<8x64xf32> -> vector<8x64xf32>
    %c0_368 = arith.constant 0 : index
    %c0_369 = arith.constant 0 : index
    %829 = vector.load %arg11[%c0_368, %c0_369] : memref<1x64xf32, #tpu.memory_space<vmem>>, vector<1x64xf32>
    %830 = vector.broadcast %829 : vector<1x64xf32> to vector<8x64xf32>
    %831 = arith.addf %828, %830 : vector<8x64xf32>
    %c0_370 = arith.constant 0 : index
    %c0_371 = arith.constant 0 : index
    %832 = vector.load %arg12[%c0_370, %c0_371] : memref<8x64xf32, #tpu.memory_space<vmem>>, vector<8x64xf32>
    tpu.vector_store %arg12[%c0_370, %c0_371], %831 {strides = array<i32>} : memref<8x64xf32, #tpu.memory_space<vmem>>, vector<8x64xf32>,
    return
  }
  func.func @transform_0(%arg0: i32) -> (i32, i32, i32) {
    %c0_i32 = arith.constant 0 : i32
    %c0_i32_0 = arith.constant 0 : i32
    %c0_i32_1 = arith.constant 0 : i32
    return %c0_i32, %arg0, %c0_i32_0 : i32, i32, i32
  }
  func.func @transform_1(%arg0: i32) -> (i32, i32) {
    %c0_i32 = arith.constant 0 : i32
    %c0_i32_0 = arith.constant 0 : i32
    %c0_i32_1 = arith.constant 0 : i32
    return %c0_i32, %c0_i32_0 : i32, i32
  }
  func.func @transform_2(%arg0: i32) -> (i32, i32) {
    %c0_i32 = arith.constant 0 : i32
    %c0_i32_0 = arith.constant 0 : i32
    %c0_i32_1 = arith.constant 0 : i32
    return %c0_i32, %c0_i32_0 : i32, i32
  }
  func.func @transform_3(%arg0: i32) -> (i32, i32) {
    %c0_i32 = arith.constant 0 : i32
    %c0_i32_0 = arith.constant 0 : i32
    %c0_i32_1 = arith.constant 0 : i32
    return %c0_i32, %c0_i32_0 : i32, i32
  }
  func.func @transform_4(%arg0: i32) -> (i32, i32) {
    %c0_i32 = arith.constant 0 : i32
    %c0_i32_0 = arith.constant 0 : i32
    %c0_i32_1 = arith.constant 0 : i32
    return %c0_i32, %c0_i32_0 : i32, i32
  }
  func.func @transform_5(%arg0: i32) -> (i32, i32) {
    %c0_i32 = arith.constant 0 : i32
    %c0_i32_0 = arith.constant 0 : i32
    %c0_i32_1 = arith.constant 0 : i32
    return %c0_i32, %c0_i32_0 : i32, i32
  }
  func.func @transform_6(%arg0: i32) -> (i32, i32) {
    %c0_i32 = arith.constant 0 : i32
    %c0_i32_0 = arith.constant 0 : i32
    %c0_i32_1 = arith.constant 0 : i32
    return %c0_i32, %c0_i32_0 : i32, i32
  }
  func.func @transform_7(%arg0: i32) -> (i32, i32) {
    %c0_i32 = arith.constant 0 : i32
    %c0_i32_0 = arith.constant 0 : i32
    %c0_i32_1 = arith.constant 0 : i32
    return %c0_i32, %c0_i32_0 : i32, i32
  }
  func.func @transform_8(%arg0: i32) -> (i32, i32) {
    %c0_i32 = arith.constant 0 : i32
    %c0_i32_0 = arith.constant 0 : i32
    %c0_i32_1 = arith.constant 0 : i32
    return %c0_i32, %c0_i32_0 : i32, i32
  }
  func.func @transform_9(%arg0: i32) -> (i32, i32) {
    %c0_i32 = arith.constant 0 : i32
    %c0_i32_0 = arith.constant 0 : i32
    %c0_i32_1 = arith.constant 0 : i32
    return %c0_i32, %c0_i32_0 : i32, i32
  }
  func.func @transform_10(%arg0: i32) -> (i32, i32) {
    %c0_i32 = arith.constant 0 : i32
    %c0_i32_0 = arith.constant 0 : i32
    %c0_i32_1 = arith.constant 0 : i32
    return %c0_i32, %c0_i32_0 : i32, i32
  }
  func.func @transform_11(%arg0: i32) -> (i32, i32) {
    %c0_i32 = arith.constant 0 : i32
    %c0_i32_0 = arith.constant 0 : i32
    return %arg0, %c0_i32 : i32, i32
  }
}

</mosaic_0001>

<bundles_post_ra>
// kernel: segment_lstm_forward.1
= control target key start
LH: loop header
LB: loop body
LE: loop exit
PB: predicated region body
PF: predicated region fallthrough
CT: control target
= control target key end

     0   :  { %s7844_s0 = inlined_call_operand.vmem [shape: f32[8,16,8], index: 0, kind: input, shape index: {}]   ;;  %s7845_s1 = inlined_call_operand.vmem [shape: f32[8,256], index: 1, kind: input, shape index: {}]   ;;  %s7846_s2 = inlined_call_operand.vmem [shape: f32[64,256], index: 2, kind: input, shape index: {}]   ;;  %s7847_s3 = inlined_call_operand.vmem [shape: f32[1,256], index: 3, kind: input, shape index: {}]   ;;  %s7848_s4 = inlined_call_operand.vmem [shape: f32[64,256], index: 4, kind: input, shape index: {}]   ;;  %s7849_s5 = inlined_call_operand.vmem [shape: f32[64,256], index: 5, kind: input, shape index: {}]   ;;  %s7850_s6 = inlined_call_operand.vmem [shape: f32[1,256], index: 6, kind: input, shape index: {}]   ;;  %s7851_s7 = inlined_call_operand.vmem [shape: f32[64,384], index: 7, kind: input, shape index: {}]   ;;  %s7852_s8 = inlined_call_operand.vmem [shape: f32[1,384], index: 8, kind: input, shape index: {}]   ;;  %s7853_s9 = inlined_call_operand.vmem [shape: f32[64,64], index: 9, kind: input, shape index: {}]   ;;  %s7854_s10 = inlined_call_operand.vmem [shape: f32[1,64], index: 10, kind: input, shape index: {}]   ;;  %s7855_s11 = inlined_call_operand.hbm [shape: f32[16,64], index: 11, kind: output, shape index: {}]  }
   0x1   :  { %7861 = sst [smem:[#allocation11_spill]] %s7844_s0 }
   0x2   :  { %7862 = sst [smem:[#allocation12_spill]] %s7845_s1 }
   0x3   :  { %7863 = sst [smem:[#allocation13_spill]] %s7846_s2 }
   0x4   :  { %16 = vsyncpa [#allocation9], 0 }
   0x5   :  { %18 = vsyncpa [#allocation9 + $0x1], 0  ;;  %s5725_s17 = smov 0   ;;  %s5727_s18 = smov 0  }
   0x6   :  { %s5729_s19 = smov 0   ;;  %s5731_s20 = smov 0  }
   0x7 LB: > { %s7858_s21 = sadd.s32 4294967295, %s5656_s20   ;;  %s5064_s22 = sadd.s32 4294967294, %s5656_s20   ;;  %s5656_s20 = sphi %s5731_s20, %s7888_s20   ;;  %s5652_s19 = sphi %s5729_s19, %s7887_s19   ;;  %s5648_s18 = sphi %s5727_s18, %s7886_s18   ;;  %s5644_s17 = sphi %s5725_s17, %s7885_s17  }
   0x8   : > { %s5748_s23 = sadd.s32 1, %s5656_s20   ;;  %s31_s24 = sadd.s32 1, %s5652_s19 }
   0x9   : > { %s28_s25 = ssub.s32 %s5656_s20, %s5748_s23  ;;  %p38_p0 = scmp.ne.s32.totalorder %s5652_s19, %s5648_s18 }
   0xa   : > { %p29_p1 = scmp.eq.s32.totalorder %s28_s25, 0  ;;  %p39_p2 = scmp.eq.s32.totalorder %s5656_s20, 0 }
   0xb   : > { %p278_p3 = scmp.eq.s32.totalorder %s7858_s21, 1  ;;  %p283_p4 = scmp.ne.s32.totalorder %s5648_s18, %s5644_s17 }
   0xc   : > { %s5761_s26 = scalar_select %p29_p1, %s5652_s19, %s31_s24  }
   0xd   : > { %p40_p5 = por %p39_p2, %p38_p0  ;;  %p5763_p6 = por %p278_p3, %p38_p0 }
   0xe   : > { %p284_p7 = scmp.eq.s32.totalorder %s5064_s22, 1  ;;  %p5066_p9 = scmp.ge.s32.totalorder %s5656_s20, 2 }
  0x10   : > { %p5767_p8 = por %p284_p7, %p283_p4  ;;  %330 = sbr.rel (%p5066_p9) target bundleno = 39 (0x27), region = 56 }
  0x15   : > { %333 = sbr.rel (!%p40_p5) target bundleno = 39 (0x27), region = 60  ;;  %s335_s29 = sand.u32 (%p40_p5), 1, %s5652_s19  }
  0x16   : > { %s5068_s30 = sshll.u32 (%p40_p5), %s5656_s20, 3  ;;  %s5067_s12 = sshll.u32 (%p40_p5), %s335_s29, 6 }
  0x17   : > { %s7866_s0 = sld [smem:[#allocation11_spill]] (%p40_p5)  ;;  %s337_s16 = scalar_lea.vmem (%p40_p5), [#allocation7], %s5067_s12 }
  0x1d   : > { %s339_s15 = scalar_lea.vmem %s7866_s0, %s5068_s30 }
  0x1e   : > { %v382_v0 = vld [vmem:[%s339_s15] sm:$0xff]  ;;  %v384_v1 = vld [vmem:[%s339_s15 + $0x10] sm:$0xff] }
  0x1f   : > { %v386_v2 = vld [vmem:[%s339_s15 + $0x20] sm:$0xff]  ;;  %383 = vst [vmem:[%s337_s16] sm:$0xff] %v382_v0  ;;  %v388_v3 = vld [vmem:[%s339_s15 + $0x30] sm:$0xff] }
  0x20   : > { %385 = vst [vmem:[%s337_s16 + $0x8] sm:$0xff] %v384_v1  ;;  %v390_v4 = vld [vmem:[%s339_s15 + $0x40] sm:$0xff]  ;;  %v392_v5 = vld [vmem:[%s339_s15 + $0x50] sm:$0xff] }
  0x21   : > { %387 = vst [vmem:[%s337_s16 + $0x10] sm:$0xff] %v386_v2  ;;  %v394_v6 = vld [vmem:[%s339_s15 + $0x60] sm:$0xff]  ;;  %v396_v7 = vld [vmem:[%s339_s15 + $0x70] sm:$0xff] }
  0x22   : > { %389 = vst [vmem:[%s337_s16 + $0x18] sm:$0xff] %v388_v3 }
  0x23   : > { %391 = vst [vmem:[%s337_s16 + $0x20] sm:$0xff] %v390_v4 }
  0x24   : > { %393 = vst [vmem:[%s337_s16 + $0x28] sm:$0xff] %v392_v5 }
  0x25   : > { %395 = vst [vmem:[%s337_s16 + $0x30] sm:$0xff] %v394_v6 }
  0x26   : > { %397 = vst [vmem:[%s337_s16 + $0x38] sm:$0xff] %v396_v7 }
  0x27 PF: > { %p5069_p10 = scmp.ge.s32.totalorder %s5656_s20, 1  ;;  %p402_p11 = scmp.lt.s32.totalorder %s5656_s20, 3 }
  0x29   : > { %p403_p12 = pnand %p5069_p10, %p402_p11 }
  0x2a   : > { %s7867_s1 = sld [smem:[#allocation12_spill]] (!%p403_p12)  ;;  %s5788_s30 = sand.u32 (!%p403_p12), 1, %s5648_s18  }
  0x2b   : > { %406 = sbr.rel (%p403_p12) target bundleno = 7369 (0x1cc9), region = 98  ;;  %s5070_s12 = sshll.u32 (!%p403_p12), %s5788_s30, 6 }
  0x2c   : > { %s5791_s13 = scalar_lea.vmem (!%p403_p12), [#allocation7], %s5070_s12  ;;  %s7868_s2 = sld [smem:[#allocation13_spill]] (!%p403_p12) }
  0x2d   : > { %s7859_s15 = smov (!%p403_p12), 64   ;;  %s5661_s14 = smov (!%p403_p12), 96  }
  0x2e   : > { %s5662_s21 = smov (!%p403_p12), 112  }
  0x30   : > { %v496_v8 = vld [vmem:[%s7867_s1] sm:$0xff]  ;;  %v497_v9 = vld [vmem:[%s7867_s1 + $0x8] sm:$0xff]  ;;  %vm504_vm0 = vcmask 64512   ;;  %v489_v13 = vld [vmem:[%s5791_s13 + $0x8] sm:$0xff]  ;;  %v7856_v30 = vmov 0.0   ;;  %v448_v39 = vlaneseq  ;;  %vm668_vm12 = vcmask 523264  }
  0x31   : > { %544 = vmatpush.msra.mxu0 %v496_v8  ;;  %585 = vmatpush.msra.mxu1 %v497_v9  ;;  %v488_v10 = vld [vmem:[%s5791_s13] sm:$0xff]  ;;  %v490_v22 = vld [vmem:[%s5791_s13 + $0x10] sm:$0xff]  ;;  %v491_v29 = vld [vmem:[%s5791_s13 + $0x18] sm:$0xff]  ;;  %s4984_s1 = scalar_lea.sflag [#allocation9], %s5788_s30 }
  0x32   : > { %5072 = vmatmul.msk.f32.vlgmr.msra.gmra.mxu0 %vm504_vm0, %v488_v10  ;;  %5080 = vmatmul.msk.f32.vlgmr.msra.gmra.mxu1 %vm504_vm0, %v488_v10  ;;  %v5799_v11 = vld [vmem:[%s7868_s2 + $0x70] sm:$0xff]  ;;  %v5805_v12 = vld [vmem:[%s7868_s2 + $0x78] sm:$0xff]  ;;  %v5814_v14 = vld [vmem:[%s7868_s2 + $0x60] sm:$0xff]  ;;  %v5979_v42 = vand.u32 127, %v448_v39 }
  0x33   : > { %680 = vmatpush.msra.mxu2 %v5799_v11  ;;  %1099 = vmatpush.msrb.mxu0 %v5799_v11  ;;  %v5819_v15 = vld [vmem:[%s7868_s2 + $0x68] sm:$0xff]  ;;  %v5826_v16 = vld [vmem:[%s7868_s2 + $0x50] sm:$0xff]  ;;  %v5831_v17 = vld [vmem:[%s7868_s2 + $0x58] sm:$0xff] }
  0x34   : > { %700 = vmatpush.msra.mxu3 %v5805_v12  ;;  %1119 = vmatpush.msrb.mxu1 %v5805_v12  ;;  %v5838_v18 = vld [vmem:[%s7868_s2 + $0x40] sm:$0xff]  ;;  %v5843_v19 = vld [vmem:[%s7868_s2 + $0x48] sm:$0xff]  ;;  %v5852_v20 = vld [vmem:[%s7868_s2 + $0x30] sm:$0xff]  ;;  %v5982_v43 = vadd.s32 128, %v5979_v42  ;;  %v455_v46 = vand.u32 63, %v5979_v42 }
  0x35   : > { %681 = vmatpush.msra.mxu2 %v5814_v14  ;;  %1100 = vmatpush.msrb.mxu0 %v5814_v14  ;;  %v5857_v21 = vld [vmem:[%s7868_s2 + $0x38] sm:$0xff]  ;;  %v5871_v23 = vld [vmem:[%s7868_s2 + $0x20] sm:$0xff]  ;;  %v5876_v24 = vld [vmem:[%s7868_s2 + $0x28] sm:$0xff] }
  0x36   : > { %701 = vmatpush.msra.mxu3 %v5819_v15  ;;  %1120 = vmatpush.msrb.mxu1 %v5819_v15  ;;  %v5883_v25 = vld [vmem:[%s7868_s2 + $0x10] sm:$0xff]  ;;  %v5888_v26 = vld [vmem:[%s7868_s2 + $0x18] sm:$0xff]  ;;  %v5895_v27 = vld [vmem:[%s7868_s2] sm:$0xff]  ;;  %v462_v47 = vand.u32 63, %v5982_v43  ;;  %vm5989_vm1 = vcmp.lt.s32.totalorder %v455_v46, 32  ;;  %vm480_vm3 = vcmp.lt.s32.totalorder %v5982_v43, 192 }
  0x37   : > { %682 = vmatpush.msra.mxu2 %v5826_v16  ;;  %1101 = vmatpush.msrb.mxu0 %v5826_v16  ;;  %v5900_v28 = vld [vmem:[%s7868_s2 + $0x8] sm:$0xff]  ;;  %v493_v32 = vld [vmem:[%s5791_s13 + $0x28] sm:$0xff]  ;;  %v494_v33 = vld [vmem:[%s5791_s13 + $0x30] sm:$0xff] }
  0x38   : > { %702 = vmatpush.msra.mxu3 %v5831_v17  ;;  %1121 = vmatpush.msrb.mxu1 %v5831_v17  ;;  %v492_v31 = vld [vmem:[%s5791_s13 + $0x20] sm:$0xff]  ;;  %v495_v34 = vld [vmem:[%s5791_s13 + $0x38] sm:$0xff]  ;;  %vm5993_vm2 = vcmp.lt.s32.totalorder %v462_v47, 32  ;;  %s7876_s13 = smov 64  }
  0x39   : > { %683 = vmatpush.msra.mxu2 %v5838_v18  ;;  %1102 = vmatpush.msrb.mxu0 %v5838_v18  ;;  %v498_v48 = vld [vmem:[%s7847_s3] sm:$0x3] }
  0x3a   : > { %5073 = vmatmul.msk.f32.gmra.mxu0 %vm504_vm0, %v489_v13  ;;  %5081 = vmatmul.msk.f32.gmra.mxu1 %vm504_vm0, %v489_v13  ;;  %v500_v49 = vperm.slane %v498_v48, 0  ;;  %v501_v50 = vperm.slane %v498_v48, 1 }
  0x3b   : > { %703 = vmatpush.msra.mxu3 %v5843_v19  ;;  %1122 = vmatpush.msrb.mxu1 %v5843_v19 }
  0x3c   : > { %684 = vmatpush.msra.mxu2 %v5852_v20  ;;  %1103 = vmatpush.msrb.mxu0 %v5852_v20 }
  0x3d   : > { %704 = vmatpush.msra.mxu3 %v5857_v21  ;;  %1123 = vmatpush.msrb.mxu1 %v5857_v21 }
  0x3e   : > { %685 = vmatpush.msra.mxu2 %v5871_v23  ;;  %1104 = vmatpush.msrb.mxu0 %v5871_v23 }
  0x3f   : > { %705 = vmatpush.msra.mxu3 %v5876_v24  ;;  %1124 = vmatpush.msrb.mxu1 %v5876_v24 }
  0x40   : > { %686 = vmatpush.msra.mxu2 %v5883_v25  ;;  %1105 = vmatpush.msrb.mxu0 %v5883_v25 }
  0x41   : > { %706 = vmatpush.msra.mxu3 %v5888_v26  ;;  %1125 = vmatpush.msrb.mxu1 %v5888_v26 }
  0x42   : > { %5074 = vmatmul.msk.f32.gmra.mxu0 %vm504_vm0, %v490_v22  ;;  %5082 = vmatmul.msk.f32.gmra.mxu1 %vm504_vm0, %v490_v22 }
  0x43   : > { %687 = vmatpush.msra.mxu2 %v5895_v27  ;;  %707 = vmatpush.msra.mxu3 %v5900_v28 }
  0x44   : > { %688 = vmatmul.f32.vlgmr.msra.gmra.mxu2 %v7856_v30  ;;  %708 = vmatmul.f32.vlgmr.msra.gmra.mxu3 %v7856_v30 }
  0x45   : > { %784 = vmatpush.msrb.mxu2 %v5799_v11  ;;  %804 = vmatpush.msrb.mxu3 %v5805_v12 }
  0x46   : > { %1106 = vmatpush.msrb.mxu0 %v5895_v27  ;;  %1126 = vmatpush.msrb.mxu1 %v5900_v28 }
  0x47   : > { %785 = vmatpush.msrb.mxu2 %v5814_v14  ;;  %805 = vmatpush.msrb.mxu3 %v5819_v15 }
  0x48   : > { %1309 = vmatpush.msra.mxu0 %v5799_v11  ;;  %1329 = vmatpush.msra.mxu1 %v5805_v12 }
  0x49   : > { %786 = vmatpush.msrb.mxu2 %v5826_v16  ;;  %806 = vmatpush.msrb.mxu3 %v5831_v17 }
  0x4a   : > { %5075 = vmatmul.msk.f32.gmra.mxu0 %vm504_vm0, %v491_v29  ;;  %5083 = vmatmul.msk.f32.gmra.mxu1 %vm504_vm0, %v491_v29 }
  0x4b   : > { %787 = vmatpush.msrb.mxu2 %v5838_v18  ;;  %807 = vmatpush.msrb.mxu3 %v5843_v19 }
  0x4c   : > { %1310 = vmatpush.msra.mxu0 %v5814_v14  ;;  %1330 = vmatpush.msra.mxu1 %v5819_v15 }
  0x4d   : > { %788 = vmatpush.msrb.mxu2 %v5852_v20  ;;  %808 = vmatpush.msrb.mxu3 %v5857_v21 }
  0x4e   : > { %1311 = vmatpush.msra.mxu0 %v5826_v16  ;;  %1331 = vmatpush.msra.mxu1 %v5831_v17 }
  0x4f   : > { %789 = vmatpush.msrb.mxu2 %v5871_v23  ;;  %809 = vmatpush.msrb.mxu3 %v5876_v24 }
  0x50   : > { %1312 = vmatpush.msra.mxu0 %v5838_v18  ;;  %1332 = vmatpush.msra.mxu1 %v5843_v19 }
  0x51   : > { %790 = vmatpush.msrb.mxu2 %v5883_v25  ;;  %810 = vmatpush.msrb.mxu3 %v5888_v26 }
  0x52   : > { %5076 = vmatmul.msk.f32.gmra.mxu0 %vm504_vm0, %v492_v31  ;;  %5084 = vmatmul.msk.f32.gmra.mxu1 %vm504_vm0, %v492_v31 }
  0x53   : > { %791 = vmatpush.msrb.mxu2 %v5895_v27  ;;  %811 = vmatpush.msrb.mxu3 %v5900_v28 }
  0x54   : > { %1313 = vmatpush.msra.mxu0 %v5852_v20  ;;  %1333 = vmatpush.msra.mxu1 %v5857_v21 }
  0x55   : > { %889 = vmatpush.msra.mxu2 %v5799_v11  ;;  %909 = vmatpush.msra.mxu3 %v5805_v12 }
  0x56   : > { %1314 = vmatpush.msra.mxu0 %v5871_v23  ;;  %1334 = vmatpush.msra.mxu1 %v5876_v24 }
  0x57   : > { %890 = vmatpush.msra.mxu2 %v5814_v14  ;;  %910 = vmatpush.msra.mxu3 %v5819_v15 }
  0x58   : > { %1315 = vmatpush.msra.mxu0 %v5883_v25  ;;  %1335 = vmatpush.msra.mxu1 %v5888_v26 }
  0x59   : > { %891 = vmatpush.msra.mxu2 %v5826_v16  ;;  %911 = vmatpush.msra.mxu3 %v5831_v17 }
  0x5a   : > { %5077 = vmatmul.msk.f32.gmra.mxu0 %vm504_vm0, %v493_v32  ;;  %5085 = vmatmul.msk.f32.gmra.mxu1 %vm504_vm0, %v493_v32 }
  0x5b   : > { %892 = vmatpush.msra.mxu2 %v5838_v18  ;;  %912 = vmatpush.msra.mxu3 %v5843_v19 }
  0x5c   : > { %1316 = vmatpush.msra.mxu0 %v5895_v27  ;;  %1336 = vmatpush.msra.mxu1 %v5900_v28 }
  0x5d   : > { %893 = vmatpush.msra.mxu2 %v5852_v20  ;;  %913 = vmatpush.msra.mxu3 %v5857_v21 }
  0x5f   : > { %894 = vmatpush.msra.mxu2 %v5871_v23  ;;  %914 = vmatpush.msra.mxu3 %v5876_v24 }
  0x61   : > { %895 = vmatpush.msra.mxu2 %v5883_v25  ;;  %915 = vmatpush.msra.mxu3 %v5888_v26 }
  0x62   : > { %5078 = vmatmul.msk.f32.gmra.mxu0 %vm504_vm0, %v494_v33  ;;  %5086 = vmatmul.msk.f32.gmra.mxu1 %vm504_vm0, %v494_v33 }
  0x63   : > { %896 = vmatpush.msra.mxu2 %v5895_v27  ;;  %916 = vmatpush.msra.mxu3 %v5900_v28 }
  0x6a   : > { %5079 = vmatmul.msk.f32.gmra.mxu0 %vm504_vm0, %v495_v34  ;;  %5087 = vmatmul.msk.f32.gmra.mxu1 %vm504_vm0, %v495_v34 }
  0xaf   : > { %v546_v35 = vpop.f32.mrf.mxu0  ;;  %v587_v36 = vpop.f32.mrf.mxu1 }
  0xb0   : > { %v6046_v32 = vadd.f32 %v546_v35, %v500_v49  ;;  %v6048_v33 = vadd.f32 %v587_v36, %v501_v50 }
  0xb7   : > { %v549_v37 = vpop.f32.mrf.mxu0  ;;  %v590_v38 = vpop.f32.mrf.mxu1 }
  0xb8   : > { %v6029_v7 = vadd.f32 %v549_v37, %v500_v49  ;;  %v6031_v8 = vadd.f32 %v590_v38, %v501_v50 }
  0xbf   : > { %v552_v40 = vpop.f32.mrf.mxu0  ;;  %v593_v41 = vpop.f32.mrf.mxu1 }
  0xc0   : > { %v6013_v63 = vadd.f32 %v552_v40, %v500_v49  ;;  %v6015_v0 = vadd.f32 %v593_v41, %v501_v50  ;;  %v5659_v40 = vmov 1.0  }
  0xc1   : > { %v6056_v41 = vsel %vm480_vm3, 2.0, %v5659_v40 }
  0xc7   : > { %v555_v44 = vpop.f32.mrf.mxu0  ;;  %v596_v45 = vpop.f32.mrf.mxu1 }
  0xc8   : > { %v5997_v55 = vadd.f32 %v555_v44, %v500_v49  ;;  %v5999_v56 = vadd.f32 %v596_v45, %v501_v50  ;;  %v689_v38 = vpop.f32.mrf.mxu2  ;;  %v709_v39 = vpop.f32.mrf.mxu3 }
  0xcf   : > { %v558_v53 = vpop.f32.mrf.mxu0  ;;  %v599_v54 = vpop.f32.mrf.mxu1 }
  0xd0   : > { %v6001_v57 = vadd.f32 %v558_v53, %v500_v49  ;;  %v6003_v58 = vadd.f32 %v599_v54, %v501_v50 }
  0xd2   : > { %v630_v59 = vsel %vm5989_vm1, %v6001_v57, %v5997_v55  ;;  %v631_v60 = vsel %vm5993_vm2, %v6003_v58, %v5999_v56 }
  0xd7   : > { %v561_v61 = vpop.f32.mrf.mxu0  ;;  %v602_v62 = vpop.f32.mrf.mxu1 }
  0xd8   : > { %v6017_v1 = vadd.f32 %v561_v61, %v500_v49  ;;  %v6019_v2 = vadd.f32 %v602_v62, %v501_v50 }
  0xda   : > { %v635_v3 = vsel %vm5989_vm1, %v6017_v1, %v6013_v63  ;;  %v636_v4 = vsel %vm5993_vm2, %v6019_v2, %v6015_v0 }
  0xdf   : > { %v564_v5 = vpop.f32.mrf.mxu0  ;;  %v605_v6 = vpop.f32.mrf.mxu1 }
  0xe0   : > { %v6033_v9 = vadd.f32 %v564_v5, %v500_v49  ;;  %v6035_v10 = vadd.f32 %v605_v6, %v501_v50 }
  0xe2   : > { %v640_v13 = vsel %vm5989_vm1, %v6033_v9, %v6029_v7  ;;  %v641_v22 = vsel %vm5993_vm2, %v6035_v10, %v6031_v8 }
  0xe7   : > { %v567_v29 = vpop.f32.mrf.mxu0  ;;  %v608_v31 = vpop.f32.mrf.mxu1 }
  0xe8   : > { %v6050_v34 = vadd.f32 %v567_v29, %v500_v49  ;;  %v6052_v37 = vadd.f32 %v608_v31, %v501_v50 }
  0xea   : > { %v611_v44 = vsel %vm5989_vm1, %v6046_v32, %v6050_v34  ;;  %v612_v35 = vsel %vm5993_vm2, %v6048_v33, %v6052_v37 }
  0xeb   : > { %v712_v46 = vadd.f32 %v689_v38, %v611_v44  ;;  %v713_v47 = vadd.f32 %v709_v39, %v612_v35 }
  0xed   : > { %v5088_v48 = vmul.f32 -1.442695, %v712_v46  ;;  %v715_v49 = vmul.f32 %v713_v47, %v6056_v41 }
  0xef   : > { %5304 = vpow2.f32 %v5088_v48  ;;  %v5089_v50 = vmul.f32 -1.442695, %v715_v49 }
  0xf1   : > { %5306 = vpow2.f32 %v5089_v50 }
  0xf5   : > { %v5305_v53 = vpop.eup %5304 }
  0xf6   : > { %v722_v54 = vadd.f32 1.0, %v5305_v53 }
  0xf7   : > { %v5307_v61 = vpop.eup %5306 }
  0xf8   : > { %5308 = vrcp.f32 %v722_v54  ;;  %v723_v62 = vadd.f32 1.0, %v5307_v61  ;;  %v735_v48 = vand.u32 2147483648, %v722_v54  ;;  %vm729_vm8 = vweird.f32 %v722_v54 }
  0xf9   : > { %v733_v50 = vand.u32 2147483647, %v722_v54  ;;  %v6078_v61 = vsel %vm480_vm3, -1.0, %v7856_v30 }
  0xfa   : > { %5310 = vrcp.f32 %v723_v62  ;;  %v750_v39 = vand.u32 2147483648, %v723_v62  ;;  %v748_v35 = vand.u32 2147483647, %v723_v62  ;;  %vm744_vm6 = vweird.f32 %v723_v62 }
  0xfb   : > { %vm734_vm11 = vcmp.eq.f32.partialorder %v733_v50, 8.507059e+37 }
  0xfc   : > { %v751_v49 = vor.u32 1.1754944e-38, %v750_v39  ;;  %vm749_vm9 = vcmp.eq.f32.partialorder %v748_v35, 8.507059e+37 }
  0xfe   : > { %v5309_v5 = vpop.eup %5308 }
  0xff   : > { %v725_v6 = vmul.f32 %v5309_v5, %v722_v54  ;;  %vm730_vm5 = vweird.f32 %v5309_v5 }
 0x100   : > { %v5311_v29 = vpop.eup %5310  ;;  %vm731_vm10 = vmor %vm729_vm8, %vm730_vm5 }
 0x101   : > { %v726_v31 = vsub.f32 1.0, %v725_v6  ;;  %v740_v40 = vmul.f32 %v5311_v29, %v723_v62  ;;  %vm745_vm4 = vweird.f32 %v5311_v29 }
 0x102   : > { %vm746_vm7 = vmor %vm744_vm6, %vm745_vm4 }
 0x103   : > { %v727_v45 = vmul.f32 %v5309_v5, %v726_v31  ;;  %v741_v38 = vsub.f32 1.0, %v740_v40  ;;  %v736_v40 = vor.u32 1.1754944e-38, %v735_v48  ;;  %v616_v48 = vsel %vm5993_vm2, %v6031_v8, %v6035_v10 }
 0x105   : > { %v742_v44 = vmul.f32 %v5311_v29, %v741_v38  ;;  %v728_v46 = vadd.f32 %v5309_v5, %v727_v45 }
 0x107   : > { %v743_v47 = vadd.f32 %v5311_v29, %v742_v44  ;;  %v732_v31 = vsel %vm731_vm10, %v5309_v5, %v728_v46  ;;  %v615_v46 = vsel %vm5989_vm1, %v6029_v7, %v6033_v9 }
 0x108   : > { %v737_v38 = vsel %vm734_vm11, %v736_v40, %v732_v31 }
 0x109   : > { %v747_v53 = vsel %vm746_vm7, %v5311_v29, %v743_v47  ;;  %v758_v54 = vmul.f32 0.0, %v737_v38 }
 0x10a   : > { %v752_v6 = vsel %vm749_vm9, %v751_v49, %v747_v53 }
 0x10b   : > { %v755_v45 = vmul.f32 %v752_v6, %v6056_v41 }
 0x10d   : > { %v757_v62 = vadd.f32 %v755_v45, %v6078_v61 }
 0x10f   : > { %v759_v39 = vmul.f32 %v757_v62, %v737_v38 }
 0x111   : > { %761 = vrot.lane.b32.xlu0 %v759_v39, %s7859_s15 }
 0x183   : > { %v762_v29 = vpop.permute.xlu0 %761 }
 0x184   : > { %v6083_v44 = vadd.f32 %v762_v29, %v758_v54 }
 0x186   : > { %5312 = vtanh.f32 %v6083_v44 }
 0x18c   : > { %v5313_v43 = vpop.eup %5312 }
 0x18d   : > { %v766_v35 = vmul.f32 %v5313_v43, %v757_v62 }
 0x18f   : > { %768 = vrot.lane.b32.xlu0 %v766_v35, %s7859_s15 }
 0x201   : > { %v769_v5 = vpop.permute.xlu0 %768 }
 0x202   : > { %771 = vst.msk [vmem:[#allocation3] sm:$0xff] %vm668_vm12, %v769_v5  ;;  %5090 = vmatmul.msk.f32.vlgmr.msrb.gmra.mxu2 %vm668_vm12, %v769_v5  ;;  %5091 = vmatmul.msk.f32.vlgmr.msrb.gmra.mxu3 %vm668_vm12, %v769_v5 }
 0x203   : > { %994 = vmatpush.msrb.mxu2 %v5799_v11  ;;  %1014 = vmatpush.msrb.mxu3 %v5805_v12 }
 0x205   : > { %995 = vmatpush.msrb.mxu2 %v5814_v14  ;;  %1015 = vmatpush.msrb.mxu3 %v5819_v15 }
 0x207   : > { %996 = vmatpush.msrb.mxu2 %v5826_v16  ;;  %1016 = vmatpush.msrb.mxu3 %v5831_v17 }
 0x209   : > { %997 = vmatpush.msrb.mxu2 %v5838_v18  ;;  %1017 = vmatpush.msrb.mxu3 %v5843_v19 }
 0x20b   : > { %998 = vmatpush.msrb.mxu2 %v5852_v20  ;;  %1018 = vmatpush.msrb.mxu3 %v5857_v21 }
 0x20d   : > { %999 = vmatpush.msrb.mxu2 %v5871_v23  ;;  %1019 = vmatpush.msrb.mxu3 %v5876_v24 }
 0x20f   : > { %1000 = vmatpush.msrb.mxu2 %v5883_v25  ;;  %1020 = vmatpush.msrb.mxu3 %v5888_v26 }
 0x211   : > { %1001 = vmatpush.msrb.mxu2 %v5895_v27  ;;  %1021 = vmatpush.msrb.mxu3 %v5900_v28 }
 0x285   : > { %v793_v47 = vpop.f32.mrf.mxu2  ;;  %v813_v49 = vpop.f32.mrf.mxu3 }
 0x286   : > { %v816_v50 = vadd.f32 %v793_v47, %v615_v46  ;;  %v817_v53 = vadd.f32 %v813_v49, %v616_v48 }
 0x288   : > { %v5092_v6 = vmul.f32 -1.442695, %v816_v50  ;;  %v819_v31 = vmul.f32 %v817_v53, %v6056_v41 }
 0x28a   : > { %5314 = vpow2.f32 %v5092_v6  ;;  %v5093_v45 = vmul.f32 -1.442695, %v819_v31 }
 0x28c   : > { %5316 = vpow2.f32 %v5093_v45 }
 0x290   : > { %v5315_v40 = vpop.eup %5314 }
 0x291   : > { %v826_v62 = vadd.f32 1.0, %v5315_v40 }
 0x292   : > { %v5317_v38 = vpop.eup %5316 }
 0x293   : > { %5318 = vrcp.f32 %v826_v62  ;;  %v827_v39 = vadd.f32 1.0, %v5317_v38  ;;  %v839_v6 = vand.u32 2147483648, %v826_v62  ;;  %vm833_vm4 = vweird.f32 %v826_v62 }
 0x294   : > { %v837_v45 = vand.u32 2147483647, %v826_v62 }
 0x295   : > { %5320 = vrcp.f32 %v827_v39  ;;  %v854_v47 = vand.u32 2147483648, %v827_v39  ;;  %v852_v49 = vand.u32 2147483647, %v827_v39  ;;  %vm848_vm15 = vweird.f32 %v827_v39 }
 0x296   : > { %vm838_vm7 = vcmp.eq.f32.partialorder %v837_v45, 8.507059e+37 }
 0x297   : > { %v855_v31 = vor.u32 1.1754944e-38, %v854_v47  ;;  %vm853_vm5 = vcmp.eq.f32.partialorder %v852_v49, 8.507059e+37  ;;  %v621_v49 = vsel %vm5993_vm2, %v6015_v0, %v6019_v2 }
 0x299   : > { %v5319_v54 = vpop.eup %5318 }
 0x29a   : > { %v829_v29 = vmul.f32 %v5319_v54, %v826_v62  ;;  %vm834_vm14 = vweird.f32 %v5319_v54 }
 0x29b   : > { %v5321_v43 = vpop.eup %5320  ;;  %vm835_vm6 = vmor %vm833_vm4, %vm834_vm14 }
 0x29c   : > { %v830_v35 = vsub.f32 1.0, %v829_v29  ;;  %v844_v5 = vmul.f32 %v5321_v43, %v827_v39  ;;  %vm849_vm13 = vweird.f32 %v5321_v43 }
 0x29d   : > { %vm850_vm3 = vmor %vm848_vm15, %vm849_vm13 }
 0x29e   : > { %v831_v30 = vmul.f32 %v5319_v54, %v830_v35  ;;  %v845_v46 = vsub.f32 1.0, %v844_v5  ;;  %v840_v5 = vor.u32 1.1754944e-38, %v839_v6 }
 0x2a0   : > { %v846_v48 = vmul.f32 %v5321_v43, %v845_v46  ;;  %v832_v50 = vadd.f32 %v5319_v54, %v831_v30 }
 0x2a2   : > { %v847_v53 = vadd.f32 %v5321_v43, %v846_v48  ;;  %v836_v29 = vsel %vm835_vm6, %v5319_v54, %v832_v50 }
 0x2a3   : > { %v841_v30 = vsel %vm838_vm7, %v840_v5, %v836_v29 }
 0x2a4   : > { %v851_v40 = vsel %vm850_vm3, %v5321_v43, %v847_v53  ;;  %v862_v39 = vmul.f32 %v841_v30, %v6083_v44 }
 0x2a5   : > { %v856_v38 = vsel %vm853_vm5, %v855_v31, %v851_v40 }
 0x2a6   : > { %v859_v35 = vmul.f32 %v856_v38, %v6056_v41 }
 0x2a8   : > { %v861_v46 = vadd.f32 %v859_v35, %v6078_v61 }
 0x2aa   : > { %v863_v36 = vmul.f32 %v861_v46, %v841_v30 }
 0x2ac   : > { %865 = vrot.lane.b32.xlu1 %v863_v36, %s7859_s15  ;;  %v620_v36 = vsel %vm5989_vm1, %v6013_v63, %v6017_v1 }
 0x31e   : > { %v866_v47 = vpop.permute.xlu1 %865 }
 0x31f   : > { %v6119_v48 = vadd.f32 %v866_v47, %v862_v39 }
 0x321   : > { %5322 = vtanh.f32 %v6119_v48 }
 0x327   : > { %v5323_v62 = vpop.eup %5322 }
 0x328   : > { %v870_v43 = vmul.f32 %v5323_v62, %v861_v46 }
 0x32a   : > { %872 = vrot.lane.b32.xlu1 %v870_v43, %s7859_s15 }
 0x39c   : > { %v873_v54 = vpop.permute.xlu1 %872 }
 0x39d   : > { %876 = vst.msk [vmem:[#allocation3 + $0x8] sm:$0xff] %vm668_vm12, %v873_v54  ;;  %5094 = vmatmul.msk.f32.vlgmr.msra.gmra.mxu2 %vm668_vm12, %v873_v54  ;;  %5095 = vmatmul.msk.f32.vlgmr.msra.gmra.mxu3 %vm668_vm12, %v873_v54 }
 0x39e   : > { %1204 = vmatpush.msra.mxu2 %v5799_v11  ;;  %1224 = vmatpush.msra.mxu3 %v5805_v12 }
 0x3a0   : > { %1205 = vmatpush.msra.mxu2 %v5814_v14  ;;  %1225 = vmatpush.msra.mxu3 %v5819_v15 }
 0x3a2   : > { %1206 = vmatpush.msra.mxu2 %v5826_v16  ;;  %1226 = vmatpush.msra.mxu3 %v5831_v17 }
 0x3a4   : > { %1207 = vmatpush.msra.mxu2 %v5838_v18  ;;  %1227 = vmatpush.msra.mxu3 %v5843_v19 }
 0x3a6   : > { %1208 = vmatpush.msra.mxu2 %v5852_v20  ;;  %1228 = vmatpush.msra.mxu3 %v5857_v21 }
 0x3a8   : > { %1209 = vmatpush.msra.mxu2 %v5871_v23  ;;  %1229 = vmatpush.msra.mxu3 %v5876_v24 }
 0x3aa   : > { %1210 = vmatpush.msra.mxu2 %v5883_v25  ;;  %1230 = vmatpush.msra.mxu3 %v5888_v26 }
 0x3ac   : > { %1211 = vmatpush.msra.mxu2 %v5895_v27  ;;  %1231 = vmatpush.msra.mxu3 %v5900_v28 }
 0x420   : > { %v898_v44 = vpop.f32.mrf.mxu2  ;;  %v918_v50 = vpop.f32.mrf.mxu3 }
 0x421   : > { %v921_v53 = vadd.f32 %v898_v44, %v620_v36  ;;  %v922_v6 = vadd.f32 %v918_v50, %v621_v49 }
 0x423   : > { %v5096_v31 = vmul.f32 -1.442695, %v921_v53  ;;  %v924_v45 = vmul.f32 %v922_v6, %v6056_v41 }
 0x425   : > { %5324 = vpow2.f32 %v5096_v31  ;;  %v5097_v40 = vmul.f32 -1.442695, %v924_v45 }
 0x427   : > { %5326 = vpow2.f32 %v5097_v40 }
 0x42b   : > { %v5325_v38 = vpop.eup %5324 }
 0x42c   : > { %v931_v29 = vadd.f32 1.0, %v5325_v38 }
 0x42d   : > { %v5327_v35 = vpop.eup %5326 }
 0x42e   : > { %5328 = vrcp.f32 %v931_v29  ;;  %v932_v5 = vadd.f32 1.0, %v5327_v35  ;;  %v944_v6 = vand.u32 2147483648, %v931_v29  ;;  %vm938_vm13 = vweird.f32 %v931_v29 }
 0x42f   : > { %v942_v45 = vand.u32 2147483647, %v931_v29 }
 0x430   : > { %5330 = vrcp.f32 %v932_v5  ;;  %v959_v36 = vand.u32 2147483648, %v932_v5  ;;  %v957_v49 = vand.u32 2147483647, %v932_v5  ;;  %vm953_vm10 = vweird.f32 %v932_v5 }
 0x431   : > { %vm943_vm3 = vcmp.eq.f32.partialorder %v942_v45, 8.507059e+37 }
 0x432   : > { %v960_v31 = vor.u32 1.1754944e-38, %v959_v36  ;;  %vm958_vm14 = vcmp.eq.f32.partialorder %v957_v49, 8.507059e+37 }
 0x434   : > { %v5329_v46 = vpop.eup %5328 }
 0x435   : > { %v934_v30 = vmul.f32 %v5329_v46, %v931_v29  ;;  %vm939_vm9 = vweird.f32 %v5329_v46 }
 0x436   : > { %v5331_v39 = vpop.eup %5330  ;;  %vm940_vm15 = vmor %vm938_vm13, %vm939_vm9 }
 0x437   : > { %v935_v47 = vsub.f32 1.0, %v934_v30  ;;  %v949_v62 = vmul.f32 %v5331_v39, %v932_v5  ;;  %vm954_vm8 = vweird.f32 %v5331_v39 }
 0x438   : > { %vm955_vm11 = vmor %vm953_vm10, %vm954_vm8 }
 0x439   : > { %v936_v43 = vmul.f32 %v5329_v46, %v935_v47  ;;  %v950_v54 = vsub.f32 1.0, %v949_v62  ;;  %v945_v47 = vor.u32 1.1754944e-38, %v944_v6 }
 0x43b   : > { %v951_v44 = vmul.f32 %v5331_v39, %v950_v54  ;;  %v937_v50 = vadd.f32 %v5329_v46, %v936_v43 }
 0x43d   : > { %v952_v53 = vadd.f32 %v5331_v39, %v951_v44  ;;  %v941_v35 = vsel %vm940_vm15, %v5329_v46, %v937_v50 }
 0x43e   : > { %v946_v43 = vsel %vm943_vm3, %v945_v47, %v941_v35 }
 0x43f   : > { %v956_v40 = vsel %vm955_vm11, %v5331_v39, %v952_v53  ;;  %v967_v5 = vmul.f32 %v946_v43, %v6119_v48 }
 0x440   : > { %v961_v38 = vsel %vm958_vm14, %v960_v31, %v956_v40 }
 0x441   : > { %v964_v30 = vmul.f32 %v961_v38, %v6056_v41 }
 0x443   : > { %v966_v62 = vadd.f32 %v964_v30, %v6078_v61 }
 0x445   : > { %v968_v54 = vmul.f32 %v966_v62, %v946_v43 }
 0x447   : > { %970 = vrot.lane.b32.xlu2 %v968_v54, %s7859_s15 }
 0x4a1   : > { %v971_v36 = vpop.permute.xlu2 %970 }
 0x4a2   : > { %v6155_v44 = vadd.f32 %v971_v36, %v967_v5 }
 0x4a4   : > { %5332 = vtanh.f32 %v6155_v44 }
 0x4aa   : > { %v5333_v29 = vpop.eup %5332 }
 0x4ab   : > { %v975_v39 = vmul.f32 %v5333_v29, %v966_v62 }
 0x4ad   : > { %977 = vrot.lane.b32.xlu2 %v975_v39, %s7859_s15 }
 0x507   : > { %v978_v46 = vpop.permute.xlu2 %977 }
 0x508   : > { %981 = vst.msk [vmem:[#allocation3 + $0x10] sm:$0xff] %vm668_vm12, %v978_v46  ;;  %5098 = vmatmul.msk.f32.vlgmr.msrb.gmra.mxu2 %vm668_vm12, %v978_v46  ;;  %5099 = vmatmul.msk.f32.vlgmr.msrb.gmra.mxu3 %vm668_vm12, %v978_v46 }
 0x509   : > { %1414 = vmatpush.msrb.mxu2 %v5799_v11  ;;  %1434 = vmatpush.msrb.mxu3 %v5805_v12  ;;  %v625_v11 = vsel %vm5989_vm1, %v5997_v55, %v6001_v57 }
 0x50b   : > { %1415 = vmatpush.msrb.mxu2 %v5814_v14  ;;  %1435 = vmatpush.msrb.mxu3 %v5819_v15  ;;  %v626_v14 = vsel %vm5993_vm2, %v5999_v56, %v6003_v58 }
 0x50d   : > { %1416 = vmatpush.msrb.mxu2 %v5826_v16  ;;  %1436 = vmatpush.msrb.mxu3 %v5831_v17 }
 0x50f   : > { %1417 = vmatpush.msrb.mxu2 %v5838_v18  ;;  %1437 = vmatpush.msrb.mxu3 %v5843_v19 }
 0x511   : > { %1418 = vmatpush.msrb.mxu2 %v5852_v20  ;;  %1438 = vmatpush.msrb.mxu3 %v5857_v21 }
 0x513   : > { %1419 = vmatpush.msrb.mxu2 %v5871_v23  ;;  %1439 = vmatpush.msrb.mxu3 %v5876_v24 }
 0x515   : > { %1420 = vmatpush.msrb.mxu2 %v5883_v25  ;;  %1440 = vmatpush.msrb.mxu3 %v5888_v26 }
 0x517   : > { %1421 = vmatpush.msrb.mxu2 %v5895_v27  ;;  %1441 = vmatpush.msrb.mxu3 %v5900_v28 }
 0x58b   : > { %v1003_v12 = vpop.f32.mrf.mxu2  ;;  %v1023_v15 = vpop.f32.mrf.mxu3 }
 0x58c   : > { %v1026_v16 = vadd.f32 %v1003_v12, %v625_v11  ;;  %v1027_v17 = vadd.f32 %v1023_v15, %v626_v14 }
 0x58e   : > { %v5100_v18 = vmul.f32 -1.442695, %v1026_v16  ;;  %v1029_v19 = vmul.f32 %v1027_v17, %v6056_v41 }
 0x590   : > { %5334 = vpow2.f32 %v5100_v18  ;;  %v5101_v20 = vmul.f32 -1.442695, %v1029_v19 }
 0x592   : > { %5336 = vpow2.f32 %v5101_v20 }
 0x596   : > { %v5335_v21 = vpop.eup %5334 }
 0x597   : > { %v1036_v23 = vadd.f32 1.0, %v5335_v21 }
 0x598   : > { %v5337_v24 = vpop.eup %5336 }
 0x599   : > { %5338 = vrcp.f32 %v1036_v23  ;;  %v1037_v25 = vadd.f32 1.0, %v5337_v24  ;;  %v1049_v35 = vand.u32 2147483648, %v1036_v23  ;;  %vm1043_vm8 = vweird.f32 %v1036_v23 }
 0x59a   : > { %v1047_v47 = vand.u32 2147483647, %v1036_v23 }
 0x59b   : > { %5340 = vrcp.f32 %v1037_v25  ;;  %v1064_v6 = vand.u32 2147483648, %v1037_v25  ;;  %v1062_v45 = vand.u32 2147483647, %v1037_v25  ;;  %vm1058_vm6 = vweird.f32 %v1037_v25 }
 0x59c   : > { %v1050_v36 = vor.u32 1.1754944e-38, %v1049_v35  ;;  %vm1048_vm11 = vcmp.eq.f32.partialorder %v1047_v47, 8.507059e+37 }
 0x59d   : > { %v1065_v30 = vor.u32 1.1754944e-38, %v1064_v6  ;;  %vm1063_vm9 = vcmp.eq.f32.partialorder %v1062_v45, 8.507059e+37 }
 0x59f   : > { %v5339_v26 = vpop.eup %5338 }
 0x5a0   : > { %v1039_v27 = vmul.f32 %v5339_v26, %v1036_v23  ;;  %vm1044_vm5 = vweird.f32 %v5339_v26 }
 0x5a1   : > { %v5341_v28 = vpop.eup %5340  ;;  %vm1045_vm10 = vmor %vm1043_vm8, %vm1044_vm5  ;;  %vm487_vm8 = vcmp.lt.s32.totalorder %v5979_v42, 32 }
 0x5a2   : > { %v1054_v48 = vmul.f32 %v5341_v28, %v1037_v25  ;;  %v1040_v49 = vsub.f32 1.0, %v1039_v27  ;;  %vm1059_vm4 = vweird.f32 %v5341_v28 }
 0x5a3   : > { %vm1060_vm7 = vmor %vm1058_vm6, %vm1059_vm4 }
 0x5a4   : > { %v1055_v50 = vsub.f32 1.0, %v1054_v48  ;;  %v1041_v53 = vmul.f32 %v5339_v26, %v1040_v49 }
 0x5a6   : > { %v1056_v31 = vmul.f32 %v5341_v28, %v1055_v50  ;;  %v1042_v40 = vadd.f32 %v5339_v26, %v1041_v53 }
 0x5a8   : > { %v1057_v38 = vadd.f32 %v5341_v28, %v1056_v31  ;;  %v1046_v54 = vsel %vm1045_vm10, %v5339_v26, %v1042_v40 }
 0x5a9   : > { %v1051_v39 = vsel %vm1048_vm11, %v1050_v36, %v1046_v54 }
 0x5aa   : > { %v1061_v62 = vsel %vm1060_vm7, %v5341_v28, %v1057_v38  ;;  %v1072_v11 = vmul.f32 %v1051_v39, %v6155_v44 }
 0x5ab   : > { %v1066_v43 = vsel %vm1063_vm9, %v1065_v30, %v1061_v62 }
 0x5ac   : > { %v1069_v5 = vmul.f32 %v1066_v43, %v6056_v41 }
 0x5ae   : > { %v1071_v29 = vadd.f32 %v1069_v5, %v6078_v61 }
 0x5b0   : > { %v1073_v46 = vmul.f32 %v1071_v29, %v1051_v39 }
 0x5b2   : > { %1075 = vrot.lane.b32.xlu0 %v1073_v46, %s7859_s15 }
 0x624   : > { %v1076_v12 = vpop.permute.xlu0 %1075 }
 0x625   : > { %v1078_v14 = vadd.f32 %v1076_v12, %v1072_v11 }
 0x627   : > { %5342 = vtanh.f32 %v1078_v14 }
 0x62d   : > { %v5343_v15 = vpop.eup %5342 }
 0x62e   : > { %v1080_v16 = vmul.f32 %v5343_v15, %v1071_v29 }
 0x630   : > { %1082 = vrot.lane.b32.xlu1 %v1080_v16, %s7859_s15 }
 0x6a2   : > { %v1083_v17 = vpop.permute.xlu1 %1082 }
 0x6a3   : > { %1086 = vst.msk [vmem:[#allocation3 + $0x18] sm:$0xff] %vm668_vm12, %v1083_v17  ;;  %5102 = vmatmul.msk.f32.vlgmr.msrb.gmra.mxu0 %vm668_vm12, %v1083_v17  ;;  %5103 = vmatmul.msk.f32.vlgmr.msrb.gmra.mxu1 %vm668_vm12, %v1083_v17 }
 0x6aa   : > { %v1521_v16 = vld [vmem:[#allocation3 + $0x18] sm:$0xff] }
 0x720   : > { %v1108_v18 = vpop.f32.mrf.mxu0  ;;  %v1128_v19 = vpop.f32.mrf.mxu1 }
 0x721   : > { %v1131_v44 = vadd.f32 %v1108_v18, %v630_v59  ;;  %v1132_v20 = vadd.f32 %v1128_v19, %v631_v60 }
 0x723   : > { %v5104_v21 = vmul.f32 -1.442695, %v1131_v44  ;;  %v1134_v23 = vmul.f32 %v1132_v20, %v6056_v41 }
 0x725   : > { %5344 = vpow2.f32 %v5104_v21  ;;  %v5105_v24 = vmul.f32 -1.442695, %v1134_v23 }
 0x727   : > { %5346 = vpow2.f32 %v5105_v24 }
 0x72b   : > { %v5345_v25 = vpop.eup %5344 }
 0x72c   : > { %v1141_v26 = vadd.f32 1.0, %v5345_v25 }
 0x72d   : > { %v5347_v27 = vpop.eup %5346 }
 0x72e   : > { %5348 = vrcp.f32 %v1141_v26  ;;  %v1142_v28 = vadd.f32 1.0, %v5347_v27  ;;  %v1154_v45 = vand.u32 2147483648, %v1141_v26  ;;  %vm1148_vm4 = vweird.f32 %v1141_v26 }
 0x72f   : > { %v1152_v38 = vand.u32 2147483647, %v1141_v26 }
 0x730   : > { %5350 = vrcp.f32 %v1142_v28  ;;  %v1169_v58 = vand.u32 2147483648, %v1142_v28  ;;  %v1167_v53 = vand.u32 2147483647, %v1142_v28  ;;  %vm1163_vm15 = vweird.f32 %v1142_v28 }
 0x731   : > { %v1155_v43 = vor.u32 1.1754944e-38, %v1154_v45  ;;  %vm1153_vm7 = vcmp.eq.f32.partialorder %v1152_v38, 8.507059e+37 }
 0x732   : > { %v1170_v40 = vor.u32 1.1754944e-38, %v1169_v58  ;;  %vm1168_vm5 = vcmp.eq.f32.partialorder %v1167_v53, 8.507059e+37 }
 0x734   : > { %v5349_v55 = vpop.eup %5348 }
 0x735   : > { %v1144_v57 = vmul.f32 %v5349_v55, %v1141_v26  ;;  %vm1149_vm14 = vweird.f32 %v5349_v55 }
 0x736   : > { %v5351_v59 = vpop.eup %5350  ;;  %vm1150_vm6 = vmor %vm1148_vm4, %vm1149_vm14 }
 0x737   : > { %v1159_v48 = vmul.f32 %v5351_v59, %v1142_v28  ;;  %v1145_v49 = vsub.f32 1.0, %v1144_v57  ;;  %vm1164_vm13 = vweird.f32 %v5351_v59 }
 0x738   : > { %vm1165_vm3 = vmor %vm1163_vm15, %vm1164_vm13 }
 0x739   : > { %v1160_v50 = vsub.f32 1.0, %v1159_v48  ;;  %v1146_v56 = vmul.f32 %v5349_v55, %v1145_v49 }
 0x73b   : > { %v1161_v60 = vmul.f32 %v5351_v59, %v1160_v50  ;;  %v1147_v6 = vadd.f32 %v5349_v55, %v1146_v56 }
 0x73d   : > { %v1162_v31 = vadd.f32 %v5351_v59, %v1161_v60  ;;  %v1151_v47 = vsel %vm1150_vm6, %v5349_v55, %v1147_v6 }
 0x73e   : > { %v1156_v5 = vsel %vm1153_vm7, %v1155_v43, %v1151_v47 }
 0x73f   : > { %v1166_v35 = vsel %vm1165_vm3, %v5351_v59, %v1162_v31  ;;  %v1177_v29 = vmul.f32 %v1156_v5, %v1078_v14 }
 0x740   : > { %v1171_v30 = vsel %vm1168_vm5, %v1170_v40, %v1166_v35 }
 0x741   : > { %v1174_v62 = vmul.f32 %v1171_v30, %v6056_v41 }
 0x743   : > { %v1176_v54 = vadd.f32 %v1174_v62, %v6078_v61 }
 0x745   : > { %v1178_v36 = vmul.f32 %v1176_v54, %v1156_v5 }
 0x747   : > { %1180 = vrot.lane.b32.xlu2 %v1178_v36, %s7859_s15 }
 0x7a1   : > { %v1181_v39 = vpop.permute.xlu2 %1180 }
 0x7a2   : > { %v6209_v46 = vadd.f32 %v1181_v39, %v1177_v29  ;;  %v1516_v39 = vld [vmem:[#allocation3 + $0x10] sm:$0xff] }
 0x7a4   : > { %5352 = vtanh.f32 %v6209_v46 }
 0x7aa   : > { %v5353_v11 = vpop.eup %5352 }
 0x7ab   : > { %v1185_v12 = vmul.f32 %v5353_v11, %v1176_v54 }
 0x7ad   : > { %1187 = vrot.lane.b32.xlu0 %v1185_v12, %s7859_s15 }
 0x81f   : > { %v1188_v15 = vpop.permute.xlu0 %1187 }
 0x820   : > { %1191 = vst.msk [vmem:[#allocation3 + $0x20] sm:$0xff] %vm668_vm12, %v1188_v15  ;;  %5106 = vmatmul.msk.f32.vlgmr.msra.gmra.mxu2 %vm668_vm12, %v1188_v15  ;;  %5107 = vmatmul.msk.f32.vlgmr.msra.gmra.mxu3 %vm668_vm12, %v1188_v15 }
 0x827   : > { %v1522_v14 = vld [vmem:[#allocation3 + $0x20] sm:$0xff] }
 0x828   : > { %v1523_v17 = vsel %vm487_vm8, %v1521_v16, %v1522_v14  ;;  %v1528_v18 = vsel %vm487_vm8, %v1522_v14, %v1521_v16 }
 0x829   : > { %1525 = vst.msk [vmem:[#allocation4 + $0x18] sm:$0xff] %vm668_vm12, %v1523_v17 }
 0x82a   : > { %1530 = vst.msk [vmem:[#allocation4 + $0x20] sm:$0xff] %vm668_vm12, %v1528_v18 }
 0x8a3   : > { %v1213_v19 = vpop.f32.mrf.mxu2  ;;  %v1233_v44 = vpop.f32.mrf.mxu3 }
 0x8a4   : > { %v1236_v20 = vadd.f32 %v1213_v19, %v635_v3  ;;  %v1237_v21 = vadd.f32 %v1233_v44, %v636_v4 }
 0x8a6   : > { %v5108_v23 = vmul.f32 -1.442695, %v1236_v20  ;;  %v1239_v24 = vmul.f32 %v1237_v21, %v6056_v41 }
 0x8a8   : > { %5354 = vpow2.f32 %v5108_v23  ;;  %v5109_v25 = vmul.f32 -1.442695, %v1239_v24 }
 0x8aa   : > { %5356 = vpow2.f32 %v5109_v25 }
 0x8ae   : > { %v5355_v26 = vpop.eup %5354 }
 0x8af   : > { %v1246_v27 = vadd.f32 1.0, %v5355_v26 }
 0x8b0   : > { %v5357_v28 = vpop.eup %5356 }
 0x8b1   : > { %5358 = vrcp.f32 %v1246_v27  ;;  %v1247_v55 = vadd.f32 1.0, %v5357_v28  ;;  %v1259_v58 = vand.u32 2147483648, %v1246_v27  ;;  %vm1253_vm14 = vweird.f32 %v1246_v27 }
 0x8b2   : > { %v1257_v53 = vand.u32 2147483647, %v1246_v27 }
 0x8b3   : > { %5360 = vrcp.f32 %v1247_v55  ;;  %v1274_v2 = vand.u32 2147483648, %v1247_v55  ;;  %v1272_v49 = vand.u32 2147483647, %v1247_v55  ;;  %vm1268_vm11 = vweird.f32 %v1247_v55 }
 0x8b4   : > { %v1260_v38 = vor.u32 1.1754944e-38, %v1259_v58  ;;  %vm1258_vm4 = vcmp.eq.f32.partialorder %v1257_v53, 8.507059e+37 }
 0x8b5   : > { %v1275_v60 = vor.u32 1.1754944e-38, %v1274_v2  ;;  %vm1273_vm15 = vcmp.eq.f32.partialorder %v1272_v49, 8.507059e+37 }
 0x8b7   : > { %v5359_v63 = vpop.eup %5358 }
 0x8b8   : > { %v1249_v1 = vmul.f32 %v5359_v63, %v1246_v27  ;;  %vm1254_vm10 = vweird.f32 %v5359_v63 }
 0x8b9   : > { %v5361_v3 = vpop.eup %5360  ;;  %vm1255_vm3 = vmor %vm1253_vm14, %vm1254_vm10 }
 0x8ba   : > { %v1264_v57 = vmul.f32 %v5361_v3, %v1247_v55  ;;  %v1250_v59 = vsub.f32 1.0, %v1249_v1  ;;  %vm1269_vm9 = vweird.f32 %v5361_v3 }
 0x8bb   : > { %vm1270_vm13 = vmor %vm1268_vm11, %vm1269_vm9 }
 0x8bc   : > { %v1265_v48 = vsub.f32 1.0, %v1264_v57  ;;  %v1251_v0 = vmul.f32 %v5359_v63, %v1250_v59 }
 0x8be   : > { %v1266_v4 = vmul.f32 %v5361_v3, %v1265_v48  ;;  %v1252_v50 = vadd.f32 %v5359_v63, %v1251_v0 }
 0x8c0   : > { %v1267_v56 = vadd.f32 %v5361_v3, %v1266_v4  ;;  %v1256_v45 = vsel %vm1255_vm3, %v5359_v63, %v1252_v50 }
 0x8c1   : > { %v1261_v30 = vsel %vm1258_vm4, %v1260_v38, %v1256_v45 }
 0x8c2   : > { %v1271_v6 = vsel %vm1270_vm13, %v5361_v3, %v1267_v56  ;;  %v1282_v62 = vmul.f32 %v1261_v30, %v6209_v46 }
 0x8c3   : > { %v1276_v31 = vsel %vm1273_vm15, %v1275_v60, %v1271_v6 }
 0x8c4   : > { %v1279_v40 = vmul.f32 %v1276_v31, %v6056_v41 }
 0x8c6   : > { %v1281_v35 = vadd.f32 %v1279_v40, %v6078_v61  ;;  %v1511_v40 = vld [vmem:[#allocation3 + $0x8] sm:$0xff] }
 0x8c8   : > { %v1283_v47 = vmul.f32 %v1281_v35, %v1261_v30 }
 0x8ca   : > { %1285 = vrot.lane.b32.xlu1 %v1283_v47, %s7859_s15 }
 0x93c   : > { %v1286_v43 = vpop.permute.xlu1 %1285 }
 0x93d   : > { %v1288_v54 = vadd.f32 %v1286_v43, %v1282_v62  ;;  %v7873_v43 = vsel %vm5989_vm1, %v6050_v34, %v6046_v32 }
 0x93f   : > { %5362 = vtanh.f32 %v1288_v54 }
 0x945   : > { %v5363_v5 = vpop.eup %5362 }
 0x946   : > { %v1290_v36 = vmul.f32 %v5363_v5, %v1281_v35  ;;  %v7874_v5 = vsel %vm5993_vm2, %v6052_v37, %v6048_v33 }
 0x948   : > { %1292 = vrot.lane.b32.xlu2 %v1290_v36, %s7859_s15 }
 0x9a2   : > { %v1293_v29 = vpop.permute.xlu2 %1292 }
 0x9a3   : > { %1296 = vst.msk [vmem:[#allocation3 + $0x28] sm:$0xff] %vm668_vm12, %v1293_v29  ;;  %5110 = vmatmul.msk.f32.vlgmr.msra.gmra.mxu0 %vm668_vm12, %v1293_v29  ;;  %5111 = vmatmul.msk.f32.vlgmr.msra.gmra.mxu1 %vm668_vm12, %v1293_v29 }
 0x9aa   : > { %v1517_v11 = vld [vmem:[#allocation3 + $0x28] sm:$0xff] }
 0x9ab   : > { %v1518_v12 = vsel %vm487_vm8, %v1516_v39, %v1517_v11  ;;  %v1533_v46 = vsel %vm487_vm8, %v1517_v11, %v1516_v39 }
 0x9ac   : > { %1520 = vst.msk [vmem:[#allocation4 + $0x10] sm:$0xff] %vm668_vm12, %v1518_v12 }
 0x9ad   : > { %1535 = vst.msk [vmem:[#allocation4 + $0x28] sm:$0xff] %vm668_vm12, %v1533_v46 }
 0xa20   : > { %v1318_v15 = vpop.f32.mrf.mxu0  ;;  %v1338_v16 = vpop.f32.mrf.mxu1 }
 0xa21   : > { %v1341_v14 = vadd.f32 %v1318_v15, %v640_v13  ;;  %v1342_v17 = vadd.f32 %v1338_v16, %v641_v22 }
 0xa23   : > { %v5112_v18 = vmul.f32 -1.442695, %v1341_v14  ;;  %v1344_v19 = vmul.f32 %v1342_v17, %v6056_v41 }
 0xa25   : > { %5364 = vpow2.f32 %v5112_v18  ;;  %v5113_v44 = vmul.f32 -1.442695, %v1344_v19 }
 0xa27   : > { %5366 = vpow2.f32 %v5113_v44 }
 0xa2b   : > { %v5365_v20 = vpop.eup %5364 }
 0xa2c   : > { %v1351_v21 = vadd.f32 1.0, %v5365_v20 }
 0xa2d   : > { %v5367_v23 = vpop.eup %5366 }
 0xa2e   : > { %5368 = vrcp.f32 %v1351_v21  ;;  %v1352_v24 = vadd.f32 1.0, %v5367_v23  ;;  %v1364_v1 = vand.u32 2147483648, %v1351_v21  ;;  %vm1358_vm10 = vweird.f32 %v1351_v21 }
 0xa2f   : > { %v1362_v57 = vand.u32 2147483647, %v1351_v21 }
 0xa30   : > { %5370 = vrcp.f32 %v1352_v24  ;;  %v1379_v10 = vand.u32 2147483648, %v1352_v24  ;;  %v1377_v28 = vand.u32 2147483647, %v1352_v24  ;;  %vm1373_vm7 = vweird.f32 %v1352_v24 }
 0xa31   : > { %v1365_v4 = vor.u32 1.1754944e-38, %v1364_v1  ;;  %vm1363_vm14 = vcmp.eq.f32.partialorder %v1362_v57, 8.507059e+37 }
 0xa32   : > { %v1380_v3 = vor.u32 1.1754944e-38, %v1379_v10  ;;  %vm1378_vm11 = vcmp.eq.f32.partialorder %v1377_v28, 8.507059e+37 }
 0xa34   : > { %v5369_v7 = vpop.eup %5368 }
 0xa35   : > { %v1354_v9 = vmul.f32 %v5369_v7, %v1351_v21  ;;  %vm1359_vm6 = vweird.f32 %v5369_v7 }
 0xa36   : > { %v5371_v13 = vpop.eup %5370  ;;  %vm1360_vm13 = vmor %vm1358_vm10, %vm1359_vm6 }
 0xa37   : > { %v1369_v25 = vmul.f32 %v5371_v13, %v1352_v24  ;;  %v1355_v26 = vsub.f32 1.0, %v1354_v9  ;;  %vm1374_vm5 = vweird.f32 %v5371_v13 }
 0xa38   : > { %vm1375_vm9 = vmor %vm1373_vm7, %vm1374_vm5 }
 0xa39   : > { %v1370_v27 = vsub.f32 1.0, %v1369_v25  ;;  %v1356_v8 = vmul.f32 %v5369_v7, %v1355_v26 }
 0xa3b   : > { %v1371_v22 = vmul.f32 %v5371_v13, %v1370_v27  ;;  %v1357_v55 = vadd.f32 %v5369_v7, %v1356_v8 }
 0xa3d   : > { %v1372_v63 = vadd.f32 %v5371_v13, %v1371_v22  ;;  %v1361_v0 = vsel %vm1360_vm13, %v5369_v7, %v1357_v55 }
 0xa3e   : > { %v1366_v50 = vsel %vm1363_vm14, %v1365_v4, %v1361_v0  ;;  %v1566_v0 = vld [vmem:[%s7848_s4 + $0x60] sm:$0xff]  ;;  %v1564_v4 = vld [vmem:[%s7848_s4 + $0x50] sm:$0xff] }
 0xa3f   : > { %v1376_v59 = vsel %vm1375_vm9, %v5371_v13, %v1372_v63  ;;  %v1387_v58 = vmul.f32 %v1366_v50, %v1288_v54 }
 0xa40   : > { %v1381_v48 = vsel %vm1378_vm11, %v1380_v3, %v1376_v59  ;;  %v1568_v59 = vld [vmem:[%s7848_s4 + $0x70] sm:$0xff] }
 0xa41   : > { %v1384_v2 = vmul.f32 %v1381_v48, %v6056_v41  ;;  %v1569_v48 = vld [vmem:[%s7848_s4 + $0x78] sm:$0xff]  ;;  %1608 = vmatpush.msrb.mxu0 %v1568_v59 }
 0xa42   : > { %1649 = vmatpush.msrb.mxu1 %v1569_v48 }
 0xa43   : > { %v1386_v49 = vadd.f32 %v1384_v2, %v6078_v61  ;;  %v1567_v2 = vld [vmem:[%s7848_s4 + $0x68] sm:$0xff]  ;;  %1609 = vmatpush.msrb.mxu0 %v1566_v0 }
 0xa44   : > { %1650 = vmatpush.msrb.mxu1 %v1567_v2 }
 0xa45   : > { %v1388_v56 = vmul.f32 %v1386_v49, %v1366_v50  ;;  %1610 = vmatpush.msrb.mxu0 %v1564_v4  ;;  %v1562_v50 = vld [vmem:[%s7848_s4 + $0x40] sm:$0xff] }
 0xa47   : > { %1390 = vrot.lane.b32.xlu0 %v1388_v56, %s7859_s15  ;;  %v1563_v56 = vld [vmem:[%s7848_s4 + $0x48] sm:$0xff]  ;;  %1611 = vmatpush.msrb.mxu0 %v1562_v50 }
 0xab9   : > { %v1391_v60 = vpop.permute.xlu0 %1390 }
 0xaba   : > { %v1393_v53 = vadd.f32 %v1391_v60, %v1387_v58  ;;  %v1560_v58 = vld [vmem:[%s7848_s4 + $0x30] sm:$0xff]  ;;  %v1561_v60 = vld [vmem:[%s7848_s4 + $0x38] sm:$0xff] }
 0xabb   : > { %1612 = vmatpush.msrb.mxu0 %v1560_v58 }
 0xabc   : > { %5372 = vtanh.f32 %v1393_v53 }
 0xac2   : > { %v5373_v6 = vpop.eup %5372 }
 0xac3   : > { %v1395_v31 = vmul.f32 %v5373_v6, %v1386_v49  ;;  %v1565_v49 = vld [vmem:[%s7848_s4 + $0x58] sm:$0xff]  ;;  %v1559_v6 = vld [vmem:[%s7848_s4 + $0x28] sm:$0xff] }
 0xac4   : > { %1651 = vmatpush.msrb.mxu1 %v1565_v49 }
 0xac5   : > { %1397 = vrot.lane.b32.xlu1 %v1395_v31, %s7859_s15  ;;  %v1556_v31 = vld [vmem:[%s7848_s4 + $0x10] sm:$0xff] }
 0xac6   : > { %1652 = vmatpush.msrb.mxu1 %v1563_v56 }
 0xac8   : > { %1653 = vmatpush.msrb.mxu1 %v1561_v60 }
 0xaca   : > { %1654 = vmatpush.msrb.mxu1 %v1559_v6 }
 0xb37   : > { %v1398_v45 = vpop.permute.xlu1 %1397 }
 0xb38   : > { %1401 = vst.msk [vmem:[#allocation3 + $0x30] sm:$0xff] %vm668_vm12, %v1398_v45  ;;  %5114 = vmatmul.msk.f32.vlgmr.msrb.gmra.mxu2 %vm668_vm12, %v1398_v45  ;;  %5115 = vmatmul.msk.f32.vlgmr.msrb.gmra.mxu3 %vm668_vm12, %v1398_v45  ;;  %v1557_v45 = vld [vmem:[%s7848_s4 + $0x18] sm:$0xff] }
 0xb39   : > { %1655 = vmatpush.msrb.mxu1 %v1557_v45 }
 0xb3f   : > { %v1512_v38 = vld [vmem:[#allocation3 + $0x30] sm:$0xff] }
 0xb40   : > { %v1513_v35 = vsel %vm487_vm8, %v1511_v40, %v1512_v38  ;;  %v1538_v30 = vsel %vm487_vm8, %v1512_v38, %v1511_v40  ;;  %v1554_v40 = vld [vmem:[%s7848_s4] sm:$0xff]  ;;  %v1555_v38 = vld [vmem:[%s7848_s4 + $0x8] sm:$0xff] }
 0xb41   : > { %1515 = vst.msk [vmem:[#allocation4 + $0x8] sm:$0xff] %vm668_vm12, %v1513_v35  ;;  %1656 = vmatpush.msrb.mxu1 %v1555_v38 }
 0xb42   : > { %1540 = vst.msk [vmem:[#allocation4 + $0x30] sm:$0xff] %vm668_vm12, %v1538_v30  ;;  %v1507_v30 = vld [vmem:[#allocation3] sm:$0xff] }
 0xbbb   : > { %v1423_v47 = vpop.f32.mrf.mxu2  ;;  %v1443_v62 = vpop.f32.mrf.mxu3 }
 0xbbc   : > { %v1446_v54 = vadd.f32 %v1423_v47, %v7873_v43  ;;  %v1447_v36 = vadd.f32 %v1443_v62, %v7874_v5  ;;  %v6347_v5 = vld [vmem:[%s7849_s5 + $0x70] sm:$0xff] }
 0xbbd   : > { %1740 = vmatpush.msra.mxu2 %v6347_v5 }
 0xbbe   : > { %v5116_v29 = vmul.f32 -1.442695, %v1446_v54  ;;  %v1449_v39 = vmul.f32 %v1447_v36, %v6056_v41  ;;  %v6352_v36 = vld [vmem:[%s7849_s5 + $0x78] sm:$0xff] }
 0xbbf   : > { %1760 = vmatpush.msra.mxu3 %v6352_v36  ;;  %2176 = vmatpush.msra.mxu1 %v6352_v36 }
 0xbc0   : > { %5374 = vpow2.f32 %v5116_v29  ;;  %v5117_v11 = vmul.f32 -1.442695, %v1449_v39  ;;  %v1547_v29 = vld [vmem:[#allocation4 + $0x8] sm:$0xff]  ;;  %v6363_v39 = vld [vmem:[%s7849_s5 + $0x60] sm:$0xff] }
 0xbc1   : > { %1741 = vmatpush.msra.mxu2 %v6363_v39 }
 0xbc2   : > { %5376 = vpow2.f32 %v5117_v11  ;;  %v6368_v11 = vld [vmem:[%s7849_s5 + $0x68] sm:$0xff] }
 0xbc3   : > { %1761 = vmatpush.msra.mxu3 %v6368_v11  ;;  %2177 = vmatpush.msra.mxu1 %v6368_v11 }
 0xbc6   : > { %v5375_v12 = vpop.eup %5374 }
 0xbc7   : > { %v1456_v46 = vadd.f32 1.0, %v5375_v12  ;;  %v6373_v12 = vld [vmem:[%s7849_s5 + $0x50] sm:$0xff] }
 0xbc8   : > { %v5377_v15 = vpop.eup %5376  ;;  %1742 = vmatpush.msra.mxu2 %v6373_v12 }
 0xbc9   : > { %5378 = vrcp.f32 %v1456_v46  ;;  %v1457_v16 = vadd.f32 1.0, %v5377_v15  ;;  %v1469_v24 = vand.u32 2147483648, %v1456_v46  ;;  %vm1463_vm6 = vweird.f32 %v1456_v46  ;;  %v6385_v15 = vld [vmem:[%s7849_s5 + $0x40] sm:$0xff] }
 0xbca   : > { %v1467_v9 = vand.u32 2147483647, %v1456_v46  ;;  %1743 = vmatpush.msra.mxu2 %v6385_v15 }
 0xbcb   : > { %5380 = vrcp.f32 %v1457_v16  ;;  %v1484_v37 = vand.u32 2147483648, %v1457_v16  ;;  %v1482_v20 = vand.u32 2147483647, %v1457_v16  ;;  %vm1478_vm4 = vweird.f32 %v1457_v16 }
 0xbcc   : > { %v1470_v8 = vor.u32 1.1754944e-38, %v1469_v24  ;;  %vm1468_vm10 = vcmp.eq.f32.partialorder %v1467_v9, 8.507059e+37  ;;  %v1551_v24 = vld [vmem:[#allocation4 + $0x28] sm:$0xff] }
 0xbcd   : > { %v1485_v7 = vor.u32 1.1754944e-38, %v1484_v37  ;;  %vm1483_vm7 = vcmp.eq.f32.partialorder %v1482_v20, 8.507059e+37  ;;  %v6441_v37 = vld [vmem:[%s7849_s5] sm:$0xff]  ;;  %v7875_v20 = vmov 0.0  }
 0xbcf   : > { %v5379_v32 = vpop.eup %5378 }
 0xbd0   : > { %v1459_v34 = vmul.f32 %v5379_v32, %v1456_v46  ;;  %vm1464_vm3 = vweird.f32 %v5379_v32  ;;  %v6380_v46 = vld [vmem:[%s7849_s5 + $0x58] sm:$0xff] }
 0xbd1   : > { %v5381_v14 = vpop.eup %5380  ;;  %vm1465_vm9 = vmor %vm1463_vm6, %vm1464_vm3  ;;  %1762 = vmatpush.msra.mxu3 %v6380_v46  ;;  %2178 = vmatpush.msra.mxu1 %v6380_v46 }
 0xbd2   : > { %v1474_v17 = vmul.f32 %v5381_v14, %v1457_v16  ;;  %v1460_v18 = vsub.f32 1.0, %v1459_v34  ;;  %vm1479_vm15 = vweird.f32 %v5381_v14  ;;  %v6390_v16 = vld [vmem:[%s7849_s5 + $0x48] sm:$0xff]  ;;  %v6404_v34 = vld [vmem:[%s7849_s5 + $0x38] sm:$0xff] }
 0xbd3   : > { %vm1480_vm5 = vmor %vm1478_vm4, %vm1479_vm15  ;;  %1763 = vmatpush.msra.mxu3 %v6390_v16  ;;  %2179 = vmatpush.msra.mxu1 %v6390_v16 }
 0xbd4   : > { %v1475_v19 = vsub.f32 1.0, %v1474_v17  ;;  %v1461_v33 = vmul.f32 %v5379_v32, %v1460_v18  ;;  %v6419_v17 = vld [vmem:[%s7849_s5 + $0x20] sm:$0xff]  ;;  %v6424_v18 = vld [vmem:[%s7849_s5 + $0x28] sm:$0xff] }
 0xbd5   : > { %1764 = vmatpush.msra.mxu3 %v6404_v34  ;;  %2180 = vmatpush.msra.mxu1 %v6404_v34 }
 0xbd6   : > { %v1476_v44 = vmul.f32 %v5381_v14, %v1475_v19  ;;  %v1462_v21 = vadd.f32 %v5379_v32, %v1461_v33  ;;  %v6429_v19 = vld [vmem:[%s7849_s5 + $0x10] sm:$0xff]  ;;  %v6436_v33 = vld [vmem:[%s7849_s5 + $0x18] sm:$0xff] }
 0xbd7   : > { %1765 = vmatpush.msra.mxu3 %v6424_v18  ;;  %2181 = vmatpush.msra.mxu1 %v6424_v18 }
 0xbd8   : > { %v1477_v23 = vadd.f32 %v5381_v14, %v1476_v44  ;;  %v1466_v26 = vsel %vm1465_vm9, %v5379_v32, %v1462_v21  ;;  %v6399_v32 = vld [vmem:[%s7849_s5 + $0x30] sm:$0xff]  ;;  %v6446_v44 = vld [vmem:[%s7849_s5 + $0x8] sm:$0xff]  ;;  %v1549_v21 = vld [vmem:[#allocation4 + $0x18] sm:$0xff] }
 0xbd9   : > { %v1471_v22 = vsel %vm1468_vm10, %v1470_v8, %v1466_v26  ;;  %1744 = vmatpush.msra.mxu2 %v6399_v32  ;;  %1766 = vmatpush.msra.mxu3 %v6436_v33  ;;  %v1570_v26 = vld [vmem:[%s7850_s6] sm:$0x3] }
 0xbda   : > { %v1481_v13 = vsel %vm1480_vm5, %v5381_v14, %v1477_v23  ;;  %v1492_v55 = vmul.f32 %v1471_v22, %v1393_v53  ;;  %v1558_v53 = vld [vmem:[%s7848_s4 + $0x20] sm:$0xff]  ;;  %v1548_v14 = vld [vmem:[#allocation4 + $0x10] sm:$0xff]  ;;  %2182 = vmatpush.msra.mxu1 %v6436_v33  ;;  %v1573_v8 = vperm.slane %v1570_v26, 1 }
 0xbdb   : > { %v1486_v25 = vsel %vm1483_vm7, %v1485_v7, %v1481_v13  ;;  %1613 = vmatpush.msrb.mxu0 %v1558_v53  ;;  %1745 = vmatpush.msra.mxu2 %v6419_v17  ;;  %v1550_v23 = vld [vmem:[#allocation4 + $0x20] sm:$0xff]  ;;  %v1552_v7 = vld [vmem:[#allocation4 + $0x30] sm:$0xff] }
 0xbdc   : > { %v1489_v27 = vmul.f32 %v1486_v25, %v6056_v41  ;;  %1767 = vmatpush.msra.mxu3 %v6446_v44  ;;  %2183 = vmatpush.msra.mxu1 %v6446_v44 }
 0xbdd   : > { %1614 = vmatpush.msrb.mxu0 %v1556_v31  ;;  %1746 = vmatpush.msra.mxu2 %v6429_v19 }
 0xbde   : > { %v1491_v10 = vadd.f32 %v1489_v27, %v6078_v61  ;;  %1768 = vmatmul.f32.vlgmr.msra.gmra.mxu3 %v7875_v20  ;;  %v1572_v27 = vperm.slane %v1570_v26, 0 }
 0xbdf   : > { %1615 = vmatpush.msrb.mxu0 %v1554_v40  ;;  %1747 = vmatpush.msra.mxu2 %v6441_v37 }
 0xbe0   : > { %v1493_v28 = vmul.f32 %v1491_v10, %v1471_v22  ;;  %1748 = vmatmul.f32.vlgmr.msra.gmra.mxu2 %v7875_v20  ;;  %1864 = vmatpush.msrb.mxu3 %v6352_v36 }
 0xbe1   : > { %2156 = vmatpush.msra.mxu0 %v6347_v5  ;;  %1844 = vmatpush.msrb.mxu2 %v6347_v5 }
 0xbe2   : > { %1495 = vrot.lane.b32.xlu2 %v1493_v28, %s7859_s15  ;;  %1865 = vmatpush.msrb.mxu3 %v6368_v11 }
 0xbe3   : > { %2157 = vmatpush.msra.mxu0 %v6363_v39  ;;  %1845 = vmatpush.msrb.mxu2 %v6363_v39 }
 0xbe4   : > { %1866 = vmatpush.msrb.mxu3 %v6380_v46 }
 0xbe5   : > { %2158 = vmatpush.msra.mxu0 %v6373_v12  ;;  %1846 = vmatpush.msrb.mxu2 %v6373_v12 }
 0xbe6   : > { %1867 = vmatpush.msrb.mxu3 %v6390_v16 }
 0xbe7   : > { %2159 = vmatpush.msra.mxu0 %v6385_v15  ;;  %1847 = vmatpush.msrb.mxu2 %v6385_v15 }
 0xbe8   : > { %1868 = vmatpush.msrb.mxu3 %v6404_v34 }
 0xbe9   : > { %2160 = vmatpush.msra.mxu0 %v6399_v32  ;;  %1848 = vmatpush.msrb.mxu2 %v6399_v32 }
 0xbea   : > { %1869 = vmatpush.msrb.mxu3 %v6424_v18 }
 0xbeb   : > { %2161 = vmatpush.msra.mxu0 %v6419_v17  ;;  %1849 = vmatpush.msrb.mxu2 %v6419_v17 }
 0xbec   : > { %1870 = vmatpush.msrb.mxu3 %v6436_v33 }
 0xbed   : > { %2162 = vmatpush.msra.mxu0 %v6429_v19  ;;  %1850 = vmatpush.msrb.mxu2 %v6429_v19 }
 0xbee   : > { %1871 = vmatpush.msrb.mxu3 %v6446_v44 }
 0xbef   : > { %2163 = vmatpush.msra.mxu0 %v6441_v37  ;;  %1851 = vmatpush.msrb.mxu2 %v6441_v37 }
 0xbf0   : > { %1968 = vmatpush.msra.mxu3 %v6352_v36 }
 0xbf1   : > { %1948 = vmatpush.msra.mxu2 %v6347_v5 }
 0xbf2   : > { %1969 = vmatpush.msra.mxu3 %v6368_v11 }
 0xbf3   : > { %1949 = vmatpush.msra.mxu2 %v6363_v39 }
 0xbf4   : > { %1970 = vmatpush.msra.mxu3 %v6380_v46 }
 0xbf5   : > { %1950 = vmatpush.msra.mxu2 %v6373_v12 }
 0xbf6   : > { %1971 = vmatpush.msra.mxu3 %v6390_v16 }
 0xbf7   : > { %1951 = vmatpush.msra.mxu2 %v6385_v15 }
 0xbf8   : > { %1972 = vmatpush.msra.mxu3 %v6404_v34 }
 0xbf9   : > { %1952 = vmatpush.msra.mxu2 %v6399_v32 }
 0xbfa   : > { %1973 = vmatpush.msra.mxu3 %v6424_v18 }
 0xbfb   : > { %1953 = vmatpush.msra.mxu2 %v6419_v17 }
 0xbfc   : > { %1974 = vmatpush.msra.mxu3 %v6436_v33 }
 0xbfd   : > { %1954 = vmatpush.msra.mxu2 %v6429_v19 }
 0xbfe   : > { %1975 = vmatpush.msra.mxu3 %v6446_v44 }
 0xbff   : > { %1955 = vmatpush.msra.mxu2 %v6441_v37 }
 0xc3c   : > { %v1496_v63 = vpop.permute.xlu2 %1495 }
 0xc3d   : > { %v1498_v1 = vadd.f32 %v1496_v63, %v1492_v55 }
 0xc3f   : > { %5382 = vtanh.f32 %v1498_v1 }
 0xc45   : > { %v5383_v3 = vpop.eup %5382 }
 0xc46   : > { %v1500_v57 = vmul.f32 %v5383_v3, %v1491_v10 }
 0xc48   : > { %1502 = vrot.lane.b32.xlu0 %v1500_v57, %s7859_s15  ;;  %s5663_s15 = smov 80  }
 0xcba   : > { %v1503_v35 = vpop.permute.xlu0 %1502 }
 0xcbb   : > { %1506 = vst.msk [vmem:[#allocation3 + $0x38] sm:$0xff] %vm668_vm12, %v1503_v35 }
 0xcc2   : > { %v1508_v47 = vld [vmem:[#allocation3 + $0x38] sm:$0xff] }
 0xcc3   : > { %v1509_v62 = vsel %vm487_vm8, %v1507_v30, %v1508_v47  ;;  %v1543_v43 = vsel %vm487_vm8, %v1508_v47, %v1507_v30 }
 0xcc4   : > { %1510 = vst.msk [vmem:[#allocation4] sm:$0xff] %vm668_vm12, %v1509_v62 }
 0xcc5   : > { %1545 = vst.msk [vmem:[#allocation4 + $0x38] sm:$0xff] %vm668_vm12, %v1543_v43 }
 0xccb   : > { %v1546_v54 = vld [vmem:[#allocation4] sm:$0xff] }
 0xccc   : > { %5118 = vmatmul.msk.f32.vlgmr.msrb.gmra.mxu0 %vm668_vm12, %v1546_v54  ;;  %5126 = vmatmul.msk.f32.vlgmr.msrb.gmra.mxu1 %vm668_vm12, %v1546_v54  ;;  %v1553_v9 = vld [vmem:[#allocation4 + $0x38] sm:$0xff] }
 0xccd   : > { %2364 = vmatpush.msrb.mxu0 %v6347_v5  ;;  %2384 = vmatpush.msrb.mxu1 %v6352_v36 }
 0xccf   : > { %2365 = vmatpush.msrb.mxu0 %v6363_v39  ;;  %2385 = vmatpush.msrb.mxu1 %v6368_v11 }
 0xcd1   : > { %2366 = vmatpush.msrb.mxu0 %v6373_v12  ;;  %2386 = vmatpush.msrb.mxu1 %v6380_v46 }
 0xcd3   : > { %2367 = vmatpush.msrb.mxu0 %v6385_v15  ;;  %2387 = vmatpush.msrb.mxu1 %v6390_v16 }
 0xcd4   : > { %5119 = vmatmul.msk.f32.gmra.mxu0 %vm668_vm12, %v1547_v29  ;;  %5127 = vmatmul.msk.f32.gmra.mxu1 %vm668_vm12, %v1547_v29 }
 0xcd5   : > { %2368 = vmatpush.msrb.mxu0 %v6399_v32  ;;  %2388 = vmatpush.msrb.mxu1 %v6404_v34 }
 0xcd7   : > { %2369 = vmatpush.msrb.mxu0 %v6419_v17  ;;  %2389 = vmatpush.msrb.mxu1 %v6424_v18 }
 0xcd9   : > { %2370 = vmatpush.msrb.mxu0 %v6429_v19  ;;  %2390 = vmatpush.msrb.mxu1 %v6436_v33 }
 0xcdb   : > { %2371 = vmatpush.msrb.mxu0 %v6441_v37  ;;  %2391 = vmatpush.msrb.mxu1 %v6446_v44 }
 0xcdc   : > { %5120 = vmatmul.msk.f32.gmra.mxu0 %vm668_vm12, %v1548_v14  ;;  %5128 = vmatmul.msk.f32.gmra.mxu1 %vm668_vm12, %v1548_v14 }
 0xce4   : > { %5121 = vmatmul.msk.f32.gmra.mxu0 %vm668_vm12, %v1549_v21  ;;  %5129 = vmatmul.msk.f32.gmra.mxu1 %vm668_vm12, %v1549_v21 }
 0xcec   : > { %5122 = vmatmul.msk.f32.gmra.mxu0 %vm668_vm12, %v1550_v23  ;;  %5130 = vmatmul.msk.f32.gmra.mxu1 %vm668_vm12, %v1550_v23 }
 0xcf4   : > { %5123 = vmatmul.msk.f32.gmra.mxu0 %vm668_vm12, %v1551_v24  ;;  %5131 = vmatmul.msk.f32.gmra.mxu1 %vm668_vm12, %v1551_v24 }
 0xcfc   : > { %5124 = vmatmul.msk.f32.gmra.mxu0 %vm668_vm12, %v1552_v7  ;;  %5132 = vmatmul.msk.f32.gmra.mxu1 %vm668_vm12, %v1552_v7 }
 0xd04   : > { %5125 = vmatmul.msk.f32.gmra.mxu0 %vm668_vm12, %v1553_v9  ;;  %5133 = vmatmul.msk.f32.gmra.mxu1 %vm668_vm12, %v1553_v9 }
 0xd49   : > { %v1617_v13 = vpop.f32.mrf.mxu0  ;;  %v1658_v25 = vpop.f32.mrf.mxu1 }
 0xd4a   : > { %v6595_v26 = vadd.f32 %v1617_v13, %v1572_v27 }
 0xd51   : > { %v1620_v10 = vpop.f32.mrf.mxu0  ;;  %v1661_v22 = vpop.f32.mrf.mxu1 }
 0xd52   : > { %v6523_v28 = vadd.f32 %v1620_v10, %v1572_v27  ;;  %v6525_v55 = vadd.f32 %v1661_v22, %v1573_v8  ;;  %v6597_v10 = vadd.f32 %v1658_v25, %v1573_v8 }
 0xd59   : > { %v1623_v63 = vpop.f32.mrf.mxu0  ;;  %v1664_v1 = vpop.f32.mrf.mxu1 }
 0xd5a   : > { %v6527_v3 = vadd.f32 %v1623_v63, %v1572_v27  ;;  %v6529_v57 = vadd.f32 %v1664_v1, %v1573_v8  ;;  %v1749_v1 = vpop.f32.mrf.mxu2 }
 0xd61   : > { %v1626_v59 = vpop.f32.mrf.mxu0  ;;  %v1667_v48 = vpop.f32.mrf.mxu1 }
 0xd62   : > { %v6531_v0 = vadd.f32 %v1626_v59, %v1572_v27  ;;  %v6533_v2 = vadd.f32 %v1667_v48, %v1573_v8  ;;  %v1769_v59 = vpop.f32.mrf.mxu3 }
 0xd69   : > { %v1629_v4 = vpop.f32.mrf.mxu0  ;;  %v1670_v49 = vpop.f32.mrf.mxu1 }
 0xd6a   : > { %v6535_v50 = vadd.f32 %v1629_v4, %v1572_v27  ;;  %v6537_v56 = vadd.f32 %v1670_v49, %v1573_v8 }
 0xd6c   : > { %v1694_v58 = vsel %vm5989_vm1, %v6531_v0, %v6535_v50  ;;  %v1695_v60 = vsel %vm5993_vm2, %v6533_v2, %v6537_v56  ;;  %v1698_v53 = vsel %vm5989_vm1, %v6535_v50, %v6531_v0 }
 0xd71   : > { %v1632_v31 = vpop.f32.mrf.mxu0  ;;  %v1673_v45 = vpop.f32.mrf.mxu1 }
 0xd72   : > { %v6555_v40 = vadd.f32 %v1632_v31, %v1572_v27  ;;  %v6557_v38 = vadd.f32 %v1673_v45, %v1573_v8 }
 0xd74   : > { %v1690_v35 = vsel %vm5989_vm1, %v6527_v3, %v6555_v40  ;;  %v1691_v30 = vsel %vm5993_vm2, %v6529_v57, %v6557_v38 }
 0xd79   : > { %v1635_v43 = vpop.f32.mrf.mxu0  ;;  %v1676_v54 = vpop.f32.mrf.mxu1 }
 0xd7a   : > { %v6575_v29 = vadd.f32 %v1635_v43, %v1572_v27  ;;  %v6577_v14 = vadd.f32 %v1676_v54, %v1573_v8 }
 0xd7c   : > { %v1686_v20 = vsel %vm5989_vm1, %v6523_v28, %v6575_v29  ;;  %v1687_v21 = vsel %vm5993_vm2, %v6525_v55, %v6577_v14 }
 0xd81   : > { %v1638_v7 = vpop.f32.mrf.mxu0  ;;  %v1679_v9 = vpop.f32.mrf.mxu1 }
 0xd82   : > { %v6599_v22 = vadd.f32 %v1638_v7, %v1572_v27  ;;  %v6601_v63 = vadd.f32 %v1679_v9, %v1573_v8 }
 0xd84   : > { %v1682_v48 = vsel %vm5989_vm1, %v6595_v26, %v6599_v22  ;;  %v1683_v4 = vsel %vm5993_vm2, %v6597_v10, %v6601_v63 }
 0xd85   : > { %v1772_v27 = vadd.f32 %v1749_v1, %v1682_v48  ;;  %v1773_v8 = vadd.f32 %v1769_v59, %v1683_v4 }
 0xd87   : > { %v5134_v49 = vmul.f32 -1.442695, %v1772_v27  ;;  %v1775_v31 = vmul.f32 %v1773_v8, %v6056_v41 }
 0xd89   : > { %5384 = vpow2.f32 %v5134_v49  ;;  %v5135_v45 = vmul.f32 -1.442695, %v1775_v31 }
 0xd8b   : > { %5386 = vpow2.f32 %v5135_v45 }
 0xd8f   : > { %v5385_v43 = vpop.eup %5384 }
 0xd90   : > { %v1782_v54 = vadd.f32 1.0, %v5385_v43 }
 0xd91   : > { %v5387_v7 = vpop.eup %5386 }
 0xd92   : > { %5388 = vrcp.f32 %v1782_v54  ;;  %v1783_v9 = vadd.f32 1.0, %v5387_v7  ;;  %v1795_v49 = vand.u32 2147483648, %v1782_v54  ;;  %vm1789_vm3 = vweird.f32 %v1782_v54 }
 0xd93   : > { %v1793_v45 = vand.u32 2147483647, %v1782_v54 }
 0xd94   : > { %5390 = vrcp.f32 %v1783_v9  ;;  %v1810_v59 = vand.u32 2147483648, %v1783_v9  ;;  %v1808_v4 = vand.u32 2147483647, %v1783_v9  ;;  %vm1804_vm14 = vweird.f32 %v1783_v9 }
 0xd95   : > { %vm1794_vm6 = vcmp.eq.f32.partialorder %v1793_v45, 8.507059e+37 }
 0xd96   : > { %v1811_v31 = vor.u32 1.1754944e-38, %v1810_v59  ;;  %vm1809_vm4 = vcmp.eq.f32.partialorder %v1808_v4, 8.507059e+37 }
 0xd98   : > { %v5389_v13 = vpop.eup %5388 }
 0xd99   : > { %v1785_v24 = vmul.f32 %v5389_v13, %v1782_v54  ;;  %vm1790_vm13 = vweird.f32 %v5389_v13 }
 0xd9a   : > { %v5391_v23 = vpop.eup %5390  ;;  %vm1791_vm5 = vmor %vm1789_vm3, %vm1790_vm13 }
 0xd9b   : > { %v1800_v62 = vmul.f32 %v5391_v23, %v1783_v9  ;;  %v1786_v47 = vsub.f32 1.0, %v1785_v24  ;;  %vm1805_vm11 = vweird.f32 %v5391_v23 }
 0xd9c   : > { %vm1806_vm15 = vmor %vm1804_vm14, %vm1805_vm11 }
 0xd9d   : > { %v1801_v25 = vsub.f32 1.0, %v1800_v62  ;;  %v1787_v1 = vmul.f32 %v5389_v13, %v1786_v47  ;;  %v1796_v62 = vor.u32 1.1754944e-38, %v1795_v49 }
 0xd9f   : > { %v1802_v48 = vmul.f32 %v5391_v23, %v1801_v25  ;;  %v1788_v27 = vadd.f32 %v5389_v13, %v1787_v1 }
 0xda1   : > { %v1803_v8 = vadd.f32 %v5391_v23, %v1802_v48  ;;  %v1792_v24 = vsel %vm1791_vm5, %v5389_v13, %v1788_v27 }
 0xda2   : > { %v1797_v1 = vsel %vm1794_vm6, %v1796_v62, %v1792_v24 }
 0xda3   : > { %v1807_v43 = vsel %vm1806_vm15, %v5391_v23, %v1803_v8  ;;  %v1818_v9 = vmul.f32 0.0, %v1797_v1 }
 0xda4   : > { %v1812_v7 = vsel %vm1809_vm4, %v1811_v31, %v1807_v43 }
 0xda5   : > { %v1815_v47 = vmul.f32 %v1812_v7, %v6056_v41 }
 0xda7   : > { %v1817_v25 = vadd.f32 %v1815_v47, %v6078_v61 }
 0xda9   : > { %v1819_v6 = vmul.f32 %v1817_v25, %v1797_v1 }
 0xdab   : > { %1821 = vrot.lane.b32.xlu1 %v1819_v6, %s7876_s13 }
 0xe1d   : > { %v1822_v48 = vpop.permute.xlu1 %1821 }
 0xe1e   : > { %v6623_v59 = vadd.f32 %v1822_v48, %v1818_v9 }
 0xe20   : > { %5392 = vtanh.f32 %v6623_v59 }
 0xe26   : > { %v5393_v23 = vpop.eup %5392 }
 0xe27   : > { %v1826_v54 = vmul.f32 %v5393_v23, %v1817_v25 }
 0xe29   : > { %1828 = vrot.lane.b32.xlu2 %v1826_v54, %s7876_s13 }
 0xe83   : > { %v1829_v13 = vpop.permute.xlu2 %1828 }
 0xe84   : > { %1831 = vst.msk [vmem:[#allocation3] sm:$0xff] %vm668_vm12, %v1829_v13  ;;  %5136 = vmatmul.msk.f32.vlgmr.msrb.gmra.mxu2 %vm668_vm12, %v1829_v13  ;;  %5137 = vmatmul.msk.f32.vlgmr.msrb.gmra.mxu3 %vm668_vm12, %v1829_v13 }
 0xe85   : > { %2052 = vmatpush.msrb.mxu2 %v6347_v5  ;;  %2072 = vmatpush.msrb.mxu3 %v6352_v36 }
 0xe87   : > { %2053 = vmatpush.msrb.mxu2 %v6363_v39  ;;  %2073 = vmatpush.msrb.mxu3 %v6368_v11 }
 0xe89   : > { %2054 = vmatpush.msrb.mxu2 %v6373_v12  ;;  %2074 = vmatpush.msrb.mxu3 %v6380_v46 }
 0xe8b   : > { %2055 = vmatpush.msrb.mxu2 %v6385_v15  ;;  %2075 = vmatpush.msrb.mxu3 %v6390_v16 }
 0xe8d   : > { %2056 = vmatpush.msrb.mxu2 %v6399_v32  ;;  %2076 = vmatpush.msrb.mxu3 %v6404_v34 }
 0xe8f   : > { %2057 = vmatpush.msrb.mxu2 %v6419_v17  ;;  %2077 = vmatpush.msrb.mxu3 %v6424_v18 }
 0xe91   : > { %2058 = vmatpush.msrb.mxu2 %v6429_v19  ;;  %2078 = vmatpush.msrb.mxu3 %v6436_v33 }
 0xe93   : > { %2059 = vmatpush.msrb.mxu2 %v6441_v37  ;;  %2079 = vmatpush.msrb.mxu3 %v6446_v44 }
 0xf07   : > { %v1853_v6 = vpop.f32.mrf.mxu2  ;;  %v1873_v4 = vpop.f32.mrf.mxu3 }
 0xf08   : > { %v1876_v27 = vadd.f32 %v1853_v6, %v1686_v20  ;;  %v1877_v8 = vadd.f32 %v1873_v4, %v1687_v21 }
 0xf0a   : > { %v5138_v49 = vmul.f32 -1.442695, %v1876_v27  ;;  %v1879_v31 = vmul.f32 %v1877_v8, %v6056_v41 }
 0xf0c   : > { %5394 = vpow2.f32 %v5138_v49  ;;  %v5139_v45 = vmul.f32 -1.442695, %v1879_v31 }
 0xf0e   : > { %5396 = vpow2.f32 %v5139_v45 }
 0xf12   : > { %v5395_v43 = vpop.eup %5394 }
 0xf13   : > { %v1886_v7 = vadd.f32 1.0, %v5395_v43 }
 0xf14   : > { %v5397_v24 = vpop.eup %5396 }
 0xf15   : > { %5398 = vrcp.f32 %v1886_v7  ;;  %v1887_v47 = vadd.f32 1.0, %v5397_v24  ;;  %v1899_v27 = vand.u32 2147483648, %v1886_v7  ;;  %vm1893_vm13 = vweird.f32 %v1886_v7 }
 0xf16   : > { %v1897_v49 = vand.u32 2147483647, %v1886_v7 }
 0xf17   : > { %5400 = vrcp.f32 %v1887_v47  ;;  %v1914_v21 = vand.u32 2147483648, %v1887_v47  ;;  %v1912_v13 = vand.u32 2147483647, %v1887_v47  ;;  %vm1908_vm10 = vweird.f32 %v1887_v47 }
 0xf18   : > { %vm1898_vm3 = vcmp.eq.f32.partialorder %v1897_v49, 8.507059e+37 }
 0xf19   : > { %v1915_v8 = vor.u32 1.1754944e-38, %v1914_v21  ;;  %vm1913_vm14 = vcmp.eq.f32.partialorder %v1912_v13, 8.507059e+37 }
 0xf1b   : > { %v5399_v62 = vpop.eup %5398 }
 0xf1c   : > { %v1889_v20 = vmul.f32 %v5399_v62, %v1886_v7  ;;  %vm1894_vm9 = vweird.f32 %v5399_v62 }
 0xf1d   : > { %v5401_v25 = vpop.eup %5400  ;;  %vm1895_vm15 = vmor %vm1893_vm13, %vm1894_vm9 }
 0xf1e   : > { %v1904_v1 = vmul.f32 %v5401_v25, %v1887_v47  ;;  %v1890_v9 = vsub.f32 1.0, %v1889_v20  ;;  %vm1909_vm7 = vweird.f32 %v5401_v25  ;;  %v1900_v20 = vor.u32 1.1754944e-38, %v1899_v27 }
 0xf1f   : > { %vm1910_vm11 = vmor %vm1908_vm10, %vm1909_vm7 }
 0xf20   : > { %v1905_v48 = vsub.f32 1.0, %v1904_v1  ;;  %v1891_v23 = vmul.f32 %v5399_v62, %v1890_v9 }
 0xf22   : > { %v1906_v54 = vmul.f32 %v5401_v25, %v1905_v48  ;;  %v1892_v6 = vadd.f32 %v5399_v62, %v1891_v23 }
 0xf24   : > { %v1907_v4 = vadd.f32 %v5401_v25, %v1906_v54  ;;  %v1896_v43 = vsel %vm1895_vm15, %v5399_v62, %v1892_v6 }
 0xf25   : > { %v1901_v9 = vsel %vm1898_vm3, %v1900_v20, %v1896_v43 }
 0xf26   : > { %v1911_v31 = vsel %vm1910_vm11, %v5401_v25, %v1907_v4  ;;  %v1922_v47 = vmul.f32 %v1901_v9, %v6623_v59 }
 0xf27   : > { %v1916_v45 = vsel %vm1913_vm14, %v1915_v8, %v1911_v31 }
 0xf28   : > { %v1919_v24 = vmul.f32 %v1916_v45, %v6056_v41 }
 0xf2a   : > { %v1921_v1 = vadd.f32 %v1919_v24, %v6078_v61 }
 0xf2c   : > { %v1923_v48 = vmul.f32 %v1921_v1, %v1901_v9 }
 0xf2e   : > { %1925 = vrot.lane.b32.xlu0 %v1923_v48, %s7876_s13 }
 0xfa0   : > { %v1926_v23 = vpop.permute.xlu0 %1925 }
 0xfa1   : > { %v6661_v21 = vadd.f32 %v1926_v23, %v1922_v47 }
 0xfa3   : > { %5402 = vtanh.f32 %v6661_v21 }
 0xfa9   : > { %v5403_v7 = vpop.eup %5402 }
 0xfaa   : > { %v1930_v25 = vmul.f32 %v5403_v7, %v1921_v1 }
 0xfac   : > { %1932 = vrot.lane.b32.xlu1 %v1930_v25, %s7876_s13 }
0x101e   : > { %v1933_v62 = vpop.permute.xlu1 %1932 }
0x101f   : > { %1935 = vst.msk [vmem:[#allocation3 + $0x8] sm:$0xff] %vm668_vm12, %v1933_v62  ;;  %5140 = vmatmul.msk.f32.vlgmr.msra.gmra.mxu2 %vm668_vm12, %v1933_v62  ;;  %5141 = vmatmul.msk.f32.vlgmr.msra.gmra.mxu3 %vm668_vm12, %v1933_v62 }
0x1020   : > { %2260 = vmatpush.msra.mxu2 %v6347_v5  ;;  %2280 = vmatpush.msra.mxu3 %v6352_v36 }
0x1022   : > { %2261 = vmatpush.msra.mxu2 %v6363_v39  ;;  %2281 = vmatpush.msra.mxu3 %v6368_v11 }
0x1024   : > { %2262 = vmatpush.msra.mxu2 %v6373_v12  ;;  %2282 = vmatpush.msra.mxu3 %v6380_v46 }
0x1026   : > { %2263 = vmatpush.msra.mxu2 %v6385_v15  ;;  %2283 = vmatpush.msra.mxu3 %v6390_v16 }
0x1028   : > { %2264 = vmatpush.msra.mxu2 %v6399_v32  ;;  %2284 = vmatpush.msra.mxu3 %v6404_v34 }
0x102a   : > { %2265 = vmatpush.msra.mxu2 %v6419_v17  ;;  %2285 = vmatpush.msra.mxu3 %v6424_v18 }
0x102c   : > { %2266 = vmatpush.msra.mxu2 %v6429_v19  ;;  %2286 = vmatpush.msra.mxu3 %v6436_v33 }
0x102e   : > { %2267 = vmatpush.msra.mxu2 %v6441_v37  ;;  %2287 = vmatpush.msra.mxu3 %v6446_v44 }
0x10a2   : > { %v1957_v59 = vpop.f32.mrf.mxu2  ;;  %v1977_v54 = vpop.f32.mrf.mxu3 }
0x10a3   : > { %v1980_v13 = vadd.f32 %v1957_v59, %v1690_v35  ;;  %v1981_v6 = vadd.f32 %v1977_v54, %v1691_v30 }
0x10a5   : > { %v5142_v4 = vmul.f32 -1.442695, %v1980_v13  ;;  %v1983_v27 = vmul.f32 %v1981_v6, %v6056_v41 }
0x10a7   : > { %5404 = vpow2.f32 %v5142_v4  ;;  %v5143_v8 = vmul.f32 -1.442695, %v1983_v27 }
0x10a9   : > { %5406 = vpow2.f32 %v5143_v8 }
0x10ad   : > { %v5405_v49 = vpop.eup %5404 }
0x10ae   : > { %v1990_v31 = vadd.f32 1.0, %v5405_v49 }
0x10af   : > { %v5407_v45 = vpop.eup %5406 }
0x10b0   : > { %5408 = vrcp.f32 %v1990_v31  ;;  %v1991_v43 = vadd.f32 1.0, %v5407_v45  ;;  %v2003_v59 = vand.u32 2147483648, %v1990_v31  ;;  %vm1997_vm9 = vweird.f32 %v1990_v31 }
0x10b1   : > { %v2001_v13 = vand.u32 2147483647, %v1990_v31 }
0x10b2   : > { %5410 = vrcp.f32 %v1991_v43  ;;  %v2018_v30 = vand.u32 2147483648, %v1991_v43  ;;  %v2016_v7 = vand.u32 2147483647, %v1991_v43  ;;  %vm2012_vm6 = vweird.f32 %v1991_v43 }
0x10b3   : > { %v2004_v49 = vor.u32 1.1754944e-38, %v2003_v59  ;;  %vm2002_vm13 = vcmp.eq.f32.partialorder %v2001_v13, 8.507059e+37 }
0x10b4   : > { %v2019_v54 = vor.u32 1.1754944e-38, %v2018_v30  ;;  %vm2017_vm10 = vcmp.eq.f32.partialorder %v2016_v7, 8.507059e+37 }
0x10b6   : > { %v5409_v24 = vpop.eup %5408 }
0x10b7   : > { %v1993_v35 = vmul.f32 %v5409_v24, %v1990_v31  ;;  %vm1998_vm5 = vweird.f32 %v5409_v24 }
0x10b8   : > { %v5411_v20 = vpop.eup %5410  ;;  %vm1999_vm11 = vmor %vm1997_vm9, %vm1998_vm5 }
0x10b9   : > { %v2008_v1 = vmul.f32 %v5411_v20, %v1991_v43  ;;  %v1994_v9 = vsub.f32 1.0, %v1993_v35  ;;  %vm2013_vm4 = vweird.f32 %v5411_v20 }
0x10ba   : > { %vm2014_vm7 = vmor %vm2012_vm6, %vm2013_vm4 }
0x10bb   : > { %v2009_v48 = vsub.f32 1.0, %v2008_v1  ;;  %v1995_v47 = vmul.f32 %v5409_v24, %v1994_v9 }
0x10bd   : > { %v2010_v23 = vmul.f32 %v5411_v20, %v2009_v48  ;;  %v1996_v25 = vadd.f32 %v5409_v24, %v1995_v47 }
0x10bf   : > { %v2011_v62 = vadd.f32 %v5411_v20, %v2010_v23  ;;  %v2000_v27 = vsel %vm1999_vm11, %v5409_v24, %v1996_v25 }
0x10c0   : > { %v2005_v35 = vsel %vm2002_vm13, %v2004_v49, %v2000_v27 }
0x10c1   : > { %v2015_v6 = vsel %vm2014_vm7, %v5411_v20, %v2011_v62  ;;  %v2026_v43 = vmul.f32 %v2005_v35, %v6661_v21 }
0x10c2   : > { %v2020_v4 = vsel %vm2017_vm10, %v2019_v54, %v2015_v6 }
0x10c3   : > { %v2023_v8 = vmul.f32 %v2020_v4, %v6056_v41 }
0x10c5   : > { %v2025_v45 = vadd.f32 %v2023_v8, %v6078_v61 }
0x10c7   : > { %v2027_v1 = vmul.f32 %v2025_v45, %v2005_v35 }
0x10c9   : > { %2029 = vrot.lane.b32.xlu2 %v2027_v1, %s7876_s13 }
0x1123   : > { %v2030_v9 = vpop.permute.xlu2 %2029 }
0x1124   : > { %v6699_v48 = vadd.f32 %v2030_v9, %v2026_v43 }
0x1126   : > { %5412 = vtanh.f32 %v6699_v48 }
0x112c   : > { %v5413_v31 = vpop.eup %5412 }
0x112d   : > { %v2034_v20 = vmul.f32 %v5413_v31, %v2025_v45 }
0x112f   : > { %2036 = vrot.lane.b32.xlu0 %v2034_v20, %s7876_s13 }
0x11a1   : > { %v2037_v24 = vpop.permute.xlu0 %2036 }
0x11a2   : > { %2039 = vst.msk [vmem:[#allocation3 + $0x10] sm:$0xff] %vm668_vm12, %v2037_v24  ;;  %5144 = vmatmul.msk.f32.vlgmr.msrb.gmra.mxu2 %vm668_vm12, %v2037_v24  ;;  %5145 = vmatmul.msk.f32.vlgmr.msrb.gmra.mxu3 %vm668_vm12, %v2037_v24 }
0x11a3   : > { %2468 = vmatpush.msrb.mxu2 %v6347_v5  ;;  %2488 = vmatpush.msrb.mxu3 %v6352_v36 }
0x11a5   : > { %2469 = vmatpush.msrb.mxu2 %v6363_v39  ;;  %2489 = vmatpush.msrb.mxu3 %v6368_v11 }
0x11a7   : > { %2470 = vmatpush.msrb.mxu2 %v6373_v12  ;;  %2490 = vmatpush.msrb.mxu3 %v6380_v46 }
0x11a9   : > { %2471 = vmatpush.msrb.mxu2 %v6385_v15  ;;  %2491 = vmatpush.msrb.mxu3 %v6390_v16 }
0x11ab   : > { %2472 = vmatpush.msrb.mxu2 %v6399_v32  ;;  %2492 = vmatpush.msrb.mxu3 %v6404_v34 }
0x11ad   : > { %2473 = vmatpush.msrb.mxu2 %v6419_v17  ;;  %2493 = vmatpush.msrb.mxu3 %v6424_v18 }
0x11af   : > { %2474 = vmatpush.msrb.mxu2 %v6429_v19  ;;  %2494 = vmatpush.msrb.mxu3 %v6436_v33 }
0x11b1   : > { %2475 = vmatpush.msrb.mxu2 %v6441_v37  ;;  %2495 = vmatpush.msrb.mxu3 %v6446_v44 }
0x1225   : > { %v2061_v5 = vpop.f32.mrf.mxu2  ;;  %v2081_v36 = vpop.f32.mrf.mxu3 }
0x1226   : > { %v2084_v39 = vadd.f32 %v2061_v5, %v1694_v58  ;;  %v2085_v11 = vadd.f32 %v2081_v36, %v1695_v60  ;;  %v7877_v36 = vsel %vm5993_vm2, %v6537_v56, %v6533_v2 }
0x1228   : > { %v5146_v12 = vmul.f32 -1.442695, %v2084_v39  ;;  %v2087_v46 = vmul.f32 %v2085_v11, %v6056_v41 }
0x122a   : > { %5414 = vpow2.f32 %v5146_v12  ;;  %v5147_v15 = vmul.f32 -1.442695, %v2087_v46 }
0x122c   : > { %5416 = vpow2.f32 %v5147_v15 }
0x1230   : > { %v5415_v16 = vpop.eup %5414 }
0x1231   : > { %v2094_v32 = vadd.f32 1.0, %v5415_v16 }
0x1232   : > { %v5417_v34 = vpop.eup %5416 }
0x1233   : > { %5418 = vrcp.f32 %v2094_v32  ;;  %v2095_v17 = vadd.f32 1.0, %v5417_v34  ;;  %v2107_v25 = vand.u32 2147483648, %v2094_v32  ;;  %vm2101_vm5 = vweird.f32 %v2094_v32 }
0x1234   : > { %v2105_v59 = vand.u32 2147483647, %v2094_v32 }
0x1235   : > { %5420 = vrcp.f32 %v2095_v17  ;;  %v2122_v60 = vand.u32 2147483648, %v2095_v17  ;;  %v2120_v30 = vand.u32 2147483647, %v2095_v17  ;;  %vm2116_vm3 = vweird.f32 %v2095_v17 }
0x1236   : > { %v2108_v27 = vor.u32 1.1754944e-38, %v2107_v25  ;;  %vm2106_vm9 = vcmp.eq.f32.partialorder %v2105_v59, 8.507059e+37 }
0x1237   : > { %v2123_v62 = vor.u32 1.1754944e-38, %v2122_v60  ;;  %vm2121_vm6 = vcmp.eq.f32.partialorder %v2120_v30, 8.507059e+37 }
0x1239   : > { %v5419_v18 = vpop.eup %5418 }
0x123a   : > { %v2097_v19 = vmul.f32 %v5419_v18, %v2094_v32  ;;  %vm2102_vm15 = vweird.f32 %v5419_v18 }
0x123b   : > { %v5421_v33 = vpop.eup %5420  ;;  %vm2103_vm7 = vmor %vm2101_vm5, %vm2102_vm15 }
0x123c   : > { %v2112_v37 = vmul.f32 %v5421_v33, %v2095_v17  ;;  %v2098_v44 = vsub.f32 1.0, %v2097_v19  ;;  %vm2117_vm14 = vweird.f32 %v5421_v33 }
0x123d   : > { %vm2118_vm4 = vmor %vm2116_vm3, %vm2117_vm14 }
0x123e   : > { %v2113_v58 = vsub.f32 1.0, %v2112_v37  ;;  %v2099_v21 = vmul.f32 %v5419_v18, %v2098_v44 }
0x1240   : > { %v2114_v47 = vmul.f32 %v5421_v33, %v2113_v58  ;;  %v2100_v23 = vadd.f32 %v5419_v18, %v2099_v21 }
0x1242   : > { %v2115_v7 = vadd.f32 %v5421_v33, %v2114_v47  ;;  %v2104_v6 = vsel %vm2103_vm7, %v5419_v18, %v2100_v23 }
0x1243   : > { %v2109_v49 = vsel %vm2106_vm9, %v2108_v27, %v2104_v6 }
0x1244   : > { %v2119_v54 = vsel %vm2118_vm4, %v5421_v33, %v2115_v7  ;;  %v2130_v35 = vmul.f32 %v2109_v49, %v6699_v48 }
0x1245   : > { %v2124_v13 = vsel %vm2121_vm6, %v2123_v62, %v2119_v54  ;;  %vm2578_vm6 = vcmask 516096  }
0x1246   : > { %v2127_v4 = vmul.f32 %v2124_v13, %v6056_v41 }
0x1248   : > { %v2129_v8 = vadd.f32 %v2127_v4, %v6078_v61 }
0x124a   : > { %v2131_v45 = vmul.f32 %v2129_v8, %v2109_v49 }
0x124c   : > { %2133 = vrot.lane.b32.xlu1 %v2131_v45, %s7876_s13 }
0x12be   : > { %v2134_v1 = vpop.permute.xlu1 %2133 }
0x12bf   : > { %v2136_v43 = vadd.f32 %v2134_v1, %v2130_v35 }
0x12c1   : > { %5422 = vtanh.f32 %v2136_v43 }
0x12c7   : > { %v5423_v9 = vpop.eup %5422 }
0x12c8   : > { %v2138_v31 = vmul.f32 %v5423_v9, %v2129_v8 }
0x12ca   : > { %2140 = vrot.lane.b32.xlu2 %v2138_v31, %s7876_s13 }
0x1324   : > { %v2141_v20 = vpop.permute.xlu2 %2140 }
0x1325   : > { %2143 = vst.msk [vmem:[#allocation3 + $0x18] sm:$0xff] %vm668_vm12, %v2141_v20  ;;  %5148 = vmatmul.msk.f32.vlgmr.msra.gmra.mxu0 %vm668_vm12, %v2141_v20  ;;  %5149 = vmatmul.msk.f32.vlgmr.msra.gmra.mxu1 %vm668_vm12, %v2141_v20 }
0x132c   : > { %v2639_v35 = vld [vmem:[#allocation3 + $0x18] sm:$0xff] }
0x13a2   : > { %v2165_v24 = vpop.f32.mrf.mxu0  ;;  %v2185_v5 = vpop.f32.mrf.mxu1 }
0x13a3   : > { %v2188_v48 = vadd.f32 %v2165_v24, %v1698_v53  ;;  %v2189_v39 = vadd.f32 %v2185_v5, %v7877_v36 }
0x13a5   : > { %v5150_v11 = vmul.f32 -1.442695, %v2188_v48  ;;  %v2191_v12 = vmul.f32 %v2189_v39, %v6056_v41 }
0x13a7   : > { %5424 = vpow2.f32 %v5150_v11  ;;  %v5151_v46 = vmul.f32 -1.442695, %v2191_v12 }
0x13a9   : > { %5426 = vpow2.f32 %v5151_v46 }
0x13ad   : > { %v5425_v15 = vpop.eup %5424 }
0x13ae   : > { %v2198_v16 = vadd.f32 1.0, %v5425_v15 }
0x13af   : > { %v5427_v32 = vpop.eup %5426 }
0x13b0   : > { %5428 = vrcp.f32 %v2198_v16  ;;  %v2199_v34 = vadd.f32 1.0, %v5427_v32  ;;  %v2211_v21 = vand.u32 2147483648, %v2198_v16  ;;  %vm2205_vm15 = vweird.f32 %v2198_v16 }
0x13b1   : > { %v2209_v47 = vand.u32 2147483647, %v2198_v16 }
0x13b2   : > { %5430 = vrcp.f32 %v2199_v34  ;;  %v2226_v56 = vand.u32 2147483648, %v2199_v34  ;;  %v2224_v37 = vand.u32 2147483647, %v2199_v34  ;;  %vm2220_vm13 = vweird.f32 %v2199_v34 }
0x13b3   : > { %v2212_v62 = vor.u32 1.1754944e-38, %v2211_v21  ;;  %vm2210_vm5 = vcmp.eq.f32.partialorder %v2209_v47, 8.507059e+37 }
0x13b4   : > { %v2227_v60 = vor.u32 1.1754944e-38, %v2226_v56  ;;  %vm2225_vm3 = vcmp.eq.f32.partialorder %v2224_v37, 8.507059e+37 }
0x13b6   : > { %v5429_v0 = vpop.eup %5428 }
0x13b7   : > { %v2201_v50 = vmul.f32 %v5429_v0, %v2198_v16  ;;  %vm2206_vm11 = vweird.f32 %v5429_v0 }
0x13b8   : > { %v5431_v53 = vpop.eup %5430  ;;  %vm2207_vm4 = vmor %vm2205_vm15, %vm2206_vm11 }
0x13b9   : > { %v2216_v17 = vmul.f32 %v5431_v53, %v2199_v34  ;;  %v2202_v18 = vsub.f32 1.0, %v2201_v50  ;;  %vm2221_vm10 = vweird.f32 %v5431_v53 }
0x13ba   : > { %vm2222_vm14 = vmor %vm2220_vm13, %vm2221_vm10 }
0x13bb   : > { %v2217_v19 = vsub.f32 1.0, %v2216_v17  ;;  %v2203_v2 = vmul.f32 %v5429_v0, %v2202_v18  ;;  %v7879_v18 = vsel %vm5993_vm2, %v6557_v38, %v6529_v57 }
0x13bd   : > { %v2218_v33 = vmul.f32 %v5431_v53, %v2217_v19  ;;  %v2204_v44 = vadd.f32 %v5429_v0, %v2203_v2 }
0x13bf   : > { %v2219_v58 = vadd.f32 %v5431_v53, %v2218_v33  ;;  %v2208_v7 = vsel %vm2207_vm4, %v5429_v0, %v2204_v44 }
0x13c0   : > { %v2213_v54 = vsel %vm2210_vm5, %v2212_v62, %v2208_v7 }
0x13c1   : > { %v2223_v30 = vsel %vm2222_vm14, %v5431_v53, %v2219_v58  ;;  %v2234_v6 = vmul.f32 %v2213_v54, %v2136_v43  ;;  %v7878_v53 = vsel %vm5989_vm1, %v6555_v40, %v6527_v3 }
0x13c2   : > { %v2228_v23 = vsel %vm2225_vm3, %v2227_v60, %v2223_v30 }
0x13c3   : > { %v2231_v25 = vmul.f32 %v2228_v23, %v6056_v41 }
0x13c5   : > { %v2233_v59 = vadd.f32 %v2231_v25, %v6078_v61 }
0x13c7   : > { %v2235_v13 = vmul.f32 %v2233_v59, %v2213_v54 }
0x13c9   : > { %2237 = vrot.lane.b32.xlu0 %v2235_v13, %s7876_s13 }
0x143b   : > { %v2238_v4 = vpop.permute.xlu0 %2237 }
0x143c   : > { %v6755_v27 = vadd.f32 %v2238_v4, %v2234_v6 }
0x143e   : > { %5432 = vtanh.f32 %v6755_v27 }
0x1444   : > { %v5433_v8 = vpop.eup %5432 }
0x1445   : > { %v2242_v49 = vmul.f32 %v5433_v8, %v2233_v59 }
0x1447   : > { %2244 = vrot.lane.b32.xlu1 %v2242_v49, %s7876_s13 }
0x14b9   : > { %v2245_v45 = vpop.permute.xlu1 %2244 }
0x14ba   : > { %2247 = vst.msk [vmem:[#allocation3 + $0x20] sm:$0xff] %vm668_vm12, %v2245_v45  ;;  %5152 = vmatmul.msk.f32.vlgmr.msra.gmra.mxu2 %vm668_vm12, %v2245_v45  ;;  %5153 = vmatmul.msk.f32.vlgmr.msra.gmra.mxu3 %vm668_vm12, %v2245_v45 }
0x14c1   : > { %v2640_v1 = vld [vmem:[#allocation3 + $0x20] sm:$0xff] }
0x14c2   : > { %v2641_v43 = vsel %vm487_vm8, %v2639_v35, %v2640_v1  ;;  %v2667_v9 = vsel %vm487_vm8, %v2640_v1, %v2639_v35 }
0x14c3   : > { %2657 = vst.msk [vmem:[#allocation5 + $0x3] sm:$0x1] %vm2578_vm6, %v2641_v43  ;;  %v2643_v31 = vrot.slane %v2641_v43, 1  ;;  %v2669_v20 = vrot.slane %v2667_v9, 1  ;;  %v2644_v24 = vrot.slane %v2641_v43, 2  ;;  %v2670_v5 = vrot.slane %v2667_v9, 2 }
0x14c4   : > { %2683 = vst.msk [vmem:[#allocation5 + $0x4] sm:$0x1] %vm2578_vm6, %v2667_v9  ;;  %v2645_v48 = vrot.slane %v2641_v43, 3  ;;  %v2671_v36 = vrot.slane %v2667_v9, 3  ;;  %v2646_v39 = vrot.slane %v2641_v43, 4  ;;  %v2672_v11 = vrot.slane %v2667_v9, 4 }
0x14c5   : > { %2658 = vst.msk [vmem:[#allocation5 + $0xb] sm:$0x1] %vm2578_vm6, %v2643_v31  ;;  %v2647_v12 = vrot.slane %v2641_v43, 5  ;;  %v2673_v46 = vrot.slane %v2667_v9, 5  ;;  %v2648_v15 = vrot.slane %v2641_v43, 6  ;;  %v2674_v16 = vrot.slane %v2667_v9, 6 }
0x14c6   : > { %2684 = vst.msk [vmem:[#allocation5 + $0xc] sm:$0x1] %vm2578_vm6, %v2669_v20  ;;  %v2649_v32 = vrot.slane %v2641_v43, 7  ;;  %v2675_v34 = vrot.slane %v2667_v9, 7 }
0x14c7   : > { %2659 = vst.msk [vmem:[#allocation5 + $0x13] sm:$0x1] %vm2578_vm6, %v2644_v24 }
0x14c8   : > { %2685 = vst.msk [vmem:[#allocation5 + $0x14] sm:$0x1] %vm2578_vm6, %v2670_v5 }
0x14c9   : > { %2660 = vst.msk [vmem:[#allocation5 + $0x1b] sm:$0x1] %vm2578_vm6, %v2645_v48 }
0x14ca   : > { %2686 = vst.msk [vmem:[#allocation5 + $0x1c] sm:$0x1] %vm2578_vm6, %v2671_v36 }
0x14cb   : > { %2661 = vst.msk [vmem:[#allocation5 + $0x23] sm:$0x1] %vm2578_vm6, %v2646_v39  ;;  %v2613_v39 = vld [vmem:[#allocation3 + $0x10] sm:$0xff] }
0x14cc   : > { %2687 = vst.msk [vmem:[#allocation5 + $0x24] sm:$0x1] %vm2578_vm6, %v2672_v11 }
0x14cd   : > { %2662 = vst.msk [vmem:[#allocation5 + $0x2b] sm:$0x1] %vm2578_vm6, %v2647_v12 }
0x14ce   : > { %2688 = vst.msk [vmem:[#allocation5 + $0x2c] sm:$0x1] %vm2578_vm6, %v2673_v46 }
0x14cf   : > { %2663 = vst.msk [vmem:[#allocation5 + $0x33] sm:$0x1] %vm2578_vm6, %v2648_v15 }
0x14d0   : > { %2689 = vst.msk [vmem:[#allocation5 + $0x34] sm:$0x1] %vm2578_vm6, %v2674_v16 }
0x14d1   : > { %2664 = vst.msk [vmem:[#allocation5 + $0x3b] sm:$0x1] %vm2578_vm6, %v2649_v32 }
0x14d2   : > { %2690 = vst.msk [vmem:[#allocation5 + $0x3c] sm:$0x1] %vm2578_vm6, %v2675_v34 }
0x153d   : > { %v2269_v0 = vpop.f32.mrf.mxu2  ;;  %v2289_v50 = vpop.f32.mrf.mxu3 }
0x153e   : > { %v2292_v17 = vadd.f32 %v2269_v0, %v7878_v53  ;;  %v2293_v19 = vadd.f32 %v2289_v50, %v7879_v18 }
0x1540   : > { %v5154_v2 = vmul.f32 -1.442695, %v2292_v17  ;;  %v2295_v56 = vmul.f32 %v2293_v19, %v6056_v41 }
0x1542   : > { %5434 = vpow2.f32 %v5154_v2  ;;  %v5155_v33 = vmul.f32 -1.442695, %v2295_v56 }
0x1544   : > { %5436 = vpow2.f32 %v5155_v33 }
0x1548   : > { %v5435_v37 = vpop.eup %5434 }
0x1549   : > { %v2302_v44 = vadd.f32 1.0, %v5435_v37 }
0x154a   : > { %v5437_v58 = vpop.eup %5436 }
0x154b   : > { %5438 = vrcp.f32 %v2302_v44  ;;  %v2303_v21 = vadd.f32 1.0, %v5437_v58  ;;  %v2315_v54 = vand.u32 2147483648, %v2302_v44  ;;  %vm2309_vm13 = vweird.f32 %v2302_v44 }
0x154c   : > { %v2313_v6 = vand.u32 2147483647, %v2302_v44  ;;  %v7880_v58 = vsel %vm5989_vm1, %v6575_v29, %v6523_v28 }
0x154d   : > { %5440 = vrcp.f32 %v2303_v21  ;;  %v2330_v38 = vand.u32 2147483648, %v2303_v21  ;;  %v2328_v25 = vand.u32 2147483647, %v2303_v21  ;;  %vm2324_vm10 = vweird.f32 %v2303_v21 }
0x154e   : > { %v2316_v35 = vor.u32 1.1754944e-38, %v2315_v54  ;;  %vm2314_vm3 = vcmp.eq.f32.partialorder %v2313_v6, 8.507059e+37 }
0x154f   : > { %v2331_v13 = vor.u32 1.1754944e-38, %v2330_v38  ;;  %vm2329_vm14 = vcmp.eq.f32.partialorder %v2328_v25, 8.507059e+37 }
0x1551   : > { %v5439_v3 = vpop.eup %5438 }
0x1552   : > { %v2305_v40 = vmul.f32 %v5439_v3, %v2302_v44  ;;  %vm2310_vm9 = vweird.f32 %v5439_v3 }
0x1553   : > { %v5441_v60 = vpop.eup %5440  ;;  %vm2311_vm15 = vmor %vm2309_vm13, %vm2310_vm9 }
0x1554   : > { %v2320_v47 = vmul.f32 %v5441_v60, %v2303_v21  ;;  %v2306_v30 = vsub.f32 1.0, %v2305_v40  ;;  %vm2325_vm7 = vweird.f32 %v5441_v60 }
0x1555   : > { %vm2326_vm11 = vmor %vm2324_vm10, %vm2325_vm7 }
0x1556   : > { %v2321_v23 = vsub.f32 1.0, %v2320_v47  ;;  %v2307_v57 = vmul.f32 %v5439_v3, %v2306_v30 }
0x1558   : > { %v2322_v7 = vmul.f32 %v5441_v60, %v2321_v23  ;;  %v2308_v62 = vadd.f32 %v5439_v3, %v2307_v57 }
0x155a   : > { %v2323_v59 = vadd.f32 %v5441_v60, %v2322_v7  ;;  %v2312_v49 = vsel %vm2311_vm15, %v5439_v3, %v2308_v62  ;;  %v7881_v3 = vsel %vm5993_vm2, %v6577_v14, %v6525_v55 }
0x155b   : > { %v2317_v43 = vsel %vm2314_vm3, %v2316_v35, %v2312_v49 }
0x155c   : > { %v2327_v4 = vsel %vm2326_vm11, %v5441_v60, %v2323_v59  ;;  %v2338_v31 = vmul.f32 %v2317_v43, %v6755_v27 }
0x155d   : > { %v2332_v8 = vsel %vm2329_vm14, %v2331_v13, %v2327_v4 }
0x155e   : > { %v2335_v45 = vmul.f32 %v2332_v8, %v6056_v41 }
0x1560   : > { %v2337_v1 = vadd.f32 %v2335_v45, %v6078_v61 }
0x1562   : > { %v2339_v9 = vmul.f32 %v2337_v1, %v2317_v43 }
0x1564   : > { %2341 = vrot.lane.b32.xlu2 %v2339_v9, %s7876_s13 }
0x15be   : > { %v2342_v20 = vpop.permute.xlu2 %2341 }
0x15bf   : > { %v6797_v24 = vadd.f32 %v2342_v20, %v2338_v31 }
0x15c1   : > { %5442 = vtanh.f32 %v6797_v24 }
0x15c7   : > { %v5443_v5 = vpop.eup %5442 }
0x15c8   : > { %v2346_v48 = vmul.f32 %v5443_v5, %v2337_v1 }
0x15ca   : > { %2348 = vrot.lane.b32.xlu0 %v2346_v48, %s7876_s13 }
0x163c   : > { %v2349_v36 = vpop.permute.xlu0 %2348 }
0x163d   : > { %2351 = vst.msk [vmem:[#allocation3 + $0x28] sm:$0xff] %vm668_vm12, %v2349_v36  ;;  %5156 = vmatmul.msk.f32.vlgmr.msrb.gmra.mxu0 %vm668_vm12, %v2349_v36  ;;  %5157 = vmatmul.msk.f32.vlgmr.msrb.gmra.mxu1 %vm668_vm12, %v2349_v36 }
0x1644   : > { %v2614_v11 = vld [vmem:[#allocation3 + $0x28] sm:$0xff] }
0x1645   : > { %v2615_v27 = vsel %vm487_vm8, %v2613_v39, %v2614_v11  ;;  %v2693_v12 = vsel %vm487_vm8, %v2614_v11, %v2613_v39 }
0x1646   : > { %2631 = vst.msk [vmem:[#allocation5 + $0x2] sm:$0x1] %vm2578_vm6, %v2615_v27  ;;  %v2617_v46 = vrot.slane %v2615_v27, 1  ;;  %v2695_v15 = vrot.slane %v2693_v12, 1  ;;  %v2618_v16 = vrot.slane %v2615_v27, 2  ;;  %v2696_v32 = vrot.slane %v2693_v12, 2 }
0x1647   : > { %2709 = vst.msk [vmem:[#allocation5 + $0x5] sm:$0x1] %vm2578_vm6, %v2693_v12  ;;  %v2619_v34 = vrot.slane %v2615_v27, 3  ;;  %v2697_v0 = vrot.slane %v2693_v12, 3  ;;  %v2620_v50 = vrot.slane %v2615_v27, 4  ;;  %v2698_v53 = vrot.slane %v2693_v12, 4 }
0x1648   : > { %2632 = vst.msk [vmem:[#allocation5 + $0xa] sm:$0x1] %vm2578_vm6, %v2617_v46  ;;  %v2621_v17 = vrot.slane %v2615_v27, 5  ;;  %v2699_v18 = vrot.slane %v2693_v12, 5  ;;  %v2622_v19 = vrot.slane %v2615_v27, 6  ;;  %v2700_v2 = vrot.slane %v2693_v12, 6 }
0x1649   : > { %2710 = vst.msk [vmem:[#allocation5 + $0xd] sm:$0x1] %vm2578_vm6, %v2695_v15  ;;  %v2623_v56 = vrot.slane %v2615_v27, 7  ;;  %v2701_v33 = vrot.slane %v2693_v12, 7 }
0x164a   : > { %2633 = vst.msk [vmem:[#allocation5 + $0x12] sm:$0x1] %vm2578_vm6, %v2618_v16  ;;  %v2587_v16 = vld [vmem:[#allocation3 + $0x8] sm:$0xff] }
0x164b   : > { %2711 = vst.msk [vmem:[#allocation5 + $0x15] sm:$0x1] %vm2578_vm6, %v2696_v32 }
0x164c   : > { %2634 = vst.msk [vmem:[#allocation5 + $0x1a] sm:$0x1] %vm2578_vm6, %v2619_v34 }
0x164d   : > { %2712 = vst.msk [vmem:[#allocation5 + $0x1d] sm:$0x1] %vm2578_vm6, %v2697_v0 }
0x164e   : > { %2635 = vst.msk [vmem:[#allocation5 + $0x22] sm:$0x1] %vm2578_vm6, %v2620_v50 }
0x164f   : > { %2713 = vst.msk [vmem:[#allocation5 + $0x25] sm:$0x1] %vm2578_vm6, %v2698_v53 }
0x1650   : > { %2636 = vst.msk [vmem:[#allocation5 + $0x2a] sm:$0x1] %vm2578_vm6, %v2621_v17 }
0x1651   : > { %2714 = vst.msk [vmem:[#allocation5 + $0x2d] sm:$0x1] %vm2578_vm6, %v2699_v18 }
0x1652   : > { %2637 = vst.msk [vmem:[#allocation5 + $0x32] sm:$0x1] %vm2578_vm6, %v2622_v19 }
0x1653   : > { %2715 = vst.msk [vmem:[#allocation5 + $0x35] sm:$0x1] %vm2578_vm6, %v2700_v2 }
0x1654   : > { %2638 = vst.msk [vmem:[#allocation5 + $0x3a] sm:$0x1] %vm2578_vm6, %v2623_v56 }
0x1655   : > { %2716 = vst.msk [vmem:[#allocation5 + $0x3d] sm:$0x1] %vm2578_vm6, %v2701_v33 }
0x16ba   : > { %v2373_v37 = vpop.f32.mrf.mxu0  ;;  %v2393_v44 = vpop.f32.mrf.mxu1 }
0x16bb   : > { %v2396_v21 = vadd.f32 %v2373_v37, %v7880_v58  ;;  %v2397_v40 = vadd.f32 %v2393_v44, %v7881_v3 }
0x16bd   : > { %v5158_v60 = vmul.f32 -1.442695, %v2396_v21  ;;  %v2399_v47 = vmul.f32 %v2397_v40, %v6056_v41 }
0x16bf   : > { %5444 = vpow2.f32 %v5158_v60  ;;  %v5159_v30 = vmul.f32 -1.442695, %v2399_v47  ;;  %v7882_v47 = vsel %vm5989_vm1, %v6599_v22, %v6595_v26 }
0x16c1   : > { %5446 = vpow2.f32 %v5159_v30 }
0x16c5   : > { %v5445_v23 = vpop.eup %5444 }
0x16c6   : > { %v2406_v57 = vadd.f32 1.0, %v5445_v23  ;;  %v7883_v23 = vsel %vm5993_vm2, %v6601_v63, %v6597_v10 }
0x16c7   : > { %v5447_v38 = vpop.eup %5446 }
0x16c8   : > { %5448 = vrcp.f32 %v2406_v57  ;;  %v2407_v7 = vadd.f32 1.0, %v5447_v38  ;;  %v2419_v49 = vand.u32 2147483648, %v2406_v57  ;;  %vm2413_vm10 = vweird.f32 %v2406_v57 }
0x16c9   : > { %v2417_v35 = vand.u32 2147483647, %v2406_v57 }
0x16ca   : > { %5450 = vrcp.f32 %v2407_v7  ;;  %v2434_v14 = vand.u32 2147483648, %v2407_v7  ;;  %v2432_v6 = vand.u32 2147483647, %v2407_v7  ;;  %vm2428_vm7 = vweird.f32 %v2407_v7 }
0x16cb   : > { %v2420_v20 = vor.u32 1.1754944e-38, %v2419_v49  ;;  %vm2418_vm14 = vcmp.eq.f32.partialorder %v2417_v35, 8.507059e+37 }
0x16cc   : > { %v2435_v45 = vor.u32 1.1754944e-38, %v2434_v14  ;;  %vm2433_vm11 = vcmp.eq.f32.partialorder %v2432_v6, 8.507059e+37 }
0x16ce   : > { %v5449_v28 = vpop.eup %5448 }
0x16cf   : > { %v2409_v29 = vmul.f32 %v5449_v28, %v2406_v57  ;;  %vm2414_vm5 = vweird.f32 %v5449_v28 }
0x16d0   : > { %v5451_v25 = vpop.eup %5450  ;;  %vm2415_vm13 = vmor %vm2413_vm10, %vm2414_vm5  ;;  %vm3436_vm10 = vcmask 1041409  }
0x16d1   : > { %v2424_v62 = vmul.f32 %v5451_v25, %v2407_v7  ;;  %v2410_v59 = vsub.f32 1.0, %v2409_v29  ;;  %vm2429_vm4 = vweird.f32 %v5451_v25 }
0x16d2   : > { %vm2430_vm9 = vmor %vm2428_vm7, %vm2429_vm4 }
0x16d3   : > { %v2425_v54 = vsub.f32 1.0, %v2424_v62  ;;  %v2411_v55 = vmul.f32 %v5449_v28, %v2410_v59 }
0x16d5   : > { %v2426_v13 = vmul.f32 %v5451_v25, %v2425_v54  ;;  %v2412_v4 = vadd.f32 %v5449_v28, %v2411_v55 }
0x16d7   : > { %v2427_v8 = vadd.f32 %v5451_v25, %v2426_v13  ;;  %v2416_v9 = vsel %vm2415_vm13, %v5449_v28, %v2412_v4  ;;  %vm3440_vm13 = vcmask 1043459  }
0x16d8   : > { %v2421_v48 = vsel %vm2418_vm14, %v2420_v20, %v2416_v9  ;;  %vm3442_vm14 = vcmask 1044484  }
0x16d9   : > { %v2431_v1 = vsel %vm2430_vm9, %v5451_v25, %v2427_v8  ;;  %v2442_v39 = vmul.f32 %v2421_v48, %v6797_v24 }
0x16da   : > { %v2436_v43 = vsel %vm2433_vm11, %v2435_v45, %v2431_v1  ;;  %vm3438_vm11 = vcmask 1042434  }
0x16db   : > { %v2439_v31 = vmul.f32 %v2436_v43, %v6056_v41 }
0x16dd   : > { %v2441_v5 = vadd.f32 %v2439_v31, %v6078_v61 }
0x16df   : > { %v2443_v36 = vmul.f32 %v2441_v5, %v2421_v48 }
0x16e1   : > { %2445 = vrot.lane.b32.xlu1 %v2443_v36, %s7876_s13 }
0x1753   : > { %v2446_v11 = vpop.permute.xlu1 %2445 }
0x1754   : > { %v6839_v27 = vadd.f32 %v2446_v11, %v2442_v39 }
0x1756   : > { %5452 = vtanh.f32 %v6839_v27 }
0x175c   : > { %v5453_v12 = vpop.eup %5452 }
0x175d   : > { %v2450_v46 = vmul.f32 %v5453_v12, %v2441_v5 }
0x175f   : > { %2452 = vrot.lane.b32.xlu2 %v2450_v46, %s7876_s13 }
0x17b9   : > { %v2453_v15 = vpop.permute.xlu2 %2452 }
0x17ba   : > { %2455 = vst.msk [vmem:[#allocation3 + $0x30] sm:$0xff] %vm668_vm12, %v2453_v15  ;;  %5160 = vmatmul.msk.f32.vlgmr.msrb.gmra.mxu2 %vm668_vm12, %v2453_v15  ;;  %5161 = vmatmul.msk.f32.vlgmr.msrb.gmra.mxu3 %vm668_vm12, %v2453_v15  ;;  %v2800_v15 = vld [vmem:[%s7851_s7 + $0xb8] sm:$0xff] }
0x17bb   : > { %2923 = vmatpush.msra.mxu2 %v2800_v15 }
0x17c1   : > { %v2588_v32 = vld [vmem:[#allocation3 + $0x30] sm:$0xff] }
0x17c2   : > { %v2589_v24 = vsel %vm487_vm8, %v2587_v16, %v2588_v32  ;;  %v2719_v34 = vsel %vm487_vm8, %v2588_v32, %v2587_v16  ;;  %v2796_v16 = vld [vmem:[%s7851_s7 + $0x98] sm:$0xff]  ;;  %v2797_v32 = vld [vmem:[%s7851_s7 + $0xa0] sm:$0xff] }
0x17c3   : > { %2605 = vst.msk [vmem:[#allocation5 + $0x1] sm:$0x1] %vm2578_vm6, %v2589_v24  ;;  %v2591_v0 = vrot.slane %v2589_v24, 1  ;;  %v2721_v50 = vrot.slane %v2719_v34, 1  ;;  %v2592_v53 = vrot.slane %v2589_v24, 2  ;;  %v2722_v17 = vrot.slane %v2719_v34, 2  ;;  %2924 = vmatpush.msra.mxu2 %v2797_v32 }
0x17c4   : > { %2735 = vst.msk [vmem:[#allocation5 + $0x6] sm:$0x1] %vm2578_vm6, %v2719_v34  ;;  %v2593_v18 = vrot.slane %v2589_v24, 3  ;;  %v2723_v19 = vrot.slane %v2719_v34, 3  ;;  %v2594_v2 = vrot.slane %v2589_v24, 4  ;;  %v2724_v56 = vrot.slane %v2719_v34, 4 }
0x17c5   : > { %2606 = vst.msk [vmem:[#allocation5 + $0x9] sm:$0x1] %vm2578_vm6, %v2591_v0  ;;  %v2595_v33 = vrot.slane %v2589_v24, 5  ;;  %v2725_v37 = vrot.slane %v2719_v34, 5  ;;  %v2596_v44 = vrot.slane %v2589_v24, 6  ;;  %v2726_v58 = vrot.slane %v2719_v34, 6 }
0x17c6   : > { %2736 = vst.msk [vmem:[#allocation5 + $0xe] sm:$0x1] %vm2578_vm6, %v2721_v50  ;;  %v2597_v21 = vrot.slane %v2589_v24, 7  ;;  %v2727_v3 = vrot.slane %v2719_v34, 7  ;;  %v2792_v24 = vld [vmem:[%s7851_s7 + $0x78] sm:$0xff]  ;;  %v2793_v34 = vld [vmem:[%s7851_s7 + $0x80] sm:$0xff] }
0x17c7   : > { %2607 = vst.msk [vmem:[#allocation5 + $0x11] sm:$0x1] %vm2578_vm6, %v2592_v53  ;;  %v2794_v0 = vld [vmem:[%s7851_s7 + $0x88] sm:$0xff]  ;;  %v2789_v50 = vld [vmem:[%s7851_s7 + $0x60] sm:$0xff] }
0x17c8   : > { %2737 = vst.msk [vmem:[#allocation5 + $0x16] sm:$0x1] %vm2578_vm6, %v2722_v17  ;;  %2925 = vmatpush.msra.mxu2 %v2794_v0  ;;  %v2790_v53 = vld [vmem:[%s7851_s7 + $0x68] sm:$0xff]  ;;  %v2791_v17 = vld [vmem:[%s7851_s7 + $0x70] sm:$0xff] }
0x17c9   : > { %2608 = vst.msk [vmem:[#allocation5 + $0x19] sm:$0x1] %vm2578_vm6, %v2593_v18  ;;  %v2786_v18 = vld [vmem:[%s7851_s7 + $0x48] sm:$0xff] }
0x17ca   : > { %2738 = vst.msk [vmem:[#allocation5 + $0x1e] sm:$0x1] %vm2578_vm6, %v2723_v19  ;;  %v2787_v19 = vld [vmem:[%s7851_s7 + $0x50] sm:$0xff]  ;;  %2926 = vmatpush.msra.mxu2 %v2791_v17 }
0x17cb   : > { %2609 = vst.msk [vmem:[#allocation5 + $0x21] sm:$0x1] %vm2578_vm6, %v2594_v2  ;;  %v2788_v2 = vld [vmem:[%s7851_s7 + $0x58] sm:$0xff] }
0x17cc   : > { %2739 = vst.msk [vmem:[#allocation5 + $0x26] sm:$0x1] %vm2578_vm6, %v2724_v56  ;;  %v2783_v56 = vld [vmem:[%s7851_s7 + $0x30] sm:$0xff]  ;;  %2927 = vmatpush.msra.mxu2 %v2788_v2 }
0x17cd   : > { %2610 = vst.msk [vmem:[#allocation5 + $0x29] sm:$0x1] %vm2578_vm6, %v2595_v33  ;;  %v2784_v33 = vld [vmem:[%s7851_s7 + $0x38] sm:$0xff] }
0x17ce   : > { %2740 = vst.msk [vmem:[#allocation5 + $0x2e] sm:$0x1] %vm2578_vm6, %v2725_v37  ;;  %v2785_v37 = vld [vmem:[%s7851_s7 + $0x40] sm:$0xff] }
0x17cf   : > { %2611 = vst.msk [vmem:[#allocation5 + $0x31] sm:$0x1] %vm2578_vm6, %v2596_v44  ;;  %v2780_v44 = vld [vmem:[%s7851_s7 + $0x18] sm:$0xff]  ;;  %2928 = vmatpush.msra.mxu2 %v2785_v37 }
0x17d0   : > { %2741 = vst.msk [vmem:[#allocation5 + $0x36] sm:$0x1] %vm2578_vm6, %v2726_v58  ;;  %v2781_v58 = vld [vmem:[%s7851_s7 + $0x20] sm:$0xff] }
0x17d1   : > { %2612 = vst.msk [vmem:[#allocation5 + $0x39] sm:$0x1] %vm2578_vm6, %v2597_v21  ;;  %v2782_v21 = vld [vmem:[%s7851_s7 + $0x28] sm:$0xff] }
0x17d2   : > { %2742 = vst.msk [vmem:[#allocation5 + $0x3e] sm:$0x1] %vm2578_vm6, %v2727_v3  ;;  %v2777_v3 = vld [vmem:[%s7851_s7] sm:$0xff]  ;;  %2929 = vmatpush.msra.mxu2 %v2782_v21 }
0x183d   : > { %v2477_v40 = vpop.f32.mrf.mxu2  ;;  %v2497_v60 = vpop.f32.mrf.mxu3 }
0x183e   : > { %v2500_v30 = vadd.f32 %v2477_v40, %v7882_v47  ;;  %v2501_v57 = vadd.f32 %v2497_v60, %v7883_v23  ;;  %v2778_v40 = vld [vmem:[%s7851_s7 + $0x8] sm:$0xff]  ;;  %v2779_v60 = vld [vmem:[%s7851_s7 + $0x10] sm:$0xff] }
0x183f   : > { %2930 = vmatpush.msra.mxu2 %v2779_v60 }
0x1840   : > { %v5162_v38 = vmul.f32 -1.442695, %v2500_v30  ;;  %v2503_v7 = vmul.f32 %v2501_v57, %v6056_v41  ;;  %v2560_v30 = vld [vmem:[#allocation3] sm:$0xff] }
0x1842   : > { %5454 = vpow2.f32 %v5162_v38  ;;  %v5163_v28 = vmul.f32 -1.442695, %v2503_v7 }
0x1844   : > { %5456 = vpow2.f32 %v5163_v28 }
0x1848   : > { %v5455_v29 = vpop.eup %5454 }
0x1849   : > { %v2510_v25 = vadd.f32 1.0, %v5455_v29 }
0x184a   : > { %v5457_v62 = vpop.eup %5456 }
0x184b   : > { %5458 = vrcp.f32 %v2510_v25  ;;  %v2511_v51 = vadd.f32 1.0, %v5457_v62  ;;  %v2523_v8 = vand.u32 2147483648, %v2510_v25  ;;  %vm2517_vm4 = vweird.f32 %v2510_v25 }
0x184c   : > { %v2521_v45 = vand.u32 2147483647, %v2510_v25 }
0x184d   : > { %5460 = vrcp.f32 %v2511_v51  ;;  %v2538_v63 = vand.u32 2147483648, %v2511_v51  ;;  %v2536_v13 = vand.u32 2147483647, %v2511_v51  ;;  %vm2532_vm15 = vweird.f32 %v2511_v51 }
0x184e   : > { %v2524_v31 = vor.u32 1.1754944e-38, %v2523_v8  ;;  %vm2522_vm9 = vcmp.eq.f32.partialorder %v2521_v45, 8.507059e+37 }
0x184f   : > { %v2539_v49 = vor.u32 1.1754944e-38, %v2538_v63  ;;  %vm2537_vm5 = vcmp.eq.f32.partialorder %v2536_v13, 8.507059e+37 }
0x1851   : > { %v5459_v26 = vpop.eup %5458 }
0x1852   : > { %v2513_v22 = vmul.f32 %v5459_v26, %v2510_v25  ;;  %vm2518_vm2 = vweird.f32 %v5459_v26 }
0x1853   : > { %v5461_v59 = vpop.eup %5460  ;;  %vm2519_vm7 = vmor %vm2517_vm4, %vm2518_vm2  ;;  %vm3446_vm2 = vcmask 1046534   ;;  %vm4872_vm4 = vcmask 523648  }
0x1854   : > { %v2528_v52 = vmul.f32 %v5461_v59, %v2511_v51  ;;  %v2514_v54 = vsub.f32 1.0, %v2513_v22  ;;  %vm2533_vm1 = vweird.f32 %v5461_v59 }
0x1855   : > { %vm2534_vm3 = vmor %vm2532_vm15, %vm2533_vm1  ;;  %vm3444_vm1 = vcmask 1045509   ;;  %vm3448_vm15 = vcmask 1047559  }
0x1856   : > { %v2529_v55 = vsub.f32 1.0, %v2528_v52  ;;  %v2515_v10 = vmul.f32 %v5459_v26, %v2514_v54 }
0x1858   : > { %v2530_v14 = vmul.f32 %v5461_v59, %v2529_v55  ;;  %v2516_v6 = vadd.f32 %v5459_v26, %v2515_v10 }
0x185a   : > { %v2531_v4 = vadd.f32 %v5461_v59, %v2530_v14  ;;  %v2520_v43 = vsel %vm2519_vm7, %v5459_v26, %v2516_v6 }
0x185b   : > { %v2525_v5 = vsel %vm2522_vm9, %v2524_v31, %v2520_v43 }
0x185c   : > { %v2535_v35 = vsel %vm2534_vm3, %v5461_v59, %v2531_v4  ;;  %v2546_v36 = vmul.f32 %v2525_v5, %v6839_v27  ;;  %v2795_v27 = vld [vmem:[%s7851_s7 + $0x90] sm:$0xff]  ;;  %vm4374_vm3 = vcmask 392448  }
0x185d   : > { %v2540_v1 = vsel %vm2537_vm5, %v2539_v49, %v2535_v35  ;;  %v7002_v35 = vld [vmem:[%s7852_s8] sm:$0x7] }
0x185e   : > { %v2543_v9 = vmul.f32 %v2540_v1, %v6056_v41  ;;  %v2798_v41 = vld [vmem:[%s7851_s7 + $0xa8] sm:$0xff]  ;;  %v7005_v1 = vperm.slane %v7002_v35, 0 }
0x185f   : > { %2841 = vmatpush.msra.mxu0 %v2798_v41 }
0x1860   : > { %v2545_v20 = vadd.f32 %v2543_v9, %v6078_v61  ;;  %v2799_v61 = vld [vmem:[%s7851_s7 + $0xb0] sm:$0xff] }
0x1861   : > { %2882 = vmatpush.msra.mxu1 %v2799_v61  ;;  %2842 = vmatpush.msra.mxu0 %v2795_v27 }
0x1862   : > { %v2547_v48 = vmul.f32 %v2545_v20, %v2525_v5 }
0x1863   : > { %2883 = vmatpush.msra.mxu1 %v2796_v16  ;;  %2843 = vmatpush.msra.mxu0 %v2792_v24 }
0x1864   : > { %2549 = vrot.lane.b32.xlu0 %v2547_v48, %s7876_s13 }
0x1865   : > { %2884 = vmatpush.msra.mxu1 %v2793_v34  ;;  %2844 = vmatpush.msra.mxu0 %v2789_v50 }
0x1867   : > { %2885 = vmatpush.msra.mxu1 %v2790_v53  ;;  %2845 = vmatpush.msra.mxu0 %v2786_v18 }
0x1869   : > { %2886 = vmatpush.msra.mxu1 %v2787_v19  ;;  %2846 = vmatpush.msra.mxu0 %v2783_v56 }
0x186b   : > { %2887 = vmatpush.msra.mxu1 %v2784_v33  ;;  %2847 = vmatpush.msra.mxu0 %v2780_v44 }
0x186d   : > { %2888 = vmatpush.msra.mxu1 %v2781_v58  ;;  %2848 = vmatpush.msra.mxu0 %v2777_v3 }
0x186f   : > { %2889 = vmatpush.msra.mxu1 %v2778_v40 }
0x18d6   : > { %v2550_v39 = vpop.permute.xlu0 %2549 }
0x18d7   : > { %v2552_v11 = vadd.f32 %v2550_v39, %v2546_v36 }
0x18d9   : > { %5462 = vtanh.f32 %v2552_v11 }
0x18df   : > { %v5463_v12 = vpop.eup %5462 }
0x18e0   : > { %v2554_v46 = vmul.f32 %v5463_v12, %v2545_v20  ;;  %v7011_v20 = vperm.slane %v7002_v35, 1 }
0x18e2   : > { %2556 = vrot.lane.b32.xlu1 %v2554_v46, %s7876_s13  ;;  %s5071_s13 = sshll.u32 %s5788_s30, 3 }
0x18e3   : > { %s447_s29 = scalar_lea.vmem [#allocation8], %s5071_s13  ;;  %s5614_s13 = scalar_lea.hbm %s7855_s11, 16 }
0x18e4   : > { %s4996_s12 = sshll.u32 %s447_s29, 4  ;;  %s4997_s12 = int_to_ptr.vmem [resolvable:$true] %s4996_s12 }
0x1954   : > { %v2557_v47 = vpop.permute.xlu1 %2556 }
0x1955   : > { %2559 = vst.msk [vmem:[#allocation3 + $0x38] sm:$0xff] %vm668_vm12, %v2557_v47 }
0x195c   : > { %v2561_v23 = vld [vmem:[#allocation3 + $0x38] sm:$0xff] }
0x195d   : > { %v2562_v57 = vsel %vm487_vm8, %v2560_v30, %v2561_v23  ;;  %v2745_v38 = vsel %vm487_vm8, %v2561_v23, %v2560_v30  ;;  %vm2956_vm8 = vcmask 130048  }
0x195e   : > { %2579 = vst.msk [vmem:[#allocation5] sm:$0x1] %vm2578_vm6, %v2562_v57  ;;  %v2564_v7 = vrot.slane %v2562_v57, 1  ;;  %v2747_v28 = vrot.slane %v2745_v38, 1  ;;  %v2565_v29 = vrot.slane %v2562_v57, 2  ;;  %v2748_v25 = vrot.slane %v2745_v38, 2 }
0x195f   : > { %2761 = vst.msk [vmem:[#allocation5 + $0x7] sm:$0x1] %vm2578_vm6, %v2745_v38  ;;  %v2566_v62 = vrot.slane %v2562_v57, 3  ;;  %v2749_v51 = vrot.slane %v2745_v38, 3  ;;  %v2567_v26 = vrot.slane %v2562_v57, 4  ;;  %v2750_v42 = vrot.slane %v2745_v38, 4 }
0x1960   : > { %2580 = vst.msk [vmem:[#allocation5 + $0x8] sm:$0x1] %vm2578_vm6, %v2564_v7  ;;  %v2568_v22 = vrot.slane %v2562_v57, 5  ;;  %v2751_v59 = vrot.slane %v2745_v38, 5  ;;  %v2569_v54 = vrot.slane %v2562_v57, 6  ;;  %v2752_v55 = vrot.slane %v2745_v38, 6 }
0x1961   : > { %2762 = vst.msk [vmem:[#allocation5 + $0xf] sm:$0x1] %vm2578_vm6, %v2747_v28  ;;  %v2570_v10 = vrot.slane %v2562_v57, 7  ;;  %v2753_v63 = vrot.slane %v2745_v38, 7 }
0x1962   : > { %2581 = vst.msk [vmem:[#allocation5 + $0x10] sm:$0x1] %vm2578_vm6, %v2565_v29 }
0x1963   : > { %2763 = vst.msk [vmem:[#allocation5 + $0x17] sm:$0x1] %vm2578_vm6, %v2748_v25 }
0x1964   : > { %2582 = vst.msk [vmem:[#allocation5 + $0x18] sm:$0x1] %vm2578_vm6, %v2566_v62 }
0x1965   : > { %2764 = vst.msk [vmem:[#allocation5 + $0x1f] sm:$0x1] %vm2578_vm6, %v2749_v51 }
0x1966   : > { %v2769_v52 = vld [vmem:[#allocation5] sm:$0xff]  ;;  %2583 = vst.msk [vmem:[#allocation5 + $0x20] sm:$0x1] %vm2578_vm6, %v2567_v26 }
0x1967   : > { %5164 = vmatmul.msk.f32.vlgmr.msra.gmra.mxu0 %vm668_vm12, %v2769_v52  ;;  %5172 = vmatmul.msk.f32.vlgmr.msra.gmra.mxu1 %vm668_vm12, %v2769_v52  ;;  %2765 = vst.msk [vmem:[#allocation5 + $0x27] sm:$0x1] %vm2578_vm6, %v2750_v42 }
0x1968   : > { %5180 = vmatmul.msk.f32.vlgmr.msra.gmra.mxu2 %vm668_vm12, %v2769_v52  ;;  %2584 = vst.msk [vmem:[#allocation5 + $0x28] sm:$0x1] %vm2578_vm6, %v2568_v22  ;;  %v2770_v14 = vld [vmem:[#allocation5 + $0x8] sm:$0xff] }
0x1969   : > { %2766 = vst.msk [vmem:[#allocation5 + $0x2f] sm:$0x1] %vm2578_vm6, %v2751_v59 }
0x196a   : > { %2585 = vst.msk [vmem:[#allocation5 + $0x30] sm:$0x1] %vm2578_vm6, %v2569_v54  ;;  %v2771_v13 = vld [vmem:[#allocation5 + $0x10] sm:$0xff] }
0x196b   : > { %2767 = vst.msk [vmem:[#allocation5 + $0x37] sm:$0x1] %vm2578_vm6, %v2752_v55 }
0x196c   : > { %2586 = vst.msk [vmem:[#allocation5 + $0x38] sm:$0x1] %vm2578_vm6, %v2570_v10  ;;  %v2772_v6 = vld [vmem:[#allocation5 + $0x18] sm:$0xff] }
0x196d   : > { %2768 = vst.msk [vmem:[#allocation5 + $0x3f] sm:$0x1] %vm2578_vm6, %v2753_v63 }
0x196e   : > { %v2773_v4 = vld [vmem:[#allocation5 + $0x20] sm:$0xff] }
0x196f   : > { %5165 = vmatmul.msk.f32.gmra.mxu0 %vm668_vm12, %v2770_v14  ;;  %5173 = vmatmul.msk.f32.gmra.mxu1 %vm668_vm12, %v2770_v14 }
0x1970   : > { %5181 = vmatmul.msk.f32.gmra.mxu2 %vm668_vm12, %v2770_v14  ;;  %v2774_v8 = vld [vmem:[#allocation5 + $0x28] sm:$0xff] }
0x1972   : > { %v2775_v49 = vld [vmem:[#allocation5 + $0x30] sm:$0xff] }
0x1974   : > { %v2776_v45 = vld [vmem:[#allocation5 + $0x38] sm:$0xff] }
0x1977   : > { %5166 = vmatmul.msk.f32.gmra.mxu0 %vm668_vm12, %v2771_v13  ;;  %5174 = vmatmul.msk.f32.gmra.mxu1 %vm668_vm12, %v2771_v13 }
0x1978   : > { %5182 = vmatmul.msk.f32.gmra.mxu2 %vm668_vm12, %v2771_v13 }
0x197f   : > { %5167 = vmatmul.msk.f32.gmra.mxu0 %vm668_vm12, %v2772_v6  ;;  %5175 = vmatmul.msk.f32.gmra.mxu1 %vm668_vm12, %v2772_v6 }
0x1980   : > { %5183 = vmatmul.msk.f32.gmra.mxu2 %vm668_vm12, %v2772_v6 }
0x1987   : > { %5168 = vmatmul.msk.f32.gmra.mxu0 %vm668_vm12, %v2773_v4  ;;  %5176 = vmatmul.msk.f32.gmra.mxu1 %vm668_vm12, %v2773_v4 }
0x1988   : > { %5184 = vmatmul.msk.f32.gmra.mxu2 %vm668_vm12, %v2773_v4 }
0x198f   : > { %5169 = vmatmul.msk.f32.gmra.mxu0 %vm668_vm12, %v2774_v8  ;;  %5177 = vmatmul.msk.f32.gmra.mxu1 %vm668_vm12, %v2774_v8 }
0x1990   : > { %5185 = vmatmul.msk.f32.gmra.mxu2 %vm668_vm12, %v2774_v8 }
0x1997   : > { %5170 = vmatmul.msk.f32.gmra.mxu0 %vm668_vm12, %v2775_v49  ;;  %5178 = vmatmul.msk.f32.gmra.mxu1 %vm668_vm12, %v2775_v49 }
0x1998   : > { %5186 = vmatmul.msk.f32.gmra.mxu2 %vm668_vm12, %v2775_v49 }
0x199f   : > { %5171 = vmatmul.msk.f32.gmra.mxu0 %vm668_vm12, %v2776_v45  ;;  %5179 = vmatmul.msk.f32.gmra.mxu1 %vm668_vm12, %v2776_v45 }
0x19a0   : > { %5187 = vmatmul.msk.f32.gmra.mxu2 %vm668_vm12, %v2776_v45 }
0x19e4   : > { %v2850_v43 = vpop.f32.mrf.mxu0  ;;  %v2891_v9 = vpop.f32.mrf.mxu1 }
0x19e5   : > { %v7008_v31 = vadd.f32 %v2850_v43, %v7005_v1  ;;  %v7020_v5 = vadd.f32 %v2891_v9, %v7011_v20 }
0x19e7   : > { %3952 = vrot.lane.b32.xlu1 %v7008_v31, %s5661_s14  ;;  %3454 = vrot.lane.b32.xlu2 %v7008_v31, %s5662_s21 }
0x19e8   : > { %5188 = vmatpush.xpose.msk.msra.mxu3 %vm2956_vm8, %v7008_v31 }
0x19eb   : > { %5189 = vmatmul.msk.f32.vlgmr.msra.gmra.mxu3 %vm2956_vm8, %v7020_v5 }
0x19ec   : > { %v2853_v48 = vpop.f32.mrf.mxu0  ;;  %v2894_v36 = vpop.f32.mrf.mxu1 }
0x19ed   : > { %v2854_v39 = vadd.f32 %v2853_v48, %v7005_v1  ;;  %v7030_v11 = vadd.f32 %v2894_v36, %v7011_v20 }
0x19ef   : > { %3452 = vrot.lane.b32.xlu2 %v7020_v5, %s5662_s21  ;;  %3482 = vrot.lane.b32.xlu0 %v2854_v39, %s5662_s21 }
0x19f0   : > { %5190 = vmatpush.xpose.msk.msrb.mxu3 %vm2956_vm8, %v2854_v39 }
0x19f3   : > { %5191 = vmatmul.msk.f32.vlgmr.msrb.gmra.mxu3 %vm2956_vm8, %v7030_v11 }
0x19f4   : > { %v2856_v12 = vpop.f32.mrf.mxu0  ;;  %v2897_v46 = vpop.f32.mrf.mxu1 }
0x19f5   : > { %v2857_v41 = vadd.f32 %v2856_v12, %v7005_v1  ;;  %v2898_v61 = vadd.f32 %v2897_v46, %v7011_v20 }
0x19f7   : > { %3950 = vrot.lane.b32.xlu2 %v7020_v5, %s5661_s14  ;;  %3510 = vrot.lane.b32.xlu1 %v2857_v41, %s5662_s21 }
0x19f8   : > { %3480 = vrot.lane.b32.xlu0 %v7030_v11, %s5662_s21  ;;  %5192 = vmatpush.xpose.msk.msra.mxu3 %vm2956_vm8, %v2857_v41 }
0x19fb   : > { %5193 = vmatmul.msk.f32.vlgmr.msra.gmra.mxu3 %vm2956_vm8, %v2898_v61 }
0x19fc   : > { %v2859_v15 = vpop.f32.mrf.mxu0  ;;  %v2900_v27 = vpop.f32.mrf.mxu1 }
0x19fd   : > { %v7044_v16 = vadd.f32 %v2859_v15, %v7005_v1  ;;  %v2901_v32 = vadd.f32 %v2900_v27, %v7011_v20 }
0x19ff   : > { %3508 = vrot.lane.b32.xlu1 %v2898_v61, %s5662_s21  ;;  %3980 = vrot.lane.b32.xlu2 %v2854_v39, %s5661_s14 }
0x1a00   : > { %4478 = vrot.lane.b32.xlu0 %v2854_v39, %s5663_s15  ;;  %5194 = vmatpush.xpose.msk.msrb.mxu3 %vm2956_vm8, %v7044_v16 }
0x1a03   : > { %5195 = vmatmul.msk.f32.vlgmr.msrb.gmra.mxu3 %vm2956_vm8, %v2901_v32 }
0x1a04   : > { %v2862_v24 = vpop.f32.mrf.mxu0  ;;  %v2903_v34 = vpop.f32.mrf.mxu1 }
0x1a05   : > { %v2863_v0 = vadd.f32 %v2862_v24, %v7005_v1  ;;  %v2904_v50 = vadd.f32 %v2903_v34, %v7011_v20 }
0x1a07   : > { %4506 = vrot.lane.b32.xlu1 %v2857_v41, %s5663_s15  ;;  %3978 = vrot.lane.b32.xlu2 %v7030_v11, %s5661_s14 }
0x1a08   : > { %4008 = vrot.lane.b32.xlu0 %v2857_v41, %s5661_s14  ;;  %5196 = vmatpush.xpose.msk.msra.mxu3 %vm2956_vm8, %v2863_v0 }
0x1a0b   : > { %5197 = vmatmul.msk.f32.vlgmr.msra.gmra.mxu3 %vm2956_vm8, %v2904_v50 }
0x1a0c   : > { %v2865_v53 = vpop.f32.mrf.mxu0  ;;  %v2906_v17 = vpop.f32.mrf.mxu1 }
0x1a0d   : > { %v2866_v18 = vadd.f32 %v2865_v53, %v7005_v1  ;;  %v2907_v19 = vadd.f32 %v2906_v17, %v7011_v20 }
0x1a0f   : > { %4062 = vrot.lane.b32.xlu1 %v2904_v50, %s5661_s14  ;;  %3538 = vrot.lane.b32.xlu2 %v7044_v16, %s5662_s21 }
0x1a10   : > { %4006 = vrot.lane.b32.xlu0 %v2898_v61, %s5661_s14  ;;  %5198 = vmatpush.xpose.msk.msrb.mxu3 %vm2956_vm8, %v2866_v18 }
0x1a13   : > { %5199 = vmatmul.msk.f32.vlgmr.msrb.gmra.mxu3 %vm2956_vm8, %v2907_v19 }
0x1a14   : > { %v2868_v2 = vpop.f32.mrf.mxu0  ;;  %v2909_v56 = vpop.f32.mrf.mxu1 }
0x1a15   : > { %v2869_v33 = vadd.f32 %v2868_v2, %v7005_v1  ;;  %v2910_v37 = vadd.f32 %v2909_v56, %v7011_v20 }
0x1a17   : > { %4504 = vrot.lane.b32.xlu1 %v2898_v61, %s5663_s15  ;;  %3536 = vrot.lane.b32.xlu2 %v2901_v32, %s5662_s21 }
0x1a18   : > { %4036 = vrot.lane.b32.xlu0 %v7044_v16, %s5661_s14  ;;  %5200 = vmatpush.xpose.msk.msra.mxu3 %vm2956_vm8, %v2869_v33 }
0x1a1b   : > { %5201 = vmatmul.msk.f32.vlgmr.msra.gmra.mxu3 %vm2956_vm8, %v2910_v37 }
0x1a1c   : > { %v2871_v44 = vpop.f32.mrf.mxu0  ;;  %v2912_v21 = vpop.f32.mrf.mxu1 }
0x1a1d   : > { %v2872_v58 = vadd.f32 %v2871_v44, %v7005_v1  ;;  %v2913_v3 = vadd.f32 %v2912_v21, %v7011_v20 }
0x1a1f   : > { %4092 = vrot.lane.b32.xlu1 %v2866_v18, %s5661_s14  ;;  %3566 = vrot.lane.b32.xlu2 %v2863_v0, %s5662_s21 }
0x1a20   : > { %4034 = vrot.lane.b32.xlu0 %v2901_v32, %s5661_s14  ;;  %5202 = vmatpush.xpose.msk.msrb.mxu3 %vm2956_vm8, %v2872_v58 }
0x1a23   : > { %5203 = vmatmul.msk.f32.vlgmr.msrb.gmra.mxu3 %vm2956_vm8, %v2913_v3 }
0x1a27   : > { %4090 = vrot.lane.b32.xlu1 %v2907_v19, %s5661_s14  ;;  %4450 = vrot.lane.b32.xlu2 %v7008_v31, %s5663_s15 }
0x1a28   : > { %3564 = vrot.lane.b32.xlu0 %v2904_v50, %s5662_s21 }
0x1a2f   : > { %3622 = vrot.lane.b32.xlu1 %v2869_v33, %s5662_s21  ;;  %4120 = vrot.lane.b32.xlu2 %v2869_v33, %s5661_s14 }
0x1a30   : > { %4064 = vrot.lane.b32.xlu0 %v2863_v0, %s5661_s14 }
0x1a37   : > { %3620 = vrot.lane.b32.xlu1 %v2910_v37, %s5662_s21  ;;  %4118 = vrot.lane.b32.xlu2 %v2910_v37, %s5661_s14 }
0x1a38   : > { %3594 = vrot.lane.b32.xlu0 %v2866_v18, %s5662_s21 }
0x1a3f   : > { %3650 = vrot.lane.b32.xlu1 %v2872_v58, %s5662_s21  ;;  %4590 = vrot.lane.b32.xlu2 %v2866_v18, %s5663_s15 }
0x1a40   : > { %3592 = vrot.lane.b32.xlu0 %v2907_v19, %s5662_s21 }
0x1a41   : > { %v3455_v40 = vpop.permute.xlu2 %3454 }
0x1a42   : > { %5204 = vmatpush.xpose.msk.msrb.mxu0 %vm2956_vm8, %v3455_v40 }
0x1a47   : > { %3648 = vrot.lane.b32.xlu1 %v2913_v3, %s5662_s21  ;;  %4148 = vrot.lane.b32.xlu2 %v2872_v58, %s5661_s14 }
0x1a48   : > { %4476 = vrot.lane.b32.xlu0 %v7030_v11, %s5663_s15 }
0x1a49   : > { %v3453_v60 = vpop.permute.xlu2 %3452 }
0x1a4a   : > { %5205 = vmatmul.msk.f32.vlgmr.msrb.gmra.mxu0 %vm2956_vm8, %v3453_v60 }
0x1a4f   : > { %4534 = vrot.lane.b32.xlu1 %v7044_v16, %s5663_s15  ;;  %4146 = vrot.lane.b32.xlu2 %v2913_v3, %s5661_s14  ;;  %s7884_s14 = sadd.s32 4294967295, %s5656_s20  }
0x1a50   : > { %4448 = vrot.lane.b32.xlu0 %v7020_v5, %s5663_s15  ;;  %s5254_s21 = sshll.u32 %s7884_s14, 3 }
0x1a51   : > { %v7108_v47 = vpop.permute.xlu2 %3950  ;;  %s4994_s22 = scalar_lea.hbm %s7855_s11, %s5254_s21 }
0x1a52   : > { %s4998_s0 = sshll.u32 %s4994_s22, 4  ;;  %s4999_s0 = int_to_ptr.hbm [resolvable:$true] %s4998_s0 }
0x1a53   : > { %s5608_s14 = sshra.s32 %s4999_s0, 4  ;;  %s5609_s14 = int_to_ptr.hbm [resolvable:$true] %s5608_s14 }
0x1a54   : > { %s5610_s2 = scalar_lea.hbm %s5609_s14, 8  ;;  %p5615_p2 = scmp.lt.s32.totalorder %s5609_s14, %s7855_s11 }
0x1a55   : > { %p5611_p13 = scmp.ne.s32.totalorder %s5609_s14, %s5610_s2  ;;  %p5616_p3 = scmp.lt.s32.totalorder %s5614_s13, %s5610_s2 }
0x1a57   : > { %4532 = vrot.lane.b32.xlu1 %v2901_v32, %s5663_s15  ;;  %4588 = vrot.lane.b32.xlu2 %v2907_v19, %s5663_s15  ;;  %p5612_p0 = pnand %p5611_p13, %p5763_p6  ;;  %p5617_p4 = por %p5616_p3, %p5615_p2 }
0x1a58   : > { %4618 = vrot.lane.b32.xlu0 %v2869_v33, %s5663_s15 }
0x1a59   : > { %v7113_v30 = vpop.permute.xlu2 %3980  ;;  %v3953_v23 = vpop.permute.xlu1 %3952  ;;  %p5613_p1 = pneg %p5612_p0 }
0x1a5b   : > { %p5618_p5 = pnand %p5617_p4, %p5613_p1 }
0x1a5f   : > { %4562 = vrot.lane.b32.xlu1 %v2863_v0, %s5663_s15  ;;  %4560 = vrot.lane.b32.xlu2 %v2904_v50, %s5663_s15 }
0x1a60   : > { %4616 = vrot.lane.b32.xlu0 %v2910_v37, %s5663_s15 }
0x1a61   : > { %v7118_v57 = vpop.permute.xlu2 %3978  ;;  %v3483_v38 = vpop.permute.xlu0 %3482 }
0x1a62   : > { %5206 = vmatpush.xpose.msk.msrb.mxu2 %vm2956_vm8, %v3483_v38 }
0x1a67   : > { %4644 = vrot.lane.b32.xlu1 %v2913_v3, %s5663_s15 }
0x1a68   : > { %4646 = vrot.lane.b32.xlu0 %v2872_v58, %s5663_s15 }
0x1a69   : > { %v3511_v7 = vpop.permute.xlu1 %3510  ;;  %v3539_v28 = vpop.permute.xlu2 %3538 }
0x1a6a   : > { %v3481_v29 = vpop.permute.xlu0 %3480  ;;  %5208 = vmatpush.xpose.msk.msra.mxu3 %vm2956_vm8, %v3511_v7  ;;  %5210 = vmatpush.xpose.msk.msra.mxu0 %vm2956_vm8, %v3539_v28 }
0x1a6b   : > { %5207 = vmatmul.msk.f32.vlgmr.msrb.gmra.mxu2 %vm2956_vm8, %v3481_v29 }
0x1a6e   : > { %v2980_v25 = vpop.f32.mrf.mxu3 }
0x1a6f   : > { %v3165_v62 = vmul.f32 0.25, %v2980_v25 }
0x1a71   : > { %v3173_v51 = vsel %vm504_vm0, %v3165_v62, -inf  ;;  %v3509_v26 = vpop.permute.xlu1 %3508  ;;  %v3537_v42 = vpop.permute.xlu2 %3536 }
0x1a72   : > { %v3174_v22 = vrot.slane %v3173_v51, 4  ;;  %v7127_v59 = vpop.permute.xlu0 %4478  ;;  %5209 = vmatmul.msk.f32.vlgmr.msra.gmra.mxu3 %vm2956_vm8, %v3509_v26  ;;  %5211 = vmatmul.msk.f32.vlgmr.msra.gmra.mxu0 %vm2956_vm8, %v3537_v42 }
0x1a74   : > { %v3175_v52 = vmax.f32 %v3173_v51, %v3174_v22 }
0x1a76   : > { %v3176_v54 = vrot.slane %v3175_v52, 2  ;;  %v3006_v55 = vpop.f32.mrf.mxu3 }
0x1a77   : > { %v3166_v10 = vmul.f32 0.25, %v3006_v55 }
0x1a78   : > { %v3177_v63 = vmax.f32 %v3175_v52, %v3176_v54 }
0x1a79   : > { %v3180_v14 = vsel %vm504_vm0, %v3166_v10, -inf  ;;  %v7132_v13 = vpop.permute.xlu1 %4506  ;;  %v3567_v6 = vpop.permute.xlu2 %3566 }
0x1a7a   : > { %v3178_v4 = vrot.slane %v3177_v63, 1  ;;  %v3181_v8 = vrot.slane %v3180_v14, 4  ;;  %v7134_v49 = vpop.permute.xlu0 %4008  ;;  %5212 = vmatpush.xpose.msk.msrb.mxu1 %vm2956_vm8, %v3567_v6 }
0x1a7c   : > { %v3179_v45 = vmax.f32 %v3177_v63, %v3178_v4  ;;  %v3182_v1 = vmax.f32 %v3180_v14, %v3181_v8 }
0x1a7e   : > { %5220 = vmatpush.xpose.msk.msra.mxu1 %vm2956_vm8, %v3953_v23  ;;  %v3229_v43 = vsub.f32 %v3165_v62, %v3179_v45  ;;  %v3183_v9 = vrot.slane %v3182_v1, 2  ;;  %v3032_v31 = vpop.f32.mrf.mxu3 }
0x1a7f   : > { %v3167_v20 = vmul.f32 0.25, %v3032_v31 }
0x1a80   : > { %v3237_v5 = vmul.f32 1.442695, %v3229_v43  ;;  %v3184_v48 = vmax.f32 %v3182_v1, %v3183_v9 }
0x1a81   : > { %v3187_v36 = vsel %vm504_vm0, %v3167_v20, -inf  ;;  %v7139_v39 = vpop.permute.xlu1 %4062  ;;  %v7152_v3 = vpop.permute.xlu2 %4450 }
0x1a82   : > { %5464 = vpow2.f32 %v3237_v5  ;;  %v3185_v11 = vrot.slane %v3184_v48, 1  ;;  %v3188_v12 = vrot.slane %v3187_v36, 4  ;;  %v7141_v46 = vpop.permute.xlu0 %4006 }
0x1a84   : > { %v3186_v41 = vmax.f32 %v3184_v48, %v3185_v11  ;;  %v3189_v61 = vmax.f32 %v3187_v36, %v3188_v12 }
0x1a86   : > { %v3230_v15 = vsub.f32 %v3166_v10, %v3186_v41  ;;  %v3190_v27 = vrot.slane %v3189_v61, 2  ;;  %v3058_v16 = vpop.f32.mrf.mxu3 }
0x1a87   : > { %v3168_v32 = vmul.f32 0.25, %v3058_v16 }
0x1a88   : > { %v7143_v24 = vpop.eup %5464  ;;  %v3239_v34 = vmul.f32 1.442695, %v3230_v15  ;;  %v3191_v0 = vmax.f32 %v3189_v61, %v3190_v27 }
0x1a89   : > { %v3253_v50 = vsel %vm504_vm0, %v7143_v24, 0.0  ;;  %v3194_v53 = vsel %vm504_vm0, %v3168_v32, -inf  ;;  %v7148_v17 = vpop.permute.xlu1 %4504  ;;  %v7167_v31 = vpop.permute.xlu2 %4120 }
0x1a8a   : > { %v3254_v18 = vrot.slane %v3253_v50, 4  ;;  %5466 = vpow2.f32 %v3239_v34  ;;  %v3192_v19 = vrot.slane %v3191_v0, 1  ;;  %v3195_v2 = vrot.slane %v3194_v53, 4  ;;  %v7150_v56 = vpop.permute.xlu0 %4036 }
0x1a8c   : > { %v3255_v33 = vadd.f32 %v3254_v18, %v3253_v50  ;;  %v3193_v37 = vmax.f32 %v3191_v0, %v3192_v19  ;;  %v3196_v44 = vmax.f32 %v3194_v53, %v3195_v2 }
0x1a8e   : > { %v3256_v58 = vrot.slane %v3255_v33, 2  ;;  %v3231_v21 = vsub.f32 %v3167_v20, %v3193_v37  ;;  %v3197_v40 = vrot.slane %v3196_v44, 2  ;;  %v3084_v60 = vpop.f32.mrf.mxu3 }
0x1a8f   : > { %v3169_v23 = vmul.f32 0.25, %v3084_v60 }
0x1a90   : > { %v7154_v38 = vpop.eup %5466  ;;  %v3241_v7 = vmul.f32 1.442695, %v3231_v21  ;;  %v3198_v28 = vmax.f32 %v3196_v44, %v3197_v40  ;;  %v3257_v29 = vadd.f32 %v3256_v58, %v3255_v33  ;;  %v7181_v58 = vpop.f32.mrf.mxu2 }
0x1a91   : > { %v3260_v25 = vsel %vm504_vm0, %v7154_v38, 0.0  ;;  %v3201_v62 = vsel %vm504_vm0, %v3169_v23, -inf  ;;  %v7159_v51 = vpop.permute.xlu1 %4092 }
0x1a92   : > { %v3261_v26 = vrot.slane %v3260_v25, 4  ;;  %5468 = vpow2.f32 %v3241_v7  ;;  %v3199_v42 = vrot.slane %v3198_v28, 1  ;;  %v3202_v22 = vrot.slane %v3201_v62, 4  ;;  %v7161_v52 = vpop.permute.xlu0 %4034 }
0x1a93   : > { %v3258_v54 = vrot.slane %v3257_v29, 1 }
0x1a94   : > { %v3262_v55 = vadd.f32 %v3261_v26, %v3260_v25  ;;  %v3200_v10 = vmax.f32 %v3198_v28, %v3199_v42  ;;  %v3203_v63 = vmax.f32 %v3201_v62, %v3202_v22  ;;  %v7188_v25 = vpop.permute.xlu2 %4118 }
0x1a95   : > { %v3259_v14 = vadd.f32 %v3258_v54, %v3257_v29 }
0x1a96   : > { %v3263_v6 = vrot.slane %v3262_v55, 2  ;;  %v3232_v4 = vsub.f32 %v3168_v32, %v3200_v10  ;;  %v3204_v8 = vrot.slane %v3203_v63, 2  ;;  %v3110_v45 = vpop.f32.mrf.mxu3 }
0x1a97   : > { %v7163_v1 = vmul.f32 0.25, %v3110_v45  ;;  %5470 = vrcp.f32 %v3259_v14 }
0x1a98   : > { %v7165_v43 = vpop.eup %5468  ;;  %v3243_v9 = vmul.f32 1.442695, %v3232_v4  ;;  %v3205_v20 = vmax.f32 %v3203_v63, %v3204_v8  ;;  %v3264_v5 = vadd.f32 %v3263_v6, %v3262_v55 }
0x1a99   : > { %v3267_v48 = vsel %vm504_vm0, %v7165_v43, 0.0  ;;  %v3208_v36 = vsel %vm504_vm0, %v7163_v1, -inf  ;;  %v7173_v11 = vpop.permute.xlu1 %4090 }
0x1a9a   : > { %v3268_v12 = vrot.slane %v3267_v48, 4  ;;  %5472 = vpow2.f32 %v3243_v9  ;;  %v3206_v41 = vrot.slane %v3205_v20, 1  ;;  %v3209_v61 = vrot.slane %v3208_v36, 4  ;;  %v3565_v15 = vpop.permute.xlu0 %3564 }
0x1a9b   : > { %5213 = vmatmul.msk.f32.vlgmr.msrb.gmra.mxu1 %vm2956_vm8, %v3565_v15  ;;  %v3265_v27 = vrot.slane %v3264_v5, 1 }
0x1a9c   : > { %v3269_v16 = vadd.f32 %v3268_v12, %v3267_v48  ;;  %v3207_v32 = vmax.f32 %v3205_v20, %v3206_v41  ;;  %v3210_v34 = vmax.f32 %v3208_v36, %v3209_v61  ;;  %v7209_v41 = vpop.f32.mrf.mxu2 }
0x1a9d   : > { %v5471_v0 = vpop.eup %5470  ;;  %v3266_v50 = vadd.f32 %v3265_v27, %v3264_v5 }
0x1a9e   : > { %v3270_v53 = vrot.slane %v3269_v16, 2  ;;  %v3233_v18 = vsub.f32 %v3169_v23, %v3207_v32  ;;  %v3211_v19 = vrot.slane %v3210_v34, 2  ;;  %v3136_v2 = vpop.f32.mrf.mxu3  ;;  %v3317_v33 = vmul.f32 %v5471_v0, %v7143_v24 }
0x1a9f   : > { %v7177_v37 = vmul.f32 0.25, %v3136_v2  ;;  %5474 = vrcp.f32 %v3266_v50 }
0x1aa0   : > { %v7179_v44 = vpop.eup %5472  ;;  %v3245_v21 = vmul.f32 1.442695, %v3233_v18  ;;  %v3212_v40 = vmax.f32 %v3210_v34, %v3211_v19  ;;  %v3325_v60 = vsel %vm504_vm0, %v3317_v33, 0.0  ;;  %v3271_v7 = vadd.f32 %v3270_v53, %v3269_v16  ;;  %v7215_v34 = vpop.permute.xlu2 %4590 }
0x1aa1   : > { %v3274_v28 = vsel %vm504_vm0, %v7179_v44, 0.0  ;;  %v3215_v23 = vsel %vm504_vm0, %v7177_v37, -inf  ;;  %3326 = vadd.xlane.f32.xlu2 %v3325_v60  ;;  %v3623_v24 = vpop.permute.xlu1 %3622 }
0x1aa2   : > { %v3275_v29 = vrot.slane %v3274_v28, 4  ;;  %5476 = vpow2.f32 %v3245_v21  ;;  %v3213_v62 = vrot.slane %v3212_v40, 1  ;;  %v3216_v26 = vrot.slane %v3215_v23, 4  ;;  %v4065_v42 = vpop.permute.xlu0 %4064  ;;  %5216 = vmatpush.xpose.msk.msrb.mxu3 %vm2956_vm8, %v3623_v24 }
0x1aa3   : > { %5221 = vmatmul.msk.f32.vlgmr.msra.gmra.mxu1 %vm2956_vm8, %v7108_v47  ;;  %v3272_v22 = vrot.slane %v3271_v7, 1 }
0x1aa4   : > { %v3276_v54 = vadd.f32 %v3275_v29, %v3274_v28  ;;  %v3214_v55 = vmax.f32 %v3212_v40, %v3213_v62  ;;  %v3217_v10 = vmax.f32 %v3215_v23, %v3216_v26  ;;  %5228 = vmatpush.xpose.msk.msrb.mxu1 %vm2956_vm8, %v4065_v42  ;;  %v7234_v29 = vpop.f32.mrf.mxu2 }
0x1aa5   : > { %v5475_v63 = vpop.eup %5474  ;;  %v3273_v14 = vadd.f32 %v3272_v22, %v3271_v7 }
0x1aa6   : > { %5224 = vmatpush.xpose.msk.msra.mxu3 %vm2956_vm8, %v7134_v49  ;;  %v3277_v6 = vrot.slane %v3276_v54, 2  ;;  %v3234_v4 = vsub.f32 %v7163_v1, %v3214_v55  ;;  %v3218_v8 = vrot.slane %v3217_v10, 2  ;;  %v3162_v45 = vpop.f32.mrf.mxu3  ;;  %v3318_v47 = vmul.f32 %v5475_v63, %v7154_v38 }
0x1aa7   : > { %v7200_v9 = vmul.f32 0.25, %v3162_v45  ;;  %5478 = vrcp.f32 %v3273_v14 }
0x1aa8   : > { %5236 = vmatpush.xpose.msk.msra.mxu1 %vm2956_vm8, %v7152_v3  ;;  %v7202_v49 = vpop.eup %5476  ;;  %v3247_v20 = vmul.f32 1.442695, %v3234_v4  ;;  %v3219_v5 = vmax.f32 %v3217_v10, %v3218_v8  ;;  %v3328_v48 = vsel %vm504_vm0, %v3318_v47, 0.0  ;;  %v3278_v36 = vadd.f32 %v3277_v6, %v3276_v54 }
0x1aa9   : > { %v3281_v3 = vsel %vm504_vm0, %v7202_v49, 0.0  ;;  %v3222_v1 = vsel %vm504_vm0, %v7200_v9, -inf  ;;  %3329 = vadd.xlane.f32.xlu0 %v3328_v48  ;;  %v3621_v12 = vpop.permute.xlu1 %3620 }
0x1aaa   : > { %v3282_v38 = vrot.slane %v3281_v3, 4  ;;  %5480 = vpow2.f32 %v3247_v20  ;;  %v3220_v61 = vrot.slane %v3219_v5, 1  ;;  %v3223_v15 = vrot.slane %v3222_v1, 4  ;;  %v3595_v27 = vpop.permute.xlu0 %3594  ;;  %5217 = vmatmul.msk.f32.vlgmr.msrb.gmra.mxu3 %vm2956_vm8, %v3621_v12 }
0x1aab   : > { %5214 = vmatpush.xpose.msk.msra.mxu2 %vm2956_vm8, %v3595_v27  ;;  %5229 = vmatmul.msk.f32.vlgmr.msrb.gmra.mxu1 %vm2956_vm8, %v7139_v39  ;;  %v3279_v16 = vrot.slane %v3278_v36, 1 }
0x1aac   : > { %v3283_v32 = vadd.f32 %v3282_v38, %v3281_v3  ;;  %v3221_v0 = vmax.f32 %v3219_v5, %v3220_v61  ;;  %v3224_v50 = vmax.f32 %v3222_v1, %v3223_v15  ;;  %5232 = vmatpush.xpose.msk.msrb.mxu3 %vm2956_vm8, %v7167_v31  ;;  %v7256_v5 = vpop.f32.mrf.mxu2 }
0x1aad   : > { %v5479_v53 = vpop.eup %5478  ;;  %v3280_v18 = vadd.f32 %v3279_v16, %v3278_v36 }
0x1aae   : > { %v3284_v19 = vrot.slane %v3283_v32, 2  ;;  %v3235_v2 = vsub.f32 %v7177_v37, %v3221_v0  ;;  %v3225_v33 = vrot.slane %v3224_v50, 2  ;;  %v3319_v39 = vmul.f32 %v5479_v53, %v7165_v43 }
0x1aaf   : > { %5222 = vmatpush.xpose.msk.msrb.mxu2 %vm2956_vm8, %v7113_v30  ;;  %5482 = vrcp.f32 %v3280_v18 }
0x1ab0   : > { %v7223_v21 = vpop.eup %5480  ;;  %v3249_v40 = vmul.f32 1.442695, %v3235_v2  ;;  %v3226_v60 = vmax.f32 %v3224_v50, %v3225_v33  ;;  %v3331_v7 = vsel %vm504_vm0, %v3319_v39, 0.0  ;;  %v3285_v28 = vadd.f32 %v3284_v19, %v3283_v32 }
0x1ab1   : > { %v3288_v31 = vsel %vm504_vm0, %v7223_v21, 0.0  ;;  %3332 = vadd.xlane.f32.xlu1 %v3331_v7  ;;  %v3651_v30 = vpop.permute.xlu1 %3650 }
0x1ab2   : > { %v3289_v23 = vrot.slane %v3288_v31, 4  ;;  %5484 = vpow2.f32 %v3249_v40  ;;  %v3227_v24 = vrot.slane %v3226_v60, 1  ;;  %v3593_v37 = vpop.permute.xlu0 %3592  ;;  %5218 = vmatpush.xpose.msk.msrb.mxu0 %vm2956_vm8, %v3651_v30  ;;  %5225 = vmatmul.msk.f32.vlgmr.msra.gmra.mxu3 %vm2956_vm8, %v7141_v46  ;;  %v3286_v43 = vrot.slane %v3285_v28, 1  ;;  %v4149_v46 = vpop.permute.xlu2 %4148 }
0x1ab3   : > { %5215 = vmatmul.msk.f32.vlgmr.msra.gmra.mxu2 %vm2956_vm8, %v3593_v37  ;;  %5240 = vmatpush.xpose.msk.msra.mxu3 %vm2956_vm8, %v7132_v13 }
0x1ab4   : > { %v3290_v62 = vadd.f32 %v3289_v23, %v3288_v31  ;;  %v3228_v26 = vmax.f32 %v3226_v60, %v3227_v24  ;;  %5230 = vmatpush.xpose.msk.msra.mxu2 %vm2956_vm8, %v7159_v51  ;;  %v3287_v42 = vadd.f32 %v3286_v43, %v3285_v28  ;;  %v7272_v0 = vpop.f32.mrf.mxu2 }
0x1ab5   : > { %v5483_v22 = vpop.eup %5482 }
0x1ab6   : > { %5226 = vmatpush.xpose.msk.msra.mxu0 %vm2956_vm8, %v7150_v56  ;;  %v3291_v54 = vrot.slane %v3290_v62, 2  ;;  %v3236_v55 = vsub.f32 %v7200_v9, %v3228_v26  ;;  %v3320_v10 = vmul.f32 %v5483_v22, %v7179_v44  ;;  %5486 = vrcp.f32 %v3287_v42 }
0x1ab8   : > { %v7242_v13 = vpop.eup %5484  ;;  %v3251_v63 = vmul.f32 1.442695, %v3236_v55  ;;  %v3334_v14 = vsel %vm504_vm0, %v3320_v10, 0.0  ;;  %v3292_v6 = vadd.f32 %v3291_v54, %v3290_v62 }
0x1ab9   : > { %v3295_v51 = vsel %vm504_vm0, %v7242_v13, 0.0  ;;  %3335 = vadd.xlane.f32.xlu0 %v3334_v14  ;;  %v3649_v56 = vpop.permute.xlu1 %3648 }
0x1aba   : > { %v3296_v4 = vrot.slane %v3295_v51, 4  ;;  %5488 = vpow2.f32 %v3251_v63  ;;  %v4477_v8 = vpop.permute.xlu0 %4476  ;;  %5219 = vmatmul.msk.f32.vlgmr.msrb.gmra.mxu0 %vm2956_vm8, %v3649_v56  ;;  %5233 = vmatmul.msk.f32.vlgmr.msrb.gmra.mxu3 %vm2956_vm8, %v7188_v25  ;;  %v3293_v44 = vrot.slane %v3292_v6, 1  ;;  %v4147_v3 = vpop.permute.xlu2 %4146 }
0x1abb   : > { %5223 = vmatmul.msk.f32.vlgmr.msrb.gmra.mxu2 %vm2956_vm8, %v7118_v57  ;;  %5234 = vmatpush.xpose.msk.msrb.mxu0 %vm2956_vm8, %v4149_v46 }
0x1abc   : > { %v5487_v45 = vpop.eup %5486  ;;  %v3297_v47 = vadd.f32 %v3296_v4, %v3295_v51  ;;  %5238 = vmatpush.xpose.msk.msrb.mxu2 %vm2956_vm8, %v7127_v59  ;;  %v3294_v9 = vadd.f32 %v3293_v44, %v3292_v6  ;;  %v7280_v23 = vpop.f32.mrf.mxu2 }
0x1abd   : > { %v3321_v20 = vmul.f32 %v5487_v45, %v7202_v49 }
0x1abe   : > { %v3298_v48 = vrot.slane %v3297_v47, 2  ;;  %5490 = vrcp.f32 %v3294_v9 }
0x1abf   : > { %v3337_v25 = vsel %vm504_vm0, %v3321_v20, 0.0 }
0x1ac0   : > { %v5489_v36 = vpop.eup %5488  ;;  %3338 = vadd.xlane.f32.xlu1 %v3337_v25  ;;  %v3299_v57 = vadd.f32 %v3298_v48, %v3297_v47 }
0x1ac1   : > { %v3302_v1 = vsel %vm504_vm0, %v5489_v36, 0.0  ;;  %v4535_v12 = vpop.permute.xlu1 %4534 }
0x1ac2   : > { %v3303_v38 = vrot.slane %v3302_v1, 4  ;;  %v4449_v61 = vpop.permute.xlu0 %4448  ;;  %5227 = vmatmul.msk.f32.vlgmr.msra.gmra.mxu0 %vm2956_vm8, %v7161_v52  ;;  %5241 = vmatmul.msk.f32.vlgmr.msra.gmra.mxu3 %vm2956_vm8, %v7148_v17  ;;  %v3300_v59 = vrot.slane %v3299_v57, 1  ;;  %v4589_v18 = vpop.permute.xlu2 %4588 }
0x1ac3   : > { %5231 = vmatmul.msk.f32.vlgmr.msra.gmra.mxu2 %vm2956_vm8, %v7173_v11  ;;  %5237 = vmatmul.msk.f32.vlgmr.msra.gmra.mxu1 %vm2956_vm8, %v4449_v61 }
0x1ac4   : > { %v5491_v49 = vpop.eup %5490  ;;  %v3304_v15 = vadd.f32 %v3303_v38, %v3302_v1  ;;  %5242 = vmatpush.xpose.msk.msra.mxu0 %vm2956_vm8, %v4535_v12  ;;  %5246 = vmatpush.xpose.msk.msra.mxu2 %vm2956_vm8, %v7215_v34  ;;  %v3301_v27 = vadd.f32 %v3300_v59, %v3299_v57  ;;  %v7289_v10 = vpop.f32.mrf.mxu2 }
0x1ac5   : > { %v3322_v16 = vmul.f32 %v5491_v49, %v7223_v21 }
0x1ac6   : > { %v3305_v52 = vrot.slane %v3304_v15, 2  ;;  %5492 = vrcp.f32 %v3301_v27 }
0x1ac7   : > { %v3477_v32 = vpop.f32.mrf.mxu0  ;;  %v3340_v17 = vsel %vm504_vm0, %v3322_v16, 0.0 }
0x1ac8   : > { %v3676_v11 = vmul.f32 0.25, %v3477_v32  ;;  %3341 = vadd.xlane.f32.xlu0 %v3340_v17  ;;  %v3306_v50 = vadd.f32 %v3305_v52, %v3304_v15 }
0x1ac9   : > { %v4533_v53 = vpop.permute.xlu1 %4532 }
0x1aca   : > { %v3684_v19 = vsel %vm504_vm0, %v3676_v11, -inf  ;;  %v4619_v2 = vpop.permute.xlu0 %4618  ;;  %5235 = vmatmul.msk.f32.vlgmr.msrb.gmra.mxu0 %vm2956_vm8, %v4147_v3  ;;  %v3307_v34 = vrot.slane %v3306_v50, 1  ;;  %v4561_v62 = vpop.permute.xlu2 %4560 }
0x1acb   : > { %v3685_v33 = vrot.slane %v3684_v19, 4  ;;  %5239 = vmatmul.msk.f32.vlgmr.msrb.gmra.mxu2 %vm2956_vm8, %v4477_v8  ;;  %5248 = vmatpush.xpose.msk.msrb.mxu3 %vm2956_vm8, %v4619_v2 }
0x1acc   : > { %v5493_v39 = vpop.eup %5492  ;;  %v3308_v21 = vadd.f32 %v3307_v34, %v3306_v50  ;;  %v7293_v56 = vpop.f32.mrf.mxu2 }
0x1acd   : > { %v3686_v40 = vmax.f32 %v3684_v19, %v3685_v33  ;;  %v3323_v60 = vmul.f32 %v5493_v39, %v7242_v13 }
0x1ace   : > { %5494 = vrcp.f32 %v3308_v21 }
0x1acf   : > { %v3687_v7 = vrot.slane %v3686_v40, 2  ;;  %v3343_v28 = vsel %vm504_vm0, %v3323_v60, 0.0 }
0x1ad0   : > { %3344 = vadd.xlane.f32.xlu1 %v3343_v28  ;;  %v5664_v28 = vmov 8.0  }
0x1ad1   : > { %v3688_v31 = vmax.f32 %v3686_v40, %v3687_v7  ;;  %v4563_v30 = vpop.permute.xlu1 %4562 }
0x1ad2   : > { %v4617_v24 = vpop.permute.xlu0 %4616  ;;  %5243 = vmatmul.msk.f32.vlgmr.msra.gmra.mxu0 %vm2956_vm8, %v4533_v53  ;;  %5244 = vmatpush.xpose.msk.msrb.mxu1 %vm2956_vm8, %v4563_v30 }
0x1ad3   : > { %v3689_v37 = vrot.slane %v3688_v31, 1  ;;  %5247 = vmatmul.msk.f32.vlgmr.msra.gmra.mxu2 %vm2956_vm8, %v4589_v18  ;;  %5249 = vmatmul.msk.f32.vlgmr.msrb.gmra.mxu3 %vm2956_vm8, %v4617_v24 }
0x1ad4   : > { %v5495_v43 = vpop.eup %5494 }
0x1ad5   : > { %v3690_v26 = vmax.f32 %v3688_v31, %v3689_v37  ;;  %5245 = vmatmul.msk.f32.vlgmr.msrb.gmra.mxu1 %vm2956_vm8, %v4561_v62  ;;  %v3324_v42 = vmul.f32 %v5495_v43, %v5489_v36 }
0x1ad7   : > { %v3740_v22 = vsub.f32 %v3676_v11, %v3690_v26  ;;  %v3346_v54 = vsel %vm504_vm0, %v3324_v42, 0.0 }
0x1ad8   : > { %3347 = vadd.xlane.f32.xlu2 %v3346_v54 }
0x1ad9   : > { %v3748_v46 = vmul.f32 1.442695, %v3740_v22  ;;  %v4645_v13 = vpop.permute.xlu1 %4644 }
0x1ada   : > { %v4647_v55 = vpop.permute.xlu0 %4646 }
0x1adb   : > { %5496 = vpow2.f32 %v3748_v46  ;;  %5250 = vmatpush.xpose.msk.msrb.mxu0 %vm2956_vm8, %v4647_v55 }
0x1ade   : > { %5251 = vmatmul.msk.f32.vlgmr.msrb.gmra.mxu0 %vm2956_vm8, %v4645_v13 }
0x1ae1   : > { %v5497_v63 = vpop.eup %5496 }
0x1ae2   : > { %v3764_v14 = vsel %vm504_vm0, %v5497_v63, 0.0 }
0x1ae3   : > { %v3765_v6 = vrot.slane %v3764_v14, 4 }
0x1ae5   : > { %v3766_v51 = vadd.f32 %v3765_v6, %v3764_v14 }
0x1ae7   : > { %v3767_v4 = vrot.slane %v3766_v51, 2 }
0x1ae9   : > { %v3768_v8 = vadd.f32 %v3767_v4, %v3766_v51 }
0x1aeb   : > { %v3769_v44 = vrot.slane %v3768_v8, 1 }
0x1aed   : > { %v3770_v45 = vadd.f32 %v3769_v44, %v3768_v8 }
0x1aee   : > { %v3505_v47 = vpop.f32.mrf.mxu2 }
0x1aef   : > { %v3677_v9 = vmul.f32 0.25, %v3505_v47  ;;  %v3561_v20 = vpop.f32.mrf.mxu0  ;;  %5498 = vrcp.f32 %v3770_v45 }
0x1af0   : > { %v3679_v48 = vmul.f32 0.25, %v3561_v20  ;;  %5500 = vrcp.f32 %v5664_v28 }
0x1af1   : > { %v3691_v25 = vsel %vm504_vm0, %v3677_v9, -inf }
0x1af2   : > { %v3692_v36 = vrot.slane %v3691_v25, 4  ;;  %v3705_v3 = vsel %vm504_vm0, %v3679_v48, -inf }
0x1af3   : > { %v3706_v57 = vrot.slane %v3705_v3, 4 }
0x1af4   : > { %v3693_v1 = vmax.f32 %v3691_v25, %v3692_v36 }
0x1af5   : > { %v5499_v12 = vpop.eup %5498  ;;  %v3707_v38 = vmax.f32 %v3705_v3, %v3706_v57  ;;  %v3533_v61 = vpop.f32.mrf.mxu3 }
0x1af6   : > { %v3694_v59 = vrot.slane %v3693_v1, 2  ;;  %v3678_v49 = vmul.f32 0.25, %v3533_v61  ;;  %v3828_v15 = vmul.f32 %v5499_v12, %v5497_v63  ;;  %v5501_v24 = vpop.eup %5500 }
0x1af7   : > { %v3708_v27 = vrot.slane %v3707_v38, 2  ;;  %v3350_v54 = vmul.f32 8.0, %v5501_v24  ;;  %vm3354_vm6 = vweird.f32 %v5501_v24 }
0x1af8   : > { %v3695_v16 = vmax.f32 %v3693_v1, %v3694_v59  ;;  %v3698_v52 = vsel %vm504_vm0, %v3678_v49, -inf  ;;  %v3836_v32 = vsel %vm504_vm0, %v3828_v15, 0.0  ;;  %v7307_v15 = vperm.slane %v7002_v35, 2 }
0x1af9   : > { %v3709_v17 = vmax.f32 %v3707_v38, %v3708_v27  ;;  %v3699_v11 = vrot.slane %v3698_v52, 4  ;;  %3837 = vadd.xlane.f32.xlu2 %v3836_v32  ;;  %v3351_v14 = vsub.f32 1.0, %v3350_v54 }
0x1afa   : > { %v3696_v50 = vrot.slane %v3695_v16, 1  ;;  %v7319_v35 = vadd.f32 %v7209_v41, %v7307_v15  ;;  %v7327_v41 = vadd.f32 %v7234_v29, %v7307_v15 }
0x1afb   : > { %v3710_v53 = vrot.slane %v3709_v17, 1  ;;  %v3700_v18 = vmax.f32 %v3698_v52, %v3699_v11  ;;  %v3352_v47 = vmul.f32 %v5501_v24, %v3351_v14 }
0x1afc   : > { %v3697_v19 = vmax.f32 %v3695_v16, %v3696_v50 }
0x1afd   : > { %v3711_v2 = vmax.f32 %v3709_v17, %v3710_v53  ;;  %v3701_v34 = vrot.slane %v3700_v18, 2  ;;  %v3353_v3 = vadd.f32 %v5501_v24, %v3352_v47 }
0x1afe   : > { %v3741_v33 = vsub.f32 %v3677_v9, %v3697_v19  ;;  %v7315_v19 = vadd.f32 %v7181_v58, %v7307_v15 }
0x1aff   : > { %v3743_v39 = vsub.f32 %v3679_v48, %v3711_v2  ;;  %v3702_v21 = vmax.f32 %v3700_v18, %v3701_v34  ;;  %v7304_v59 = vsel %vm3354_vm6, %v5501_v24, %v3353_v3 }
0x1b00   : > { %v3750_v40 = vmul.f32 1.442695, %v3741_v33 }
0x1b01   : > { %v3754_v60 = vmul.f32 1.442695, %v3743_v39  ;;  %v3703_v7 = vrot.slane %v3702_v21, 1 }
0x1b02   : > { %5502 = vpow2.f32 %v3750_v40 }
0x1b03   : > { %5504 = vpow2.f32 %v3754_v60  ;;  %v3704_v31 = vmax.f32 %v3702_v21, %v3703_v7 }
0x1b05   : > { %v3742_v30 = vsub.f32 %v3678_v49, %v3704_v31 }
0x1b07   : > { %v3752_v37 = vmul.f32 1.442695, %v3742_v30 }
0x1b08   : > { %v5503_v43 = vpop.eup %5502 }
0x1b09   : > { %v5505_v62 = vpop.eup %5504  ;;  %v3771_v26 = vsel %vm504_vm0, %v5503_v43, 0.0  ;;  %5506 = vpow2.f32 %v3752_v37 }
0x1b0a   : > { %v3772_v42 = vrot.slane %v3771_v26, 4  ;;  %v3785_v22 = vsel %vm504_vm0, %v5505_v62, 0.0 }
0x1b0b   : > { %v3786_v46 = vrot.slane %v3785_v22, 4 }
0x1b0c   : > { %v3773_v55 = vadd.f32 %v3772_v42, %v3771_v26 }
0x1b0d   : > { %v3787_v13 = vadd.f32 %v3786_v46, %v3785_v22 }
0x1b0e   : > { %v3774_v63 = vrot.slane %v3773_v55, 2 }
0x1b0f   : > { %v5507_v6 = vpop.eup %5506  ;;  %v3788_v51 = vrot.slane %v3787_v13, 2 }
0x1b10   : > { %v3778_v4 = vsel %vm504_vm0, %v5507_v6, 0.0  ;;  %v3775_v8 = vadd.f32 %v3774_v63, %v3773_v55 }
0x1b11   : > { %v3779_v44 = vrot.slane %v3778_v4, 4  ;;  %v3789_v45 = vadd.f32 %v3788_v51, %v3787_v13 }
0x1b12   : > { %v3776_v9 = vrot.slane %v3775_v8, 1 }
0x1b13   : > { %v3780_v20 = vadd.f32 %v3779_v44, %v3778_v4  ;;  %v3790_v48 = vrot.slane %v3789_v45, 1 }
0x1b14   : > { %v3777_v25 = vadd.f32 %v3776_v9, %v3775_v8  ;;  %v3327_v49 = vpop.xlane.xlu2 %3326 }
0x1b15   : > { %v3781_v36 = vrot.slane %v3780_v20, 2  ;;  %v3791_v57 = vadd.f32 %v3790_v48, %v3789_v45  ;;  %v3356_v11 = vmul.f32 %v7304_v59, %v3327_v49 }
0x1b16   : > { %5508 = vrcp.f32 %v3777_v25  ;;  %v7343_v25 = vadd.f32 %v7256_v5, %v7307_v15 }
0x1b17   : > { %v3782_v1 = vadd.f32 %v3781_v36, %v3780_v20  ;;  %5510 = vrcp.f32 %v3791_v57  ;;  %v3364_v21 = vmul.f32 %v3356_v11, %v7315_v19 }
0x1b18   : > { %v3589_v12 = vpop.f32.mrf.mxu1 }
0x1b19   : > { %v7302_v38 = vmul.f32 0.25, %v3589_v12  ;;  %v3783_v61 = vrot.slane %v3782_v1, 1 }
0x1b1b   : > { %v3712_v27 = vsel %vm504_vm0, %v7302_v38, -inf  ;;  %v3784_v16 = vadd.f32 %v3783_v61, %v3782_v1 }
0x1b1c   : > { %v5509_v52 = vpop.eup %5508  ;;  %v3713_v32 = vrot.slane %v3712_v27, 4  ;;  %v3330_v17 = vpop.xlane.xlu0 %3329 }
0x1b1d   : > { %v3357_v50 = vmul.f32 %v7304_v59, %v3330_v17  ;;  %v3829_v53 = vmul.f32 %v5509_v52, %v5503_v43  ;;  %5512 = vrcp.f32 %v3784_v16  ;;  %v5511_v34 = vpop.eup %5510  ;;  %v3372_v43 = vsel %vm2956_vm8, %v3364_v21, 0.0 }
0x1b1e   : > { %v3714_v18 = vmax.f32 %v3712_v27, %v3713_v32  ;;  %v3831_v31 = vmul.f32 %v5511_v34, %v5505_v62  ;;  %v3373_v29 = vrot.slane %v3372_v43, 4  ;;  %v7354_v21 = vadd.f32 %v7272_v0, %v7307_v15 }
0x1b1f   : > { %v3839_v2 = vsel %vm504_vm0, %v3829_v53, 0.0  ;;  %v3365_v40 = vmul.f32 %v3357_v50, %v7319_v35 }
0x1b20   : > { %v3715_v33 = vrot.slane %v3714_v18, 2  ;;  %v3975_v39 = vpop.f32.mrf.mxu1  ;;  %3840 = vadd.xlane.f32.xlu2 %v3839_v2  ;;  %v3845_v13 = vsel %vm504_vm0, %v3831_v31, 0.0  ;;  %v3374_v47 = vadd.f32 %v3373_v29, %v3372_v43 }
0x1b21   : > { %v4174_v60 = vmul.f32 0.25, %v3975_v39  ;;  %v3379_v26 = vsel %vm2956_vm8, %v3365_v40, 0.0 }
0x1b22   : > { %v3716_v7 = vmax.f32 %v3714_v18, %v3715_v33  ;;  %v3380_v63 = vrot.slane %v3379_v26, 4  ;;  %v3375_v16 = vrot.slane %v3374_v47, 2 }
0x1b23   : > { %v5513_v28 = vpop.eup %5512  ;;  %v4182_v58 = vsel %vm504_vm0, %v4174_v60, -inf }
0x1b24   : > { %v3717_v30 = vrot.slane %v3716_v7, 1  ;;  %v4183_v24 = vrot.slane %v4182_v58, 4  ;;  %v3333_v37 = vpop.xlane.xlu1 %3332  ;;  %v3830_v22 = vmul.f32 %v5513_v28, %v5507_v6  ;;  %v3381_v9 = vadd.f32 %v3380_v63, %v3379_v26 }
0x1b25   : > { %v3358_v42 = vmul.f32 %v7304_v59, %v3333_v37  ;;  %v3376_v40 = vadd.f32 %v3375_v16, %v3374_v47 }
0x1b26   : > { %v4184_v54 = vmax.f32 %v4182_v58, %v4183_v24  ;;  %v3718_v46 = vmax.f32 %v3716_v7, %v3717_v30  ;;  %v3842_v62 = vsel %vm504_vm0, %v3830_v22, 0.0  ;;  %v3382_v52 = vrot.slane %v3381_v9, 2 }
0x1b27   : > { %v3366_v55 = vmul.f32 %v3358_v42, %v7327_v41  ;;  %3843 = vadd.xlane.f32.xlu1 %v3842_v62  ;;  %v7358_v7 = vadd.f32 %v7280_v23, %v7307_v15  ;;  %v3377_v23 = vrot.slane %v3376_v40, 1 }
0x1b28   : > { %v4185_v14 = vrot.slane %v4184_v54, 2  ;;  %v4087_v51 = vpop.f32.mrf.mxu1  ;;  %3846 = vadd.xlane.f32.xlu2 %v3845_v13  ;;  %v3744_v44 = vsub.f32 %v7302_v38, %v3718_v46 }
0x1b29   : > { %v7335_v4 = vmul.f32 0.25, %v4087_v51  ;;  %v3386_v6 = vsel %vm2956_vm8, %v3366_v55, 0.0 }
0x1b2a   : > { %v4186_v8 = vmax.f32 %v4184_v54, %v4185_v14  ;;  %v3387_v12 = vrot.slane %v3386_v6, 4  ;;  %v3756_v61 = vmul.f32 1.442695, %v3744_v44 }
0x1b2b   : > { %v4210_v45 = vsel %vm504_vm0, %v7335_v4, -inf }
0x1b2c   : > { %v4187_v20 = vrot.slane %v4186_v8, 1  ;;  %v3336_v48 = vpop.xlane.xlu0 %3335  ;;  %v4211_v36 = vrot.slane %v4210_v45, 4  ;;  %v3388_v18 = vadd.f32 %v3387_v12, %v3386_v6  ;;  %5514 = vpow2.f32 %v3756_v61 }
0x1b2d   : > { %v3359_v3 = vmul.f32 %v7304_v59, %v3336_v48  ;;  %v3645_v57 = vpop.f32.mrf.mxu3  ;;  %v3378_v61 = vadd.f32 %v3377_v23, %v3376_v40 }
0x1b2e   : > { %v4188_v1 = vmax.f32 %v4186_v8, %v4187_v20  ;;  %v7346_v38 = vmul.f32 0.25, %v3645_v57  ;;  %v4212_v49 = vmax.f32 %v4210_v45, %v4211_v36  ;;  %v3389_v24 = vrot.slane %v3388_v18, 2 }
0x1b2f   : > { %v3367_v27 = vmul.f32 %v3359_v3, %v7343_v25  ;;  %v7386_v3 = vadd.f32 %v7293_v56, %v7307_v15 }
0x1b30   : > { %v4238_v32 = vsub.f32 %v4174_v60, %v4188_v1  ;;  %v3726_v17 = vsel %vm504_vm0, %v7346_v38, -inf  ;;  %v4213_v5 = vrot.slane %v4212_v49, 2  ;;  %v3383_v60 = vadd.f32 %v3382_v52, %v3381_v9 }
0x1b31   : > { %v3393_v11 = vsel %vm2956_vm8, %v3367_v27, 0.0  ;;  %v3727_v50 = vrot.slane %v3726_v17, 4  ;;  %v3390_v44 = vadd.f32 %v3389_v24, %v3388_v18  ;;  %v7378_v9 = vadd.f32 %v7289_v10, %v7307_v15 }
0x1b32   : > { %v4246_v53 = vmul.f32 1.442695, %v4238_v32  ;;  %v3394_v2 = vrot.slane %v3393_v11, 4  ;;  %v4214_v34 = vmax.f32 %v4212_v49, %v4213_v5  ;;  %v3384_v55 = vrot.slane %v3383_v60, 1  ;;  %v7370_v29 = vpop.eup %5514 }
0x1b33   : > { %v3728_v33 = vmax.f32 %v3726_v17, %v3727_v50  ;;  %v3339_v39 = vpop.xlane.xlu1 %3338  ;;  %v3792_v57 = vsel %vm504_vm0, %v7370_v29, 0.0  ;;  %v3391_v32 = vrot.slane %v3390_v44, 1 }
0x1b34   : > { %v4215_v28 = vrot.slane %v4214_v34, 1  ;;  %v3360_v31 = vmul.f32 %v7304_v59, %v3339_v39  ;;  %5516 = vpow2.f32 %v4246_v53  ;;  %v3395_v37 = vadd.f32 %v3394_v2, %v3393_v11 }
0x1b35   : > { %v3729_v58 = vrot.slane %v3728_v33, 2  ;;  %v4031_v30 = vpop.f32.mrf.mxu3  ;;  %v3385_v52 = vadd.f32 %v3384_v55, %v3383_v60  ;;  %v3793_v56 = vrot.slane %v3792_v57, 4 }
0x1b36   : > { %v3617_v43 = vpop.f32.mrf.mxu2  ;;  %v7361_v26 = vmul.f32 0.25, %v4031_v30  ;;  %v4216_v42 = vmax.f32 %v4214_v34, %v4215_v28  ;;  %v3368_v22 = vmul.f32 %v3360_v31, %v7354_v21  ;;  %v3396_v20 = vrot.slane %v3395_v37, 2 }
0x1b37   : > { %v3730_v0 = vmax.f32 %v3728_v33, %v3729_v58  ;;  %v7364_v54 = vmul.f32 0.25, %v3617_v43  ;;  %v3673_v46 = vpop.f32.mrf.mxu0 }
0x1b38   : > { %v4196_v62 = vsel %vm504_vm0, %v7361_v26, -inf  ;;  %v7368_v13 = vmul.f32 0.25, %v3673_v46  ;;  %v4242_v63 = vsub.f32 %v7335_v4, %v4216_v42  ;;  %v3400_v51 = vsel %vm2956_vm8, %v3368_v22, 0.0 }
0x1b39   : > { %v3731_v14 = vrot.slane %v3730_v0, 1  ;;  %v3719_v8 = vsel %vm504_vm0, %v7364_v54, -inf  ;;  %v3401_v6 = vrot.slane %v3400_v51, 4  ;;  %v4197_v47 = vrot.slane %v4196_v62, 4 }
0x1b3a   : > { %v3720_v45 = vrot.slane %v3719_v8, 4  ;;  %v3733_v36 = vsel %vm504_vm0, %v7368_v13, -inf  ;;  %v7382_v4 = vpop.eup %5516  ;;  %v4254_v1 = vmul.f32 1.442695, %v4242_v63  ;;  %v3397_v15 = vadd.f32 %v3396_v20, %v3395_v37 }
0x1b3b   : > { %v3732_v48 = vmax.f32 %v3730_v0, %v3731_v14  ;;  %v3402_v10 = vadd.f32 %v3401_v6, %v3400_v51  ;;  %v4198_v49 = vmax.f32 %v4196_v62, %v4197_v47  ;;  %v3734_v27 = vrot.slane %v3733_v36, 4  ;;  %v3342_v16 = vpop.xlane.xlu0 %3341 }
0x1b3c   : > { %v3721_v12 = vmax.f32 %v3719_v8, %v3720_v45  ;;  %v4262_v2 = vsel %vm504_vm0, %v7382_v4, 0.0  ;;  %5518 = vpow2.f32 %v4254_v1  ;;  %v3361_v33 = vmul.f32 %v7304_v59, %v3342_v16 }
0x1b3d   : > { %v3746_v17 = vsub.f32 %v7346_v38, %v3732_v48  ;;  %v4199_v50 = vrot.slane %v4198_v49, 2  ;;  %v3735_v53 = vmax.f32 %v3733_v36, %v3734_v27  ;;  %v4143_v18 = vpop.f32.mrf.mxu3  ;;  %v3403_v39 = vrot.slane %v3402_v10, 2 }
0x1b3e   : > { %v3722_v5 = vrot.slane %v3721_v12, 2  ;;  %v4003_v11 = vpop.f32.mrf.mxu2  ;;  %v3369_v31 = vmul.f32 %v3361_v33, %v7358_v7  ;;  %v7397_v30 = vmul.f32 0.25, %v4143_v18  ;;  %v3398_v24 = vrot.slane %v3397_v15, 1 }
0x1b3f   : > { %v4200_v40 = vmax.f32 %v4198_v49, %v4199_v50  ;;  %v3736_v60 = vrot.slane %v3735_v53, 2  ;;  %v7394_v28 = vmul.f32 0.25, %v4003_v11  ;;  %v3760_v38 = vmul.f32 1.442695, %v3746_v17  ;;  %v4059_v55 = vpop.f32.mrf.mxu0 }
0x1b40   : > { %v3723_v34 = vmax.f32 %v3721_v12, %v3722_v5  ;;  %v7401_v0 = vadd.f32 %v3793_v56, %v3792_v57  ;;  %v3392_v22 = vadd.f32 %v3391_v32, %v3390_v44  ;;  %v3407_v23 = vsel %vm2956_vm8, %v3369_v31, 0.0  ;;  %v4473_v11 = vpop.f32.mrf.mxu1 }
0x1b41   : > { %v4201_v37 = vrot.slane %v4200_v40, 1  ;;  %v3737_v43 = vmax.f32 %v3735_v53, %v3736_v60  ;;  %v4189_v42 = vsel %vm504_vm0, %v7394_v28, -inf  ;;  %v4263_v62 = vrot.slane %v4262_v2, 4 }
0x1b42   : > { %v3724_v58 = vrot.slane %v3723_v34, 1  ;;  %v3404_v63 = vadd.f32 %v3403_v39, %v3402_v10  ;;  %v7404_v8 = vpop.eup %5518  ;;  %5520 = vpow2.f32 %v3760_v38  ;;  %v4190_v45 = vrot.slane %v4189_v42, 4 }
0x1b43   : > { %v4202_v14 = vmax.f32 %v4200_v40, %v4201_v37  ;;  %v3738_v51 = vrot.slane %v3737_v43, 1  ;;  %v4224_v47 = vsel %vm504_vm0, %v7397_v30, -inf  ;;  %v3399_v20 = vadd.f32 %v3398_v24, %v3397_v15 }
0x1b44   : > { %v3725_v46 = vmax.f32 %v3723_v34, %v3724_v58  ;;  %v3408_v44 = vrot.slane %v3407_v23, 4  ;;  %v7409_v48 = vmul.f32 0.25, %v4059_v55  ;;  %v3437_v36 = vsel %vm3436_vm10, %v3385_v52, %v3378_v61 }
0x1b45   : > { %v4240_v57 = vsub.f32 %v7361_v26, %v4202_v14  ;;  %v4191_v1 = vmax.f32 %v4189_v42, %v4190_v45  ;;  %v4225_v12 = vrot.slane %v4224_v47, 4  ;;  %v3439_v10 = vsel %vm3438_vm11, %v3392_v22, %v3437_v36 }
0x1b46   : > { %v3745_v6 = vsub.f32 %v7364_v54, %v3725_v46  ;;  %v3405_v49 = vrot.slane %v3404_v63, 1  ;;  %v3739_v54 = vmax.f32 %v3737_v43, %v3738_v51  ;;  %v3795_v16 = vrot.slane %v7401_v0, 2  ;;  %v4115_v24 = vpop.f32.mrf.mxu2  ;;  %v4529_v51 = vpop.f32.mrf.mxu3 }
0x1b47   : > { %v7415_v32 = vadd.f32 %v4263_v62, %v4262_v2  ;;  %v4192_v17 = vrot.slane %v4191_v1, 2  ;;  %v4226_v5 = vmax.f32 %v4224_v47, %v4225_v12  ;;  %v4290_v56 = vsel %vm504_vm0, %v7404_v8, 0.0  ;;  %v3345_v2 = vpop.xlane.xlu1 %3344 }
0x1b48   : > { %v3758_v27 = vmul.f32 1.442695, %v3745_v6  ;;  %v3441_v61 = vsel %vm3440_vm13, %v3399_v20, %v3439_v10  ;;  %v3409_v26 = vadd.f32 %v3408_v44, %v3407_v23  ;;  %v4203_v52 = vsel %vm504_vm0, %v7409_v48, -inf  ;;  %v7422_v15 = vpop.eup %5520 }
0x1b49   : > { %v4250_v50 = vmul.f32 1.442695, %v4240_v57  ;;  %v4193_v53 = vmax.f32 %v4191_v1, %v4192_v17  ;;  %v4227_v18 = vrot.slane %v4226_v5, 2  ;;  %v4204_v34 = vrot.slane %v4203_v52, 4 }
0x1b4a   : > { %v3406_v33 = vadd.f32 %v3405_v49, %v3404_v63  ;;  %5522 = vpow2.f32 %v3758_v27  ;;  %v3747_v39 = vsub.f32 %v7368_v13, %v3739_v54  ;;  %v7425_v40 = vmul.f32 0.25, %v4473_v11 }
0x1b4b   : > { %v4291_v60 = vrot.slane %v4290_v56, 4  ;;  %v4194_v38 = vrot.slane %v4193_v53, 1  ;;  %v4228_v58 = vmax.f32 %v4226_v5, %v4227_v18  ;;  %v4205_v31 = vmax.f32 %v4203_v52, %v4204_v34  ;;  %v4171_v34 = vpop.f32.mrf.mxu0 }
0x1b4c   : > { %v3806_v37 = vsel %vm504_vm0, %v7422_v15, 0.0  ;;  %v3410_v43 = vrot.slane %v3409_v26, 2  ;;  %v4680_v42 = vsel %vm504_vm0, %v7425_v40, -inf  ;;  %v3362_v22 = vmul.f32 %v7304_v59, %v3345_v2 }
0x1b4d   : > { %5524 = vpow2.f32 %v4250_v50  ;;  %v4195_v46 = vmax.f32 %v4193_v53, %v4194_v38  ;;  %v4229_v23 = vrot.slane %v4228_v58, 1  ;;  %v4206_v13 = vrot.slane %v4205_v31, 2 }
0x1b4e   : > { %v3762_v55 = vmul.f32 1.442695, %v3747_v39  ;;  %v4681_v62 = vrot.slane %v4680_v42, 4  ;;  %v3370_v63 = vmul.f32 %v3362_v22, %v7378_v9  ;;  %v7433_v14 = vmul.f32 0.25, %v4115_v24 }
0x1b4f   : > { %v4265_v6 = vrot.slane %v7415_v32, 2  ;;  %v7436_v45 = vadd.f32 %v4291_v60, %v4290_v56  ;;  %v7439_v47 = vsel %vm3442_vm14, %v3406_v33, %v3441_v61  ;;  %v4239_v20 = vsub.f32 %v7394_v28, %v4195_v46 }
0x1b50   : > { %v7442_v44 = vpop.eup %5522  ;;  %v3411_v36 = vadd.f32 %v3410_v43, %v3409_v26  ;;  %v4230_v57 = vmax.f32 %v4228_v58, %v4229_v23  ;;  %v4207_v1 = vmax.f32 %v4205_v31, %v4206_v13  ;;  %v4682_v12 = vmax.f32 %v4680_v42, %v4681_v62 }
0x1b51   : > { %v3807_v10 = vrot.slane %v3806_v37, 4  ;;  %v4248_v49 = vmul.f32 1.442695, %v4239_v20  ;;  %v3414_v27 = vsel %vm2956_vm8, %v3370_v63, 0.0  ;;  %v7445_v54 = vmul.f32 0.25, %v4529_v51 }
0x1b52   : > { %5526 = vpow2.f32 %v3762_v55  ;;  %v4244_v17 = vsub.f32 %v7397_v30, %v4230_v57  ;;  %v4208_v5 = vrot.slane %v4207_v1, 1  ;;  %v4217_v28 = vsel %vm504_vm0, %v7433_v14, -inf }
0x1b53   : > { %v7450_v11 = vpop.eup %5524  ;;  %v3799_v56 = vsel %vm504_vm0, %v7442_v44, 0.0  ;;  %5528 = vpow2.f32 %v4248_v49  ;;  %v4683_v61 = vrot.slane %v4682_v12, 2  ;;  %v3415_v26 = vrot.slane %v3414_v27, 4 }
0x1b54   : > { %v4293_v52 = vrot.slane %v7436_v45, 2  ;;  %v3412_v50 = vrot.slane %v3411_v36, 1  ;;  %v4258_v53 = vmul.f32 1.442695, %v4244_v17  ;;  %v4209_v18 = vmax.f32 %v4207_v1, %v4208_v5 }
0x1b55   : > { %v4684_v2 = vmax.f32 %v4682_v12, %v4683_v61  ;;  %v3416_v30 = vadd.f32 %v3415_v26, %v3414_v27  ;;  %v4218_v33 = vrot.slane %v4217_v28, 4  ;;  %v4694_v39 = vsel %vm504_vm0, %v7445_v54, -inf }
0x1b56   : > { %v7457_v60 = vadd.f32 %v3807_v10, %v3806_v37  ;;  %v3800_v38 = vrot.slane %v3799_v56, 4  ;;  %v4276_v58 = vsel %vm504_vm0, %v7450_v11, 0.0  ;;  %v4695_v31 = vrot.slane %v4694_v39, 4 }
0x1b57   : > { %v4241_v24 = vsub.f32 %v7409_v48, %v4209_v18  ;;  %v4685_v43 = vrot.slane %v4684_v2, 1  ;;  %v4219_v42 = vmax.f32 %v4217_v28, %v4218_v33  ;;  %v7462_v22 = vmul.f32 0.25, %v4171_v34 }
0x1b58   : > { %v7464_v46 = vpop.eup %5526  ;;  %v3413_v23 = vadd.f32 %v3412_v50, %v3411_v36  ;;  %5530 = vpow2.f32 %v4258_v53  ;;  %v4696_v13 = vmax.f32 %v4694_v39, %v4695_v31  ;;  %v3796_v37 = vadd.f32 %v3795_v16, %v7401_v0  ;;  %v3348_v36 = vpop.xlane.xlu2 %3347 }
0x1b59   : > { %v7469_v55 = vpop.eup %5528  ;;  %v4686_v62 = vmax.f32 %v4684_v2, %v4685_v43  ;;  %v3417_v63 = vrot.slane %v3416_v30, 2  ;;  %v4220_v51 = vrot.slane %v4219_v42, 2  ;;  %v4231_v48 = vsel %vm504_vm0, %v7462_v22, -inf  ;;  %v4501_v39 = vpop.f32.mrf.mxu2 }
0x1b5a   : > { %v7473_v20 = vadd.f32 %v3800_v38, %v3799_v56  ;;  %v4277_v57 = vrot.slane %v4276_v58, 4  ;;  %v4697_v1 = vrot.slane %v4696_v13, 2  ;;  %v4232_v12 = vrot.slane %v4231_v48, 4 }
0x1b5b   : > { %v3813_v10 = vsel %vm504_vm0, %v7464_v46, 0.0  ;;  %v4269_v0 = vsel %vm504_vm0, %v7469_v55, 0.0  ;;  %v4252_v16 = vmul.f32 1.442695, %v4241_v24  ;;  %v4221_v49 = vmax.f32 %v4219_v42, %v4220_v51 }
0x1b5c   : > { %v4736_v27 = vsub.f32 %v7425_v40, %v4686_v62  ;;  %v4698_v17 = vmax.f32 %v4696_v13, %v4697_v1  ;;  %v4233_v5 = vmax.f32 %v4231_v48, %v4232_v12  ;;  %v3797_v28 = vrot.slane %v3796_v37, 1 }
0x1b5d   : > { %v3809_v56 = vrot.slane %v7457_v60, 2  ;;  %v7483_v61 = vsel %vm3444_vm1, %v3413_v23, %v7439_v47  ;;  %v3418_v26 = vadd.f32 %v3417_v63, %v3416_v30  ;;  %v3363_v50 = vmul.f32 %v7304_v59, %v3348_v36  ;;  %v4557_v30 = vpop.f32.mrf.mxu0 }
0x1b5e   : > { %v7486_v53 = vpop.eup %5530  ;;  %v4270_v18 = vrot.slane %v4269_v0, 4  ;;  %v4222_v34 = vrot.slane %v4221_v49, 1  ;;  %v4699_v2 = vrot.slane %v4698_v17, 1  ;;  %v4234_v33 = vrot.slane %v4233_v5, 2 }
0x1b5f   : > { %v3802_v40 = vrot.slane %v7473_v20, 2  ;;  %v7489_v38 = vadd.f32 %v4277_v57, %v4276_v58  ;;  %v3814_v31 = vrot.slane %v3813_v10, 4  ;;  %v3798_v24 = vadd.f32 %v3797_v28, %v3796_v37 }
0x1b60   : > { %5532 = vpow2.f32 %v4252_v16  ;;  %v4744_v43 = vmul.f32 1.442695, %v4736_v27  ;;  %v4223_v47 = vmax.f32 %v4221_v49, %v4222_v34  ;;  %v4235_v42 = vmax.f32 %v4233_v5, %v4234_v33 }
0x1b61   : > { %v3419_v23 = vrot.slane %v3418_v26, 1  ;;  %5534 = vrcp.f32 %v3798_v24  ;;  %v3371_v13 = vmul.f32 %v3363_v50, %v7386_v3  ;;  %v7492_v62 = vmul.f32 0.25, %v4501_v39 }
0x1b62   : > { %v7494_v63 = vadd.f32 %v4270_v18, %v4269_v0  ;;  %v7498_v51 = vsel %vm504_vm0, %v7486_v53, 0.0  ;;  %v4243_v58 = vsub.f32 %v7433_v14, %v4223_v47  ;;  %v4700_v37 = vmax.f32 %v4698_v17, %v4699_v2 }
0x1b63   : > { %v4236_v48 = vrot.slane %v4235_v42, 1  ;;  %v3421_v57 = vsel %vm2956_vm8, %v3371_v13, 0.0  ;;  %v4687_v1 = vsel %vm504_vm0, %v7492_v62, -inf  ;;  %v7504_v12 = vmul.f32 0.25, %v4557_v30 }
0x1b64   : > { %v4279_v36 = vrot.slane %v7489_v38, 2  ;;  %v7507_v0 = vadd.f32 %v3814_v31, %v3813_v10  ;;  %5536 = vpow2.f32 %v4744_v43  ;;  %v3422_v16 = vrot.slane %v3421_v57, 4  ;;  %v4585_v10 = vpop.f32.mrf.mxu1 }
0x1b65   : > { %v4256_v49 = vmul.f32 1.442695, %v4243_v58  ;;  %v4688_v27 = vrot.slane %v4687_v1, 4  ;;  %v4701_v14 = vsel %vm504_vm0, %v7504_v12, -inf  ;;  %v4266_v17 = vadd.f32 %v4265_v6, %v7415_v32 }
0x1b66   : > { %v7514_v5 = vpop.eup %5532  ;;  %v4305_v28 = vrot.slane %v7498_v51, 4  ;;  %v3420_v50 = vadd.f32 %v3419_v23, %v3418_v26  ;;  %v3423_v18 = vadd.f32 %v3422_v16, %v3421_v57  ;;  %v4272_v2 = vrot.slane %v7494_v63, 2 }
0x1b67   : > { %v5535_v34 = vpop.eup %5534  ;;  %v4738_v33 = vsub.f32 %v7445_v54, %v4700_v37  ;;  %v4237_v39 = vmax.f32 %v4235_v42, %v4236_v48  ;;  %v4689_v31 = vmax.f32 %v4687_v1, %v4688_v27  ;;  %v4702_v47 = vrot.slane %v4701_v14, 4  ;;  %v4613_v37 = vpop.f32.mrf.mxu2 }
0x1b68   : > { %v3832_v24 = vmul.f32 %v5535_v34, %v7370_v29  ;;  %v3424_v43 = vrot.slane %v3423_v18, 2  ;;  %v4267_v32 = vrot.slane %v4266_v17, 1  ;;  %v4283_v6 = vsel %vm504_vm0, %v7514_v5, 0.0  ;;  %v4641_v48 = vpop.f32.mrf.mxu3 }
0x1b69   : > { %5538 = vpow2.f32 %v4256_v49  ;;  %v4690_v26 = vrot.slane %v4689_v31, 2  ;;  %v7522_v30 = vmul.f32 0.25, %v4585_v10  ;;  %v4703_v54 = vmax.f32 %v4701_v14, %v4702_v47 }
0x1b6a   : > { %v7524_v23 = vpop.eup %5536  ;;  %v3848_v13 = vsel %vm504_vm0, %v3832_v24, 0.0  ;;  %v3425_v58 = vadd.f32 %v3424_v43, %v3423_v18  ;;  %v4268_v42 = vadd.f32 %v4267_v32, %v4266_v17  ;;  %v4748_v29 = vmul.f32 1.442695, %v4738_v33 }
0x1b6b   : > { %v4245_v57 = vsub.f32 %v7462_v22, %v4237_v39  ;;  %3849 = vadd.xlane.f32.xlu1 %v3848_v13  ;;  %v4691_v1 = vmax.f32 %v4689_v31, %v4690_v26  ;;  %v4708_v16 = vsel %vm504_vm0, %v7522_v30, -inf  ;;  %v4704_v27 = vrot.slane %v4703_v54, 2 }
0x1b6c   : > { %v3426_v49 = vrot.slane %v3425_v58, 1  ;;  %5540 = vrcp.f32 %v4268_v42  ;;  %v4709_v10 = vrot.slane %v4708_v16, 4  ;;  %v3447_v34 = vsel %vm3446_vm2, %v3420_v50, %v7483_v61 }
0x1b6d   : > { %v4692_v18 = vrot.slane %v4691_v1, 1  ;;  %v7532_v14 = vmul.f32 0.25, %v4613_v37  ;;  %v7534_v17 = vmul.f32 0.25, %v4641_v48  ;;  %v4284_v33 = vrot.slane %v4283_v6, 4 }
0x1b6e   : > { %v4760_v22 = vsel %vm504_vm0, %v7524_v23, 0.0  ;;  %v3427_v39 = vadd.f32 %v3426_v49, %v3425_v58  ;;  %v4705_v31 = vmax.f32 %v4703_v54, %v4704_v27  ;;  %v4260_v43 = vmul.f32 1.442695, %v4245_v57 }
0x1b6f   : > { %v7538_v24 = vpop.eup %5538  ;;  %v4693_v47 = vmax.f32 %v4691_v1, %v4692_v18  ;;  %v4710_v32 = vmax.f32 %v4708_v16, %v4709_v10  ;;  %v4715_v26 = vsel %vm504_vm0, %v7532_v14, -inf  ;;  %5542 = vpow2.f32 %v4748_v29 }
0x1b70   : > { %v3449_v61 = vsel %vm3448_vm15, %v3427_v39, %v3447_v34  ;;  %v4706_v50 = vrot.slane %v4705_v31, 1  ;;  %v4716_v13 = vrot.slane %v4715_v26, 4  ;;  %v4761_v42 = vrot.slane %v4760_v22, 4 }
0x1b71   : > { %3451 = vst.msk [vmem:[#allocation6] sm:$0xff] %vm2956_vm8, %v3449_v61  ;;  %v4737_v37 = vsub.f32 %v7492_v62, %v4693_v47  ;;  %v4711_v58 = vrot.slane %v4710_v32, 2  ;;  %v4722_v54 = vsel %vm504_vm0, %v7534_v17, -inf  ;;  %v7548_v57 = vadd.f32 %v4305_v28, %v7498_v51  ;;  %v4669_v47 = vpop.f32.mrf.mxu0 }
0x1b72   : > { %v5541_v48 = vpop.eup %5540  ;;  %v7550_v1 = vadd.f32 %v4284_v33, %v4283_v6  ;;  %v4707_v29 = vmax.f32 %v4705_v31, %v4706_v50  ;;  %v4717_v16 = vmax.f32 %v4715_v26, %v4716_v13  ;;  %v4297_v49 = vsel %vm504_vm0, %v7538_v24, 0.0 }
0x1b73   : > { %5544 = vpow2.f32 %v4260_v43  ;;  %v4746_v27 = vmul.f32 1.442695, %v4737_v37  ;;  %v4326_v10 = vmul.f32 %v5541_v48, %v7382_v4  ;;  %v4712_v34 = vmax.f32 %v4710_v32, %v4711_v58 }
0x1b74   : > { %v4739_v62 = vsub.f32 %v7504_v12, %v4707_v29  ;;  %v4718_v18 = vrot.slane %v4717_v16, 2  ;;  %v4723_v39 = vrot.slane %v4722_v54, 4  ;;  %v4762_v61 = vadd.f32 %v4761_v42, %v4760_v22 }
0x1b75   : > { %5546 = vpow2.f32 %v4746_v27  ;;  %v4334_v51 = vsel %vm504_vm0, %v4326_v10, 0.0  ;;  %v4294_v28 = vadd.f32 %v4293_v52, %v7436_v45  ;;  %v7560_v6 = vpop.eup %5542  ;;  %v4713_v31 = vrot.slane %v4712_v34, 1 }
0x1b76   : > { %v4750_v33 = vmul.f32 1.442695, %v4739_v62  ;;  %4335 = vadd.xlane.f32.xlu2 %v4334_v51  ;;  %v4719_v4 = vmax.f32 %v4717_v16, %v4718_v18  ;;  %v4724_v43 = vmax.f32 %v4722_v54, %v4723_v39  ;;  %v4298_v12 = vrot.slane %v4297_v49, 4 }
0x1b77   : > { %v4295_v32 = vrot.slane %v4294_v28, 1  ;;  %v7562_v26 = vmul.f32 0.25, %v4669_v47  ;;  %v3803_v22 = vadd.f32 %v3802_v40, %v7473_v20  ;;  %v4714_v50 = vmax.f32 %v4712_v34, %v4713_v31 }
0x1b78   : > { %5548 = vpow2.f32 %v4750_v33  ;;  %v4720_v13 = vrot.slane %v4719_v4, 1  ;;  %v4725_v42 = vrot.slane %v4724_v43, 2  ;;  %v4774_v52 = vsel %vm504_vm0, %v7560_v6, 0.0 }
0x1b79   : > { %v7567_v45 = vpop.eup %5544  ;;  %v4296_v37 = vadd.f32 %v4295_v32, %v4294_v28  ;;  %v4729_v58 = vsel %vm504_vm0, %v7562_v26, -inf  ;;  %v3804_v54 = vrot.slane %v3803_v22, 1  ;;  %v4740_v48 = vsub.f32 %v7522_v30, %v4714_v50 }
0x1b7a   : > { %v4721_v29 = vmax.f32 %v4719_v4, %v4720_v13  ;;  %v4726_v16 = vmax.f32 %v4724_v43, %v4725_v42  ;;  %v4730_v27 = vrot.slane %v4729_v58, 4  ;;  %v4763_v40 = vrot.slane %v4762_v61, 2 }
0x1b7b   : > { %v7574_v20 = vpop.eup %5546  ;;  %5550 = vrcp.f32 %v4296_v37  ;;  %v3805_v10 = vadd.f32 %v3804_v54, %v3803_v22  ;;  %v4273_v62 = vadd.f32 %v4272_v2, %v7494_v63  ;;  %v4775_v34 = vrot.slane %v4774_v52, 4 }
0x1b7c   : > { %v4752_v18 = vmul.f32 1.442695, %v4740_v48  ;;  %v4741_v39 = vsub.f32 %v7532_v14, %v4721_v29  ;;  %v4727_v47 = vrot.slane %v4726_v16, 1  ;;  %v4299_v51 = vadd.f32 %v4298_v12, %v4297_v49 }
0x1b7d   : > { %v4767_v30 = vsel %vm504_vm0, %v7574_v20, 0.0  ;;  %v4731_v28 = vmax.f32 %v4729_v58, %v4730_v27  ;;  %5552 = vrcp.f32 %v3805_v10  ;;  %v4274_v43 = vrot.slane %v4273_v62, 1 }
0x1b7e   : > { %v7582_v33 = vpop.eup %5548  ;;  %5554 = vpow2.f32 %v4752_v18  ;;  %v4754_v31 = vmul.f32 1.442695, %v4741_v39  ;;  %v4728_v4 = vmax.f32 %v4726_v16, %v4727_v47  ;;  %v3816_v32 = vrot.slane %v7507_v0, 2 }
0x1b7f   : > { %v4286_v63 = vrot.slane %v7550_v1, 2  ;;  %v4781_v2 = vsel %vm504_vm0, %v7582_v33, 0.0  ;;  %v4732_v14 = vrot.slane %v4731_v28, 2  ;;  %v4307_v49 = vrot.slane %v7548_v57, 2 }
0x1b80   : > { %v7589_v12 = vadd.f32 %v4775_v34, %v4774_v52  ;;  %5556 = vpow2.f32 %v4754_v31  ;;  %v4742_v22 = vsub.f32 %v7534_v17, %v4728_v4  ;;  %v4768_v13 = vrot.slane %v4767_v30, 4 }
0x1b81   : > { %v5551_v50 = vpop.eup %5550  ;;  %v4733_v42 = vmax.f32 %v4731_v28, %v4732_v14  ;;  %v4275_v37 = vadd.f32 %v4274_v43, %v4273_v62  ;;  %v4764_v58 = vadd.f32 %v4763_v40, %v4762_v61  ;;  %v4300_v54 = vrot.slane %v4299_v51, 2 }
0x1b82   : > { %v4782_v48 = vrot.slane %v4781_v2, 4  ;;  %v4756_v29 = vmul.f32 1.442695, %v4742_v22  ;;  %v4330_v16 = vmul.f32 %v5551_v50, %v7404_v8  ;;  %v4287_v52 = vadd.f32 %v4286_v63, %v7550_v1 }
0x1b83   : > { %v5553_v27 = vpop.eup %5552  ;;  %v4734_v10 = vrot.slane %v4733_v42, 1  ;;  %5558 = vrcp.f32 %v4275_v37  ;;  %v4765_v18 = vrot.slane %v4764_v58, 1  ;;  %v7598_v17 = vsel %vm504_vm0, %v7567_v45, 0.0 }
0x1b84   : > { %v7594_v34 = vpop.eup %5554  ;;  %5560 = vpow2.f32 %v4756_v29  ;;  %v4346_v61 = vsel %vm504_vm0, %v4330_v16, 0.0  ;;  %v3833_v40 = vmul.f32 %v5553_v27, %v7442_v44  ;;  %v7602_v62 = vadd.f32 %v4768_v13, %v4767_v30 }
0x1b85   : > { %v4788_v8 = vsel %vm504_vm0, %v7594_v34, 0.0  ;;  %4347 = vadd.xlane.f32.xlu0 %v4346_v61  ;;  %v4735_v39 = vmax.f32 %v4733_v42, %v4734_v10  ;;  %v4766_v47 = vadd.f32 %v4765_v18, %v4764_v58  ;;  %v4288_v4 = vrot.slane %v4287_v52, 1 }
0x1b86   : > { %v7606_v1 = vpop.eup %5556  ;;  %v4789_v28 = vrot.slane %v4788_v8, 4  ;;  %v3851_v31 = vsel %vm504_vm0, %v3833_v40, 0.0  ;;  %v3810_v43 = vadd.f32 %v3809_v56, %v7457_v60  ;;  %v4783_v63 = vadd.f32 %v4782_v48, %v4781_v2 }
0x1b87   : > { %v4795_v44 = vsel %vm504_vm0, %v7606_v1, 0.0  ;;  %v4743_v30 = vsub.f32 %v7562_v26, %v4735_v39  ;;  %3852 = vadd.xlane.f32.xlu2 %v3851_v31  ;;  %5562 = vrcp.f32 %v4766_v47  ;;  %v4289_v50 = vadd.f32 %v4288_v4, %v4287_v52 }
0x1b88   : > { %v4790_v14 = vadd.f32 %v4789_v28, %v4788_v8  ;;  %v4796_v22 = vrot.slane %v4795_v44, 4  ;;  %v3811_v13 = vrot.slane %v3810_v43, 1  ;;  %v4777_v37 = vrot.slane %v7589_v12, 2 }
0x1b89   : > { %v5559_v42 = vpop.eup %5558  ;;  %v4758_v58 = vmul.f32 1.442695, %v4743_v30  ;;  %v4301_v29 = vadd.f32 %v4300_v54, %v4299_v51  ;;  %v3817_v16 = vadd.f32 %v3816_v32, %v7507_v0  ;;  %v4770_v56 = vrot.slane %v7602_v62, 2 }
0x1b8a   : > { %v7617_v60 = vpop.eup %5560  ;;  %v4791_v2 = vrot.slane %v4790_v14, 2  ;;  %v4327_v26 = vmul.f32 %v5559_v42, %v7469_v55  ;;  %5564 = vrcp.f32 %v4289_v50  ;;  %v4784_v48 = vrot.slane %v4783_v63, 2 }
0x1b8b   : > { %v4802_v27 = vsel %vm504_vm0, %v7617_v60, 0.0  ;;  %5566 = vpow2.f32 %v4758_v58  ;;  %v3812_v10 = vadd.f32 %v3811_v13, %v3810_v43  ;;  %v4797_v18 = vadd.f32 %v4796_v22, %v4795_v44 }
0x1b8c   : > { %v4803_v52 = vrot.slane %v4802_v27, 4  ;;  %v4337_v51 = vsel %vm504_vm0, %v4327_v26, 0.0  ;;  %v4302_v54 = vrot.slane %v4301_v29, 1  ;;  %v3818_v32 = vrot.slane %v3817_v16, 1 }
0x1b8d   : > { %v5563_v0 = vpop.eup %5562  ;;  %4338 = vadd.xlane.f32.xlu0 %v4337_v51  ;;  %5568 = vrcp.f32 %v3812_v10  ;;  %v4308_v55 = vadd.f32 %v4307_v49, %v7548_v57  ;;  %v4792_v61 = vadd.f32 %v4791_v2, %v4790_v14  ;;  %v4280_v47 = vadd.f32 %v4279_v36, %v7489_v38 }
0x1b8e   : > { %v4804_v40 = vadd.f32 %v4803_v52, %v4802_v27  ;;  %v4824_v8 = vmul.f32 %v5563_v0, %v7524_v23  ;;  %v4303_v39 = vadd.f32 %v4302_v54, %v4301_v29  ;;  %v3819_v28 = vadd.f32 %v3818_v32, %v3817_v16 }
0x1b8f   : > { %v4309_v31 = vrot.slane %v4308_v55, 1  ;;  %v4793_v4 = vrot.slane %v4792_v61, 1  ;;  %v4785_v43 = vadd.f32 %v4784_v48, %v4783_v63  ;;  %v4312_v30 = vrot.slane %v7598_v17, 4 }
0x1b90   : > { %v5565_v44 = vpop.eup %5564  ;;  %v4832_v22 = vsel %vm504_vm0, %v4824_v8, 0.0  ;;  %5570 = vrcp.f32 %v4303_v39  ;;  %v4281_v57 = vrot.slane %v4280_v47, 1  ;;  %v4798_v38 = vrot.slane %v4797_v18, 2 }
0x1b91   : > { %v7633_v49 = vpop.eup %5566  ;;  %4833 = vadd.xlane.f32.xlu1 %v4832_v22  ;;  %v4329_v23 = vmul.f32 %v5565_v44, %v7514_v5  ;;  %5572 = vrcp.f32 %v3819_v28  ;;  %v4310_v14 = vadd.f32 %v4309_v31, %v4308_v55  ;;  %v4794_v50 = vadd.f32 %v4793_v4, %v4792_v61 }
0x1b92   : > { %v4809_v36 = vsel %vm504_vm0, %v7633_v49, 0.0  ;;  %v4771_v63 = vadd.f32 %v4770_v56, %v7602_v62  ;;  %v4805_v42 = vrot.slane %v4804_v40, 2  ;;  %v4786_v29 = vrot.slane %v4785_v43, 1 }
0x1b93   : > { %v5569_v13 = vpop.eup %5568  ;;  %v4343_v58 = vsel %vm504_vm0, %v4329_v23, 0.0  ;;  %5574 = vrcp.f32 %v4310_v14  ;;  %v4810_v16 = vrot.slane %v4809_v36, 4  ;;  %v4313_v26 = vadd.f32 %v4312_v30, %v7598_v17 }
0x1b94   : > { %4344 = vadd.xlane.f32.xlu2 %v4343_v58  ;;  %v3834_v2 = vmul.f32 %v5569_v13, %v7422_v15  ;;  %5576 = vrcp.f32 %v4794_v50  ;;  %v4772_v5 = vrot.slane %v4771_v63, 1  ;;  %v4282_v48 = vadd.f32 %v4281_v57, %v4280_v47 }
0x1b95   : > { %v4778_v27 = vadd.f32 %v4777_v37, %v7589_v12  ;;  %v4787_v54 = vadd.f32 %v4786_v29, %v4785_v43  ;;  %v4811_v0 = vadd.f32 %v4810_v16, %v4809_v36  ;;  %v4806_v32 = vadd.f32 %v4805_v42, %v4804_v40 }
0x1b96   : > { %v5571_v10 = vpop.eup %5570  ;;  %v3854_v62 = vsel %vm504_vm0, %v3834_v2, 0.0  ;;  %v4773_v56 = vadd.f32 %v4772_v5, %v4771_v63  ;;  %v4799_v15 = vadd.f32 %v4798_v38, %v4797_v18  ;;  %v4314_v61 = vrot.slane %v4313_v26, 2 }
0x1b97   : > { %v5573_v52 = vpop.eup %5572  ;;  %3855 = vadd.xlane.f32.xlu0 %v3854_v62  ;;  %v4331_v51 = vmul.f32 %v5571_v10, %v7538_v24  ;;  %v4779_v8 = vrot.slane %v4778_v27, 1  ;;  %v4812_v28 = vrot.slane %v4811_v0, 2  ;;  %v4807_v24 = vrot.slane %v4806_v32, 1 }
0x1b98   : > { %5578 = vrcp.f32 %v4773_v56  ;;  %v3835_v37 = vmul.f32 %v5573_v52, %v7464_v46  ;;  %v4800_v39 = vrot.slane %v4799_v15, 1  ;;  %v4315_v43 = vadd.f32 %v4314_v61, %v4313_v26 }
0x1b99   : > { %v5575_v55 = vpop.eup %5574  ;;  %v4349_v17 = vsel %vm504_vm0, %v4331_v51, 0.0  ;;  %5580 = vrcp.f32 %v4282_v48  ;;  %v4780_v4 = vadd.f32 %v4779_v8, %v4778_v27  ;;  %v4808_v46 = vadd.f32 %v4807_v24, %v4806_v32 }
0x1b9a   : > { %v5577_v12 = vpop.eup %5576  ;;  %4350 = vadd.xlane.f32.xlu1 %v4349_v17  ;;  %5582 = vrcp.f32 %v4787_v54  ;;  %v4801_v31 = vadd.f32 %v4800_v39, %v4799_v15  ;;  %v4332_v40 = vmul.f32 %v5575_v55, %v7486_v53  ;;  %v3857_v30 = vsel %vm504_vm0, %v3835_v37, 0.0  ;;  %v3844_v54 = vpop.xlane.xlu1 %3843 }
0x1b9b   : > { %v4828_v47 = vmul.f32 %v5577_v12, %v7594_v34  ;;  %v4813_v57 = vadd.f32 %v4812_v28, %v4811_v0  ;;  %v4316_v14 = vrot.slane %v4315_v43, 1  ;;  %v3862_v15 = vmul.f32 %v3844_v54, %v7304_v59 }
0x1b9c   : > { %5584 = vrcp.f32 %v4801_v31  ;;  %v4352_v34 = vsel %vm504_vm0, %v4332_v40, 0.0 }
0x1b9d   : > { %v4844_v18 = vsel %vm504_vm0, %v4828_v47, 0.0  ;;  %5586 = vrcp.f32 %v4780_v4  ;;  %v4814_v38 = vrot.slane %v4813_v57, 1  ;;  %v4317_v42 = vadd.f32 %v4316_v14, %v4315_v43 }
0x1b9e   : > { %v5579_v44 = vpop.eup %5578  ;;  %4845 = vadd.xlane.f32.xlu2 %v4844_v18  ;;  %5588 = vrcp.f32 %v4808_v46  ;;  %v3870_v17 = vmul.f32 %v3862_v15, %v7327_v41 }
0x1b9f   : > { %v5581_v22 = vpop.eup %5580  ;;  %3858 = vadd.xlane.f32.xlu0 %v3857_v30  ;;  %v4825_v23 = vmul.f32 %v5579_v44, %v7574_v20  ;;  %v4815_v36 = vadd.f32 %v4814_v38, %v4813_v57 }
0x1ba0   : > { %v5583_v53 = vpop.eup %5582  ;;  %v4328_v50 = vmul.f32 %v5581_v22, %v7450_v11 }
0x1ba1   : > { %v4827_v63 = vmul.f32 %v5583_v53, %v7582_v33  ;;  %v4835_v13 = vsel %vm504_vm0, %v4825_v23, 0.0  ;;  %5590 = vrcp.f32 %v4815_v36 }
0x1ba2   : > { %4353 = vadd.xlane.f32.xlu1 %v4352_v34  ;;  %v5585_v58 = vpop.eup %5584  ;;  %v4340_v29 = vsel %vm504_vm0, %v4328_v50, 0.0  ;;  %5592 = vrcp.f32 %v4317_v42 }
0x1ba3   : > { %v5587_v16 = vpop.eup %5586  ;;  %v4841_v20 = vsel %vm504_vm0, %v4827_v63, 0.0  ;;  %v4829_v2 = vmul.f32 %v5585_v58, %v7606_v1 }
0x1ba4   : > { %v5589_v11 = vpop.eup %5588  ;;  %v4826_v5 = vmul.f32 %v5587_v16, %v7560_v6 }
0x1ba5   : > { %v4830_v33 = vmul.f32 %v5589_v11, %v7617_v60  ;;  %v4847_v26 = vsel %vm504_vm0, %v4829_v2, 0.0  ;;  %v3838_v60 = vpop.xlane.xlu2 %3837 }
0x1ba6   : > { %4836 = vadd.xlane.f32.xlu2 %v4835_v13  ;;  %v4838_v27 = vsel %vm504_vm0, %v4826_v5, 0.0  ;;  %v3860_v55 = vmul.f32 %v3838_v60, %v7304_v59 }
0x1ba7   : > { %4341 = vadd.xlane.f32.xlu0 %v4340_v29  ;;  %v5591_v48 = vpop.eup %5590  ;;  %v4850_v62 = vsel %vm504_vm0, %v4830_v33, 0.0 }
0x1ba8   : > { %v5593_v10 = vpop.eup %5592  ;;  %v4831_v56 = vmul.f32 %v5591_v48, %v7633_v49  ;;  %v3868_v12 = vmul.f32 %v3860_v55, %v7315_v19 }
0x1ba9   : > { %v4333_v1 = vmul.f32 %v5593_v10, %v7567_v45 }
0x1baa   : > { %4842 = vadd.xlane.f32.xlu1 %v4841_v20  ;;  %v4853_v52 = vsel %vm504_vm0, %v4831_v56, 0.0 }
0x1bab   : > { %v4355_v6 = vsel %vm504_vm0, %v4333_v1, 0.0  ;;  %vm3876_vm0 = vcmask 261248  }
0x1bac   : > { %v3891_v47 = vsel %vm3876_vm0, %v3870_v17, 0.0  ;;  %v3877_v31 = vsel %vm3876_vm0, %v3868_v12, 0.0 }
0x1bad   : > { %v3841_v51 = vpop.xlane.xlu2 %3840  ;;  %v3892_v44 = vrot.slane %v3891_v47, 4  ;;  %v3878_v22 = vrot.slane %v3877_v31, 4 }
0x1bae   : > { %4848 = vadd.xlane.f32.xlu2 %v4847_v26  ;;  %v3861_v32 = vmul.f32 %v3841_v51, %v7304_v59 }
0x1baf   : > { %4839 = vadd.xlane.f32.xlu0 %v4838_v27  ;;  %v3893_v14 = vadd.f32 %v3892_v44, %v3891_v47  ;;  %v3879_v38 = vadd.f32 %v3878_v22, %v3877_v31 }
0x1bb0   : > { %v3869_v45 = vmul.f32 %v3861_v32, %v7319_v35 }
0x1bb1   : > { %v3894_v16 = vrot.slane %v3893_v14, 2  ;;  %v3880_v5 = vrot.slane %v3879_v38, 2 }
0x1bb2   : > { %4851 = vadd.xlane.f32.xlu1 %v4850_v62  ;;  %v3884_v39 = vsel %vm3876_vm0, %v3869_v45, 0.0 }
0x1bb3   : > { %v3885_v18 = vrot.slane %v3884_v39, 4  ;;  %v3881_v54 = vadd.f32 %v3880_v5, %v3879_v38 }
0x1bb5   : > { %v3847_v0 = vpop.xlane.xlu2 %3846  ;;  %v3886_v34 = vadd.f32 %v3885_v18, %v3884_v39  ;;  %v3882_v47 = vrot.slane %v3881_v54, 1 }
0x1bb6   : > { %4854 = vadd.xlane.f32.xlu2 %v4853_v52  ;;  %v3863_v8 = vmul.f32 %v3847_v0, %v7304_v59  ;;  %v3895_v52 = vadd.f32 %v3894_v16, %v3893_v14 }
0x1bb7   : > { %4356 = vadd.xlane.f32.xlu0 %v4355_v6  ;;  %v3887_v58 = vrot.slane %v3886_v34, 2 }
0x1bb8   : > { %v3871_v28 = vmul.f32 %v3863_v8, %v7343_v25  ;;  %v3896_v8 = vrot.slane %v3895_v52, 1 }
0x1bb9   : > { %v3888_v56 = vadd.f32 %v3887_v58, %v3886_v34  ;;  %v3883_v34 = vadd.f32 %v3882_v47, %v3881_v54 }
0x1bba   : > { %v3898_v46 = vsel %vm3876_vm0, %v3871_v28, 0.0 }
0x1bbb   : > { %v3899_v53 = vrot.slane %v3898_v46, 4 }
0x1bbd   : > { %v3900_v20 = vadd.f32 %v3899_v53, %v3898_v46 }
0x1bbf   : > { %v3901_v6 = vrot.slane %v3900_v20, 2 }
0x1bc1   : > { %v3902_v12 = vadd.f32 %v3901_v6, %v3900_v20 }
0x1bc3   : > { %v3903_v22 = vrot.slane %v3902_v12, 1 }
0x1bde   : > { %v3850_v49 = vpop.xlane.xlu1 %3849 }
0x1bdf   : > { %v3864_v37 = vmul.f32 %v3850_v49, %v7304_v59 }
0x1be1   : > { %v3872_v40 = vmul.f32 %v3864_v37, %v7354_v21 }
0x1be3   : > { %v3905_v57 = vsel %vm3876_vm0, %v3872_v40, 0.0 }
0x1be4   : > { %v3906_v36 = vrot.slane %v3905_v57, 4 }
0x1be6   : > { %v3907_v33 = vadd.f32 %v3906_v36, %v3905_v57 }
0x1be8   : > { %v3908_v0 = vrot.slane %v3907_v33, 2 }
0x1be9   : > { %v4336_v61 = vpop.xlane.xlu2 %4335 }
0x1bea   : > { %v4358_v4 = vmul.f32 %v4336_v61, %v7304_v59  ;;  %v3889_v61 = vrot.slane %v3888_v56, 1  ;;  %v3909_v28 = vadd.f32 %v3908_v0, %v3907_v33 }
0x1bec   : > { %v4366_v23 = vmul.f32 %v4358_v4, %v7315_v19 }
0x1bee   : > { %v4375_v29 = vsel %vm4374_vm3, %v4366_v23, 0.0 }
0x1bef   : > { %v4376_v48 = vrot.slane %v4375_v29, 4 }
0x1bf1   : > { %v4377_v32 = vadd.f32 %v4376_v48, %v4375_v29 }
0x1bf3   : > { %v4378_v31 = vrot.slane %v4377_v32, 2 }
0x1bf5   : > { %v4379_v38 = vadd.f32 %v4378_v31, %v4377_v32 }
0x1bf8   : > { %v4348_v24 = vpop.xlane.xlu0 %4347 }
0x1bf9   : > { %v4362_v13 = vmul.f32 %v4348_v24, %v7304_v59 }
0x1bfa   : > { %v3853_v43 = vpop.xlane.xlu2 %3852 }
0x1bfb   : > { %v3865_v30 = vmul.f32 %v3853_v43, %v7304_v59  ;;  %v4370_v27 = vmul.f32 %v4362_v13, %v7354_v21  ;;  %v3890_v43 = vadd.f32 %v3889_v61, %v3888_v56 }
0x1bfd   : > { %v3873_v50 = vmul.f32 %v3865_v30, %v7358_v7  ;;  %v4403_v15 = vsel %vm4374_vm3, %v4370_v27, 0.0  ;;  %v3897_v30 = vadd.f32 %v3896_v8, %v3895_v52  ;;  %v3941_v13 = vsel %vm3436_vm10, %v3890_v43, %v3883_v34 }
0x1bfe   : > { %v4404_v24 = vrot.slane %v4403_v15, 4 }
0x1bff   : > { %v3912_v2 = vsel %vm3876_vm0, %v3873_v50, 0.0  ;;  %v3910_v50 = vrot.slane %v3909_v28, 1  ;;  %v3942_v20 = vsel %vm3438_vm11, %v3897_v30, %v3941_v13 }
0x1c00   : > { %v4339_v63 = vpop.xlane.xlu0 %4338  ;;  %v3913_v1 = vrot.slane %v3912_v2, 4  ;;  %v4405_v23 = vadd.f32 %v4404_v24, %v4403_v15 }
0x1c01   : > { %v4359_v42 = vmul.f32 %v4339_v63, %v7304_v59 }
0x1c02   : > { %v3914_v45 = vadd.f32 %v3913_v1, %v3912_v2  ;;  %v3904_v2 = vadd.f32 %v3903_v22, %v3902_v12  ;;  %v4406_v33 = vrot.slane %v4405_v23, 2 }
0x1c03   : > { %v4367_v11 = vmul.f32 %v4359_v42, %v7319_v35 }
0x1c04   : > { %v4834_v26 = vpop.xlane.xlu1 %4833  ;;  %v3915_v44 = vrot.slane %v3914_v45, 2  ;;  %v7713_v15 = vadd.f32 %v4406_v33, %v4405_v23 }
0x1c05   : > { %v4382_v10 = vsel %vm4374_vm3, %v4367_v11, 0.0  ;;  %v4856_v62 = vmul.f32 %v4834_v26, %v7304_v59 }
0x1c06   : > { %v4383_v60 = vrot.slane %v4382_v10, 4  ;;  %v3916_v42 = vadd.f32 %v3915_v44, %v3914_v45 }
0x1c07   : > { %v4345_v51 = vpop.xlane.xlu2 %4344  ;;  %v4864_v55 = vmul.f32 %v4856_v62, %v7315_v19  ;;  %v4380_v62 = vrot.slane %v4379_v38, 1 }
0x1c08   : > { %v4361_v49 = vmul.f32 %v4345_v51, %v7304_v59  ;;  %v4384_v37 = vadd.f32 %v4383_v60, %v4382_v10  ;;  %v3911_v10 = vadd.f32 %v3910_v50, %v3909_v28  ;;  %v3917_v6 = vrot.slane %v3916_v42, 1 }
0x1c09   : > { %v4873_v40 = vsel %vm4872_vm4, %v4864_v55, 0.0  ;;  %v3943_v51 = vsel %vm3440_vm13, %v3904_v2, %v3942_v20 }
0x1c0a   : > { %v3856_v17 = vpop.xlane.xlu0 %3855  ;;  %v4369_v18 = vmul.f32 %v4361_v49, %v7343_v25  ;;  %v4385_v46 = vrot.slane %v4384_v37, 2  ;;  %v4874_v14 = vrot.slane %v4873_v40, 4  ;;  %v3944_v45 = vsel %vm3442_vm14, %v3911_v10, %v3943_v51  ;;  %v4951_v51 = vld [vmem:[%s7853_s9 + $0x20] sm:$0xff] }
0x1c0b   : > { %v3866_v39 = vmul.f32 %v3856_v17, %v7304_v59  ;;  %v4381_v17 = vadd.f32 %v4380_v62, %v4379_v38 }
0x1c0c   : > { %v4396_v36 = vsel %vm4374_vm3, %v4369_v18, 0.0  ;;  %v4386_v11 = vadd.f32 %v4385_v46, %v4384_v37  ;;  %v4875_v26 = vadd.f32 %v4874_v14, %v4873_v40  ;;  %v3918_v37 = vadd.f32 %v3917_v6, %v3916_v42  ;;  %v4954_v42 = vld [vmem:[%s7853_s9 + $0x38] sm:$0xff] }
0x1c0d   : > { %v3874_v19 = vmul.f32 %v3866_v39, %v7378_v9  ;;  %v4351_v4 = vpop.xlane.xlu1 %4350  ;;  %v4397_v48 = vrot.slane %v4396_v36, 4  ;;  %4970 = vmatpush.msra.mxu1 %v4954_v42 }
0x1c0e   : > { %v4363_v29 = vmul.f32 %v4351_v4, %v7304_v59  ;;  %v4387_v54 = vrot.slane %v4386_v11, 1  ;;  %v4876_v55 = vrot.slane %v4875_v26, 2  ;;  %v4408_v4 = vrot.slane %v7713_v15, 1 }
0x1c0f   : > { %v3919_v57 = vsel %vm3876_vm0, %v3874_v19, 0.0  ;;  %v4398_v49 = vadd.f32 %v4397_v48, %v4396_v36  ;;  %v3945_v23 = vsel %vm3444_vm1, %v3918_v37, %v3944_v45  ;;  %v4952_v48 = vld [vmem:[%s7853_s9 + $0x28] sm:$0xff] }
0x1c10   : > { %v3920_v53 = vrot.slane %v3919_v57, 4  ;;  %v4371_v60 = vmul.f32 %v4363_v29, %v7358_v7  ;;  %v4388_v31 = vadd.f32 %v4387_v54, %v4386_v11  ;;  %v4877_v43 = vadd.f32 %v4876_v55, %v4875_v26 }
0x1c11   : > { %v4846_v63 = vpop.xlane.xlu2 %4845  ;;  %v4399_v44 = vrot.slane %v4398_v49, 2 }
0x1c12   : > { %v3921_v58 = vadd.f32 %v3920_v53, %v3919_v57  ;;  %v3859_v16 = vpop.xlane.xlu0 %3858  ;;  %v4860_v52 = vmul.f32 %v4846_v63, %v7304_v59  ;;  %v4410_v39 = vsel %vm4374_vm3, %v4371_v60, 0.0  ;;  %v7729_v38 = vsel %vm3436_vm10, %v4388_v31, %v4381_v17 }
0x1c13   : > { %v3867_v5 = vmul.f32 %v3859_v16, %v7304_v59  ;;  %v4878_v2 = vrot.slane %v4877_v43, 1  ;;  %v7740_v11 = vadd.f32 %v4399_v44, %v4398_v49 }
0x1c14   : > { %v3922_v27 = vrot.slane %v3921_v58, 2  ;;  %v4868_v8 = vmul.f32 %v4860_v52, %v7354_v21  ;;  %v4411_v21 = vrot.slane %v4410_v39, 4 }
0x1c15   : > { %v3875_v56 = vmul.f32 %v3867_v5, %v7386_v3  ;;  %v4354_v1 = vpop.xlane.xlu1 %4353  ;;  %v7759_v37 = vadd.f32 %v4878_v2, %v4877_v43 }
0x1c16   : > { %v3923_v0 = vadd.f32 %v3922_v27, %v3921_v58  ;;  %v4364_v28 = vmul.f32 %v4354_v1, %v7304_v59  ;;  %v4901_v22 = vsel %vm4872_vm4, %v4868_v8, 0.0  ;;  %v4412_v5 = vadd.f32 %v4411_v21, %v4410_v39 }
0x1c17   : > { %v3926_v32 = vsel %vm3876_vm0, %v3875_v56, 0.0  ;;  %v4902_v29 = vrot.slane %v4901_v22, 4  ;;  %v4401_v21 = vrot.slane %v7740_v11, 1 }
0x1c18   : > { %v3927_v61 = vrot.slane %v3926_v32, 4  ;;  %v3924_v40 = vrot.slane %v3923_v0, 1  ;;  %v4372_v53 = vmul.f32 %v4364_v28, %v7378_v9 }
0x1c19   : > { %v4837_v12 = vpop.xlane.xlu2 %4836  ;;  %v4402_v2 = vadd.f32 %v4401_v21, %v7740_v11 }
0x1c1a   : > { %v3928_v47 = vadd.f32 %v3927_v61, %v3926_v32  ;;  %v4342_v24 = vpop.xlane.xlu0 %4341  ;;  %v4857_v19 = vmul.f32 %v4837_v12, %v7304_v59  ;;  %v3925_v36 = vadd.f32 %v3924_v40, %v3923_v0  ;;  %v4417_v10 = vsel %vm4374_vm3, %v4372_v53, 0.0  ;;  %v4950_v12 = vld [vmem:[%s7853_s9 + $0x18] sm:$0xff] }
0x1c1b   : > { %v4360_v18 = vmul.f32 %v4342_v24, %v7304_v59  ;;  %v4903_v0 = vadd.f32 %v4902_v29, %v4901_v22  ;;  %v4418_v49 = vrot.slane %v4417_v10, 4  ;;  %v4413_v24 = vrot.slane %v4412_v5, 2 }
0x1c1c   : > { %v3929_v30 = vrot.slane %v3928_v47, 2  ;;  %v4865_v34 = vmul.f32 %v4857_v19, %v7319_v35  ;;  %v4953_v35 = vld [vmem:[%s7853_s9 + $0x30] sm:$0xff] }
0x1c1d   : > { %v4368_v46 = vmul.f32 %v4360_v18, %v7327_v41  ;;  %v4843_v57 = vpop.xlane.xlu1 %4842  ;;  %4971 = vmatpush.msra.mxu1 %v4953_v35  ;;  %v4904_v22 = vrot.slane %v4903_v0, 2  ;;  %v4947_v35 = vld [vmem:[%s7853_s9] sm:$0xff] }
0x1c1e   : > { %v3930_v14 = vadd.f32 %v3929_v30, %v3928_v47  ;;  %v4859_v50 = vmul.f32 %v4843_v57, %v7304_v59  ;;  %v4880_v13 = vsel %vm4872_vm4, %v4865_v34, 0.0  ;;  %v4948_v34 = vld [vmem:[%s7853_s9 + $0x8] sm:$0xff] }
0x1c1f   : > { %v4389_v63 = vsel %vm4374_vm3, %v4368_v46, 0.0  ;;  %v4881_v33 = vrot.slane %v4880_v13, 4  ;;  %4972 = vmatpush.msra.mxu1 %v4952_v48 }
0x1c20   : > { %v3931_v58 = vrot.slane %v3930_v14, 1  ;;  %v4390_v16 = vrot.slane %v4389_v63, 4  ;;  %v4867_v20 = vmul.f32 %v4859_v50, %v7343_v25  ;;  %v3946_v25 = vsel %vm3446_vm2, %v3925_v36, %v3945_v23 }
0x1c21   : > { %v4849_v26 = vpop.xlane.xlu2 %4848  ;;  %v4882_v6 = vadd.f32 %v4881_v33, %v4880_v13  ;;  %4973 = vmatpush.msra.mxu1 %v4951_v51 }
0x1c22   : > { %v3932_v27 = vadd.f32 %v3931_v58, %v3930_v14  ;;  %v4391_v62 = vadd.f32 %v4390_v16, %v4389_v63  ;;  %v4894_v56 = vsel %vm4872_vm4, %v4867_v20, 0.0  ;;  %v4840_v1 = vpop.xlane.xlu0 %4839  ;;  %v4861_v55 = vmul.f32 %v4849_v26, %v7304_v59 }
0x1c23   : > { %v4895_v52 = vrot.slane %v4894_v56, 4  ;;  %v4858_v60 = vmul.f32 %v4840_v1, %v7304_v59  ;;  %v4883_v45 = vrot.slane %v4882_v6, 2  ;;  %4974 = vmatpush.msra.mxu1 %v4950_v12  ;;  %v4414_v58 = vadd.f32 %v4413_v24, %v4412_v5 }
0x1c24   : > { %v3947_v54 = vsel %vm3448_vm15, %v3932_v27, %v3946_v25  ;;  %v4392_v32 = vrot.slane %v4391_v62, 2  ;;  %v4869_v28 = vmul.f32 %v4861_v55, %v7358_v7  ;;  %v4419_v7 = vadd.f32 %v4418_v49, %v4417_v10 }
0x1c25   : > { %3949 = vst.msk [vmem:[#allocation6] sm:$0xff] %vm3876_vm0, %v3947_v54  ;;  %v4896_v61 = vadd.f32 %v4895_v52, %v4894_v56  ;;  %v4866_v17 = vmul.f32 %v4858_v60, %v7327_v41  ;;  %v4852_v8 = vpop.xlane.xlu1 %4851  ;;  %v4884_v40 = vadd.f32 %v4883_v45, %v4882_v6  ;;  %v4949_v41 = vld [vmem:[%s7853_s9 + $0x10] sm:$0xff]  ;;  %v4905_v26 = vadd.f32 %v4904_v22, %v4903_v0 }
0x1c26   : > { %v4393_v39 = vadd.f32 %v4392_v32, %v4391_v62  ;;  %v4862_v47 = vmul.f32 %v4852_v8, %v7304_v59  ;;  %v4908_v30 = vsel %vm4872_vm4, %v4869_v28, 0.0  ;;  %4975 = vmatpush.msra.mxu1 %v4949_v41  ;;  %v4420_v33 = vrot.slane %v4419_v7, 2 }
0x1c27   : > { %v4897_v31 = vrot.slane %v4896_v61, 2  ;;  %v4887_v18 = vsel %vm4872_vm4, %v4866_v17, 0.0  ;;  %v4909_v46 = vrot.slane %v4908_v30, 4  ;;  %v4885_v63 = vrot.slane %v4884_v40, 1 }
0x1c28   : > { %v4394_v19 = vrot.slane %v4393_v39, 1  ;;  %v4888_v44 = vrot.slane %v4887_v18, 4  ;;  %v4870_v43 = vmul.f32 %v4862_v47, %v7378_v9  ;;  %4976 = vmatpush.msra.mxu1 %v4948_v34  ;;  %v4415_v52 = vrot.slane %v4414_v58, 1 }
0x1c29   : > { %v4855_v57 = vpop.xlane.xlu2 %4854  ;;  %v4898_v23 = vadd.f32 %v4897_v31, %v4896_v61  ;;  %v4910_v42 = vadd.f32 %v4909_v46, %v4908_v30  ;;  %v4886_v1 = vadd.f32 %v4885_v63, %v4884_v40  ;;  %v4421_v51 = vadd.f32 %v4420_v33, %v4419_v7 }
0x1c2a   : > { %v4889_v14 = vadd.f32 %v4888_v44, %v4887_v18  ;;  %v4915_v53 = vsel %vm4872_vm4, %v4870_v43, 0.0  ;;  %v4357_v50 = vpop.xlane.xlu0 %4356  ;;  %v4863_v9 = vmul.f32 %v4855_v57, %v7304_v59  ;;  %v4395_v36 = vadd.f32 %v4394_v19, %v4393_v39  ;;  %4977 = vmatpush.msra.mxu1 %v4947_v35 }
0x1c2b   : > { %v4916_v13 = vrot.slane %v4915_v53, 4  ;;  %v4365_v16 = vmul.f32 %v4357_v50, %v7304_v59  ;;  %v4899_v27 = vrot.slane %v4898_v23, 1  ;;  %v4911_v62 = vrot.slane %v4910_v42, 2 }
0x1c2c   : > { %v4890_v29 = vrot.slane %v4889_v14, 2  ;;  %v4871_v20 = vmul.f32 %v4863_v9, %v7386_v3  ;;  %v4440_v5 = vsel %vm3438_vm11, %v4395_v36, %v7729_v38  ;;  %v4906_v54 = vrot.slane %v4905_v26, 1  ;;  %v5303_v36 = vld [vmem:[%s7854_s10] ss:$0 sm:$0xff] }
0x1c2d   : > { %v4917_v48 = vadd.f32 %v4916_v13, %v4915_v53  ;;  %v4373_v56 = vmul.f32 %v4365_v16, %v7386_v3  ;;  %v4912_v60 = vadd.f32 %v4911_v62, %v4910_v42  ;;  %v4441_v55 = vsel %vm3440_vm13, %v4402_v2, %v4440_v5 }
0x1c2e   : > { %v4891_v10 = vadd.f32 %v4890_v29, %v4889_v14  ;;  %v4922_v59 = vsel %vm4872_vm4, %v4871_v20, 0.0  ;;  %v4900_v45 = vadd.f32 %v4899_v27, %v4898_v23  ;;  %v4937_v38 = vsel %vm3436_vm10, %v4886_v1, %v7759_v37 }
0x1c2f   : > { %v4918_v25 = vrot.slane %v4917_v48, 2  ;;  %v4424_v11 = vsel %vm4374_vm3, %v4373_v56, 0.0  ;;  %v4923_v32 = vrot.slane %v4922_v59, 4  ;;  %v4913_v61 = vrot.slane %v4912_v60, 1 }
0x1c30   : > { %v4892_v6 = vrot.slane %v4891_v10, 1  ;;  %v4425_v0 = vrot.slane %v4424_v11, 4  ;;  %v4409_v12 = vadd.f32 %v4408_v4, %v7713_v15  ;;  %v4422_v40 = vrot.slane %v4421_v51, 1 }
0x1c31   : > { %v4919_v49 = vadd.f32 %v4918_v25, %v4917_v48  ;;  %v4924_v8 = vadd.f32 %v4923_v32, %v4922_v59  ;;  %v4914_v28 = vadd.f32 %v4913_v61, %v4912_v60  ;;  %v4907_v18 = vadd.f32 %v4906_v54, %v4905_v26 }
0x1c32   : > { %v4893_v3 = vadd.f32 %v4892_v6, %v4891_v10  ;;  %v4426_v17 = vadd.f32 %v4425_v0, %v4424_v11  ;;  %v4442_v41 = vsel %vm3442_vm14, %v4409_v12, %v4441_v55  ;;  %v4416_v44 = vadd.f32 %v4415_v52, %v4414_v58 }
0x1c33   : > { %v4925_v31 = vrot.slane %v4924_v8, 2  ;;  %v4920_v19 = vrot.slane %v4919_v49, 1  ;;  %v4423_v22 = vadd.f32 %v4422_v40, %v4421_v51 }
0x1c34   : > { %v4938_v39 = vsel %vm3438_vm11, %v4893_v3, %v4937_v38  ;;  %v4427_v24 = vrot.slane %v4426_v17, 2  ;;  %v4443_v4 = vsel %vm3444_vm1, %v4416_v44, %v4442_v41 }
0x1c35   : > { %v4939_v47 = vsel %vm3440_vm13, %v4900_v45, %v4938_v39  ;;  %v4926_v43 = vadd.f32 %v4925_v31, %v4924_v8  ;;  %v4921_v46 = vadd.f32 %v4920_v19, %v4919_v49  ;;  %v4444_v23 = vsel %vm3446_vm2, %v4423_v22, %v4443_v4 }
0x1c36   : > { %v4428_v37 = vadd.f32 %v4427_v24, %v4426_v17  ;;  %v4940_v30 = vsel %vm3442_vm14, %v4907_v18, %v4939_v47 }
0x1c37   : > { %v4941_v21 = vsel %vm3444_vm1, %v4914_v28, %v4940_v30  ;;  %v4927_v7 = vrot.slane %v4926_v43, 1 }
0x1c38   : > { %v4429_v15 = vrot.slane %v4428_v37, 1  ;;  %v4942_v14 = vsel %vm3446_vm2, %v4921_v46, %v4941_v21 }
0x1c39   : > { %v4928_v34 = vadd.f32 %v4927_v7, %v4926_v43 }
0x1c3a   : > { %v4430_v57 = vadd.f32 %v4429_v15, %v4428_v37 }
0x1c3b   : > { %v4943_v50 = vsel %vm3448_vm15, %v4928_v34, %v4942_v14 }
0x1c3c   : > { %v4445_v53 = vsel %vm3448_vm15, %v4430_v57, %v4444_v23 }
0x1c3d   : > { %4447 = vst.msk [vmem:[#allocation6] sm:$0xff] %vm4374_vm3, %v4445_v53 }
0x1c3e   : > { %4945 = vst.msk [vmem:[#allocation6] sm:$0xff] %vm4872_vm4, %v4943_v50 }
0x1c45   : > { %v4946_v9 = vld [vmem:[#allocation6] sm:$0xff] }
0x1c46   : > { %5252 = vmatmul.msk.f32.vlgmr.msra.gmra.mxu1 %vm668_vm12, %v4946_v9 }
0x1cc3   : > { %v4979_v63 = vpop.f32.mrf.mxu1 }
0x1cc4   : > { %v4980_v13 = vadd.f32 %v5303_v36, %v4979_v63 }
0x1cc6   : > { %4982 = vst.msk [vmem:[%s447_s29] sm:$0xff] %vm668_vm12, %v4980_v13 }
0x1cc7   : > { %5621 = shalt.err (!%p5618_p5)
}
0x1cc8   : > { %5257 = dma.vmem_to_hbm [thread:$0]  (%p5763_p6), %s4997_s12, 128, %s4999_s0, %s4984_s1  }
0x1cc9 PF: > { %s5010_s30 = sand.u32 1, %s5644_s17   ;;  %p5260_p7 = pnand %p5066_p9, %p5767_p8 }
0x1cca   : > { %s5011_s24 = scalar_lea.sflag [#allocation9], %s5010_s30 }
0x1ccb   : > { %p5261_p10 = pneg %p5260_p7 }
0x1ccd   : > { %5639 = dma.done.wait (%p5261_p10), %s5011_s24, 128  }
0x1cce   : > { %5641 = vsyncadd (%p5261_p10), %s5011_s24, 4294967168  ;;  %p21_p11 = scmp.ge.s32.totalorder %s5748_s23, 4   ;;  %s7885_s17 = smov %s5648_s18 }
0x1ccf   : > { %s7886_s18 = smov %s5652_s19  ;;  %s7887_s19 = smov %s5761_s26 }
0x1cd0   : > { %s7888_s20 = smov %s5748_s23  ;;  %23 = sbr.rel (!%p21_p11) target bundleno = 7 (0x7), region = 163 }
0x1cd5   :  { %5017 = vsyncpa [#allocation9], 1 }
0x1cd6   :  { %5019 = vsyncpa [#allocation9 + $0x1], 1 }

</bundles_post_ra>
